<compile_context>
chip_gen: v6e
topology: v6e:2x2x1
jax: 0.10.0
libtpu: 0.0.40
codegen_flags: <defaults>
</compile_context>

<pallas_src>
import functools

import jax
import jax.numpy as jnp
from jax.experimental import pallas as pl
from jax.experimental.pallas import tpu as pltpu


# --------------------------------------------------------------------------
# Tile-size helpers
# --------------------------------------------------------------------------

@functools.lru_cache(maxsize=None)
def _matmul_row_tile():
    """Per-generation M tile: larger on 128 MiB-VMEM chips (v5e/v6e), smaller
    on v7x (64 MiB).  Falls back to the conservative value off-TPU."""
    try:
        vmem = pltpu.get_tpu_info().vmem_capacity_bytes
    except Exception:
        vmem = 64 * 1024 * 1024
    return 1024 if vmem >= 96 * 1024 * 1024 else 512


def _pick_k_tile(k_total, max_tile=512):
    """Largest K tile <= max_tile that divides K and is lane-aligned (x128);
    otherwise a single K block (K <= 4608 in ResNet18, still cheap)."""
    if k_total <= max_tile:
        return k_total
    t = (max_tile // 128) * 128
    while t >= 128:
        if k_total % t == 0:
            return t
        t -= 128
    return k_total


_ELTWISE_ROW_TILE = 1024


# --------------------------------------------------------------------------
# Pallas kernels
# --------------------------------------------------------------------------

def _conv_matmul_kernel(a_ref, b_ref, o_ref, sum_ref, ssq_ref, acc_ref, *,
                        m_valid):
    """bf16 x bf16 -> f32-accumulated matmul over an (M, N, K) grid.

    At the last K step: writes the bf16 output tile plus per-column (row-
    masked) sum / sum-of-squares partials for the fused BatchNorm stats.
    """
    # All grid queries at top level (never inside pl.when bodies).
    m_idx = pl.program_id(0)
    k = pl.program_id(2)
    k_last = pl.num_programs(2) - 1
    tm = a_ref.shape[0]
    row_base = m_idx * tm

    @pl.when(k == 0)
    def _init():
        acc_ref[...] = jnp.zeros_like(acc_ref)

    acc_ref[...] += jnp.dot(a_ref[...], b_ref[...],
                            preferred_element_type=jnp.float32)

    @pl.when(k == k_last)
    def _finalize():
        y = acc_ref[...]
        o_ref[...] = y.astype(o_ref.dtype)
        row = jax.lax.broadcasted_iota(jnp.int32, y.shape, 0) + row_base
        ym = jnp.where(row < m_valid, y, 0.0)        # mask ragged last M tile
        sum_ref[...] = jnp.sum(ym, axis=0, keepdims=True)[None]
        ssq_ref[...] = jnp.sum(ym * ym, axis=0, keepdims=True)[None]


def _bn_act_kernel(x_ref, scale_ref, shift_ref, o_ref, *, relu):
    y = x_ref[...].astype(jnp.float32) * scale_ref[...] + shift_ref[...]
    if relu:
        y = jnp.maximum(y, 0.0)
    o_ref[...] = y.astype(o_ref.dtype)


def _bn_act_res_kernel(x_ref, scale_ref, shift_ref, r_ref, o_ref):
    y = (x_ref[...].astype(jnp.float32) * scale_ref[...] + shift_ref[...]
         + r_ref[...].astype(jnp.float32))
    o_ref[...] = jnp.maximum(y, 0.0).astype(o_ref.dtype)


def _maxpool_kernel(p_ref, o_ref, acc_ref):
    t = pl.program_id(1)
    t_last = pl.num_programs(1) - 1
    cur = p_ref[0]

    @pl.when(t == 0)
    def _init():
        acc_ref[...] = cur

    @pl.when(t != 0)
    def _acc():
        acc_ref[...] = jnp.maximum(acc_ref[...], cur)

    @pl.when(t == t_last)
    def _finalize():
        o_ref[...] = acc_ref[...]


def _avgpool_kernel(x_ref, o_ref):
    o_ref[...] = jnp.mean(x_ref[...].astype(jnp.float32), axis=1)


def _fc_kernel(x_ref, w_ref, b_ref, o_ref):
    o_ref[...] = (jnp.dot(x_ref[...], w_ref[...],
                          preferred_element_type=jnp.float32) + b_ref[...])


# --------------------------------------------------------------------------
# Pallas call wrappers
# --------------------------------------------------------------------------

def conv_matmul_with_stats(a, b):
    """a: (M, K) bf16 im2col patches; b: (K, OC) bf16 weights.

    Returns (out bf16 (M, OC), per-channel sum f32 (OC,), sumsq f32 (OC,)).
    """
    M, K = a.shape
    K2, OC = b.shape
    assert K == K2
    tm_max = _matmul_row_tile()
    tm = M if M <= tm_max else tm_max
    tn = OC if OC <= 256 else 256
    tk = _pick_k_tile(K)
    m_tiles = pl.cdiv(M, tm)
    n_tiles = pl.cdiv(OC, tn)
    k_tiles = pl.cdiv(K, tk)

    kernel = functools.partial(_conv_matmul_kernel, m_valid=M)
    out, psum, pssq = pl.pallas_call(
        kernel,
        out_shape=[
            jax.ShapeDtypeStruct((M, OC), jnp.bfloat16),
            jax.ShapeDtypeStruct((m_tiles, 1, OC), jnp.float32),
            jax.ShapeDtypeStruct((m_tiles, 1, OC), jnp.float32),
        ],
        grid_spec=pltpu.PrefetchScalarGridSpec(
            num_scalar_prefetch=0,
            grid=(m_tiles, n_tiles, k_tiles),
            in_specs=[
                pl.BlockSpec((tm, tk), lambda i, j, k: (i, k)),
                pl.BlockSpec((tk, tn), lambda i, j, k: (k, j)),
            ],
            out_specs=[
                pl.BlockSpec((tm, tn), lambda i, j, k: (i, j)),
                pl.BlockSpec((1, 1, tn), lambda i, j, k: (i, 0, j)),
                pl.BlockSpec((1, 1, tn), lambda i, j, k: (i, 0, j)),
            ],
            scratch_shapes=[pltpu.VMEM((tm, tn), jnp.float32)],
        ),
        compiler_params=pltpu.CompilerParams(
            dimension_semantics=("parallel", "parallel", "arbitrary")),
    )(a, b)
    col_sum = jnp.sum(psum[:, 0, :], axis=0)
    col_ssq = jnp.sum(pssq[:, 0, :], axis=0)
    return out, col_sum, col_ssq


def bn_apply(x2, scale, shift, *, relu, residual=None):
    """Tiled y = x * scale + shift (+ residual) (+ ReLU); bf16 in/out."""
    rows, C = x2.shape
    tr = rows if rows <= _ELTWISE_ROW_TILE else _ELTWISE_ROW_TILE
    row_spec = pl.BlockSpec((tr, C), lambda i: (i, 0))
    vec_spec = pl.BlockSpec((1, C), lambda i: (0, 0))
    scale2 = scale.reshape(1, C).astype(jnp.float32)
    shift2 = shift.reshape(1, C).astype(jnp.float32)
    if residual is None:
        kernel = functools.partial(_bn_act_kernel, relu=relu)
        in_specs = [row_spec, vec_spec, vec_spec]
        args = (x2, scale2, shift2)
    else:
        kernel = _bn_act_res_kernel
        in_specs = [row_spec, vec_spec, vec_spec, row_spec]
        args = (x2, scale2, shift2, residual.astype(jnp.bfloat16))
    return pl.pallas_call(
        kernel,
        out_shape=jax.ShapeDtypeStruct((rows, C), jnp.bfloat16),
        grid_spec=pltpu.PrefetchScalarGridSpec(
            num_scalar_prefetch=0,
            grid=(pl.cdiv(rows, tr),),
            in_specs=in_specs,
            out_specs=row_spec),
        compiler_params=pltpu.CompilerParams(
            dimension_semantics=("parallel",)),
    )(*args)


def _extract_windows(xp, kh, kw, stride, N, OH, OW, C):
    cols = []
    for i in range(kh):
        for j in range(kw):
            cols.append(jax.lax.slice(
                xp,
                (0, i, j, 0),
                (N, i + stride * (OH - 1) + 1, j + stride * (OW - 1) + 1, C),
                (1, stride, stride, 1)))
    return cols  # list of (N, OH, OW, C)


def conv_bn(x, w, gamma, beta, *, stride, pad, relu, residual=None, eps=1e-5):
    """Fused Conv2d(bias=False) + BatchNorm(batch stats) [+ residual] [+ ReLU].

    x: (N, H, W, C) NHWC bf16.  w: (OC, IC, KH, KW) PyTorch layout.
    """
    N, H, W, C = x.shape
    OC, IC, KH, KW = w.shape
    assert IC == C
    OH = (H + 2 * pad - KH) // stride + 1
    OW = (W + 2 * pad - KW) // stride + 1

    # im2col in bf16 (patch extraction stays in XLA glue).
    # TODO(synk): fold the KHxKW tap loop into the matmul grid with windowed /
    # strided DMA so the blown-up im2col tensor is never materialized in HBM.
    xp = jnp.pad(x, ((0, 0), (pad, pad), (pad, pad), (0, 0)))
    cols = _extract_windows(xp, KH, KW, stride, N, OH, OW, C)
    patches = jnp.stack(cols, axis=3)                     # (N, OH, OW, KK, C)
    a = patches.reshape(N * OH * OW, KH * KW * C)
    wmat = jnp.transpose(w, (2, 3, 1, 0)).reshape(KH * KW * IC, OC)
    wmat = wmat.astype(jnp.bfloat16)

    y, col_sum, col_ssq = conv_matmul_with_stats(a, wmat)

    # Per-channel batch statistics -> affine scale/shift (tiny per-channel glue).
    count = float(N * OH * OW)
    mean = col_sum / count
    var = jnp.maximum(col_ssq / count - mean * mean, 0.0)
    scale = gamma * jax.lax.rsqrt(var + eps)
    shift = beta - mean * scale

    res2 = None if residual is None else residual.reshape(N * OH * OW, OC)
    out = bn_apply(y, scale, shift, relu=relu, residual=res2)
    return out.reshape(N, OH, OW, OC)


def maxpool2d(x, k=3, stride=2, pad=1):
    N, H, W, C = x.shape
    xp = jnp.pad(x, ((0, 0), (pad, pad), (pad, pad), (0, 0)),
                 constant_values=-jnp.inf)
    OH = (H + 2 * pad - k) // stride + 1
    OW = (W + 2 * pad - k) // stride + 1
    cols = _extract_windows(xp, k, k, stride, N, OH, OW, C)
    rows = N * OH * OW
    # TODO(synk): read the padded activation with windowed DMA instead of
    # materializing the k*k tap stack in HBM.
    taps = jnp.stack(cols, axis=0).reshape(k * k, rows, C)
    tr = rows if rows <= _ELTWISE_ROW_TILE else _ELTWISE_ROW_TILE
    out = pl.pallas_call(
        _maxpool_kernel,
        out_shape=jax.ShapeDtypeStruct((rows, C), x.dtype),
        grid_spec=pltpu.PrefetchScalarGridSpec(
            num_scalar_prefetch=0,
            grid=(pl.cdiv(rows, tr), k * k),
            in_specs=[pl.BlockSpec((1, tr, C), lambda r, t: (t, r, 0))],
            out_specs=pl.BlockSpec((tr, C), lambda r, t: (r, 0)),
            scratch_shapes=[pltpu.VMEM((tr, C), x.dtype)]),
        compiler_params=pltpu.CompilerParams(
            dimension_semantics=("parallel", "arbitrary")),
    )(taps)
    return out.reshape(N, OH, OW, C)


def global_avgpool(x):
    N, H, W, C = x.shape
    x3 = x.reshape(N, H * W, C)
    nb = N if N <= 8 else 8
    return pl.pallas_call(
        _avgpool_kernel,
        out_shape=jax.ShapeDtypeStruct((N, C), jnp.float32),
        grid_spec=pltpu.PrefetchScalarGridSpec(
            num_scalar_prefetch=0,
            grid=(pl.cdiv(N, nb),),
            in_specs=[pl.BlockSpec((nb, H * W, C), lambda i: (i, 0, 0))],
            out_specs=pl.BlockSpec((nb, C), lambda i: (i, 0))),
        compiler_params=pltpu.CompilerParams(
            dimension_semantics=("parallel",)),
    )(x3)


def linear(x, w, b):
    N, D = x.shape
    num_classes = w.shape[0]
    wT = jnp.transpose(w).astype(jnp.float32)
    b2 = b.reshape(1, num_classes).astype(jnp.float32)
    tr = N if N <= 256 else 256
    return pl.pallas_call(
        _fc_kernel,
        out_shape=jax.ShapeDtypeStruct((N, num_classes), jnp.float32),
        grid_spec=pltpu.PrefetchScalarGridSpec(
            num_scalar_prefetch=0,
            grid=(pl.cdiv(N, tr),),
            in_specs=[pl.BlockSpec((tr, D), lambda i: (i, 0)),
                      pl.BlockSpec((D, num_classes), lambda i: (0, 0)),
                      pl.BlockSpec((1, num_classes), lambda i: (0, 0))],
            out_specs=pl.BlockSpec((tr, num_classes), lambda i: (i, 0))),
        compiler_params=pltpu.CompilerParams(
            dimension_semantics=("parallel",)),
    )(x.astype(jnp.float32), wT, b2)


# --------------------------------------------------------------------------
# ResNet18 structure
# --------------------------------------------------------------------------

def basic_block(x, p, stride):
    out = conv_bn(x, p['conv1_w'], p['bn1_g'], p['bn1_b'],
                  stride=stride, pad=1, relu=True)
    if 'down_w' in p:
        identity = conv_bn(x, p['down_w'], p['down_bn_g'], p['down_bn_b'],
                           stride=stride, pad=0, relu=False)
    else:
        identity = x
    # conv2 + bn2 + residual add + relu (add/relu fused into the BN kernel)
    out = conv_bn(out, p['conv2_w'], p['bn2_g'], p['bn2_b'],
                  stride=1, pad=1, relu=True, residual=identity)
    return out


def resnet18_forward(params, x_nchw):
    x = jnp.transpose(x_nchw, (0, 2, 3, 1)).astype(jnp.bfloat16)  # NCHW -> NHWC
    x = conv_bn(x, params['conv1_w'], params['bn1_g'], params['bn1_b'],
                stride=2, pad=3, relu=True)
    x = maxpool2d(x, k=3, stride=2, pad=1)

    layer_cfg = [('layer1', 1), ('layer2', 2), ('layer3', 2), ('layer4', 2)]
    for name, stride in layer_cfg:
        b0, b1 = params[name]
        x = basic_block(x, b0, stride)
        x = basic_block(x, b1, 1)

    # AdaptiveAvgPool2d((1,1)) + flatten
    feat = global_avgpool(x)

    # Linear(512, num_classes)
    return linear(feat, params['fc_w'], params['fc_b'])


# --------------------------------------------------------------------------
# Deterministic parameter initialization (shapes from the PyTorch __init__)
# --------------------------------------------------------------------------

def init_params(key, num_classes=10):
    def conv_w(k, oc, ic, kh, kw):
        # MyConv2d has unspecified init; use small deterministic normals.
        return jax.random.normal(k, (oc, ic, kh, kw), jnp.float32) * 0.05

    keys = jax.random.split(key, 16)
    ki = iter(range(16))

    params = {
        'conv1_w': conv_w(keys[next(ki)], 64, 3, 7, 7),
        'bn1_g': jnp.ones((64,), jnp.float32),
        'bn1_b': jnp.zeros((64,), jnp.float32),
    }

    def make_block(k, in_c, out_c, stride):
        k1, k2, k3 = jax.random.split(k, 3)
        p = {
            'conv1_w': conv_w(k1, out_c, in_c, 3, 3),
            'bn1_g': jnp.ones((out_c,), jnp.float32),
            'bn1_b': jnp.zeros((out_c,), jnp.float32),
            'conv2_w': conv_w(k2, out_c, out_c, 3, 3),
            'bn2_g': jnp.ones((out_c,), jnp.float32),
            'bn2_b': jnp.zeros((out_c,), jnp.float32),
        }
        if stride != 1 or in_c != out_c:
            p['down_w'] = conv_w(k3, out_c, in_c, 1, 1)
            p['down_bn_g'] = jnp.ones((out_c,), jnp.float32)
            p['down_bn_b'] = jnp.zeros((out_c,), jnp.float32)
        return p

    cfg = [('layer1', 64, 64, 1),
           ('layer2', 64, 128, 2),
           ('layer3', 128, 256, 2),
           ('layer4', 256, 512, 2)]
    for name, in_c, out_c, stride in cfg:
        b0 = make_block(keys[next(ki)], in_c, out_c, stride)
        b1 = make_block(keys[next(ki)], out_c, out_c, 1)
        params[name] = [b0, b1]

    params['fc_w'] = jax.random.normal(keys[next(ki)], (num_classes, 512),
                                       jnp.float32) * 0.01
    params['fc_b'] = jnp.zeros((num_classes,), jnp.float32)
    return params


# --------------------------------------------------------------------------

if __name__ == "__main__":
    key = jax.random.PRNGKey(0)
    pkey, xkey = jax.random.split(key)
    params = init_params(pkey, num_classes=10)

    # Small NCHW input consistent with conv1(in_channels=3).
    x = jax.random.normal(xkey, (2, 3, 16, 16), jnp.float32)

    fwd = jax.jit(resnet18_forward)
    logits = jax.block_until_ready(fwd(params, x))
    assert logits.shape == (2, 10)
    assert bool(jnp.all(jnp.isfinite(logits)))
    print("KERNEL_OK")
</pallas_src>

<mosaic_0001>
module attributes {stable_mosaic.version = 11 : i64} {
  func.func @_bn_act_kernel(%arg0: i32, %arg1: memref<128x64xbf16, #tpu.memory_space<vmem>>, %arg2: memref<1x64xf32, #tpu.memory_space<vmem>>, %arg3: memref<1x64xf32, #tpu.memory_space<vmem>>, %arg4: memref<128x64xbf16, #tpu.memory_space<vmem>>) attributes {dimension_semantics = [#tpu.dimension_semantics<parallel>], iteration_bounds = array<i64: 1>, scalar_prefetch = 0 : i64, scratch_operands = 0 : i64, tpu.core_type = #tpu.core_type<tc>, window_params = [{transform_indices = @transform_0, window_bounds = array<i64: 128, 64>}, {pipeline_mode = #tpu.pipeline_mode<synchronous>, transform_indices = @transform_1, window_bounds = array<i64: 1, 64>}, {pipeline_mode = #tpu.pipeline_mode<synchronous>, transform_indices = @transform_2, window_bounds = array<i64: 1, 64>}, {transform_indices = @transform_3, window_bounds = array<i64: 128, 64>}]} {
    %c0 = arith.constant 0 : index
    %c0_0 = arith.constant 0 : index
    %0 = vector.load %arg1[%c0, %c0_0] : memref<128x64xbf16, #tpu.memory_space<vmem>>, vector<128x64xbf16>
    %1 = arith.extf %0 : vector<128x64xbf16> to vector<128x64xf32>
    %c0_1 = arith.constant 0 : index
    %c0_2 = arith.constant 0 : index
    %2 = vector.load %arg2[%c0_1, %c0_2] : memref<1x64xf32, #tpu.memory_space<vmem>>, vector<1x64xf32>
    %3 = vector.broadcast %2 : vector<1x64xf32> to vector<128x64xf32>
    %4 = arith.mulf %1, %3 : vector<128x64xf32>
    %c0_3 = arith.constant 0 : index
    %c0_4 = arith.constant 0 : index
    %5 = vector.load %arg3[%c0_3, %c0_4] : memref<1x64xf32, #tpu.memory_space<vmem>>, vector<1x64xf32>
    %6 = vector.broadcast %5 : vector<1x64xf32> to vector<128x64xf32>
    %7 = arith.addf %4, %6 : vector<128x64xf32>
    %cst = arith.constant 0.000000e+00 : f32
    %8 = vector.broadcast %cst : f32 to vector<128x64xf32>
    %9 = arith.maximumf %7, %8 : vector<128x64xf32>
    %10 = arith.truncf %9 : vector<128x64xf32> to vector<128x64xbf16>
    %c0_5 = arith.constant 0 : index
    %c0_6 = arith.constant 0 : index
    %11 = vector.load %arg4[%c0_5, %c0_6] : memref<128x64xbf16, #tpu.memory_space<vmem>>, vector<128x64xbf16>
    tpu.vector_store %arg4[%c0_5, %c0_6], %10 {strides = array<i32>} : memref<128x64xbf16, #tpu.memory_space<vmem>>, vector<128x64xbf16>,
    return
  }
  func.func @transform_0(%arg0: i32) -> (i32, i32) {
    %c0_i32 = arith.constant 0 : i32
    %c0_i32_0 = arith.constant 0 : i32
    return %arg0, %c0_i32 : i32, i32
  }
  func.func @transform_1(%arg0: i32) -> (i32, i32) {
    %c0_i32 = arith.constant 0 : i32
    %c0_i32_0 = arith.constant 0 : i32
    %c0_i32_1 = arith.constant 0 : i32
    return %c0_i32, %c0_i32_0 : i32, i32
  }
  func.func @transform_2(%arg0: i32) -> (i32, i32) {
    %c0_i32 = arith.constant 0 : i32
    %c0_i32_0 = arith.constant 0 : i32
    %c0_i32_1 = arith.constant 0 : i32
    return %c0_i32, %c0_i32_0 : i32, i32
  }
  func.func @transform_3(%arg0: i32) -> (i32, i32) {
    %c0_i32 = arith.constant 0 : i32
    %c0_i32_0 = arith.constant 0 : i32
    return %arg0, %c0_i32 : i32, i32
  }
}

module attributes {stable_mosaic.version = 11 : i64} {
  func.func @_conv_matmul_kernel(%arg0: i32, %arg1: i32, %arg2: i32, %arg3: memref<128x147xbf16, #tpu.memory_space<vmem>>, %arg4: memref<147x64xbf16, #tpu.memory_space<vmem>>, %arg5: memref<128x64xbf16, #tpu.memory_space<vmem>>, %arg6: memref<1x1x64xf32, #tpu.memory_space<vmem>>, %arg7: memref<1x1x64xf32, #tpu.memory_space<vmem>>, %arg8: memref<128x64xf32, #tpu.memory_space<vmem>>) attributes {dimension_semantics = [#tpu.dimension_semantics<parallel>, #tpu.dimension_semantics<parallel>, #tpu.dimension_semantics<arbitrary>], iteration_bounds = array<i64: 1, 1, 1>, scalar_prefetch = 0 : i64, scratch_operands = 1 : i64, tpu.core_type = #tpu.core_type<tc>, window_params = [{transform_indices = @transform_0, window_bounds = array<i64: 128, 147>}, {transform_indices = @transform_1, window_bounds = array<i64: 147, 64>}, {transform_indices = @transform_2, window_bounds = array<i64: 128, 64>}, {transform_indices = @transform_3, window_bounds = array<i64: 1, 1, 64>}, {transform_indices = @transform_4, window_bounds = array<i64: 1, 1, 64>}]} {
    %c128_i32 = arith.constant 128 : i32
    %0 = arith.muli %arg0, %c128_i32 : i32
    %c0_i32 = arith.constant 0 : i32
    %1 = arith.cmpi eq, %arg2, %c0_i32 : i32
    %2 = arith.extui %1 : i1 to i32
    %c0_i32_0 = arith.constant 0 : i32
    %3 = arith.cmpi ne, %2, %c0_i32_0 : i32
    scf.if %3 {
      %cst_10 = arith.constant 0.000000e+00 : f32
      %13 = vector.broadcast %cst_10 : f32 to vector<128x64xf32>
      %c0_11 = arith.constant 0 : index
      %c0_12 = arith.constant 0 : index
      %14 = vector.load %arg8[%c0_11, %c0_12] : memref<128x64xf32, #tpu.memory_space<vmem>>, vector<128x64xf32>
      tpu.vector_store %arg8[%c0_11, %c0_12], %13 {strides = array<i32>} : memref<128x64xf32, #tpu.memory_space<vmem>>, vector<128x64xf32>,
    } else {
    }
    %c0 = arith.constant 0 : index
    %c0_1 = arith.constant 0 : index
    %4 = vector.load %arg8[%c0, %c0_1] : memref<128x64xf32, #tpu.memory_space<vmem>>, vector<128x64xf32>
    %c0_2 = arith.constant 0 : index
    %c0_3 = arith.constant 0 : index
    %5 = vector.load %arg3[%c0_2, %c0_3] : memref<128x147xbf16, #tpu.memory_space<vmem>>, vector<128x147xbf16>
    %c0_4 = arith.constant 0 : index
    %c0_5 = arith.constant 0 : index
    %6 = vector.load %arg4[%c0_4, %c0_5] : memref<147x64xbf16, #tpu.memory_space<vmem>>, vector<147x64xbf16>
    %cst = arith.constant dense<0.000000e+00> : vector<128x64xf32>
    %7 = tpu.matmul %5, %6, %cst {dimension_numbers = #tpu.dot_dimension_numbers<[1], [0], [0], [1], [0, 0, 1, 1], [], []>} : vector<128x147xbf16>, vector<147x64xbf16>, vector<128x64xf32> -> vector<128x64xf32>
    %8 = arith.addf %4, %7 : vector<128x64xf32>
    %c0_6 = arith.constant 0 : index
    %c0_7 = arith.constant 0 : index
    %9 = vector.load %arg8[%c0_6, %c0_7] : memref<128x64xf32, #tpu.memory_space<vmem>>, vector<128x64xf32>
    tpu.vector_store %arg8[%c0_6, %c0_7], %8 {strides = array<i32>} : memref<128x64xf32, #tpu.memory_space<vmem>>, vector<128x64xf32>,
    %c0_i32_8 = arith.constant 0 : i32
    %10 = arith.cmpi eq, %arg2, %c0_i32_8 : i32
    %11 = arith.extui %10 : i1 to i32
    %c0_i32_9 = arith.constant 0 : i32
    %12 = arith.cmpi ne, %11, %c0_i32_9 : i32
    scf.if %12 {
      %c0_10 = arith.constant 0 : index
      %c0_11 = arith.constant 0 : index
      %13 = vector.load %arg8[%c0_10, %c0_11] : memref<128x64xf32, #tpu.memory_space<vmem>>, vector<128x64xf32>
      %14 = arith.truncf %13 : vector<128x64xf32> to vector<128x64xbf16>
      %c0_12 = arith.constant 0 : index
      %c0_13 = arith.constant 0 : index
      %15 = vector.load %arg5[%c0_12, %c0_13] : memref<128x64xbf16, #tpu.memory_space<vmem>>, vector<128x64xbf16>
      tpu.vector_store %arg5[%c0_12, %c0_13], %14 {strides = array<i32>} : memref<128x64xbf16, #tpu.memory_space<vmem>>, vector<128x64xbf16>,
      %16 = tpu.iota {dimensions = array<i32: 0>} : vector<128x64xi32>
      %17 = vector.broadcast %0 : i32 to vector<128x64xi32>
      %18 = arith.addi %16, %17 : vector<128x64xi32>
      %c128_i32_14 = arith.constant 128 : i32
      %19 = vector.broadcast %c128_i32_14 : i32 to vector<128x64xi32>
      %20 = arith.cmpi slt, %18, %19 : vector<128x64xi32>
      %cst_15 = arith.constant 0.000000e+00 : f32
      %21 = vector.broadcast %cst_15 : f32 to vector<128x64xf32>
      %22 = arith.select %20, %13, %21 : vector<128x64xi1>, vector<128x64xf32>
      %cst_16 = arith.constant dense<0.000000e+00> : vector<64xf32>
      %23 = vector.multi_reduction <add>, %22, %cst_16 [0] : vector<128x64xf32> to vector<64xf32>
      %24 = vector.shape_cast %23 : vector<64xf32> to vector<1x64xf32>
      %25 = vector.shape_cast %24 : vector<1x64xf32> to vector<1x1x64xf32>
      %c0_17 = arith.constant 0 : index
      %c0_18 = arith.constant 0 : index
      %c0_19 = arith.constant 0 : index
      %26 = vector.load %arg6[%c0_17, %c0_18, %c0_19] : memref<1x1x64xf32, #tpu.memory_space<vmem>>, vector<1x1x64xf32>
      tpu.vector_store %arg6[%c0_17, %c0_18, %c0_19], %25 {strides = array<i32>} : memref<1x1x64xf32, #tpu.memory_space<vmem>>, vector<1x1x64xf32>,
      %27 = arith.mulf %22, %22 : vector<128x64xf32>
      %cst_20 = arith.constant dense<0.000000e+00> : vector<64xf32>
      %28 = vector.multi_reduction <add>, %27, %cst_20 [0] : vector<128x64xf32> to vector<64xf32>
      %29 = vector.shape_cast %28 : vector<64xf32> to vector<1x64xf32>
      %30 = vector.shape_cast %29 : vector<1x64xf32> to vector<1x1x64xf32>
      %c0_21 = arith.constant 0 : index
      %c0_22 = arith.constant 0 : index
      %c0_23 = arith.constant 0 : index
      %31 = vector.load %arg7[%c0_21, %c0_22, %c0_23] : memref<1x1x64xf32, #tpu.memory_space<vmem>>, vector<1x1x64xf32>
      tpu.vector_store %arg7[%c0_21, %c0_22, %c0_23], %30 {strides = array<i32>} : memref<1x1x64xf32, #tpu.memory_space<vmem>>, vector<1x1x64xf32>,
    } else {
    }
    return
  }
  func.func @transform_0(%arg0: i32, %arg1: i32, %arg2: i32) -> (i32, i32) {
    %c0_i32 = arith.constant 0 : i32
    return %arg0, %arg2 : i32, i32
  }
  func.func @transform_1(%arg0: i32, %arg1: i32, %arg2: i32) -> (i32, i32) {
    %c0_i32 = arith.constant 0 : i32
    return %arg2, %arg1 : i32, i32
  }
  func.func @transform_2(%arg0: i32, %arg1: i32, %arg2: i32) -> (i32, i32) {
    %c0_i32 = arith.constant 0 : i32
    return %arg0, %arg1 : i32, i32
  }
  func.func @transform_3(%arg0: i32, %arg1: i32, %arg2: i32) -> (i32, i32, i32) {
    %c0_i32 = arith.constant 0 : i32
    %c0_i32_0 = arith.constant 0 : i32
    return %arg0, %c0_i32, %arg1 : i32, i32, i32
  }
  func.func @transform_4(%arg0: i32, %arg1: i32, %arg2: i32) -> (i32, i32, i32) {
    %c0_i32 = arith.constant 0 : i32
    %c0_i32_0 = arith.constant 0 : i32
    return %arg0, %c0_i32, %arg1 : i32, i32, i32
  }
}

module attributes {stable_mosaic.version = 11 : i64} {
  func.func @_maxpool_kernel(%arg0: i32, %arg1: i32, %arg2: memref<1x32x64xbf16, #tpu.memory_space<vmem>>, %arg3: memref<32x64xbf16, #tpu.memory_space<vmem>>, %arg4: memref<32x64xbf16, #tpu.memory_space<vmem>>) attributes {dimension_semantics = [#tpu.dimension_semantics<parallel>, #tpu.dimension_semantics<arbitrary>], iteration_bounds = array<i64: 1, 9>, scalar_prefetch = 0 : i64, scratch_operands = 1 : i64, tpu.core_type = #tpu.core_type<tc>, window_params = [{transform_indices = @transform_0, window_bounds = array<i64: 1, 32, 64>}, {transform_indices = @transform_1, window_bounds = array<i64: 32, 64>}]} {
    %c0 = arith.constant 0 : index
    %c0_0 = arith.constant 0 : index
    %c0_1 = arith.constant 0 : index
    %0 = vector.load %arg2[%c0, %c0_0, %c0_1] : memref<1x32x64xbf16, #tpu.memory_space<vmem>>, vector<1x32x64xbf16>
    %1 = vector.shape_cast %0 : vector<1x32x64xbf16> to vector<32x64xbf16>
    %c0_i32 = arith.constant 0 : i32
    %2 = arith.cmpi eq, %arg1, %c0_i32 : i32
    %3 = arith.extui %2 : i1 to i32
    %c0_i32_2 = arith.constant 0 : i32
    %4 = arith.cmpi ne, %3, %c0_i32_2 : i32
    scf.if %4 {
      %c0_6 = arith.constant 0 : index
      %c0_7 = arith.constant 0 : index
      %11 = vector.load %arg4[%c0_6, %c0_7] : memref<32x64xbf16, #tpu.memory_space<vmem>>, vector<32x64xbf16>
      tpu.vector_store %arg4[%c0_6, %c0_7], %1 {strides = array<i32>} : memref<32x64xbf16, #tpu.memory_space<vmem>>, vector<32x64xbf16>,
    } else {
    }
    %c0_i32_3 = arith.constant 0 : i32
    %5 = arith.cmpi ne, %arg1, %c0_i32_3 : i32
    %6 = arith.extui %5 : i1 to i32
    %c0_i32_4 = arith.constant 0 : i32
    %7 = arith.cmpi ne, %6, %c0_i32_4 : i32
    scf.if %7 {
      %c0_6 = arith.constant 0 : index
      %c0_7 = arith.constant 0 : index
      %11 = vector.load %arg4[%c0_6, %c0_7] : memref<32x64xbf16, #tpu.memory_space<vmem>>, vector<32x64xbf16>
      %12 = arith.maximumf %11, %1 : vector<32x64xbf16>
      %c0_8 = arith.constant 0 : index
      %c0_9 = arith.constant 0 : index
      %13 = vector.load %arg4[%c0_8, %c0_9] : memref<32x64xbf16, #tpu.memory_space<vmem>>, vector<32x64xbf16>
      tpu.vector_store %arg4[%c0_8, %c0_9], %12 {strides = array<i32>} : memref<32x64xbf16, #tpu.memory_space<vmem>>, vector<32x64xbf16>,
    } else {
    }
    %c8_i32 = arith.constant 8 : i32
    %8 = arith.cmpi eq, %arg1, %c8_i32 : i32
    %9 = arith.extui %8 : i1 to i32
    %c0_i32_5 = arith.constant 0 : i32
    %10 = arith.cmpi ne, %9, %c0_i32_5 : i32
    scf.if %10 {
      %c0_6 = arith.constant 0 : index
      %c0_7 = arith.constant 0 : index
      %11 = vector.load %arg4[%c0_6, %c0_7] : memref<32x64xbf16, #tpu.memory_space<vmem>>, vector<32x64xbf16>
      %c0_8 = arith.constant 0 : index
      %c0_9 = arith.constant 0 : index
      %12 = vector.load %arg3[%c0_8, %c0_9] : memref<32x64xbf16, #tpu.memory_space<vmem>>, vector<32x64xbf16>
      tpu.vector_store %arg3[%c0_8, %c0_9], %11 {strides = array<i32>} : memref<32x64xbf16, #tpu.memory_space<vmem>>, vector<32x64xbf16>,
    } else {
    }
    return
  }
  func.func @transform_0(%arg0: i32, %arg1: i32) -> (i32, i32, i32) {
    %c0_i32 = arith.constant 0 : i32
    %c0_i32_0 = arith.constant 0 : i32
    return %arg1, %arg0, %c0_i32 : i32, i32, i32
  }
  func.func @transform_1(%arg0: i32, %arg1: i32) -> (i32, i32) {
    %c0_i32 = arith.constant 0 : i32
    %c0_i32_0 = arith.constant 0 : i32
    return %arg0, %c0_i32 : i32, i32
  }
}

module attributes {stable_mosaic.version = 11 : i64} {
  func.func @_bn_act_kernel(%arg0: i32, %arg1: memref<32x64xbf16, #tpu.memory_space<vmem>>, %arg2: memref<1x64xf32, #tpu.memory_space<vmem>>, %arg3: memref<1x64xf32, #tpu.memory_space<vmem>>, %arg4: memref<32x64xbf16, #tpu.memory_space<vmem>>) attributes {dimension_semantics = [#tpu.dimension_semantics<parallel>], iteration_bounds = array<i64: 1>, scalar_prefetch = 0 : i64, scratch_operands = 0 : i64, tpu.core_type = #tpu.core_type<tc>, window_params = [{transform_indices = @transform_0, window_bounds = array<i64: 32, 64>}, {pipeline_mode = #tpu.pipeline_mode<synchronous>, transform_indices = @transform_1, window_bounds = array<i64: 1, 64>}, {pipeline_mode = #tpu.pipeline_mode<synchronous>, transform_indices = @transform_2, window_bounds = array<i64: 1, 64>}, {transform_indices = @transform_3, window_bounds = array<i64: 32, 64>}]} {
    %c0 = arith.constant 0 : index
    %c0_0 = arith.constant 0 : index
    %0 = vector.load %arg1[%c0, %c0_0] : memref<32x64xbf16, #tpu.memory_space<vmem>>, vector<32x64xbf16>
    %1 = arith.extf %0 : vector<32x64xbf16> to vector<32x64xf32>
    %c0_1 = arith.constant 0 : index
    %c0_2 = arith.constant 0 : index
    %2 = vector.load %arg2[%c0_1, %c0_2] : memref<1x64xf32, #tpu.memory_space<vmem>>, vector<1x64xf32>
    %3 = vector.broadcast %2 : vector<1x64xf32> to vector<32x64xf32>
    %4 = arith.mulf %1, %3 : vector<32x64xf32>
    %c0_3 = arith.constant 0 : index
    %c0_4 = arith.constant 0 : index
    %5 = vector.load %arg3[%c0_3, %c0_4] : memref<1x64xf32, #tpu.memory_space<vmem>>, vector<1x64xf32>
    %6 = vector.broadcast %5 : vector<1x64xf32> to vector<32x64xf32>
    %7 = arith.addf %4, %6 : vector<32x64xf32>
    %cst = arith.constant 0.000000e+00 : f32
    %8 = vector.broadcast %cst : f32 to vector<32x64xf32>
    %9 = arith.maximumf %7, %8 : vector<32x64xf32>
    %10 = arith.truncf %9 : vector<32x64xf32> to vector<32x64xbf16>
    %c0_5 = arith.constant 0 : index
    %c0_6 = arith.constant 0 : index
    %11 = vector.load %arg4[%c0_5, %c0_6] : memref<32x64xbf16, #tpu.memory_space<vmem>>, vector<32x64xbf16>
    tpu.vector_store %arg4[%c0_5, %c0_6], %10 {strides = array<i32>} : memref<32x64xbf16, #tpu.memory_space<vmem>>, vector<32x64xbf16>,
    return
  }
  func.func @transform_0(%arg0: i32) -> (i32, i32) {
    %c0_i32 = arith.constant 0 : i32
    %c0_i32_0 = arith.constant 0 : i32
    return %arg0, %c0_i32 : i32, i32
  }
  func.func @transform_1(%arg0: i32) -> (i32, i32) {
    %c0_i32 = arith.constant 0 : i32
    %c0_i32_0 = arith.constant 0 : i32
    %c0_i32_1 = arith.constant 0 : i32
    return %c0_i32, %c0_i32_0 : i32, i32
  }
  func.func @transform_2(%arg0: i32) -> (i32, i32) {
    %c0_i32 = arith.constant 0 : i32
    %c0_i32_0 = arith.constant 0 : i32
    %c0_i32_1 = arith.constant 0 : i32
    return %c0_i32, %c0_i32_0 : i32, i32
  }
  func.func @transform_3(%arg0: i32) -> (i32, i32) {
    %c0_i32 = arith.constant 0 : i32
    %c0_i32_0 = arith.constant 0 : i32
    return %arg0, %c0_i32 : i32, i32
  }
}

module attributes {stable_mosaic.version = 11 : i64} {
  func.func @_conv_matmul_kernel(%arg0: i32, %arg1: i32, %arg2: i32, %arg3: memref<32x576xbf16, #tpu.memory_space<vmem>>, %arg4: memref<576x64xbf16, #tpu.memory_space<vmem>>, %arg5: memref<32x64xbf16, #tpu.memory_space<vmem>>, %arg6: memref<1x1x64xf32, #tpu.memory_space<vmem>>, %arg7: memref<1x1x64xf32, #tpu.memory_space<vmem>>, %arg8: memref<32x64xf32, #tpu.memory_space<vmem>>) attributes {dimension_semantics = [#tpu.dimension_semantics<parallel>, #tpu.dimension_semantics<parallel>, #tpu.dimension_semantics<arbitrary>], iteration_bounds = array<i64: 1, 1, 1>, scalar_prefetch = 0 : i64, scratch_operands = 1 : i64, tpu.core_type = #tpu.core_type<tc>, window_params = [{transform_indices = @transform_0, window_bounds = array<i64: 32, 576>}, {transform_indices = @transform_1, window_bounds = array<i64: 576, 64>}, {transform_indices = @transform_2, window_bounds = array<i64: 32, 64>}, {transform_indices = @transform_3, window_bounds = array<i64: 1, 1, 64>}, {transform_indices = @transform_4, window_bounds = array<i64: 1, 1, 64>}]} {
    %c32_i32 = arith.constant 32 : i32
    %0 = arith.muli %arg0, %c32_i32 : i32
    %c0_i32 = arith.constant 0 : i32
    %1 = arith.cmpi eq, %arg2, %c0_i32 : i32
    %2 = arith.extui %1 : i1 to i32
    %c0_i32_0 = arith.constant 0 : i32
    %3 = arith.cmpi ne, %2, %c0_i32_0 : i32
    scf.if %3 {
      %cst_10 = arith.constant 0.000000e+00 : f32
      %13 = vector.broadcast %cst_10 : f32 to vector<32x64xf32>
      %c0_11 = arith.constant 0 : index
      %c0_12 = arith.constant 0 : index
      %14 = vector.load %arg8[%c0_11, %c0_12] : memref<32x64xf32, #tpu.memory_space<vmem>>, vector<32x64xf32>
      tpu.vector_store %arg8[%c0_11, %c0_12], %13 {strides = array<i32>} : memref<32x64xf32, #tpu.memory_space<vmem>>, vector<32x64xf32>,
    } else {
    }
    %c0 = arith.constant 0 : index
    %c0_1 = arith.constant 0 : index
    %4 = vector.load %arg8[%c0, %c0_1] : memref<32x64xf32, #tpu.memory_space<vmem>>, vector<32x64xf32>
    %c0_2 = arith.constant 0 : index
    %c0_3 = arith.constant 0 : index
    %5 = vector.load %arg3[%c0_2, %c0_3] : memref<32x576xbf16, #tpu.memory_space<vmem>>, vector<32x576xbf16>
    %c0_4 = arith.constant 0 : index
    %c0_5 = arith.constant 0 : index
    %6 = vector.load %arg4[%c0_4, %c0_5] : memref<576x64xbf16, #tpu.memory_space<vmem>>, vector<576x64xbf16>
    %cst = arith.constant dense<0.000000e+00> : vector<32x64xf32>
    %7 = tpu.matmul %5, %6, %cst {dimension_numbers = #tpu.dot_dimension_numbers<[1], [0], [0], [1], [0, 0, 1, 1], [], []>} : vector<32x576xbf16>, vector<576x64xbf16>, vector<32x64xf32> -> vector<32x64xf32>
    %8 = arith.addf %4, %7 : vector<32x64xf32>
    %c0_6 = arith.constant 0 : index
    %c0_7 = arith.constant 0 : index
    %9 = vector.load %arg8[%c0_6, %c0_7] : memref<32x64xf32, #tpu.memory_space<vmem>>, vector<32x64xf32>
    tpu.vector_store %arg8[%c0_6, %c0_7], %8 {strides = array<i32>} : memref<32x64xf32, #tpu.memory_space<vmem>>, vector<32x64xf32>,
    %c0_i32_8 = arith.constant 0 : i32
    %10 = arith.cmpi eq, %arg2, %c0_i32_8 : i32
    %11 = arith.extui %10 : i1 to i32
    %c0_i32_9 = arith.constant 0 : i32
    %12 = arith.cmpi ne, %11, %c0_i32_9 : i32
    scf.if %12 {
      %c0_10 = arith.constant 0 : index
      %c0_11 = arith.constant 0 : index
      %13 = vector.load %arg8[%c0_10, %c0_11] : memref<32x64xf32, #tpu.memory_space<vmem>>, vector<32x64xf32>
      %14 = arith.truncf %13 : vector<32x64xf32> to vector<32x64xbf16>
      %c0_12 = arith.constant 0 : index
      %c0_13 = arith.constant 0 : index
      %15 = vector.load %arg5[%c0_12, %c0_13] : memref<32x64xbf16, #tpu.memory_space<vmem>>, vector<32x64xbf16>
      tpu.vector_store %arg5[%c0_12, %c0_13], %14 {strides = array<i32>} : memref<32x64xbf16, #tpu.memory_space<vmem>>, vector<32x64xbf16>,
      %16 = tpu.iota {dimensions = array<i32: 0>} : vector<32x64xi32>
      %17 = vector.broadcast %0 : i32 to vector<32x64xi32>
      %18 = arith.addi %16, %17 : vector<32x64xi32>
      %c32_i32_14 = arith.constant 32 : i32
      %19 = vector.broadcast %c32_i32_14 : i32 to vector<32x64xi32>
      %20 = arith.cmpi slt, %18, %19 : vector<32x64xi32>
      %cst_15 = arith.constant 0.000000e+00 : f32
      %21 = vector.broadcast %cst_15 : f32 to vector<32x64xf32>
      %22 = arith.select %20, %13, %21 : vector<32x64xi1>, vector<32x64xf32>
      %cst_16 = arith.constant dense<0.000000e+00> : vector<64xf32>
      %23 = vector.multi_reduction <add>, %22, %cst_16 [0] : vector<32x64xf32> to vector<64xf32>
      %24 = vector.shape_cast %23 : vector<64xf32> to vector<1x64xf32>
      %25 = vector.shape_cast %24 : vector<1x64xf32> to vector<1x1x64xf32>
      %c0_17 = arith.constant 0 : index
      %c0_18 = arith.constant 0 : index
      %c0_19 = arith.constant 0 : index
      %26 = vector.load %arg6[%c0_17, %c0_18, %c0_19] : memref<1x1x64xf32, #tpu.memory_space<vmem>>, vector<1x1x64xf32>
      tpu.vector_store %arg6[%c0_17, %c0_18, %c0_19], %25 {strides = array<i32>} : memref<1x1x64xf32, #tpu.memory_space<vmem>>, vector<1x1x64xf32>,
      %27 = arith.mulf %22, %22 : vector<32x64xf32>
      %cst_20 = arith.constant dense<0.000000e+00> : vector<64xf32>
      %28 = vector.multi_reduction <add>, %27, %cst_20 [0] : vector<32x64xf32> to vector<64xf32>
      %29 = vector.shape_cast %28 : vector<64xf32> to vector<1x64xf32>
      %30 = vector.shape_cast %29 : vector<1x64xf32> to vector<1x1x64xf32>
      %c0_21 = arith.constant 0 : index
      %c0_22 = arith.constant 0 : index
      %c0_23 = arith.constant 0 : index
      %31 = vector.load %arg7[%c0_21, %c0_22, %c0_23] : memref<1x1x64xf32, #tpu.memory_space<vmem>>, vector<1x1x64xf32>
      tpu.vector_store %arg7[%c0_21, %c0_22, %c0_23], %30 {strides = array<i32>} : memref<1x1x64xf32, #tpu.memory_space<vmem>>, vector<1x1x64xf32>,
    } else {
    }
    return
  }
  func.func @transform_0(%arg0: i32, %arg1: i32, %arg2: i32) -> (i32, i32) {
    %c0_i32 = arith.constant 0 : i32
    return %arg0, %arg2 : i32, i32
  }
  func.func @transform_1(%arg0: i32, %arg1: i32, %arg2: i32) -> (i32, i32) {
    %c0_i32 = arith.constant 0 : i32
    return %arg2, %arg1 : i32, i32
  }
  func.func @transform_2(%arg0: i32, %arg1: i32, %arg2: i32) -> (i32, i32) {
    %c0_i32 = arith.constant 0 : i32
    return %arg0, %arg1 : i32, i32
  }
  func.func @transform_3(%arg0: i32, %arg1: i32, %arg2: i32) -> (i32, i32, i32) {
    %c0_i32 = arith.constant 0 : i32
    %c0_i32_0 = arith.constant 0 : i32
    return %arg0, %c0_i32, %arg1 : i32, i32, i32
  }
  func.func @transform_4(%arg0: i32, %arg1: i32, %arg2: i32) -> (i32, i32, i32) {
    %c0_i32 = arith.constant 0 : i32
    %c0_i32_0 = arith.constant 0 : i32
    return %arg0, %c0_i32, %arg1 : i32, i32, i32
  }
}

module attributes {stable_mosaic.version = 11 : i64} {
  func.func @_bn_act_res_kernel(%arg0: i32, %arg1: memref<32x64xbf16, #tpu.memory_space<vmem>>, %arg2: memref<1x64xf32, #tpu.memory_space<vmem>>, %arg3: memref<1x64xf32, #tpu.memory_space<vmem>>, %arg4: memref<32x64xbf16, #tpu.memory_space<vmem>>, %arg5: memref<32x64xbf16, #tpu.memory_space<vmem>>) attributes {dimension_semantics = [#tpu.dimension_semantics<parallel>], iteration_bounds = array<i64: 1>, scalar_prefetch = 0 : i64, scratch_operands = 0 : i64, tpu.core_type = #tpu.core_type<tc>, window_params = [{transform_indices = @transform_0, window_bounds = array<i64: 32, 64>}, {pipeline_mode = #tpu.pipeline_mode<synchronous>, transform_indices = @transform_1, window_bounds = array<i64: 1, 64>}, {pipeline_mode = #tpu.pipeline_mode<synchronous>, transform_indices = @transform_2, window_bounds = array<i64: 1, 64>}, {transform_indices = @transform_3, window_bounds = array<i64: 32, 64>}, {transform_indices = @transform_4, window_bounds = array<i64: 32, 64>}]} {
    %c0 = arith.constant 0 : index
    %c0_0 = arith.constant 0 : index
    %0 = vector.load %arg1[%c0, %c0_0] : memref<32x64xbf16, #tpu.memory_space<vmem>>, vector<32x64xbf16>
    %1 = arith.extf %0 : vector<32x64xbf16> to vector<32x64xf32>
    %c0_1 = arith.constant 0 : index
    %c0_2 = arith.constant 0 : index
    %2 = vector.load %arg2[%c0_1, %c0_2] : memref<1x64xf32, #tpu.memory_space<vmem>>, vector<1x64xf32>
    %3 = vector.broadcast %2 : vector<1x64xf32> to vector<32x64xf32>
    %4 = arith.mulf %1, %3 : vector<32x64xf32>
    %c0_3 = arith.constant 0 : index
    %c0_4 = arith.constant 0 : index
    %5 = vector.load %arg3[%c0_3, %c0_4] : memref<1x64xf32, #tpu.memory_space<vmem>>, vector<1x64xf32>
    %6 = vector.broadcast %5 : vector<1x64xf32> to vector<32x64xf32>
    %7 = arith.addf %4, %6 : vector<32x64xf32>
    %c0_5 = arith.constant 0 : index
    %c0_6 = arith.constant 0 : index
    %8 = vector.load %arg4[%c0_5, %c0_6] : memref<32x64xbf16, #tpu.memory_space<vmem>>, vector<32x64xbf16>
    %9 = arith.extf %8 : vector<32x64xbf16> to vector<32x64xf32>
    %10 = arith.addf %7, %9 : vector<32x64xf32>
    %cst = arith.constant 0.000000e+00 : f32
    %11 = vector.broadcast %cst : f32 to vector<32x64xf32>
    %12 = arith.maximumf %10, %11 : vector<32x64xf32>
    %13 = arith.truncf %12 : vector<32x64xf32> to vector<32x64xbf16>
    %c0_7 = arith.constant 0 : index
    %c0_8 = arith.constant 0 : index
    %14 = vector.load %arg5[%c0_7, %c0_8] : memref<32x64xbf16, #tpu.memory_space<vmem>>, vector<32x64xbf16>
    tpu.vector_store %arg5[%c0_7, %c0_8], %13 {strides = array<i32>} : memref<32x64xbf16, #tpu.memory_space<vmem>>, vector<32x64xbf16>,
    return
  }
  func.func @transform_0(%arg0: i32) -> (i32, i32) {
    %c0_i32 = arith.constant 0 : i32
    %c0_i32_0 = arith.constant 0 : i32
    return %arg0, %c0_i32 : i32, i32
  }
  func.func @transform_1(%arg0: i32) -> (i32, i32) {
    %c0_i32 = arith.constant 0 : i32
    %c0_i32_0 = arith.constant 0 : i32
    %c0_i32_1 = arith.constant 0 : i32
    return %c0_i32, %c0_i32_0 : i32, i32
  }
  func.func @transform_2(%arg0: i32) -> (i32, i32) {
    %c0_i32 = arith.constant 0 : i32
    %c0_i32_0 = arith.constant 0 : i32
    %c0_i32_1 = arith.constant 0 : i32
    return %c0_i32, %c0_i32_0 : i32, i32
  }
  func.func @transform_3(%arg0: i32) -> (i32, i32) {
    %c0_i32 = arith.constant 0 : i32
    %c0_i32_0 = arith.constant 0 : i32
    return %arg0, %c0_i32 : i32, i32
  }
  func.func @transform_4(%arg0: i32) -> (i32, i32) {
    %c0_i32 = arith.constant 0 : i32
    %c0_i32_0 = arith.constant 0 : i32
    return %arg0, %c0_i32 : i32, i32
  }
}

module attributes {stable_mosaic.version = 11 : i64} {
  func.func @_conv_matmul_kernel(%arg0: i32, %arg1: i32, %arg2: i32, %arg3: memref<8x64xbf16, #tpu.memory_space<vmem>>, %arg4: memref<64x128xbf16, #tpu.memory_space<vmem>>, %arg5: memref<8x128xbf16, #tpu.memory_space<vmem>>, %arg6: memref<1x1x128xf32, #tpu.memory_space<vmem>>, %arg7: memref<1x1x128xf32, #tpu.memory_space<vmem>>, %arg8: memref<8x128xf32, #tpu.memory_space<vmem>>) attributes {dimension_semantics = [#tpu.dimension_semantics<parallel>, #tpu.dimension_semantics<parallel>, #tpu.dimension_semantics<arbitrary>], iteration_bounds = array<i64: 1, 1, 1>, scalar_prefetch = 0 : i64, scratch_operands = 1 : i64, tpu.core_type = #tpu.core_type<tc>, window_params = [{transform_indices = @transform_0, window_bounds = array<i64: 8, 64>}, {transform_indices = @transform_1, window_bounds = array<i64: 64, 128>}, {transform_indices = @transform_2, window_bounds = array<i64: 8, 128>}, {transform_indices = @transform_3, window_bounds = array<i64: 1, 1, 128>}, {transform_indices = @transform_4, window_bounds = array<i64: 1, 1, 128>}]} {
    %c8_i32 = arith.constant 8 : i32
    %0 = arith.muli %arg0, %c8_i32 : i32
    %c0_i32 = arith.constant 0 : i32
    %1 = arith.cmpi eq, %arg2, %c0_i32 : i32
    %2 = arith.extui %1 : i1 to i32
    %c0_i32_0 = arith.constant 0 : i32
    %3 = arith.cmpi ne, %2, %c0_i32_0 : i32
    scf.if %3 {
      %cst_10 = arith.constant 0.000000e+00 : f32
      %13 = vector.broadcast %cst_10 : f32 to vector<8x128xf32>
      %c0_11 = arith.constant 0 : index
      %c0_12 = arith.constant 0 : index
      %14 = vector.load %arg8[%c0_11, %c0_12] : memref<8x128xf32, #tpu.memory_space<vmem>>, vector<8x128xf32>
      tpu.vector_store %arg8[%c0_11, %c0_12], %13 {strides = array<i32>} : memref<8x128xf32, #tpu.memory_space<vmem>>, vector<8x128xf32>,
    } else {
    }
    %c0 = arith.constant 0 : index
    %c0_1 = arith.constant 0 : index
    %4 = vector.load %arg8[%c0, %c0_1] : memref<8x128xf32, #tpu.memory_space<vmem>>, vector<8x128xf32>
    %c0_2 = arith.constant 0 : index
    %c0_3 = arith.constant 0 : index
    %5 = vector.load %arg3[%c0_2, %c0_3] : memref<8x64xbf16, #tpu.memory_space<vmem>>, vector<8x64xbf16>
    %c0_4 = arith.constant 0 : index
    %c0_5 = arith.constant 0 : index
    %6 = vector.load %arg4[%c0_4, %c0_5] : memref<64x128xbf16, #tpu.memory_space<vmem>>, vector<64x128xbf16>
    %cst = arith.constant dense<0.000000e+00> : vector<8x128xf32>
    %7 = tpu.matmul %5, %6, %cst {dimension_numbers = #tpu.dot_dimension_numbers<[1], [0], [0], [1], [0, 0, 1, 1], [], []>} : vector<8x64xbf16>, vector<64x128xbf16>, vector<8x128xf32> -> vector<8x128xf32>
    %8 = arith.addf %4, %7 : vector<8x128xf32>
    %c0_6 = arith.constant 0 : index
    %c0_7 = arith.constant 0 : index
    %9 = vector.load %arg8[%c0_6, %c0_7] : memref<8x128xf32, #tpu.memory_space<vmem>>, vector<8x128xf32>
    tpu.vector_store %arg8[%c0_6, %c0_7], %8 {strides = array<i32>} : memref<8x128xf32, #tpu.memory_space<vmem>>, vector<8x128xf32>,
    %c0_i32_8 = arith.constant 0 : i32
    %10 = arith.cmpi eq, %arg2, %c0_i32_8 : i32
    %11 = arith.extui %10 : i1 to i32
    %c0_i32_9 = arith.constant 0 : i32
    %12 = arith.cmpi ne, %11, %c0_i32_9 : i32
    scf.if %12 {
      %c0_10 = arith.constant 0 : index
      %c0_11 = arith.constant 0 : index
      %13 = vector.load %arg8[%c0_10, %c0_11] : memref<8x128xf32, #tpu.memory_space<vmem>>, vector<8x128xf32>
      %14 = arith.truncf %13 : vector<8x128xf32> to vector<8x128xbf16>
      %c0_12 = arith.constant 0 : index
      %c0_13 = arith.constant 0 : index
      %15 = vector.load %arg5[%c0_12, %c0_13] : memref<8x128xbf16, #tpu.memory_space<vmem>>, vector<8x128xbf16>
      tpu.vector_store %arg5[%c0_12, %c0_13], %14 {strides = array<i32>} : memref<8x128xbf16, #tpu.memory_space<vmem>>, vector<8x128xbf16>,
      %16 = tpu.iota {dimensions = array<i32: 0>} : vector<8x128xi32>
      %17 = vector.broadcast %0 : i32 to vector<8x128xi32>
      %18 = arith.addi %16, %17 : vector<8x128xi32>
      %c8_i32_14 = arith.constant 8 : i32
      %19 = vector.broadcast %c8_i32_14 : i32 to vector<8x128xi32>
      %20 = arith.cmpi slt, %18, %19 : vector<8x128xi32>
      %cst_15 = arith.constant 0.000000e+00 : f32
      %21 = vector.broadcast %cst_15 : f32 to vector<8x128xf32>
      %22 = arith.select %20, %13, %21 : vector<8x128xi1>, vector<8x128xf32>
      %cst_16 = arith.constant dense<0.000000e+00> : vector<128xf32>
      %23 = vector.multi_reduction <add>, %22, %cst_16 [0] : vector<8x128xf32> to vector<128xf32>
      %24 = vector.shape_cast %23 : vector<128xf32> to vector<1x128xf32>
      %25 = vector.shape_cast %24 : vector<1x128xf32> to vector<1x1x128xf32>
      %c0_17 = arith.constant 0 : index
      %c0_18 = arith.constant 0 : index
      %c0_19 = arith.constant 0 : index
      %26 = vector.load %arg6[%c0_17, %c0_18, %c0_19] : memref<1x1x128xf32, #tpu.memory_space<vmem>>, vector<1x1x128xf32>
      tpu.vector_store %arg6[%c0_17, %c0_18, %c0_19], %25 {strides = array<i32>} : memref<1x1x128xf32, #tpu.memory_space<vmem>>, vector<1x1x128xf32>,
      %27 = arith.mulf %22, %22 : vector<8x128xf32>
      %cst_20 = arith.constant dense<0.000000e+00> : vector<128xf32>
      %28 = vector.multi_reduction <add>, %27, %cst_20 [0] : vector<8x128xf32> to vector<128xf32>
      %29 = vector.shape_cast %28 : vector<128xf32> to vector<1x128xf32>
      %30 = vector.shape_cast %29 : vector<1x128xf32> to vector<1x1x128xf32>
      %c0_21 = arith.constant 0 : index
      %c0_22 = arith.constant 0 : index
      %c0_23 = arith.constant 0 : index
      %31 = vector.load %arg7[%c0_21, %c0_22, %c0_23] : memref<1x1x128xf32, #tpu.memory_space<vmem>>, vector<1x1x128xf32>
      tpu.vector_store %arg7[%c0_21, %c0_22, %c0_23], %30 {strides = array<i32>} : memref<1x1x128xf32, #tpu.memory_space<vmem>>, vector<1x1x128xf32>,
    } else {
    }
    return
  }
  func.func @transform_0(%arg0: i32, %arg1: i32, %arg2: i32) -> (i32, i32) {
    %c0_i32 = arith.constant 0 : i32
    return %arg0, %arg2 : i32, i32
  }
  func.func @transform_1(%arg0: i32, %arg1: i32, %arg2: i32) -> (i32, i32) {
    %c0_i32 = arith.constant 0 : i32
    return %arg2, %arg1 : i32, i32
  }
  func.func @transform_2(%arg0: i32, %arg1: i32, %arg2: i32) -> (i32, i32) {
    %c0_i32 = arith.constant 0 : i32
    return %arg0, %arg1 : i32, i32
  }
  func.func @transform_3(%arg0: i32, %arg1: i32, %arg2: i32) -> (i32, i32, i32) {
    %c0_i32 = arith.constant 0 : i32
    %c0_i32_0 = arith.constant 0 : i32
    return %arg0, %c0_i32, %arg1 : i32, i32, i32
  }
  func.func @transform_4(%arg0: i32, %arg1: i32, %arg2: i32) -> (i32, i32, i32) {
    %c0_i32 = arith.constant 0 : i32
    %c0_i32_0 = arith.constant 0 : i32
    return %arg0, %c0_i32, %arg1 : i32, i32, i32
  }
}

module attributes {stable_mosaic.version = 11 : i64} {
  func.func @_bn_act_kernel(%arg0: i32, %arg1: memref<8x128xbf16, #tpu.memory_space<vmem>>, %arg2: memref<1x128xf32, #tpu.memory_space<vmem>>, %arg3: memref<1x128xf32, #tpu.memory_space<vmem>>, %arg4: memref<8x128xbf16, #tpu.memory_space<vmem>>) attributes {dimension_semantics = [#tpu.dimension_semantics<parallel>], iteration_bounds = array<i64: 1>, scalar_prefetch = 0 : i64, scratch_operands = 0 : i64, tpu.core_type = #tpu.core_type<tc>, window_params = [{transform_indices = @transform_0, window_bounds = array<i64: 8, 128>}, {pipeline_mode = #tpu.pipeline_mode<synchronous>, transform_indices = @transform_1, window_bounds = array<i64: 1, 128>}, {pipeline_mode = #tpu.pipeline_mode<synchronous>, transform_indices = @transform_2, window_bounds = array<i64: 1, 128>}, {transform_indices = @transform_3, window_bounds = array<i64: 8, 128>}]} {
    %c0 = arith.constant 0 : index
    %c0_0 = arith.constant 0 : index
    %0 = vector.load %arg1[%c0, %c0_0] : memref<8x128xbf16, #tpu.memory_space<vmem>>, vector<8x128xbf16>
    %1 = arith.extf %0 : vector<8x128xbf16> to vector<8x128xf32>
    %c0_1 = arith.constant 0 : index
    %c0_2 = arith.constant 0 : index
    %2 = vector.load %arg2[%c0_1, %c0_2] : memref<1x128xf32, #tpu.memory_space<vmem>>, vector<1x128xf32>
    %3 = vector.broadcast %2 : vector<1x128xf32> to vector<8x128xf32>
    %4 = arith.mulf %1, %3 : vector<8x128xf32>
    %c0_3 = arith.constant 0 : index
    %c0_4 = arith.constant 0 : index
    %5 = vector.load %arg3[%c0_3, %c0_4] : memref<1x128xf32, #tpu.memory_space<vmem>>, vector<1x128xf32>
    %6 = vector.broadcast %5 : vector<1x128xf32> to vector<8x128xf32>
    %7 = arith.addf %4, %6 : vector<8x128xf32>
    %8 = arith.truncf %7 : vector<8x128xf32> to vector<8x128xbf16>
    %c0_5 = arith.constant 0 : index
    %c0_6 = arith.constant 0 : index
    %9 = vector.load %arg4[%c0_5, %c0_6] : memref<8x128xbf16, #tpu.memory_space<vmem>>, vector<8x128xbf16>
    tpu.vector_store %arg4[%c0_5, %c0_6], %8 {strides = array<i32>} : memref<8x128xbf16, #tpu.memory_space<vmem>>, vector<8x128xbf16>,
    return
  }
  func.func @transform_0(%arg0: i32) -> (i32, i32) {
    %c0_i32 = arith.constant 0 : i32
    %c0_i32_0 = arith.constant 0 : i32
    return %arg0, %c0_i32 : i32, i32
  }
  func.func @transform_1(%arg0: i32) -> (i32, i32) {
    %c0_i32 = arith.constant 0 : i32
    %c0_i32_0 = arith.constant 0 : i32
    %c0_i32_1 = arith.constant 0 : i32
    return %c0_i32, %c0_i32_0 : i32, i32
  }
  func.func @transform_2(%arg0: i32) -> (i32, i32) {
    %c0_i32 = arith.constant 0 : i32
    %c0_i32_0 = arith.constant 0 : i32
    %c0_i32_1 = arith.constant 0 : i32
    return %c0_i32, %c0_i32_0 : i32, i32
  }
  func.func @transform_3(%arg0: i32) -> (i32, i32) {
    %c0_i32 = arith.constant 0 : i32
    %c0_i32_0 = arith.constant 0 : i32
    return %arg0, %c0_i32 : i32, i32
  }
}

module attributes {stable_mosaic.version = 11 : i64} {
  func.func @_conv_matmul_kernel(%arg0: i32, %arg1: i32, %arg2: i32, %arg3: memref<8x576xbf16, #tpu.memory_space<vmem>>, %arg4: memref<576x128xbf16, #tpu.memory_space<vmem>>, %arg5: memref<8x128xbf16, #tpu.memory_space<vmem>>, %arg6: memref<1x1x128xf32, #tpu.memory_space<vmem>>, %arg7: memref<1x1x128xf32, #tpu.memory_space<vmem>>, %arg8: memref<8x128xf32, #tpu.memory_space<vmem>>) attributes {dimension_semantics = [#tpu.dimension_semantics<parallel>, #tpu.dimension_semantics<parallel>, #tpu.dimension_semantics<arbitrary>], iteration_bounds = array<i64: 1, 1, 1>, scalar_prefetch = 0 : i64, scratch_operands = 1 : i64, tpu.core_type = #tpu.core_type<tc>, window_params = [{transform_indices = @transform_0, window_bounds = array<i64: 8, 576>}, {transform_indices = @transform_1, window_bounds = array<i64: 576, 128>}, {transform_indices = @transform_2, window_bounds = array<i64: 8, 128>}, {transform_indices = @transform_3, window_bounds = array<i64: 1, 1, 128>}, {transform_indices = @transform_4, window_bounds = array<i64: 1, 1, 128>}]} {
    %c8_i32 = arith.constant 8 : i32
    %0 = arith.muli %arg0, %c8_i32 : i32
    %c0_i32 = arith.constant 0 : i32
    %1 = arith.cmpi eq, %arg2, %c0_i32 : i32
    %2 = arith.extui %1 : i1 to i32
    %c0_i32_0 = arith.constant 0 : i32
    %3 = arith.cmpi ne, %2, %c0_i32_0 : i32
    scf.if %3 {
      %cst_10 = arith.constant 0.000000e+00 : f32
      %13 = vector.broadcast %cst_10 : f32 to vector<8x128xf32>
      %c0_11 = arith.constant 0 : index
      %c0_12 = arith.constant 0 : index
      %14 = vector.load %arg8[%c0_11, %c0_12] : memref<8x128xf32, #tpu.memory_space<vmem>>, vector<8x128xf32>
      tpu.vector_store %arg8[%c0_11, %c0_12], %13 {strides = array<i32>} : memref<8x128xf32, #tpu.memory_space<vmem>>, vector<8x128xf32>,
    } else {
    }
    %c0 = arith.constant 0 : index
    %c0_1 = arith.constant 0 : index
    %4 = vector.load %arg8[%c0, %c0_1] : memref<8x128xf32, #tpu.memory_space<vmem>>, vector<8x128xf32>
    %c0_2 = arith.constant 0 : index
    %c0_3 = arith.constant 0 : index
    %5 = vector.load %arg3[%c0_2, %c0_3] : memref<8x576xbf16, #tpu.memory_space<vmem>>, vector<8x576xbf16>
    %c0_4 = arith.constant 0 : index
    %c0_5 = arith.constant 0 : index
    %6 = vector.load %arg4[%c0_4, %c0_5] : memref<576x128xbf16, #tpu.memory_space<vmem>>, vector<576x128xbf16>
    %cst = arith.constant dense<0.000000e+00> : vector<8x128xf32>
    %7 = tpu.matmul %5, %6, %cst {dimension_numbers = #tpu.dot_dimension_numbers<[1], [0], [0], [1], [0, 0, 1, 1], [], []>} : vector<8x576xbf16>, vector<576x128xbf16>, vector<8x128xf32> -> vector<8x128xf32>
    %8 = arith.addf %4, %7 : vector<8x128xf32>
    %c0_6 = arith.constant 0 : index
    %c0_7 = arith.constant 0 : index
    %9 = vector.load %arg8[%c0_6, %c0_7] : memref<8x128xf32, #tpu.memory_space<vmem>>, vector<8x128xf32>
    tpu.vector_store %arg8[%c0_6, %c0_7], %8 {strides = array<i32>} : memref<8x128xf32, #tpu.memory_space<vmem>>, vector<8x128xf32>,
    %c0_i32_8 = arith.constant 0 : i32
    %10 = arith.cmpi eq, %arg2, %c0_i32_8 : i32
    %11 = arith.extui %10 : i1 to i32
    %c0_i32_9 = arith.constant 0 : i32
    %12 = arith.cmpi ne, %11, %c0_i32_9 : i32
    scf.if %12 {
      %c0_10 = arith.constant 0 : index
      %c0_11 = arith.constant 0 : index
      %13 = vector.load %arg8[%c0_10, %c0_11] : memref<8x128xf32, #tpu.memory_space<vmem>>, vector<8x128xf32>
      %14 = arith.truncf %13 : vector<8x128xf32> to vector<8x128xbf16>
      %c0_12 = arith.constant 0 : index
      %c0_13 = arith.constant 0 : index
      %15 = vector.load %arg5[%c0_12, %c0_13] : memref<8x128xbf16, #tpu.memory_space<vmem>>, vector<8x128xbf16>
      tpu.vector_store %arg5[%c0_12, %c0_13], %14 {strides = array<i32>} : memref<8x128xbf16, #tpu.memory_space<vmem>>, vector<8x128xbf16>,
      %16 = tpu.iota {dimensions = array<i32: 0>} : vector<8x128xi32>
      %17 = vector.broadcast %0 : i32 to vector<8x128xi32>
      %18 = arith.addi %16, %17 : vector<8x128xi32>
      %c8_i32_14 = arith.constant 8 : i32
      %19 = vector.broadcast %c8_i32_14 : i32 to vector<8x128xi32>
      %20 = arith.cmpi slt, %18, %19 : vector<8x128xi32>
      %cst_15 = arith.constant 0.000000e+00 : f32
      %21 = vector.broadcast %cst_15 : f32 to vector<8x128xf32>
      %22 = arith.select %20, %13, %21 : vector<8x128xi1>, vector<8x128xf32>
      %cst_16 = arith.constant dense<0.000000e+00> : vector<128xf32>
      %23 = vector.multi_reduction <add>, %22, %cst_16 [0] : vector<8x128xf32> to vector<128xf32>
      %24 = vector.shape_cast %23 : vector<128xf32> to vector<1x128xf32>
      %25 = vector.shape_cast %24 : vector<1x128xf32> to vector<1x1x128xf32>
      %c0_17 = arith.constant 0 : index
      %c0_18 = arith.constant 0 : index
      %c0_19 = arith.constant 0 : index
      %26 = vector.load %arg6[%c0_17, %c0_18, %c0_19] : memref<1x1x128xf32, #tpu.memory_space<vmem>>, vector<1x1x128xf32>
      tpu.vector_store %arg6[%c0_17, %c0_18, %c0_19], %25 {strides = array<i32>} : memref<1x1x128xf32, #tpu.memory_space<vmem>>, vector<1x1x128xf32>,
      %27 = arith.mulf %22, %22 : vector<8x128xf32>
      %cst_20 = arith.constant dense<0.000000e+00> : vector<128xf32>
      %28 = vector.multi_reduction <add>, %27, %cst_20 [0] : vector<8x128xf32> to vector<128xf32>
      %29 = vector.shape_cast %28 : vector<128xf32> to vector<1x128xf32>
      %30 = vector.shape_cast %29 : vector<1x128xf32> to vector<1x1x128xf32>
      %c0_21 = arith.constant 0 : index
      %c0_22 = arith.constant 0 : index
      %c0_23 = arith.constant 0 : index
      %31 = vector.load %arg7[%c0_21, %c0_22, %c0_23] : memref<1x1x128xf32, #tpu.memory_space<vmem>>, vector<1x1x128xf32>
      tpu.vector_store %arg7[%c0_21, %c0_22, %c0_23], %30 {strides = array<i32>} : memref<1x1x128xf32, #tpu.memory_space<vmem>>, vector<1x1x128xf32>,
    } else {
    }
    return
  }
  func.func @transform_0(%arg0: i32, %arg1: i32, %arg2: i32) -> (i32, i32) {
    %c0_i32 = arith.constant 0 : i32
    return %arg0, %arg2 : i32, i32
  }
  func.func @transform_1(%arg0: i32, %arg1: i32, %arg2: i32) -> (i32, i32) {
    %c0_i32 = arith.constant 0 : i32
    return %arg2, %arg1 : i32, i32
  }
  func.func @transform_2(%arg0: i32, %arg1: i32, %arg2: i32) -> (i32, i32) {
    %c0_i32 = arith.constant 0 : i32
    return %arg0, %arg1 : i32, i32
  }
  func.func @transform_3(%arg0: i32, %arg1: i32, %arg2: i32) -> (i32, i32, i32) {
    %c0_i32 = arith.constant 0 : i32
    %c0_i32_0 = arith.constant 0 : i32
    return %arg0, %c0_i32, %arg1 : i32, i32, i32
  }
  func.func @transform_4(%arg0: i32, %arg1: i32, %arg2: i32) -> (i32, i32, i32) {
    %c0_i32 = arith.constant 0 : i32
    %c0_i32_0 = arith.constant 0 : i32
    return %arg0, %c0_i32, %arg1 : i32, i32, i32
  }
}

module attributes {stable_mosaic.version = 11 : i64} {
  func.func @_bn_act_kernel(%arg0: i32, %arg1: memref<8x128xbf16, #tpu.memory_space<vmem>>, %arg2: memref<1x128xf32, #tpu.memory_space<vmem>>, %arg3: memref<1x128xf32, #tpu.memory_space<vmem>>, %arg4: memref<8x128xbf16, #tpu.memory_space<vmem>>) attributes {dimension_semantics = [#tpu.dimension_semantics<parallel>], iteration_bounds = array<i64: 1>, scalar_prefetch = 0 : i64, scratch_operands = 0 : i64, tpu.core_type = #tpu.core_type<tc>, window_params = [{transform_indices = @transform_0, window_bounds = array<i64: 8, 128>}, {pipeline_mode = #tpu.pipeline_mode<synchronous>, transform_indices = @transform_1, window_bounds = array<i64: 1, 128>}, {pipeline_mode = #tpu.pipeline_mode<synchronous>, transform_indices = @transform_2, window_bounds = array<i64: 1, 128>}, {transform_indices = @transform_3, window_bounds = array<i64: 8, 128>}]} {
    %c0 = arith.constant 0 : index
    %c0_0 = arith.constant 0 : index
    %0 = vector.load %arg1[%c0, %c0_0] : memref<8x128xbf16, #tpu.memory_space<vmem>>, vector<8x128xbf16>
    %1 = arith.extf %0 : vector<8x128xbf16> to vector<8x128xf32>
    %c0_1 = arith.constant 0 : index
    %c0_2 = arith.constant 0 : index
    %2 = vector.load %arg2[%c0_1, %c0_2] : memref<1x128xf32, #tpu.memory_space<vmem>>, vector<1x128xf32>
    %3 = vector.broadcast %2 : vector<1x128xf32> to vector<8x128xf32>
    %4 = arith.mulf %1, %3 : vector<8x128xf32>
    %c0_3 = arith.constant 0 : index
    %c0_4 = arith.constant 0 : index
    %5 = vector.load %arg3[%c0_3, %c0_4] : memref<1x128xf32, #tpu.memory_space<vmem>>, vector<1x128xf32>
    %6 = vector.broadcast %5 : vector<1x128xf32> to vector<8x128xf32>
    %7 = arith.addf %4, %6 : vector<8x128xf32>
    %cst = arith.constant 0.000000e+00 : f32
    %8 = vector.broadcast %cst : f32 to vector<8x128xf32>
    %9 = arith.maximumf %7, %8 : vector<8x128xf32>
    %10 = arith.truncf %9 : vector<8x128xf32> to vector<8x128xbf16>
    %c0_5 = arith.constant 0 : index
    %c0_6 = arith.constant 0 : index
    %11 = vector.load %arg4[%c0_5, %c0_6] : memref<8x128xbf16, #tpu.memory_space<vmem>>, vector<8x128xbf16>
    tpu.vector_store %arg4[%c0_5, %c0_6], %10 {strides = array<i32>} : memref<8x128xbf16, #tpu.memory_space<vmem>>, vector<8x128xbf16>,
    return
  }
  func.func @transform_0(%arg0: i32) -> (i32, i32) {
    %c0_i32 = arith.constant 0 : i32
    %c0_i32_0 = arith.constant 0 : i32
    return %arg0, %c0_i32 : i32, i32
  }
  func.func @transform_1(%arg0: i32) -> (i32, i32) {
    %c0_i32 = arith.constant 0 : i32
    %c0_i32_0 = arith.constant 0 : i32
    %c0_i32_1 = arith.constant 0 : i32
    return %c0_i32, %c0_i32_0 : i32, i32
  }
  func.func @transform_2(%arg0: i32) -> (i32, i32) {
    %c0_i32 = arith.constant 0 : i32
    %c0_i32_0 = arith.constant 0 : i32
    %c0_i32_1 = arith.constant 0 : i32
    return %c0_i32, %c0_i32_0 : i32, i32
  }
  func.func @transform_3(%arg0: i32) -> (i32, i32) {
    %c0_i32 = arith.constant 0 : i32
    %c0_i32_0 = arith.constant 0 : i32
    return %arg0, %c0_i32 : i32, i32
  }
}

module attributes {stable_mosaic.version = 11 : i64} {
  func.func @_bn_act_res_kernel(%arg0: i32, %arg1: memref<8x128xbf16, #tpu.memory_space<vmem>>, %arg2: memref<1x128xf32, #tpu.memory_space<vmem>>, %arg3: memref<1x128xf32, #tpu.memory_space<vmem>>, %arg4: memref<8x128xbf16, #tpu.memory_space<vmem>>, %arg5: memref<8x128xbf16, #tpu.memory_space<vmem>>) attributes {dimension_semantics = [#tpu.dimension_semantics<parallel>], iteration_bounds = array<i64: 1>, scalar_prefetch = 0 : i64, scratch_operands = 0 : i64, tpu.core_type = #tpu.core_type<tc>, window_params = [{transform_indices = @transform_0, window_bounds = array<i64: 8, 128>}, {pipeline_mode = #tpu.pipeline_mode<synchronous>, transform_indices = @transform_1, window_bounds = array<i64: 1, 128>}, {pipeline_mode = #tpu.pipeline_mode<synchronous>, transform_indices = @transform_2, window_bounds = array<i64: 1, 128>}, {transform_indices = @transform_3, window_bounds = array<i64: 8, 128>}, {transform_indices = @transform_4, window_bounds = array<i64: 8, 128>}]} {
    %c0 = arith.constant 0 : index
    %c0_0 = arith.constant 0 : index
    %0 = vector.load %arg1[%c0, %c0_0] : memref<8x128xbf16, #tpu.memory_space<vmem>>, vector<8x128xbf16>
    %1 = arith.extf %0 : vector<8x128xbf16> to vector<8x128xf32>
    %c0_1 = arith.constant 0 : index
    %c0_2 = arith.constant 0 : index
    %2 = vector.load %arg2[%c0_1, %c0_2] : memref<1x128xf32, #tpu.memory_space<vmem>>, vector<1x128xf32>
    %3 = vector.broadcast %2 : vector<1x128xf32> to vector<8x128xf32>
    %4 = arith.mulf %1, %3 : vector<8x128xf32>
    %c0_3 = arith.constant 0 : index
    %c0_4 = arith.constant 0 : index
    %5 = vector.load %arg3[%c0_3, %c0_4] : memref<1x128xf32, #tpu.memory_space<vmem>>, vector<1x128xf32>
    %6 = vector.broadcast %5 : vector<1x128xf32> to vector<8x128xf32>
    %7 = arith.addf %4, %6 : vector<8x128xf32>
    %c0_5 = arith.constant 0 : index
    %c0_6 = arith.constant 0 : index
    %8 = vector.load %arg4[%c0_5, %c0_6] : memref<8x128xbf16, #tpu.memory_space<vmem>>, vector<8x128xbf16>
    %9 = arith.extf %8 : vector<8x128xbf16> to vector<8x128xf32>
    %10 = arith.addf %7, %9 : vector<8x128xf32>
    %cst = arith.constant 0.000000e+00 : f32
    %11 = vector.broadcast %cst : f32 to vector<8x128xf32>
    %12 = arith.maximumf %10, %11 : vector<8x128xf32>
    %13 = arith.truncf %12 : vector<8x128xf32> to vector<8x128xbf16>
    %c0_7 = arith.constant 0 : index
    %c0_8 = arith.constant 0 : index
    %14 = vector.load %arg5[%c0_7, %c0_8] : memref<8x128xbf16, #tpu.memory_space<vmem>>, vector<8x128xbf16>
    tpu.vector_store %arg5[%c0_7, %c0_8], %13 {strides = array<i32>} : memref<8x128xbf16, #tpu.memory_space<vmem>>, vector<8x128xbf16>,
    return
  }
  func.func @transform_0(%arg0: i32) -> (i32, i32) {
    %c0_i32 = arith.constant 0 : i32
    %c0_i32_0 = arith.constant 0 : i32
    return %arg0, %c0_i32 : i32, i32
  }
  func.func @transform_1(%arg0: i32) -> (i32, i32) {
    %c0_i32 = arith.constant 0 : i32
    %c0_i32_0 = arith.constant 0 : i32
    %c0_i32_1 = arith.constant 0 : i32
    return %c0_i32, %c0_i32_0 : i32, i32
  }
  func.func @transform_2(%arg0: i32) -> (i32, i32) {
    %c0_i32 = arith.constant 0 : i32
    %c0_i32_0 = arith.constant 0 : i32
    %c0_i32_1 = arith.constant 0 : i32
    return %c0_i32, %c0_i32_0 : i32, i32
  }
  func.func @transform_3(%arg0: i32) -> (i32, i32) {
    %c0_i32 = arith.constant 0 : i32
    %c0_i32_0 = arith.constant 0 : i32
    return %arg0, %c0_i32 : i32, i32
  }
  func.func @transform_4(%arg0: i32) -> (i32, i32) {
    %c0_i32 = arith.constant 0 : i32
    %c0_i32_0 = arith.constant 0 : i32
    return %arg0, %c0_i32 : i32, i32
  }
}

module attributes {stable_mosaic.version = 11 : i64} {
  func.func @_conv_matmul_kernel(%arg0: i32, %arg1: i32, %arg2: i32, %arg3: memref<8x384xbf16, #tpu.memory_space<vmem>>, %arg4: memref<384x128xbf16, #tpu.memory_space<vmem>>, %arg5: memref<8x128xbf16, #tpu.memory_space<vmem>>, %arg6: memref<1x1x128xf32, #tpu.memory_space<vmem>>, %arg7: memref<1x1x128xf32, #tpu.memory_space<vmem>>, %arg8: memref<8x128xf32, #tpu.memory_space<vmem>>) attributes {dimension_semantics = [#tpu.dimension_semantics<parallel>, #tpu.dimension_semantics<parallel>, #tpu.dimension_semantics<arbitrary>], iteration_bounds = array<i64: 1, 1, 3>, scalar_prefetch = 0 : i64, scratch_operands = 1 : i64, tpu.core_type = #tpu.core_type<tc>, window_params = [{transform_indices = @transform_0, window_bounds = array<i64: 8, 384>}, {transform_indices = @transform_1, window_bounds = array<i64: 384, 128>}, {transform_indices = @transform_2, window_bounds = array<i64: 8, 128>}, {transform_indices = @transform_3, window_bounds = array<i64: 1, 1, 128>}, {transform_indices = @transform_4, window_bounds = array<i64: 1, 1, 128>}]} {
    %c8_i32 = arith.constant 8 : i32
    %0 = arith.muli %arg0, %c8_i32 : i32
    %c0_i32 = arith.constant 0 : i32
    %1 = arith.cmpi eq, %arg2, %c0_i32 : i32
    %2 = arith.extui %1 : i1 to i32
    %c0_i32_0 = arith.constant 0 : i32
    %3 = arith.cmpi ne, %2, %c0_i32_0 : i32
    scf.if %3 {
      %cst_9 = arith.constant 0.000000e+00 : f32
      %13 = vector.broadcast %cst_9 : f32 to vector<8x128xf32>
      %c0_10 = arith.constant 0 : index
      %c0_11 = arith.constant 0 : index
      %14 = vector.load %arg8[%c0_10, %c0_11] : memref<8x128xf32, #tpu.memory_space<vmem>>, vector<8x128xf32>
      tpu.vector_store %arg8[%c0_10, %c0_11], %13 {strides = array<i32>} : memref<8x128xf32, #tpu.memory_space<vmem>>, vector<8x128xf32>,
    } else {
    }
    %c0 = arith.constant 0 : index
    %c0_1 = arith.constant 0 : index
    %4 = vector.load %arg8[%c0, %c0_1] : memref<8x128xf32, #tpu.memory_space<vmem>>, vector<8x128xf32>
    %c0_2 = arith.constant 0 : index
    %c0_3 = arith.constant 0 : index
    %5 = vector.load %arg3[%c0_2, %c0_3] : memref<8x384xbf16, #tpu.memory_space<vmem>>, vector<8x384xbf16>
    %c0_4 = arith.constant 0 : index
    %c0_5 = arith.constant 0 : index
    %6 = vector.load %arg4[%c0_4, %c0_5] : memref<384x128xbf16, #tpu.memory_space<vmem>>, vector<384x128xbf16>
    %cst = arith.constant dense<0.000000e+00> : vector<8x128xf32>
    %7 = tpu.matmul %5, %6, %cst {dimension_numbers = #tpu.dot_dimension_numbers<[1], [0], [0], [1], [0, 0, 1, 1], [], []>} : vector<8x384xbf16>, vector<384x128xbf16>, vector<8x128xf32> -> vector<8x128xf32>
    %8 = arith.addf %4, %7 : vector<8x128xf32>
    %c0_6 = arith.constant 0 : index
    %c0_7 = arith.constant 0 : index
    %9 = vector.load %arg8[%c0_6, %c0_7] : memref<8x128xf32, #tpu.memory_space<vmem>>, vector<8x128xf32>
    tpu.vector_store %arg8[%c0_6, %c0_7], %8 {strides = array<i32>} : memref<8x128xf32, #tpu.memory_space<vmem>>, vector<8x128xf32>,
    %c2_i32 = arith.constant 2 : i32
    %10 = arith.cmpi eq, %arg2, %c2_i32 : i32
    %11 = arith.extui %10 : i1 to i32
    %c0_i32_8 = arith.constant 0 : i32
    %12 = arith.cmpi ne, %11, %c0_i32_8 : i32
    scf.if %12 {
      %c0_9 = arith.constant 0 : index
      %c0_10 = arith.constant 0 : index
      %13 = vector.load %arg8[%c0_9, %c0_10] : memref<8x128xf32, #tpu.memory_space<vmem>>, vector<8x128xf32>
      %14 = arith.truncf %13 : vector<8x128xf32> to vector<8x128xbf16>
      %c0_11 = arith.constant 0 : index
      %c0_12 = arith.constant 0 : index
      %15 = vector.load %arg5[%c0_11, %c0_12] : memref<8x128xbf16, #tpu.memory_space<vmem>>, vector<8x128xbf16>
      tpu.vector_store %arg5[%c0_11, %c0_12], %14 {strides = array<i32>} : memref<8x128xbf16, #tpu.memory_space<vmem>>, vector<8x128xbf16>,
      %16 = tpu.iota {dimensions = array<i32: 0>} : vector<8x128xi32>
      %17 = vector.broadcast %0 : i32 to vector<8x128xi32>
      %18 = arith.addi %16, %17 : vector<8x128xi32>
      %c8_i32_13 = arith.constant 8 : i32
      %19 = vector.broadcast %c8_i32_13 : i32 to vector<8x128xi32>
      %20 = arith.cmpi slt, %18, %19 : vector<8x128xi32>
      %cst_14 = arith.constant 0.000000e+00 : f32
      %21 = vector.broadcast %cst_14 : f32 to vector<8x128xf32>
      %22 = arith.select %20, %13, %21 : vector<8x128xi1>, vector<8x128xf32>
      %cst_15 = arith.constant dense<0.000000e+00> : vector<128xf32>
      %23 = vector.multi_reduction <add>, %22, %cst_15 [0] : vector<8x128xf32> to vector<128xf32>
      %24 = vector.shape_cast %23 : vector<128xf32> to vector<1x128xf32>
      %25 = vector.shape_cast %24 : vector<1x128xf32> to vector<1x1x128xf32>
      %c0_16 = arith.constant 0 : index
      %c0_17 = arith.constant 0 : index
      %c0_18 = arith.constant 0 : index
      %26 = vector.load %arg6[%c0_16, %c0_17, %c0_18] : memref<1x1x128xf32, #tpu.memory_space<vmem>>, vector<1x1x128xf32>
      tpu.vector_store %arg6[%c0_16, %c0_17, %c0_18], %25 {strides = array<i32>} : memref<1x1x128xf32, #tpu.memory_space<vmem>>, vector<1x1x128xf32>,
      %27 = arith.mulf %22, %22 : vector<8x128xf32>
      %cst_19 = arith.constant dense<0.000000e+00> : vector<128xf32>
      %28 = vector.multi_reduction <add>, %27, %cst_19 [0] : vector<8x128xf32> to vector<128xf32>
      %29 = vector.shape_cast %28 : vector<128xf32> to vector<1x128xf32>
      %30 = vector.shape_cast %29 : vector<1x128xf32> to vector<1x1x128xf32>
      %c0_20 = arith.constant 0 : index
      %c0_21 = arith.constant 0 : index
      %c0_22 = arith.constant 0 : index
      %31 = vector.load %arg7[%c0_20, %c0_21, %c0_22] : memref<1x1x128xf32, #tpu.memory_space<vmem>>, vector<1x1x128xf32>
      tpu.vector_store %arg7[%c0_20, %c0_21, %c0_22], %30 {strides = array<i32>} : memref<1x1x128xf32, #tpu.memory_space<vmem>>, vector<1x1x128xf32>,
    } else {
    }
    return
  }
  func.func @transform_0(%arg0: i32, %arg1: i32, %arg2: i32) -> (i32, i32) {
    %c0_i32 = arith.constant 0 : i32
    return %arg0, %arg2 : i32, i32
  }
  func.func @transform_1(%arg0: i32, %arg1: i32, %arg2: i32) -> (i32, i32) {
    %c0_i32 = arith.constant 0 : i32
    return %arg2, %arg1 : i32, i32
  }
  func.func @transform_2(%arg0: i32, %arg1: i32, %arg2: i32) -> (i32, i32) {
    %c0_i32 = arith.constant 0 : i32
    return %arg0, %arg1 : i32, i32
  }
  func.func @transform_3(%arg0: i32, %arg1: i32, %arg2: i32) -> (i32, i32, i32) {
    %c0_i32 = arith.constant 0 : i32
    %c0_i32_0 = arith.constant 0 : i32
    return %arg0, %c0_i32, %arg1 : i32, i32, i32
  }
  func.func @transform_4(%arg0: i32, %arg1: i32, %arg2: i32) -> (i32, i32, i32) {
    %c0_i32 = arith.constant 0 : i32
    %c0_i32_0 = arith.constant 0 : i32
    return %arg0, %c0_i32, %arg1 : i32, i32, i32
  }
}

module attributes {stable_mosaic.version = 11 : i64} {
  func.func @_conv_matmul_kernel(%arg0: i32, %arg1: i32, %arg2: i32, %arg3: memref<2x128xbf16, #tpu.memory_space<vmem>>, %arg4: memref<128x256xbf16, #tpu.memory_space<vmem>>, %arg5: memref<2x256xbf16, #tpu.memory_space<vmem>>, %arg6: memref<1x1x256xf32, #tpu.memory_space<vmem>>, %arg7: memref<1x1x256xf32, #tpu.memory_space<vmem>>, %arg8: memref<2x256xf32, #tpu.memory_space<vmem>>) attributes {dimension_semantics = [#tpu.dimension_semantics<parallel>, #tpu.dimension_semantics<parallel>, #tpu.dimension_semantics<arbitrary>], iteration_bounds = array<i64: 1, 1, 1>, scalar_prefetch = 0 : i64, scratch_operands = 1 : i64, tpu.core_type = #tpu.core_type<tc>, window_params = [{transform_indices = @transform_0, window_bounds = array<i64: 2, 128>}, {transform_indices = @transform_1, window_bounds = array<i64: 128, 256>}, {transform_indices = @transform_2, window_bounds = array<i64: 2, 256>}, {transform_indices = @transform_3, window_bounds = array<i64: 1, 1, 256>}, {transform_indices = @transform_4, window_bounds = array<i64: 1, 1, 256>}]} {
    %c2_i32 = arith.constant 2 : i32
    %0 = arith.muli %arg0, %c2_i32 : i32
    %c0_i32 = arith.constant 0 : i32
    %1 = arith.cmpi eq, %arg2, %c0_i32 : i32
    %2 = arith.extui %1 : i1 to i32
    %c0_i32_0 = arith.constant 0 : i32
    %3 = arith.cmpi ne, %2, %c0_i32_0 : i32
    scf.if %3 {
      %cst_10 = arith.constant 0.000000e+00 : f32
      %13 = vector.broadcast %cst_10 : f32 to vector<2x256xf32>
      %c0_11 = arith.constant 0 : index
      %c0_12 = arith.constant 0 : index
      %14 = vector.load %arg8[%c0_11, %c0_12] : memref<2x256xf32, #tpu.memory_space<vmem>>, vector<2x256xf32>
      tpu.vector_store %arg8[%c0_11, %c0_12], %13 {strides = array<i32>} : memref<2x256xf32, #tpu.memory_space<vmem>>, vector<2x256xf32>,
    } else {
    }
    %c0 = arith.constant 0 : index
    %c0_1 = arith.constant 0 : index
    %4 = vector.load %arg8[%c0, %c0_1] : memref<2x256xf32, #tpu.memory_space<vmem>>, vector<2x256xf32>
    %c0_2 = arith.constant 0 : index
    %c0_3 = arith.constant 0 : index
    %5 = vector.load %arg3[%c0_2, %c0_3] : memref<2x128xbf16, #tpu.memory_space<vmem>>, vector<2x128xbf16>
    %c0_4 = arith.constant 0 : index
    %c0_5 = arith.constant 0 : index
    %6 = vector.load %arg4[%c0_4, %c0_5] : memref<128x256xbf16, #tpu.memory_space<vmem>>, vector<128x256xbf16>
    %cst = arith.constant dense<0.000000e+00> : vector<2x256xf32>
    %7 = tpu.matmul %5, %6, %cst {dimension_numbers = #tpu.dot_dimension_numbers<[1], [0], [0], [1], [0, 0, 1, 1], [], []>} : vector<2x128xbf16>, vector<128x256xbf16>, vector<2x256xf32> -> vector<2x256xf32>
    %8 = arith.addf %4, %7 : vector<2x256xf32>
    %c0_6 = arith.constant 0 : index
    %c0_7 = arith.constant 0 : index
    %9 = vector.load %arg8[%c0_6, %c0_7] : memref<2x256xf32, #tpu.memory_space<vmem>>, vector<2x256xf32>
    tpu.vector_store %arg8[%c0_6, %c0_7], %8 {strides = array<i32>} : memref<2x256xf32, #tpu.memory_space<vmem>>, vector<2x256xf32>,
    %c0_i32_8 = arith.constant 0 : i32
    %10 = arith.cmpi eq, %arg2, %c0_i32_8 : i32
    %11 = arith.extui %10 : i1 to i32
    %c0_i32_9 = arith.constant 0 : i32
    %12 = arith.cmpi ne, %11, %c0_i32_9 : i32
    scf.if %12 {
      %c0_10 = arith.constant 0 : index
      %c0_11 = arith.constant 0 : index
      %13 = vector.load %arg8[%c0_10, %c0_11] : memref<2x256xf32, #tpu.memory_space<vmem>>, vector<2x256xf32>
      %14 = arith.truncf %13 : vector<2x256xf32> to vector<2x256xbf16>
      %c0_12 = arith.constant 0 : index
      %c0_13 = arith.constant 0 : index
      %15 = vector.load %arg5[%c0_12, %c0_13] : memref<2x256xbf16, #tpu.memory_space<vmem>>, vector<2x256xbf16>
      tpu.vector_store %arg5[%c0_12, %c0_13], %14 {strides = array<i32>} : memref<2x256xbf16, #tpu.memory_space<vmem>>, vector<2x256xbf16>,
      %16 = tpu.iota {dimensions = array<i32: 0>} : vector<2x256xi32>
      %17 = vector.broadcast %0 : i32 to vector<2x256xi32>
      %18 = arith.addi %16, %17 : vector<2x256xi32>
      %c2_i32_14 = arith.constant 2 : i32
      %19 = vector.broadcast %c2_i32_14 : i32 to vector<2x256xi32>
      %20 = arith.cmpi slt, %18, %19 : vector<2x256xi32>
      %cst_15 = arith.constant 0.000000e+00 : f32
      %21 = vector.broadcast %cst_15 : f32 to vector<2x256xf32>
      %22 = arith.select %20, %13, %21 : vector<2x256xi1>, vector<2x256xf32>
      %cst_16 = arith.constant dense<0.000000e+00> : vector<256xf32>
      %23 = vector.multi_reduction <add>, %22, %cst_16 [0] : vector<2x256xf32> to vector<256xf32>
      %24 = vector.shape_cast %23 : vector<256xf32> to vector<1x256xf32>
      %25 = vector.shape_cast %24 : vector<1x256xf32> to vector<1x1x256xf32>
      %c0_17 = arith.constant 0 : index
      %c0_18 = arith.constant 0 : index
      %c0_19 = arith.constant 0 : index
      %26 = vector.load %arg6[%c0_17, %c0_18, %c0_19] : memref<1x1x256xf32, #tpu.memory_space<vmem>>, vector<1x1x256xf32>
      tpu.vector_store %arg6[%c0_17, %c0_18, %c0_19], %25 {strides = array<i32>} : memref<1x1x256xf32, #tpu.memory_space<vmem>>, vector<1x1x256xf32>,
      %27 = arith.mulf %22, %22 : vector<2x256xf32>
      %cst_20 = arith.constant dense<0.000000e+00> : vector<256xf32>
      %28 = vector.multi_reduction <add>, %27, %cst_20 [0] : vector<2x256xf32> to vector<256xf32>
      %29 = vector.shape_cast %28 : vector<256xf32> to vector<1x256xf32>
      %30 = vector.shape_cast %29 : vector<1x256xf32> to vector<1x1x256xf32>
      %c0_21 = arith.constant 0 : index
      %c0_22 = arith.constant 0 : index
      %c0_23 = arith.constant 0 : index
      %31 = vector.load %arg7[%c0_21, %c0_22, %c0_23] : memref<1x1x256xf32, #tpu.memory_space<vmem>>, vector<1x1x256xf32>
      tpu.vector_store %arg7[%c0_21, %c0_22, %c0_23], %30 {strides = array<i32>} : memref<1x1x256xf32, #tpu.memory_space<vmem>>, vector<1x1x256xf32>,
    } else {
    }
    return
  }
  func.func @transform_0(%arg0: i32, %arg1: i32, %arg2: i32) -> (i32, i32) {
    %c0_i32 = arith.constant 0 : i32
    return %arg0, %arg2 : i32, i32
  }
  func.func @transform_1(%arg0: i32, %arg1: i32, %arg2: i32) -> (i32, i32) {
    %c0_i32 = arith.constant 0 : i32
    return %arg2, %arg1 : i32, i32
  }
  func.func @transform_2(%arg0: i32, %arg1: i32, %arg2: i32) -> (i32, i32) {
    %c0_i32 = arith.constant 0 : i32
    return %arg0, %arg1 : i32, i32
  }
  func.func @transform_3(%arg0: i32, %arg1: i32, %arg2: i32) -> (i32, i32, i32) {
    %c0_i32 = arith.constant 0 : i32
    %c0_i32_0 = arith.constant 0 : i32
    return %arg0, %c0_i32, %arg1 : i32, i32, i32
  }
  func.func @transform_4(%arg0: i32, %arg1: i32, %arg2: i32) -> (i32, i32, i32) {
    %c0_i32 = arith.constant 0 : i32
    %c0_i32_0 = arith.constant 0 : i32
    return %arg0, %c0_i32, %arg1 : i32, i32, i32
  }
}

module attributes {stable_mosaic.version = 11 : i64} {
  func.func @_bn_act_kernel(%arg0: i32, %arg1: memref<2x256xbf16, #tpu.memory_space<vmem>>, %arg2: memref<1x256xf32, #tpu.memory_space<vmem>>, %arg3: memref<1x256xf32, #tpu.memory_space<vmem>>, %arg4: memref<2x256xbf16, #tpu.memory_space<vmem>>) attributes {dimension_semantics = [#tpu.dimension_semantics<parallel>], iteration_bounds = array<i64: 1>, scalar_prefetch = 0 : i64, scratch_operands = 0 : i64, tpu.core_type = #tpu.core_type<tc>, window_params = [{transform_indices = @transform_0, window_bounds = array<i64: 2, 256>}, {pipeline_mode = #tpu.pipeline_mode<synchronous>, transform_indices = @transform_1, window_bounds = array<i64: 1, 256>}, {pipeline_mode = #tpu.pipeline_mode<synchronous>, transform_indices = @transform_2, window_bounds = array<i64: 1, 256>}, {transform_indices = @transform_3, window_bounds = array<i64: 2, 256>}]} {
    %c0 = arith.constant 0 : index
    %c0_0 = arith.constant 0 : index
    %0 = vector.load %arg1[%c0, %c0_0] : memref<2x256xbf16, #tpu.memory_space<vmem>>, vector<2x256xbf16>
    %1 = arith.extf %0 : vector<2x256xbf16> to vector<2x256xf32>
    %c0_1 = arith.constant 0 : index
    %c0_2 = arith.constant 0 : index
    %2 = vector.load %arg2[%c0_1, %c0_2] : memref<1x256xf32, #tpu.memory_space<vmem>>, vector<1x256xf32>
    %3 = vector.broadcast %2 : vector<1x256xf32> to vector<2x256xf32>
    %4 = arith.mulf %1, %3 : vector<2x256xf32>
    %c0_3 = arith.constant 0 : index
    %c0_4 = arith.constant 0 : index
    %5 = vector.load %arg3[%c0_3, %c0_4] : memref<1x256xf32, #tpu.memory_space<vmem>>, vector<1x256xf32>
    %6 = vector.broadcast %5 : vector<1x256xf32> to vector<2x256xf32>
    %7 = arith.addf %4, %6 : vector<2x256xf32>
    %8 = arith.truncf %7 : vector<2x256xf32> to vector<2x256xbf16>
    %c0_5 = arith.constant 0 : index
    %c0_6 = arith.constant 0 : index
    %9 = vector.load %arg4[%c0_5, %c0_6] : memref<2x256xbf16, #tpu.memory_space<vmem>>, vector<2x256xbf16>
    tpu.vector_store %arg4[%c0_5, %c0_6], %8 {strides = array<i32>} : memref<2x256xbf16, #tpu.memory_space<vmem>>, vector<2x256xbf16>,
    return
  }
  func.func @transform_0(%arg0: i32) -> (i32, i32) {
    %c0_i32 = arith.constant 0 : i32
    %c0_i32_0 = arith.constant 0 : i32
    return %arg0, %c0_i32 : i32, i32
  }
  func.func @transform_1(%arg0: i32) -> (i32, i32) {
    %c0_i32 = arith.constant 0 : i32
    %c0_i32_0 = arith.constant 0 : i32
    %c0_i32_1 = arith.constant 0 : i32
    return %c0_i32, %c0_i32_0 : i32, i32
  }
  func.func @transform_2(%arg0: i32) -> (i32, i32) {
    %c0_i32 = arith.constant 0 : i32
    %c0_i32_0 = arith.constant 0 : i32
    %c0_i32_1 = arith.constant 0 : i32
    return %c0_i32, %c0_i32_0 : i32, i32
  }
  func.func @transform_3(%arg0: i32) -> (i32, i32) {
    %c0_i32 = arith.constant 0 : i32
    %c0_i32_0 = arith.constant 0 : i32
    return %arg0, %c0_i32 : i32, i32
  }
}

module attributes {stable_mosaic.version = 11 : i64} {
  func.func @_conv_matmul_kernel(%arg0: i32, %arg1: i32, %arg2: i32, %arg3: memref<2x384xbf16, #tpu.memory_space<vmem>>, %arg4: memref<384x256xbf16, #tpu.memory_space<vmem>>, %arg5: memref<2x256xbf16, #tpu.memory_space<vmem>>, %arg6: memref<1x1x256xf32, #tpu.memory_space<vmem>>, %arg7: memref<1x1x256xf32, #tpu.memory_space<vmem>>, %arg8: memref<2x256xf32, #tpu.memory_space<vmem>>) attributes {dimension_semantics = [#tpu.dimension_semantics<parallel>, #tpu.dimension_semantics<parallel>, #tpu.dimension_semantics<arbitrary>], iteration_bounds = array<i64: 1, 1, 3>, scalar_prefetch = 0 : i64, scratch_operands = 1 : i64, tpu.core_type = #tpu.core_type<tc>, window_params = [{transform_indices = @transform_0, window_bounds = array<i64: 2, 384>}, {transform_indices = @transform_1, window_bounds = array<i64: 384, 256>}, {transform_indices = @transform_2, window_bounds = array<i64: 2, 256>}, {transform_indices = @transform_3, window_bounds = array<i64: 1, 1, 256>}, {transform_indices = @transform_4, window_bounds = array<i64: 1, 1, 256>}]} {
    %c2_i32 = arith.constant 2 : i32
    %0 = arith.muli %arg0, %c2_i32 : i32
    %c0_i32 = arith.constant 0 : i32
    %1 = arith.cmpi eq, %arg2, %c0_i32 : i32
    %2 = arith.extui %1 : i1 to i32
    %c0_i32_0 = arith.constant 0 : i32
    %3 = arith.cmpi ne, %2, %c0_i32_0 : i32
    scf.if %3 {
      %cst_10 = arith.constant 0.000000e+00 : f32
      %13 = vector.broadcast %cst_10 : f32 to vector<2x256xf32>
      %c0_11 = arith.constant 0 : index
      %c0_12 = arith.constant 0 : index
      %14 = vector.load %arg8[%c0_11, %c0_12] : memref<2x256xf32, #tpu.memory_space<vmem>>, vector<2x256xf32>
      tpu.vector_store %arg8[%c0_11, %c0_12], %13 {strides = array<i32>} : memref<2x256xf32, #tpu.memory_space<vmem>>, vector<2x256xf32>,
    } else {
    }
    %c0 = arith.constant 0 : index
    %c0_1 = arith.constant 0 : index
    %4 = vector.load %arg8[%c0, %c0_1] : memref<2x256xf32, #tpu.memory_space<vmem>>, vector<2x256xf32>
    %c0_2 = arith.constant 0 : index
    %c0_3 = arith.constant 0 : index
    %5 = vector.load %arg3[%c0_2, %c0_3] : memref<2x384xbf16, #tpu.memory_space<vmem>>, vector<2x384xbf16>
    %c0_4 = arith.constant 0 : index
    %c0_5 = arith.constant 0 : index
    %6 = vector.load %arg4[%c0_4, %c0_5] : memref<384x256xbf16, #tpu.memory_space<vmem>>, vector<384x256xbf16>
    %cst = arith.constant dense<0.000000e+00> : vector<2x256xf32>
    %7 = tpu.matmul %5, %6, %cst {dimension_numbers = #tpu.dot_dimension_numbers<[1], [0], [0], [1], [0, 0, 1, 1], [], []>} : vector<2x384xbf16>, vector<384x256xbf16>, vector<2x256xf32> -> vector<2x256xf32>
    %8 = arith.addf %4, %7 : vector<2x256xf32>
    %c0_6 = arith.constant 0 : index
    %c0_7 = arith.constant 0 : index
    %9 = vector.load %arg8[%c0_6, %c0_7] : memref<2x256xf32, #tpu.memory_space<vmem>>, vector<2x256xf32>
    tpu.vector_store %arg8[%c0_6, %c0_7], %8 {strides = array<i32>} : memref<2x256xf32, #tpu.memory_space<vmem>>, vector<2x256xf32>,
    %c2_i32_8 = arith.constant 2 : i32
    %10 = arith.cmpi eq, %arg2, %c2_i32_8 : i32
    %11 = arith.extui %10 : i1 to i32
    %c0_i32_9 = arith.constant 0 : i32
    %12 = arith.cmpi ne, %11, %c0_i32_9 : i32
    scf.if %12 {
      %c0_10 = arith.constant 0 : index
      %c0_11 = arith.constant 0 : index
      %13 = vector.load %arg8[%c0_10, %c0_11] : memref<2x256xf32, #tpu.memory_space<vmem>>, vector<2x256xf32>
      %14 = arith.truncf %13 : vector<2x256xf32> to vector<2x256xbf16>
      %c0_12 = arith.constant 0 : index
      %c0_13 = arith.constant 0 : index
      %15 = vector.load %arg5[%c0_12, %c0_13] : memref<2x256xbf16, #tpu.memory_space<vmem>>, vector<2x256xbf16>
      tpu.vector_store %arg5[%c0_12, %c0_13], %14 {strides = array<i32>} : memref<2x256xbf16, #tpu.memory_space<vmem>>, vector<2x256xbf16>,
      %16 = tpu.iota {dimensions = array<i32: 0>} : vector<2x256xi32>
      %17 = vector.broadcast %0 : i32 to vector<2x256xi32>
      %18 = arith.addi %16, %17 : vector<2x256xi32>
      %c2_i32_14 = arith.constant 2 : i32
      %19 = vector.broadcast %c2_i32_14 : i32 to vector<2x256xi32>
      %20 = arith.cmpi slt, %18, %19 : vector<2x256xi32>
      %cst_15 = arith.constant 0.000000e+00 : f32
      %21 = vector.broadcast %cst_15 : f32 to vector<2x256xf32>
      %22 = arith.select %20, %13, %21 : vector<2x256xi1>, vector<2x256xf32>
      %cst_16 = arith.constant dense<0.000000e+00> : vector<256xf32>
      %23 = vector.multi_reduction <add>, %22, %cst_16 [0] : vector<2x256xf32> to vector<256xf32>
      %24 = vector.shape_cast %23 : vector<256xf32> to vector<1x256xf32>
      %25 = vector.shape_cast %24 : vector<1x256xf32> to vector<1x1x256xf32>
      %c0_17 = arith.constant 0 : index
      %c0_18 = arith.constant 0 : index
      %c0_19 = arith.constant 0 : index
      %26 = vector.load %arg6[%c0_17, %c0_18, %c0_19] : memref<1x1x256xf32, #tpu.memory_space<vmem>>, vector<1x1x256xf32>
      tpu.vector_store %arg6[%c0_17, %c0_18, %c0_19], %25 {strides = array<i32>} : memref<1x1x256xf32, #tpu.memory_space<vmem>>, vector<1x1x256xf32>,
      %27 = arith.mulf %22, %22 : vector<2x256xf32>
      %cst_20 = arith.constant dense<0.000000e+00> : vector<256xf32>
      %28 = vector.multi_reduction <add>, %27, %cst_20 [0] : vector<2x256xf32> to vector<256xf32>
      %29 = vector.shape_cast %28 : vector<256xf32> to vector<1x256xf32>
      %30 = vector.shape_cast %29 : vector<1x256xf32> to vector<1x1x256xf32>
      %c0_21 = arith.constant 0 : index
      %c0_22 = arith.constant 0 : index
      %c0_23 = arith.constant 0 : index
      %31 = vector.load %arg7[%c0_21, %c0_22, %c0_23] : memref<1x1x256xf32, #tpu.memory_space<vmem>>, vector<1x1x256xf32>
      tpu.vector_store %arg7[%c0_21, %c0_22, %c0_23], %30 {strides = array<i32>} : memref<1x1x256xf32, #tpu.memory_space<vmem>>, vector<1x1x256xf32>,
    } else {
    }
    return
  }
  func.func @transform_0(%arg0: i32, %arg1: i32, %arg2: i32) -> (i32, i32) {
    %c0_i32 = arith.constant 0 : i32
    return %arg0, %arg2 : i32, i32
  }
  func.func @transform_1(%arg0: i32, %arg1: i32, %arg2: i32) -> (i32, i32) {
    %c0_i32 = arith.constant 0 : i32
    return %arg2, %arg1 : i32, i32
  }
  func.func @transform_2(%arg0: i32, %arg1: i32, %arg2: i32) -> (i32, i32) {
    %c0_i32 = arith.constant 0 : i32
    return %arg0, %arg1 : i32, i32
  }
  func.func @transform_3(%arg0: i32, %arg1: i32, %arg2: i32) -> (i32, i32, i32) {
    %c0_i32 = arith.constant 0 : i32
    %c0_i32_0 = arith.constant 0 : i32
    return %arg0, %c0_i32, %arg1 : i32, i32, i32
  }
  func.func @transform_4(%arg0: i32, %arg1: i32, %arg2: i32) -> (i32, i32, i32) {
    %c0_i32 = arith.constant 0 : i32
    %c0_i32_0 = arith.constant 0 : i32
    return %arg0, %c0_i32, %arg1 : i32, i32, i32
  }
}

module attributes {stable_mosaic.version = 11 : i64} {
  func.func @_bn_act_kernel(%arg0: i32, %arg1: memref<2x256xbf16, #tpu.memory_space<vmem>>, %arg2: memref<1x256xf32, #tpu.memory_space<vmem>>, %arg3: memref<1x256xf32, #tpu.memory_space<vmem>>, %arg4: memref<2x256xbf16, #tpu.memory_space<vmem>>) attributes {dimension_semantics = [#tpu.dimension_semantics<parallel>], iteration_bounds = array<i64: 1>, scalar_prefetch = 0 : i64, scratch_operands = 0 : i64, tpu.core_type = #tpu.core_type<tc>, window_params = [{transform_indices = @transform_0, window_bounds = array<i64: 2, 256>}, {pipeline_mode = #tpu.pipeline_mode<synchronous>, transform_indices = @transform_1, window_bounds = array<i64: 1, 256>}, {pipeline_mode = #tpu.pipeline_mode<synchronous>, transform_indices = @transform_2, window_bounds = array<i64: 1, 256>}, {transform_indices = @transform_3, window_bounds = array<i64: 2, 256>}]} {
    %c0 = arith.constant 0 : index
    %c0_0 = arith.constant 0 : index
    %0 = vector.load %arg1[%c0, %c0_0] : memref<2x256xbf16, #tpu.memory_space<vmem>>, vector<2x256xbf16>
    %1 = arith.extf %0 : vector<2x256xbf16> to vector<2x256xf32>
    %c0_1 = arith.constant 0 : index
    %c0_2 = arith.constant 0 : index
    %2 = vector.load %arg2[%c0_1, %c0_2] : memref<1x256xf32, #tpu.memory_space<vmem>>, vector<1x256xf32>
    %3 = vector.broadcast %2 : vector<1x256xf32> to vector<2x256xf32>
    %4 = arith.mulf %1, %3 : vector<2x256xf32>
    %c0_3 = arith.constant 0 : index
    %c0_4 = arith.constant 0 : index
    %5 = vector.load %arg3[%c0_3, %c0_4] : memref<1x256xf32, #tpu.memory_space<vmem>>, vector<1x256xf32>
    %6 = vector.broadcast %5 : vector<1x256xf32> to vector<2x256xf32>
    %7 = arith.addf %4, %6 : vector<2x256xf32>
    %cst = arith.constant 0.000000e+00 : f32
    %8 = vector.broadcast %cst : f32 to vector<2x256xf32>
    %9 = arith.maximumf %7, %8 : vector<2x256xf32>
    %10 = arith.truncf %9 : vector<2x256xf32> to vector<2x256xbf16>
    %c0_5 = arith.constant 0 : index
    %c0_6 = arith.constant 0 : index
    %11 = vector.load %arg4[%c0_5, %c0_6] : memref<2x256xbf16, #tpu.memory_space<vmem>>, vector<2x256xbf16>
    tpu.vector_store %arg4[%c0_5, %c0_6], %10 {strides = array<i32>} : memref<2x256xbf16, #tpu.memory_space<vmem>>, vector<2x256xbf16>,
    return
  }
  func.func @transform_0(%arg0: i32) -> (i32, i32) {
    %c0_i32 = arith.constant 0 : i32
    %c0_i32_0 = arith.constant 0 : i32
    return %arg0, %c0_i32 : i32, i32
  }
  func.func @transform_1(%arg0: i32) -> (i32, i32) {
    %c0_i32 = arith.constant 0 : i32
    %c0_i32_0 = arith.constant 0 : i32
    %c0_i32_1 = arith.constant 0 : i32
    return %c0_i32, %c0_i32_0 : i32, i32
  }
  func.func @transform_2(%arg0: i32) -> (i32, i32) {
    %c0_i32 = arith.constant 0 : i32
    %c0_i32_0 = arith.constant 0 : i32
    %c0_i32_1 = arith.constant 0 : i32
    return %c0_i32, %c0_i32_0 : i32, i32
  }
  func.func @transform_3(%arg0: i32) -> (i32, i32) {
    %c0_i32 = arith.constant 0 : i32
    %c0_i32_0 = arith.constant 0 : i32
    return %arg0, %c0_i32 : i32, i32
  }
}

module attributes {stable_mosaic.version = 11 : i64} {
  func.func @_conv_matmul_kernel(%arg0: i32, %arg1: i32, %arg2: i32, %arg3: memref<2x384xbf16, #tpu.memory_space<vmem>>, %arg4: memref<384x256xbf16, #tpu.memory_space<vmem>>, %arg5: memref<2x256xbf16, #tpu.memory_space<vmem>>, %arg6: memref<1x1x256xf32, #tpu.memory_space<vmem>>, %arg7: memref<1x1x256xf32, #tpu.memory_space<vmem>>, %arg8: memref<2x256xf32, #tpu.memory_space<vmem>>) attributes {dimension_semantics = [#tpu.dimension_semantics<parallel>, #tpu.dimension_semantics<parallel>, #tpu.dimension_semantics<arbitrary>], iteration_bounds = array<i64: 1, 1, 6>, scalar_prefetch = 0 : i64, scratch_operands = 1 : i64, tpu.core_type = #tpu.core_type<tc>, window_params = [{transform_indices = @transform_0, window_bounds = array<i64: 2, 384>}, {transform_indices = @transform_1, window_bounds = array<i64: 384, 256>}, {transform_indices = @transform_2, window_bounds = array<i64: 2, 256>}, {transform_indices = @transform_3, window_bounds = array<i64: 1, 1, 256>}, {transform_indices = @transform_4, window_bounds = array<i64: 1, 1, 256>}]} {
    %c2_i32 = arith.constant 2 : i32
    %0 = arith.muli %arg0, %c2_i32 : i32
    %c0_i32 = arith.constant 0 : i32
    %1 = arith.cmpi eq, %arg2, %c0_i32 : i32
    %2 = arith.extui %1 : i1 to i32
    %c0_i32_0 = arith.constant 0 : i32
    %3 = arith.cmpi ne, %2, %c0_i32_0 : i32
    scf.if %3 {
      %cst_9 = arith.constant 0.000000e+00 : f32
      %13 = vector.broadcast %cst_9 : f32 to vector<2x256xf32>
      %c0_10 = arith.constant 0 : index
      %c0_11 = arith.constant 0 : index
      %14 = vector.load %arg8[%c0_10, %c0_11] : memref<2x256xf32, #tpu.memory_space<vmem>>, vector<2x256xf32>
      tpu.vector_store %arg8[%c0_10, %c0_11], %13 {strides = array<i32>} : memref<2x256xf32, #tpu.memory_space<vmem>>, vector<2x256xf32>,
    } else {
    }
    %c0 = arith.constant 0 : index
    %c0_1 = arith.constant 0 : index
    %4 = vector.load %arg8[%c0, %c0_1] : memref<2x256xf32, #tpu.memory_space<vmem>>, vector<2x256xf32>
    %c0_2 = arith.constant 0 : index
    %c0_3 = arith.constant 0 : index
    %5 = vector.load %arg3[%c0_2, %c0_3] : memref<2x384xbf16, #tpu.memory_space<vmem>>, vector<2x384xbf16>
    %c0_4 = arith.constant 0 : index
    %c0_5 = arith.constant 0 : index
    %6 = vector.load %arg4[%c0_4, %c0_5] : memref<384x256xbf16, #tpu.memory_space<vmem>>, vector<384x256xbf16>
    %cst = arith.constant dense<0.000000e+00> : vector<2x256xf32>
    %7 = tpu.matmul %5, %6, %cst {dimension_numbers = #tpu.dot_dimension_numbers<[1], [0], [0], [1], [0, 0, 1, 1], [], []>} : vector<2x384xbf16>, vector<384x256xbf16>, vector<2x256xf32> -> vector<2x256xf32>
    %8 = arith.addf %4, %7 : vector<2x256xf32>
    %c0_6 = arith.constant 0 : index
    %c0_7 = arith.constant 0 : index
    %9 = vector.load %arg8[%c0_6, %c0_7] : memref<2x256xf32, #tpu.memory_space<vmem>>, vector<2x256xf32>
    tpu.vector_store %arg8[%c0_6, %c0_7], %8 {strides = array<i32>} : memref<2x256xf32, #tpu.memory_space<vmem>>, vector<2x256xf32>,
    %c5_i32 = arith.constant 5 : i32
    %10 = arith.cmpi eq, %arg2, %c5_i32 : i32
    %11 = arith.extui %10 : i1 to i32
    %c0_i32_8 = arith.constant 0 : i32
    %12 = arith.cmpi ne, %11, %c0_i32_8 : i32
    scf.if %12 {
      %c0_9 = arith.constant 0 : index
      %c0_10 = arith.constant 0 : index
      %13 = vector.load %arg8[%c0_9, %c0_10] : memref<2x256xf32, #tpu.memory_space<vmem>>, vector<2x256xf32>
      %14 = arith.truncf %13 : vector<2x256xf32> to vector<2x256xbf16>
      %c0_11 = arith.constant 0 : index
      %c0_12 = arith.constant 0 : index
      %15 = vector.load %arg5[%c0_11, %c0_12] : memref<2x256xbf16, #tpu.memory_space<vmem>>, vector<2x256xbf16>
      tpu.vector_store %arg5[%c0_11, %c0_12], %14 {strides = array<i32>} : memref<2x256xbf16, #tpu.memory_space<vmem>>, vector<2x256xbf16>,
      %16 = tpu.iota {dimensions = array<i32: 0>} : vector<2x256xi32>
      %17 = vector.broadcast %0 : i32 to vector<2x256xi32>
      %18 = arith.addi %16, %17 : vector<2x256xi32>
      %c2_i32_13 = arith.constant 2 : i32
      %19 = vector.broadcast %c2_i32_13 : i32 to vector<2x256xi32>
      %20 = arith.cmpi slt, %18, %19 : vector<2x256xi32>
      %cst_14 = arith.constant 0.000000e+00 : f32
      %21 = vector.broadcast %cst_14 : f32 to vector<2x256xf32>
      %22 = arith.select %20, %13, %21 : vector<2x256xi1>, vector<2x256xf32>
      %cst_15 = arith.constant dense<0.000000e+00> : vector<256xf32>
      %23 = vector.multi_reduction <add>, %22, %cst_15 [0] : vector<2x256xf32> to vector<256xf32>
      %24 = vector.shape_cast %23 : vector<256xf32> to vector<1x256xf32>
      %25 = vector.shape_cast %24 : vector<1x256xf32> to vector<1x1x256xf32>
      %c0_16 = arith.constant 0 : index
      %c0_17 = arith.constant 0 : index
      %c0_18 = arith.constant 0 : index
      %26 = vector.load %arg6[%c0_16, %c0_17, %c0_18] : memref<1x1x256xf32, #tpu.memory_space<vmem>>, vector<1x1x256xf32>
      tpu.vector_store %arg6[%c0_16, %c0_17, %c0_18], %25 {strides = array<i32>} : memref<1x1x256xf32, #tpu.memory_space<vmem>>, vector<1x1x256xf32>,
      %27 = arith.mulf %22, %22 : vector<2x256xf32>
      %cst_19 = arith.constant dense<0.000000e+00> : vector<256xf32>
      %28 = vector.multi_reduction <add>, %27, %cst_19 [0] : vector<2x256xf32> to vector<256xf32>
      %29 = vector.shape_cast %28 : vector<256xf32> to vector<1x256xf32>
      %30 = vector.shape_cast %29 : vector<1x256xf32> to vector<1x1x256xf32>
      %c0_20 = arith.constant 0 : index
      %c0_21 = arith.constant 0 : index
      %c0_22 = arith.constant 0 : index
      %31 = vector.load %arg7[%c0_20, %c0_21, %c0_22] : memref<1x1x256xf32, #tpu.memory_space<vmem>>, vector<1x1x256xf32>
      tpu.vector_store %arg7[%c0_20, %c0_21, %c0_22], %30 {strides = array<i32>} : memref<1x1x256xf32, #tpu.memory_space<vmem>>, vector<1x1x256xf32>,
    } else {
    }
    return
  }
  func.func @transform_0(%arg0: i32, %arg1: i32, %arg2: i32) -> (i32, i32) {
    %c0_i32 = arith.constant 0 : i32
    return %arg0, %arg2 : i32, i32
  }
  func.func @transform_1(%arg0: i32, %arg1: i32, %arg2: i32) -> (i32, i32) {
    %c0_i32 = arith.constant 0 : i32
    return %arg2, %arg1 : i32, i32
  }
  func.func @transform_2(%arg0: i32, %arg1: i32, %arg2: i32) -> (i32, i32) {
    %c0_i32 = arith.constant 0 : i32
    return %arg0, %arg1 : i32, i32
  }
  func.func @transform_3(%arg0: i32, %arg1: i32, %arg2: i32) -> (i32, i32, i32) {
    %c0_i32 = arith.constant 0 : i32
    %c0_i32_0 = arith.constant 0 : i32
    return %arg0, %c0_i32, %arg1 : i32, i32, i32
  }
  func.func @transform_4(%arg0: i32, %arg1: i32, %arg2: i32) -> (i32, i32, i32) {
    %c0_i32 = arith.constant 0 : i32
    %c0_i32_0 = arith.constant 0 : i32
    return %arg0, %c0_i32, %arg1 : i32, i32, i32
  }
}

module attributes {stable_mosaic.version = 11 : i64} {
  func.func @_bn_act_res_kernel(%arg0: i32, %arg1: memref<2x256xbf16, #tpu.memory_space<vmem>>, %arg2: memref<1x256xf32, #tpu.memory_space<vmem>>, %arg3: memref<1x256xf32, #tpu.memory_space<vmem>>, %arg4: memref<2x256xbf16, #tpu.memory_space<vmem>>, %arg5: memref<2x256xbf16, #tpu.memory_space<vmem>>) attributes {dimension_semantics = [#tpu.dimension_semantics<parallel>], iteration_bounds = array<i64: 1>, scalar_prefetch = 0 : i64, scratch_operands = 0 : i64, tpu.core_type = #tpu.core_type<tc>, window_params = [{transform_indices = @transform_0, window_bounds = array<i64: 2, 256>}, {pipeline_mode = #tpu.pipeline_mode<synchronous>, transform_indices = @transform_1, window_bounds = array<i64: 1, 256>}, {pipeline_mode = #tpu.pipeline_mode<synchronous>, transform_indices = @transform_2, window_bounds = array<i64: 1, 256>}, {transform_indices = @transform_3, window_bounds = array<i64: 2, 256>}, {transform_indices = @transform_4, window_bounds = array<i64: 2, 256>}]} {
    %c0 = arith.constant 0 : index
    %c0_0 = arith.constant 0 : index
    %0 = vector.load %arg1[%c0, %c0_0] : memref<2x256xbf16, #tpu.memory_space<vmem>>, vector<2x256xbf16>
    %1 = arith.extf %0 : vector<2x256xbf16> to vector<2x256xf32>
    %c0_1 = arith.constant 0 : index
    %c0_2 = arith.constant 0 : index
    %2 = vector.load %arg2[%c0_1, %c0_2] : memref<1x256xf32, #tpu.memory_space<vmem>>, vector<1x256xf32>
    %3 = vector.broadcast %2 : vector<1x256xf32> to vector<2x256xf32>
    %4 = arith.mulf %1, %3 : vector<2x256xf32>
    %c0_3 = arith.constant 0 : index
    %c0_4 = arith.constant 0 : index
    %5 = vector.load %arg3[%c0_3, %c0_4] : memref<1x256xf32, #tpu.memory_space<vmem>>, vector<1x256xf32>
    %6 = vector.broadcast %5 : vector<1x256xf32> to vector<2x256xf32>
    %7 = arith.addf %4, %6 : vector<2x256xf32>
    %c0_5 = arith.constant 0 : index
    %c0_6 = arith.constant 0 : index
    %8 = vector.load %arg4[%c0_5, %c0_6] : memref<2x256xbf16, #tpu.memory_space<vmem>>, vector<2x256xbf16>
    %9 = arith.extf %8 : vector<2x256xbf16> to vector<2x256xf32>
    %10 = arith.addf %7, %9 : vector<2x256xf32>
    %cst = arith.constant 0.000000e+00 : f32
    %11 = vector.broadcast %cst : f32 to vector<2x256xf32>
    %12 = arith.maximumf %10, %11 : vector<2x256xf32>
    %13 = arith.truncf %12 : vector<2x256xf32> to vector<2x256xbf16>
    %c0_7 = arith.constant 0 : index
    %c0_8 = arith.constant 0 : index
    %14 = vector.load %arg5[%c0_7, %c0_8] : memref<2x256xbf16, #tpu.memory_space<vmem>>, vector<2x256xbf16>
    tpu.vector_store %arg5[%c0_7, %c0_8], %13 {strides = array<i32>} : memref<2x256xbf16, #tpu.memory_space<vmem>>, vector<2x256xbf16>,
    return
  }
  func.func @transform_0(%arg0: i32) -> (i32, i32) {
    %c0_i32 = arith.constant 0 : i32
    %c0_i32_0 = arith.constant 0 : i32
    return %arg0, %c0_i32 : i32, i32
  }
  func.func @transform_1(%arg0: i32) -> (i32, i32) {
    %c0_i32 = arith.constant 0 : i32
    %c0_i32_0 = arith.constant 0 : i32
    %c0_i32_1 = arith.constant 0 : i32
    return %c0_i32, %c0_i32_0 : i32, i32
  }
  func.func @transform_2(%arg0: i32) -> (i32, i32) {
    %c0_i32 = arith.constant 0 : i32
    %c0_i32_0 = arith.constant 0 : i32
    %c0_i32_1 = arith.constant 0 : i32
    return %c0_i32, %c0_i32_0 : i32, i32
  }
  func.func @transform_3(%arg0: i32) -> (i32, i32) {
    %c0_i32 = arith.constant 0 : i32
    %c0_i32_0 = arith.constant 0 : i32
    return %arg0, %c0_i32 : i32, i32
  }
  func.func @transform_4(%arg0: i32) -> (i32, i32) {
    %c0_i32 = arith.constant 0 : i32
    %c0_i32_0 = arith.constant 0 : i32
    return %arg0, %c0_i32 : i32, i32
  }
}

module attributes {stable_mosaic.version = 11 : i64} {
  func.func @_conv_matmul_kernel(%arg0: i32, %arg1: i32, %arg2: i32, %arg3: memref<2x256xbf16, #tpu.memory_space<vmem>>, %arg4: memref<256x256xbf16, #tpu.memory_space<vmem>>, %arg5: memref<2x256xbf16, #tpu.memory_space<vmem>>, %arg6: memref<1x1x256xf32, #tpu.memory_space<vmem>>, %arg7: memref<1x1x256xf32, #tpu.memory_space<vmem>>, %arg8: memref<2x256xf32, #tpu.memory_space<vmem>>) attributes {dimension_semantics = [#tpu.dimension_semantics<parallel>, #tpu.dimension_semantics<parallel>, #tpu.dimension_semantics<arbitrary>], iteration_bounds = array<i64: 1, 2, 1>, scalar_prefetch = 0 : i64, scratch_operands = 1 : i64, tpu.core_type = #tpu.core_type<tc>, window_params = [{transform_indices = @transform_0, window_bounds = array<i64: 2, 256>}, {transform_indices = @transform_1, window_bounds = array<i64: 256, 256>}, {transform_indices = @transform_2, window_bounds = array<i64: 2, 256>}, {transform_indices = @transform_3, window_bounds = array<i64: 1, 1, 256>}, {transform_indices = @transform_4, window_bounds = array<i64: 1, 1, 256>}]} {
    %c2_i32 = arith.constant 2 : i32
    %0 = arith.muli %arg0, %c2_i32 : i32
    %c0_i32 = arith.constant 0 : i32
    %1 = arith.cmpi eq, %arg2, %c0_i32 : i32
    %2 = arith.extui %1 : i1 to i32
    %c0_i32_0 = arith.constant 0 : i32
    %3 = arith.cmpi ne, %2, %c0_i32_0 : i32
    scf.if %3 {
      %cst_10 = arith.constant 0.000000e+00 : f32
      %13 = vector.broadcast %cst_10 : f32 to vector<2x256xf32>
      %c0_11 = arith.constant 0 : index
      %c0_12 = arith.constant 0 : index
      %14 = vector.load %arg8[%c0_11, %c0_12] : memref<2x256xf32, #tpu.memory_space<vmem>>, vector<2x256xf32>
      tpu.vector_store %arg8[%c0_11, %c0_12], %13 {strides = array<i32>} : memref<2x256xf32, #tpu.memory_space<vmem>>, vector<2x256xf32>,
    } else {
    }
    %c0 = arith.constant 0 : index
    %c0_1 = arith.constant 0 : index
    %4 = vector.load %arg8[%c0, %c0_1] : memref<2x256xf32, #tpu.memory_space<vmem>>, vector<2x256xf32>
    %c0_2 = arith.constant 0 : index
    %c0_3 = arith.constant 0 : index
    %5 = vector.load %arg3[%c0_2, %c0_3] : memref<2x256xbf16, #tpu.memory_space<vmem>>, vector<2x256xbf16>
    %c0_4 = arith.constant 0 : index
    %c0_5 = arith.constant 0 : index
    %6 = vector.load %arg4[%c0_4, %c0_5] : memref<256x256xbf16, #tpu.memory_space<vmem>>, vector<256x256xbf16>
    %cst = arith.constant dense<0.000000e+00> : vector<2x256xf32>
    %7 = tpu.matmul %5, %6, %cst {dimension_numbers = #tpu.dot_dimension_numbers<[1], [0], [0], [1], [0, 0, 1, 1], [], []>} : vector<2x256xbf16>, vector<256x256xbf16>, vector<2x256xf32> -> vector<2x256xf32>
    %8 = arith.addf %4, %7 : vector<2x256xf32>
    %c0_6 = arith.constant 0 : index
    %c0_7 = arith.constant 0 : index
    %9 = vector.load %arg8[%c0_6, %c0_7] : memref<2x256xf32, #tpu.memory_space<vmem>>, vector<2x256xf32>
    tpu.vector_store %arg8[%c0_6, %c0_7], %8 {strides = array<i32>} : memref<2x256xf32, #tpu.memory_space<vmem>>, vector<2x256xf32>,
    %c0_i32_8 = arith.constant 0 : i32
    %10 = arith.cmpi eq, %arg2, %c0_i32_8 : i32
    %11 = arith.extui %10 : i1 to i32
    %c0_i32_9 = arith.constant 0 : i32
    %12 = arith.cmpi ne, %11, %c0_i32_9 : i32
    scf.if %12 {
      %c0_10 = arith.constant 0 : index
      %c0_11 = arith.constant 0 : index
      %13 = vector.load %arg8[%c0_10, %c0_11] : memref<2x256xf32, #tpu.memory_space<vmem>>, vector<2x256xf32>
      %14 = arith.truncf %13 : vector<2x256xf32> to vector<2x256xbf16>
      %c0_12 = arith.constant 0 : index
      %c0_13 = arith.constant 0 : index
      %15 = vector.load %arg5[%c0_12, %c0_13] : memref<2x256xbf16, #tpu.memory_space<vmem>>, vector<2x256xbf16>
      tpu.vector_store %arg5[%c0_12, %c0_13], %14 {strides = array<i32>} : memref<2x256xbf16, #tpu.memory_space<vmem>>, vector<2x256xbf16>,
      %16 = tpu.iota {dimensions = array<i32: 0>} : vector<2x256xi32>
      %17 = vector.broadcast %0 : i32 to vector<2x256xi32>
      %18 = arith.addi %16, %17 : vector<2x256xi32>
      %c2_i32_14 = arith.constant 2 : i32
      %19 = vector.broadcast %c2_i32_14 : i32 to vector<2x256xi32>
      %20 = arith.cmpi slt, %18, %19 : vector<2x256xi32>
      %cst_15 = arith.constant 0.000000e+00 : f32
      %21 = vector.broadcast %cst_15 : f32 to vector<2x256xf32>
      %22 = arith.select %20, %13, %21 : vector<2x256xi1>, vector<2x256xf32>
      %cst_16 = arith.constant dense<0.000000e+00> : vector<256xf32>
      %23 = vector.multi_reduction <add>, %22, %cst_16 [0] : vector<2x256xf32> to vector<256xf32>
      %24 = vector.shape_cast %23 : vector<256xf32> to vector<1x256xf32>
      %25 = vector.shape_cast %24 : vector<1x256xf32> to vector<1x1x256xf32>
      %c0_17 = arith.constant 0 : index
      %c0_18 = arith.constant 0 : index
      %c0_19 = arith.constant 0 : index
      %26 = vector.load %arg6[%c0_17, %c0_18, %c0_19] : memref<1x1x256xf32, #tpu.memory_space<vmem>>, vector<1x1x256xf32>
      tpu.vector_store %arg6[%c0_17, %c0_18, %c0_19], %25 {strides = array<i32>} : memref<1x1x256xf32, #tpu.memory_space<vmem>>, vector<1x1x256xf32>,
      %27 = arith.mulf %22, %22 : vector<2x256xf32>
      %cst_20 = arith.constant dense<0.000000e+00> : vector<256xf32>
      %28 = vector.multi_reduction <add>, %27, %cst_20 [0] : vector<2x256xf32> to vector<256xf32>
      %29 = vector.shape_cast %28 : vector<256xf32> to vector<1x256xf32>
      %30 = vector.shape_cast %29 : vector<1x256xf32> to vector<1x1x256xf32>
      %c0_21 = arith.constant 0 : index
      %c0_22 = arith.constant 0 : index
      %c0_23 = arith.constant 0 : index
      %31 = vector.load %arg7[%c0_21, %c0_22, %c0_23] : memref<1x1x256xf32, #tpu.memory_space<vmem>>, vector<1x1x256xf32>
      tpu.vector_store %arg7[%c0_21, %c0_22, %c0_23], %30 {strides = array<i32>} : memref<1x1x256xf32, #tpu.memory_space<vmem>>, vector<1x1x256xf32>,
    } else {
    }
    return
  }
  func.func @transform_0(%arg0: i32, %arg1: i32, %arg2: i32) -> (i32, i32) {
    %c0_i32 = arith.constant 0 : i32
    return %arg0, %arg2 : i32, i32
  }
  func.func @transform_1(%arg0: i32, %arg1: i32, %arg2: i32) -> (i32, i32) {
    %c0_i32 = arith.constant 0 : i32
    return %arg2, %arg1 : i32, i32
  }
  func.func @transform_2(%arg0: i32, %arg1: i32, %arg2: i32) -> (i32, i32) {
    %c0_i32 = arith.constant 0 : i32
    return %arg0, %arg1 : i32, i32
  }
  func.func @transform_3(%arg0: i32, %arg1: i32, %arg2: i32) -> (i32, i32, i32) {
    %c0_i32 = arith.constant 0 : i32
    %c0_i32_0 = arith.constant 0 : i32
    return %arg0, %c0_i32, %arg1 : i32, i32, i32
  }
  func.func @transform_4(%arg0: i32, %arg1: i32, %arg2: i32) -> (i32, i32, i32) {
    %c0_i32 = arith.constant 0 : i32
    %c0_i32_0 = arith.constant 0 : i32
    return %arg0, %c0_i32, %arg1 : i32, i32, i32
  }
}

module attributes {stable_mosaic.version = 11 : i64} {
  func.func @_bn_act_kernel(%arg0: i32, %arg1: memref<2x512xbf16, #tpu.memory_space<vmem>>, %arg2: memref<1x512xf32, #tpu.memory_space<vmem>>, %arg3: memref<1x512xf32, #tpu.memory_space<vmem>>, %arg4: memref<2x512xbf16, #tpu.memory_space<vmem>>) attributes {dimension_semantics = [#tpu.dimension_semantics<parallel>], iteration_bounds = array<i64: 1>, scalar_prefetch = 0 : i64, scratch_operands = 0 : i64, tpu.core_type = #tpu.core_type<tc>, window_params = [{transform_indices = @transform_0, window_bounds = array<i64: 2, 512>}, {pipeline_mode = #tpu.pipeline_mode<synchronous>, transform_indices = @transform_1, window_bounds = array<i64: 1, 512>}, {pipeline_mode = #tpu.pipeline_mode<synchronous>, transform_indices = @transform_2, window_bounds = array<i64: 1, 512>}, {transform_indices = @transform_3, window_bounds = array<i64: 2, 512>}]} {
    %c0 = arith.constant 0 : index
    %c0_0 = arith.constant 0 : index
    %0 = vector.load %arg1[%c0, %c0_0] : memref<2x512xbf16, #tpu.memory_space<vmem>>, vector<2x512xbf16>
    %1 = arith.extf %0 : vector<2x512xbf16> to vector<2x512xf32>
    %c0_1 = arith.constant 0 : index
    %c0_2 = arith.constant 0 : index
    %2 = vector.load %arg2[%c0_1, %c0_2] : memref<1x512xf32, #tpu.memory_space<vmem>>, vector<1x512xf32>
    %3 = vector.broadcast %2 : vector<1x512xf32> to vector<2x512xf32>
    %4 = arith.mulf %1, %3 : vector<2x512xf32>
    %c0_3 = arith.constant 0 : index
    %c0_4 = arith.constant 0 : index
    %5 = vector.load %arg3[%c0_3, %c0_4] : memref<1x512xf32, #tpu.memory_space<vmem>>, vector<1x512xf32>
    %6 = vector.broadcast %5 : vector<1x512xf32> to vector<2x512xf32>
    %7 = arith.addf %4, %6 : vector<2x512xf32>
    %8 = arith.truncf %7 : vector<2x512xf32> to vector<2x512xbf16>
    %c0_5 = arith.constant 0 : index
    %c0_6 = arith.constant 0 : index
    %9 = vector.load %arg4[%c0_5, %c0_6] : memref<2x512xbf16, #tpu.memory_space<vmem>>, vector<2x512xbf16>
    tpu.vector_store %arg4[%c0_5, %c0_6], %8 {strides = array<i32>} : memref<2x512xbf16, #tpu.memory_space<vmem>>, vector<2x512xbf16>,
    return
  }
  func.func @transform_0(%arg0: i32) -> (i32, i32) {
    %c0_i32 = arith.constant 0 : i32
    %c0_i32_0 = arith.constant 0 : i32
    return %arg0, %c0_i32 : i32, i32
  }
  func.func @transform_1(%arg0: i32) -> (i32, i32) {
    %c0_i32 = arith.constant 0 : i32
    %c0_i32_0 = arith.constant 0 : i32
    %c0_i32_1 = arith.constant 0 : i32
    return %c0_i32, %c0_i32_0 : i32, i32
  }
  func.func @transform_2(%arg0: i32) -> (i32, i32) {
    %c0_i32 = arith.constant 0 : i32
    %c0_i32_0 = arith.constant 0 : i32
    %c0_i32_1 = arith.constant 0 : i32
    return %c0_i32, %c0_i32_0 : i32, i32
  }
  func.func @transform_3(%arg0: i32) -> (i32, i32) {
    %c0_i32 = arith.constant 0 : i32
    %c0_i32_0 = arith.constant 0 : i32
    return %arg0, %c0_i32 : i32, i32
  }
}

module attributes {stable_mosaic.version = 11 : i64} {
  func.func @_conv_matmul_kernel(%arg0: i32, %arg1: i32, %arg2: i32, %arg3: memref<2x384xbf16, #tpu.memory_space<vmem>>, %arg4: memref<384x256xbf16, #tpu.memory_space<vmem>>, %arg5: memref<2x256xbf16, #tpu.memory_space<vmem>>, %arg6: memref<1x1x256xf32, #tpu.memory_space<vmem>>, %arg7: memref<1x1x256xf32, #tpu.memory_space<vmem>>, %arg8: memref<2x256xf32, #tpu.memory_space<vmem>>) attributes {dimension_semantics = [#tpu.dimension_semantics<parallel>, #tpu.dimension_semantics<parallel>, #tpu.dimension_semantics<arbitrary>], iteration_bounds = array<i64: 1, 2, 6>, scalar_prefetch = 0 : i64, scratch_operands = 1 : i64, tpu.core_type = #tpu.core_type<tc>, window_params = [{transform_indices = @transform_0, window_bounds = array<i64: 2, 384>}, {transform_indices = @transform_1, window_bounds = array<i64: 384, 256>}, {transform_indices = @transform_2, window_bounds = array<i64: 2, 256>}, {transform_indices = @transform_3, window_bounds = array<i64: 1, 1, 256>}, {transform_indices = @transform_4, window_bounds = array<i64: 1, 1, 256>}]} {
    %c2_i32 = arith.constant 2 : i32
    %0 = arith.muli %arg0, %c2_i32 : i32
    %c0_i32 = arith.constant 0 : i32
    %1 = arith.cmpi eq, %arg2, %c0_i32 : i32
    %2 = arith.extui %1 : i1 to i32
    %c0_i32_0 = arith.constant 0 : i32
    %3 = arith.cmpi ne, %2, %c0_i32_0 : i32
    scf.if %3 {
      %cst_9 = arith.constant 0.000000e+00 : f32
      %13 = vector.broadcast %cst_9 : f32 to vector<2x256xf32>
      %c0_10 = arith.constant 0 : index
      %c0_11 = arith.constant 0 : index
      %14 = vector.load %arg8[%c0_10, %c0_11] : memref<2x256xf32, #tpu.memory_space<vmem>>, vector<2x256xf32>
      tpu.vector_store %arg8[%c0_10, %c0_11], %13 {strides = array<i32>} : memref<2x256xf32, #tpu.memory_space<vmem>>, vector<2x256xf32>,
    } else {
    }
    %c0 = arith.constant 0 : index
    %c0_1 = arith.constant 0 : index
    %4 = vector.load %arg8[%c0, %c0_1] : memref<2x256xf32, #tpu.memory_space<vmem>>, vector<2x256xf32>
    %c0_2 = arith.constant 0 : index
    %c0_3 = arith.constant 0 : index
    %5 = vector.load %arg3[%c0_2, %c0_3] : memref<2x384xbf16, #tpu.memory_space<vmem>>, vector<2x384xbf16>
    %c0_4 = arith.constant 0 : index
    %c0_5 = arith.constant 0 : index
    %6 = vector.load %arg4[%c0_4, %c0_5] : memref<384x256xbf16, #tpu.memory_space<vmem>>, vector<384x256xbf16>
    %cst = arith.constant dense<0.000000e+00> : vector<2x256xf32>
    %7 = tpu.matmul %5, %6, %cst {dimension_numbers = #tpu.dot_dimension_numbers<[1], [0], [0], [1], [0, 0, 1, 1], [], []>} : vector<2x384xbf16>, vector<384x256xbf16>, vector<2x256xf32> -> vector<2x256xf32>
    %8 = arith.addf %4, %7 : vector<2x256xf32>
    %c0_6 = arith.constant 0 : index
    %c0_7 = arith.constant 0 : index
    %9 = vector.load %arg8[%c0_6, %c0_7] : memref<2x256xf32, #tpu.memory_space<vmem>>, vector<2x256xf32>
    tpu.vector_store %arg8[%c0_6, %c0_7], %8 {strides = array<i32>} : memref<2x256xf32, #tpu.memory_space<vmem>>, vector<2x256xf32>,
    %c5_i32 = arith.constant 5 : i32
    %10 = arith.cmpi eq, %arg2, %c5_i32 : i32
    %11 = arith.extui %10 : i1 to i32
    %c0_i32_8 = arith.constant 0 : i32
    %12 = arith.cmpi ne, %11, %c0_i32_8 : i32
    scf.if %12 {
      %c0_9 = arith.constant 0 : index
      %c0_10 = arith.constant 0 : index
      %13 = vector.load %arg8[%c0_9, %c0_10] : memref<2x256xf32, #tpu.memory_space<vmem>>, vector<2x256xf32>
      %14 = arith.truncf %13 : vector<2x256xf32> to vector<2x256xbf16>
      %c0_11 = arith.constant 0 : index
      %c0_12 = arith.constant 0 : index
      %15 = vector.load %arg5[%c0_11, %c0_12] : memref<2x256xbf16, #tpu.memory_space<vmem>>, vector<2x256xbf16>
      tpu.vector_store %arg5[%c0_11, %c0_12], %14 {strides = array<i32>} : memref<2x256xbf16, #tpu.memory_space<vmem>>, vector<2x256xbf16>,
      %16 = tpu.iota {dimensions = array<i32: 0>} : vector<2x256xi32>
      %17 = vector.broadcast %0 : i32 to vector<2x256xi32>
      %18 = arith.addi %16, %17 : vector<2x256xi32>
      %c2_i32_13 = arith.constant 2 : i32
      %19 = vector.broadcast %c2_i32_13 : i32 to vector<2x256xi32>
      %20 = arith.cmpi slt, %18, %19 : vector<2x256xi32>
      %cst_14 = arith.constant 0.000000e+00 : f32
      %21 = vector.broadcast %cst_14 : f32 to vector<2x256xf32>
      %22 = arith.select %20, %13, %21 : vector<2x256xi1>, vector<2x256xf32>
      %cst_15 = arith.constant dense<0.000000e+00> : vector<256xf32>
      %23 = vector.multi_reduction <add>, %22, %cst_15 [0] : vector<2x256xf32> to vector<256xf32>
      %24 = vector.shape_cast %23 : vector<256xf32> to vector<1x256xf32>
      %25 = vector.shape_cast %24 : vector<1x256xf32> to vector<1x1x256xf32>
      %c0_16 = arith.constant 0 : index
      %c0_17 = arith.constant 0 : index
      %c0_18 = arith.constant 0 : index
      %26 = vector.load %arg6[%c0_16, %c0_17, %c0_18] : memref<1x1x256xf32, #tpu.memory_space<vmem>>, vector<1x1x256xf32>
      tpu.vector_store %arg6[%c0_16, %c0_17, %c0_18], %25 {strides = array<i32>} : memref<1x1x256xf32, #tpu.memory_space<vmem>>, vector<1x1x256xf32>,
      %27 = arith.mulf %22, %22 : vector<2x256xf32>
      %cst_19 = arith.constant dense<0.000000e+00> : vector<256xf32>
      %28 = vector.multi_reduction <add>, %27, %cst_19 [0] : vector<2x256xf32> to vector<256xf32>
      %29 = vector.shape_cast %28 : vector<256xf32> to vector<1x256xf32>
      %30 = vector.shape_cast %29 : vector<1x256xf32> to vector<1x1x256xf32>
      %c0_20 = arith.constant 0 : index
      %c0_21 = arith.constant 0 : index
      %c0_22 = arith.constant 0 : index
      %31 = vector.load %arg7[%c0_20, %c0_21, %c0_22] : memref<1x1x256xf32, #tpu.memory_space<vmem>>, vector<1x1x256xf32>
      tpu.vector_store %arg7[%c0_20, %c0_21, %c0_22], %30 {strides = array<i32>} : memref<1x1x256xf32, #tpu.memory_space<vmem>>, vector<1x1x256xf32>,
    } else {
    }
    return
  }
  func.func @transform_0(%arg0: i32, %arg1: i32, %arg2: i32) -> (i32, i32) {
    %c0_i32 = arith.constant 0 : i32
    return %arg0, %arg2 : i32, i32
  }
  func.func @transform_1(%arg0: i32, %arg1: i32, %arg2: i32) -> (i32, i32) {
    %c0_i32 = arith.constant 0 : i32
    return %arg2, %arg1 : i32, i32
  }
  func.func @transform_2(%arg0: i32, %arg1: i32, %arg2: i32) -> (i32, i32) {
    %c0_i32 = arith.constant 0 : i32
    return %arg0, %arg1 : i32, i32
  }
  func.func @transform_3(%arg0: i32, %arg1: i32, %arg2: i32) -> (i32, i32, i32) {
    %c0_i32 = arith.constant 0 : i32
    %c0_i32_0 = arith.constant 0 : i32
    return %arg0, %c0_i32, %arg1 : i32, i32, i32
  }
  func.func @transform_4(%arg0: i32, %arg1: i32, %arg2: i32) -> (i32, i32, i32) {
    %c0_i32 = arith.constant 0 : i32
    %c0_i32_0 = arith.constant 0 : i32
    return %arg0, %c0_i32, %arg1 : i32, i32, i32
  }
}

module attributes {stable_mosaic.version = 11 : i64} {
  func.func @_bn_act_kernel(%arg0: i32, %arg1: memref<2x512xbf16, #tpu.memory_space<vmem>>, %arg2: memref<1x512xf32, #tpu.memory_space<vmem>>, %arg3: memref<1x512xf32, #tpu.memory_space<vmem>>, %arg4: memref<2x512xbf16, #tpu.memory_space<vmem>>) attributes {dimension_semantics = [#tpu.dimension_semantics<parallel>], iteration_bounds = array<i64: 1>, scalar_prefetch = 0 : i64, scratch_operands = 0 : i64, tpu.core_type = #tpu.core_type<tc>, window_params = [{transform_indices = @transform_0, window_bounds = array<i64: 2, 512>}, {pipeline_mode = #tpu.pipeline_mode<synchronous>, transform_indices = @transform_1, window_bounds = array<i64: 1, 512>}, {pipeline_mode = #tpu.pipeline_mode<synchronous>, transform_indices = @transform_2, window_bounds = array<i64: 1, 512>}, {transform_indices = @transform_3, window_bounds = array<i64: 2, 512>}]} {
    %c0 = arith.constant 0 : index
    %c0_0 = arith.constant 0 : index
    %0 = vector.load %arg1[%c0, %c0_0] : memref<2x512xbf16, #tpu.memory_space<vmem>>, vector<2x512xbf16>
    %1 = arith.extf %0 : vector<2x512xbf16> to vector<2x512xf32>
    %c0_1 = arith.constant 0 : index
    %c0_2 = arith.constant 0 : index
    %2 = vector.load %arg2[%c0_1, %c0_2] : memref<1x512xf32, #tpu.memory_space<vmem>>, vector<1x512xf32>
    %3 = vector.broadcast %2 : vector<1x512xf32> to vector<2x512xf32>
    %4 = arith.mulf %1, %3 : vector<2x512xf32>
    %c0_3 = arith.constant 0 : index
    %c0_4 = arith.constant 0 : index
    %5 = vector.load %arg3[%c0_3, %c0_4] : memref<1x512xf32, #tpu.memory_space<vmem>>, vector<1x512xf32>
    %6 = vector.broadcast %5 : vector<1x512xf32> to vector<2x512xf32>
    %7 = arith.addf %4, %6 : vector<2x512xf32>
    %cst = arith.constant 0.000000e+00 : f32
    %8 = vector.broadcast %cst : f32 to vector<2x512xf32>
    %9 = arith.maximumf %7, %8 : vector<2x512xf32>
    %10 = arith.truncf %9 : vector<2x512xf32> to vector<2x512xbf16>
    %c0_5 = arith.constant 0 : index
    %c0_6 = arith.constant 0 : index
    %11 = vector.load %arg4[%c0_5, %c0_6] : memref<2x512xbf16, #tpu.memory_space<vmem>>, vector<2x512xbf16>
    tpu.vector_store %arg4[%c0_5, %c0_6], %10 {strides = array<i32>} : memref<2x512xbf16, #tpu.memory_space<vmem>>, vector<2x512xbf16>,
    return
  }
  func.func @transform_0(%arg0: i32) -> (i32, i32) {
    %c0_i32 = arith.constant 0 : i32
    %c0_i32_0 = arith.constant 0 : i32
    return %arg0, %c0_i32 : i32, i32
  }
  func.func @transform_1(%arg0: i32) -> (i32, i32) {
    %c0_i32 = arith.constant 0 : i32
    %c0_i32_0 = arith.constant 0 : i32
    %c0_i32_1 = arith.constant 0 : i32
    return %c0_i32, %c0_i32_0 : i32, i32
  }
  func.func @transform_2(%arg0: i32) -> (i32, i32) {
    %c0_i32 = arith.constant 0 : i32
    %c0_i32_0 = arith.constant 0 : i32
    %c0_i32_1 = arith.constant 0 : i32
    return %c0_i32, %c0_i32_0 : i32, i32
  }
  func.func @transform_3(%arg0: i32) -> (i32, i32) {
    %c0_i32 = arith.constant 0 : i32
    %c0_i32_0 = arith.constant 0 : i32
    return %arg0, %c0_i32 : i32, i32
  }
}

module attributes {stable_mosaic.version = 11 : i64} {
  func.func @_conv_matmul_kernel(%arg0: i32, %arg1: i32, %arg2: i32, %arg3: memref<2x512xbf16, #tpu.memory_space<vmem>>, %arg4: memref<512x256xbf16, #tpu.memory_space<vmem>>, %arg5: memref<2x256xbf16, #tpu.memory_space<vmem>>, %arg6: memref<1x1x256xf32, #tpu.memory_space<vmem>>, %arg7: memref<1x1x256xf32, #tpu.memory_space<vmem>>, %arg8: memref<2x256xf32, #tpu.memory_space<vmem>>) attributes {dimension_semantics = [#tpu.dimension_semantics<parallel>, #tpu.dimension_semantics<parallel>, #tpu.dimension_semantics<arbitrary>], iteration_bounds = array<i64: 1, 2, 9>, scalar_prefetch = 0 : i64, scratch_operands = 1 : i64, tpu.core_type = #tpu.core_type<tc>, window_params = [{transform_indices = @transform_0, window_bounds = array<i64: 2, 512>}, {transform_indices = @transform_1, window_bounds = array<i64: 512, 256>}, {transform_indices = @transform_2, window_bounds = array<i64: 2, 256>}, {transform_indices = @transform_3, window_bounds = array<i64: 1, 1, 256>}, {transform_indices = @transform_4, window_bounds = array<i64: 1, 1, 256>}]} {
    %c2_i32 = arith.constant 2 : i32
    %0 = arith.muli %arg0, %c2_i32 : i32
    %c0_i32 = arith.constant 0 : i32
    %1 = arith.cmpi eq, %arg2, %c0_i32 : i32
    %2 = arith.extui %1 : i1 to i32
    %c0_i32_0 = arith.constant 0 : i32
    %3 = arith.cmpi ne, %2, %c0_i32_0 : i32
    scf.if %3 {
      %cst_9 = arith.constant 0.000000e+00 : f32
      %13 = vector.broadcast %cst_9 : f32 to vector<2x256xf32>
      %c0_10 = arith.constant 0 : index
      %c0_11 = arith.constant 0 : index
      %14 = vector.load %arg8[%c0_10, %c0_11] : memref<2x256xf32, #tpu.memory_space<vmem>>, vector<2x256xf32>
      tpu.vector_store %arg8[%c0_10, %c0_11], %13 {strides = array<i32>} : memref<2x256xf32, #tpu.memory_space<vmem>>, vector<2x256xf32>,
    } else {
    }
    %c0 = arith.constant 0 : index
    %c0_1 = arith.constant 0 : index
    %4 = vector.load %arg8[%c0, %c0_1] : memref<2x256xf32, #tpu.memory_space<vmem>>, vector<2x256xf32>
    %c0_2 = arith.constant 0 : index
    %c0_3 = arith.constant 0 : index
    %5 = vector.load %arg3[%c0_2, %c0_3] : memref<2x512xbf16, #tpu.memory_space<vmem>>, vector<2x512xbf16>
    %c0_4 = arith.constant 0 : index
    %c0_5 = arith.constant 0 : index
    %6 = vector.load %arg4[%c0_4, %c0_5] : memref<512x256xbf16, #tpu.memory_space<vmem>>, vector<512x256xbf16>
    %cst = arith.constant dense<0.000000e+00> : vector<2x256xf32>
    %7 = tpu.matmul %5, %6, %cst {dimension_numbers = #tpu.dot_dimension_numbers<[1], [0], [0], [1], [0, 0, 1, 1], [], []>} : vector<2x512xbf16>, vector<512x256xbf16>, vector<2x256xf32> -> vector<2x256xf32>
    %8 = arith.addf %4, %7 : vector<2x256xf32>
    %c0_6 = arith.constant 0 : index
    %c0_7 = arith.constant 0 : index
    %9 = vector.load %arg8[%c0_6, %c0_7] : memref<2x256xf32, #tpu.memory_space<vmem>>, vector<2x256xf32>
    tpu.vector_store %arg8[%c0_6, %c0_7], %8 {strides = array<i32>} : memref<2x256xf32, #tpu.memory_space<vmem>>, vector<2x256xf32>,
    %c8_i32 = arith.constant 8 : i32
    %10 = arith.cmpi eq, %arg2, %c8_i32 : i32
    %11 = arith.extui %10 : i1 to i32
    %c0_i32_8 = arith.constant 0 : i32
    %12 = arith.cmpi ne, %11, %c0_i32_8 : i32
    scf.if %12 {
      %c0_9 = arith.constant 0 : index
      %c0_10 = arith.constant 0 : index
      %13 = vector.load %arg8[%c0_9, %c0_10] : memref<2x256xf32, #tpu.memory_space<vmem>>, vector<2x256xf32>
      %14 = arith.truncf %13 : vector<2x256xf32> to vector<2x256xbf16>
      %c0_11 = arith.constant 0 : index
      %c0_12 = arith.constant 0 : index
      %15 = vector.load %arg5[%c0_11, %c0_12] : memref<2x256xbf16, #tpu.memory_space<vmem>>, vector<2x256xbf16>
      tpu.vector_store %arg5[%c0_11, %c0_12], %14 {strides = array<i32>} : memref<2x256xbf16, #tpu.memory_space<vmem>>, vector<2x256xbf16>,
      %16 = tpu.iota {dimensions = array<i32: 0>} : vector<2x256xi32>
      %17 = vector.broadcast %0 : i32 to vector<2x256xi32>
      %18 = arith.addi %16, %17 : vector<2x256xi32>
      %c2_i32_13 = arith.constant 2 : i32
      %19 = vector.broadcast %c2_i32_13 : i32 to vector<2x256xi32>
      %20 = arith.cmpi slt, %18, %19 : vector<2x256xi32>
      %cst_14 = arith.constant 0.000000e+00 : f32
      %21 = vector.broadcast %cst_14 : f32 to vector<2x256xf32>
      %22 = arith.select %20, %13, %21 : vector<2x256xi1>, vector<2x256xf32>
      %cst_15 = arith.constant dense<0.000000e+00> : vector<256xf32>
      %23 = vector.multi_reduction <add>, %22, %cst_15 [0] : vector<2x256xf32> to vector<256xf32>
      %24 = vector.shape_cast %23 : vector<256xf32> to vector<1x256xf32>
      %25 = vector.shape_cast %24 : vector<1x256xf32> to vector<1x1x256xf32>
      %c0_16 = arith.constant 0 : index
      %c0_17 = arith.constant 0 : index
      %c0_18 = arith.constant 0 : index
      %26 = vector.load %arg6[%c0_16, %c0_17, %c0_18] : memref<1x1x256xf32, #tpu.memory_space<vmem>>, vector<1x1x256xf32>
      tpu.vector_store %arg6[%c0_16, %c0_17, %c0_18], %25 {strides = array<i32>} : memref<1x1x256xf32, #tpu.memory_space<vmem>>, vector<1x1x256xf32>,
      %27 = arith.mulf %22, %22 : vector<2x256xf32>
      %cst_19 = arith.constant dense<0.000000e+00> : vector<256xf32>
      %28 = vector.multi_reduction <add>, %27, %cst_19 [0] : vector<2x256xf32> to vector<256xf32>
      %29 = vector.shape_cast %28 : vector<256xf32> to vector<1x256xf32>
      %30 = vector.shape_cast %29 : vector<1x256xf32> to vector<1x1x256xf32>
      %c0_20 = arith.constant 0 : index
      %c0_21 = arith.constant 0 : index
      %c0_22 = arith.constant 0 : index
      %31 = vector.load %arg7[%c0_20, %c0_21, %c0_22] : memref<1x1x256xf32, #tpu.memory_space<vmem>>, vector<1x1x256xf32>
      tpu.vector_store %arg7[%c0_20, %c0_21, %c0_22], %30 {strides = array<i32>} : memref<1x1x256xf32, #tpu.memory_space<vmem>>, vector<1x1x256xf32>,
    } else {
    }
    return
  }
  func.func @transform_0(%arg0: i32, %arg1: i32, %arg2: i32) -> (i32, i32) {
    %c0_i32 = arith.constant 0 : i32
    return %arg0, %arg2 : i32, i32
  }
  func.func @transform_1(%arg0: i32, %arg1: i32, %arg2: i32) -> (i32, i32) {
    %c0_i32 = arith.constant 0 : i32
    return %arg2, %arg1 : i32, i32
  }
  func.func @transform_2(%arg0: i32, %arg1: i32, %arg2: i32) -> (i32, i32) {
    %c0_i32 = arith.constant 0 : i32
    return %arg0, %arg1 : i32, i32
  }
  func.func @transform_3(%arg0: i32, %arg1: i32, %arg2: i32) -> (i32, i32, i32) {
    %c0_i32 = arith.constant 0 : i32
    %c0_i32_0 = arith.constant 0 : i32
    return %arg0, %c0_i32, %arg1 : i32, i32, i32
  }
  func.func @transform_4(%arg0: i32, %arg1: i32, %arg2: i32) -> (i32, i32, i32) {
    %c0_i32 = arith.constant 0 : i32
    %c0_i32_0 = arith.constant 0 : i32
    return %arg0, %c0_i32, %arg1 : i32, i32, i32
  }
}

module attributes {stable_mosaic.version = 11 : i64} {
  func.func @_bn_act_res_kernel(%arg0: i32, %arg1: memref<2x512xbf16, #tpu.memory_space<vmem>>, %arg2: memref<1x512xf32, #tpu.memory_space<vmem>>, %arg3: memref<1x512xf32, #tpu.memory_space<vmem>>, %arg4: memref<2x512xbf16, #tpu.memory_space<vmem>>, %arg5: memref<2x512xbf16, #tpu.memory_space<vmem>>) attributes {dimension_semantics = [#tpu.dimension_semantics<parallel>], iteration_bounds = array<i64: 1>, scalar_prefetch = 0 : i64, scratch_operands = 0 : i64, tpu.core_type = #tpu.core_type<tc>, window_params = [{transform_indices = @transform_0, window_bounds = array<i64: 2, 512>}, {pipeline_mode = #tpu.pipeline_mode<synchronous>, transform_indices = @transform_1, window_bounds = array<i64: 1, 512>}, {pipeline_mode = #tpu.pipeline_mode<synchronous>, transform_indices = @transform_2, window_bounds = array<i64: 1, 512>}, {transform_indices = @transform_3, window_bounds = array<i64: 2, 512>}, {transform_indices = @transform_4, window_bounds = array<i64: 2, 512>}]} {
    %c0 = arith.constant 0 : index
    %c0_0 = arith.constant 0 : index
    %0 = vector.load %arg1[%c0, %c0_0] : memref<2x512xbf16, #tpu.memory_space<vmem>>, vector<2x512xbf16>
    %1 = arith.extf %0 : vector<2x512xbf16> to vector<2x512xf32>
    %c0_1 = arith.constant 0 : index
    %c0_2 = arith.constant 0 : index
    %2 = vector.load %arg2[%c0_1, %c0_2] : memref<1x512xf32, #tpu.memory_space<vmem>>, vector<1x512xf32>
    %3 = vector.broadcast %2 : vector<1x512xf32> to vector<2x512xf32>
    %4 = arith.mulf %1, %3 : vector<2x512xf32>
    %c0_3 = arith.constant 0 : index
    %c0_4 = arith.constant 0 : index
    %5 = vector.load %arg3[%c0_3, %c0_4] : memref<1x512xf32, #tpu.memory_space<vmem>>, vector<1x512xf32>
    %6 = vector.broadcast %5 : vector<1x512xf32> to vector<2x512xf32>
    %7 = arith.addf %4, %6 : vector<2x512xf32>
    %c0_5 = arith.constant 0 : index
    %c0_6 = arith.constant 0 : index
    %8 = vector.load %arg4[%c0_5, %c0_6] : memref<2x512xbf16, #tpu.memory_space<vmem>>, vector<2x512xbf16>
    %9 = arith.extf %8 : vector<2x512xbf16> to vector<2x512xf32>
    %10 = arith.addf %7, %9 : vector<2x512xf32>
    %cst = arith.constant 0.000000e+00 : f32
    %11 = vector.broadcast %cst : f32 to vector<2x512xf32>
    %12 = arith.maximumf %10, %11 : vector<2x512xf32>
    %13 = arith.truncf %12 : vector<2x512xf32> to vector<2x512xbf16>
    %c0_7 = arith.constant 0 : index
    %c0_8 = arith.constant 0 : index
    %14 = vector.load %arg5[%c0_7, %c0_8] : memref<2x512xbf16, #tpu.memory_space<vmem>>, vector<2x512xbf16>
    tpu.vector_store %arg5[%c0_7, %c0_8], %13 {strides = array<i32>} : memref<2x512xbf16, #tpu.memory_space<vmem>>, vector<2x512xbf16>,
    return
  }
  func.func @transform_0(%arg0: i32) -> (i32, i32) {
    %c0_i32 = arith.constant 0 : i32
    %c0_i32_0 = arith.constant 0 : i32
    return %arg0, %c0_i32 : i32, i32
  }
  func.func @transform_1(%arg0: i32) -> (i32, i32) {
    %c0_i32 = arith.constant 0 : i32
    %c0_i32_0 = arith.constant 0 : i32
    %c0_i32_1 = arith.constant 0 : i32
    return %c0_i32, %c0_i32_0 : i32, i32
  }
  func.func @transform_2(%arg0: i32) -> (i32, i32) {
    %c0_i32 = arith.constant 0 : i32
    %c0_i32_0 = arith.constant 0 : i32
    %c0_i32_1 = arith.constant 0 : i32
    return %c0_i32, %c0_i32_0 : i32, i32
  }
  func.func @transform_3(%arg0: i32) -> (i32, i32) {
    %c0_i32 = arith.constant 0 : i32
    %c0_i32_0 = arith.constant 0 : i32
    return %arg0, %c0_i32 : i32, i32
  }
  func.func @transform_4(%arg0: i32) -> (i32, i32) {
    %c0_i32 = arith.constant 0 : i32
    %c0_i32_0 = arith.constant 0 : i32
    return %arg0, %c0_i32 : i32, i32
  }
}

module attributes {stable_mosaic.version = 11 : i64} {
  func.func @_avgpool_kernel(%arg0: i32, %arg1: memref<2x1x512xbf16, #tpu.memory_space<vmem>>, %arg2: memref<2x512xf32, #tpu.memory_space<vmem>>) attributes {dimension_semantics = [#tpu.dimension_semantics<parallel>], iteration_bounds = array<i64: 1>, scalar_prefetch = 0 : i64, scratch_operands = 0 : i64, tpu.core_type = #tpu.core_type<tc>, window_params = [{transform_indices = @transform_0, window_bounds = array<i64: 2, 1, 512>}, {transform_indices = @transform_1, window_bounds = array<i64: 2, 512>}]} {
    %c0 = arith.constant 0 : index
    %c0_0 = arith.constant 0 : index
    %c0_1 = arith.constant 0 : index
    %0 = vector.load %arg1[%c0, %c0_0, %c0_1] : memref<2x1x512xbf16, #tpu.memory_space<vmem>>, vector<2x1x512xbf16>
    %1 = arith.extf %0 : vector<2x1x512xbf16> to vector<2x1x512xf32>
    %cst = arith.constant dense<0.000000e+00> : vector<2x512xf32>
    %2 = vector.multi_reduction <add>, %1, %cst [1] : vector<2x1x512xf32> to vector<2x512xf32>
    %cst_2 = arith.constant 1.000000e+00 : f32
    %3 = vector.broadcast %cst_2 : f32 to vector<2x512xf32>
    %4 = arith.divf %2, %3 : vector<2x512xf32>
    %c0_3 = arith.constant 0 : index
    %c0_4 = arith.constant 0 : index
    %5 = vector.load %arg2[%c0_3, %c0_4] : memref<2x512xf32, #tpu.memory_space<vmem>>, vector<2x512xf32>
    tpu.vector_store %arg2[%c0_3, %c0_4], %4 {strides = array<i32>} : memref<2x512xf32, #tpu.memory_space<vmem>>, vector<2x512xf32>,
    return
  }
  func.func @transform_0(%arg0: i32) -> (i32, i32, i32) {
    %c0_i32 = arith.constant 0 : i32
    %c0_i32_0 = arith.constant 0 : i32
    %c0_i32_1 = arith.constant 0 : i32
    return %arg0, %c0_i32, %c0_i32_0 : i32, i32, i32
  }
  func.func @transform_1(%arg0: i32) -> (i32, i32) {
    %c0_i32 = arith.constant 0 : i32
    %c0_i32_0 = arith.constant 0 : i32
    return %arg0, %c0_i32 : i32, i32
  }
}

module attributes {stable_mosaic.version = 11 : i64} {
  func.func @_fc_kernel(%arg0: i32, %arg1: memref<2x512xf32, #tpu.memory_space<vmem>>, %arg2: memref<512x10xf32, #tpu.memory_space<vmem>>, %arg3: memref<1x10xf32, #tpu.memory_space<vmem>>, %arg4: memref<2x10xf32, #tpu.memory_space<vmem>>) attributes {dimension_semantics = [#tpu.dimension_semantics<parallel>], iteration_bounds = array<i64: 1>, scalar_prefetch = 0 : i64, scratch_operands = 0 : i64, tpu.core_type = #tpu.core_type<tc>, window_params = [{transform_indices = @transform_0, window_bounds = array<i64: 2, 512>}, {pipeline_mode = #tpu.pipeline_mode<synchronous>, transform_indices = @transform_1, window_bounds = array<i64: 512, 10>}, {pipeline_mode = #tpu.pipeline_mode<synchronous>, transform_indices = @transform_2, window_bounds = array<i64: 1, 10>}, {transform_indices = @transform_3, window_bounds = array<i64: 2, 10>}]} {
    %c0 = arith.constant 0 : index
    %c0_0 = arith.constant 0 : index
    %0 = vector.load %arg1[%c0, %c0_0] : memref<2x512xf32, #tpu.memory_space<vmem>>, vector<2x512xf32>
    %c0_1 = arith.constant 0 : index
    %c0_2 = arith.constant 0 : index
    %1 = vector.load %arg2[%c0_1, %c0_2] : memref<512x10xf32, #tpu.memory_space<vmem>>, vector<512x10xf32>
    %cst = arith.constant dense<0.000000e+00> : vector<2x10xf32>
    %2 = tpu.matmul %0, %1, %cst {dimension_numbers = #tpu.dot_dimension_numbers<[1], [0], [0], [1], [0, 0, 1, 1], [], []>} : vector<2x512xf32>, vector<512x10xf32>, vector<2x10xf32> -> vector<2x10xf32>
    %c0_3 = arith.constant 0 : index
    %c0_4 = arith.constant 0 : index
    %3 = vector.load %arg3[%c0_3, %c0_4] : memref<1x10xf32, #tpu.memory_space<vmem>>, vector<1x10xf32>
    %4 = vector.broadcast %3 : vector<1x10xf32> to vector<2x10xf32>
    %5 = arith.addf %2, %4 : vector<2x10xf32>
    %c0_5 = arith.constant 0 : index
    %c0_6 = arith.constant 0 : index
    %6 = vector.load %arg4[%c0_5, %c0_6] : memref<2x10xf32, #tpu.memory_space<vmem>>, vector<2x10xf32>
    tpu.vector_store %arg4[%c0_5, %c0_6], %5 {strides = array<i32>} : memref<2x10xf32, #tpu.memory_space<vmem>>, vector<2x10xf32>,
    return
  }
  func.func @transform_0(%arg0: i32) -> (i32, i32) {
    %c0_i32 = arith.constant 0 : i32
    %c0_i32_0 = arith.constant 0 : i32
    return %arg0, %c0_i32 : i32, i32
  }
  func.func @transform_1(%arg0: i32) -> (i32, i32) {
    %c0_i32 = arith.constant 0 : i32
    %c0_i32_0 = arith.constant 0 : i32
    %c0_i32_1 = arith.constant 0 : i32
    return %c0_i32, %c0_i32_0 : i32, i32
  }
  func.func @transform_2(%arg0: i32) -> (i32, i32) {
    %c0_i32 = arith.constant 0 : i32
    %c0_i32_0 = arith.constant 0 : i32
    %c0_i32_1 = arith.constant 0 : i32
    return %c0_i32, %c0_i32_0 : i32, i32
  }
  func.func @transform_3(%arg0: i32) -> (i32, i32) {
    %c0_i32 = arith.constant 0 : i32
    %c0_i32_0 = arith.constant 0 : i32
    return %arg0, %c0_i32 : i32, i32
  }
}

</mosaic_0001>

<bundles_post_ra>
// kernel: resnet18_forward.48
= control target key start
LH: loop header
LB: loop body
LE: loop exit
PB: predicated region body
PF: predicated region fallthrough
CT: control target
= control target key end

     0   :  { %vm172_vm0 = vcmask 519168   ;;  %s416_s0 = inlined_call_operand.vmem [shape: bf16[128,64], index: 0, kind: input, shape index: {}]   ;;  %s417_s1 = inlined_call_operand.vmem [shape: f32[1,64], index: 1, kind: input, shape index: {}]   ;;  %s418_s2 = inlined_call_operand.vmem [shape: f32[1,64], index: 2, kind: input, shape index: {}]   ;;  %s419_s3 = inlined_call_operand.vmem [shape: bf16[128,64], index: 3, kind: output, shape index: {}]  }
   0x1   :  { %v228_v0 = vld [vmem:[%s416_s0] sm:$0xff]   ;;  %v259_v4 = vld [vmem:[%s416_s0 + $0x8] sm:$0xff]   ;;  %v260_v5 = vld [vmem:[%s416_s0 + $0x10] sm:$0xff]  }
   0x2   :  { %v292_v1 = vld [vmem:[%s417_s1] ss:$0 sm:$0xff]  ;;  %v229_v2 = vunpack.c.l.bf16 %v228_v0  ;;  %v230_v3 = vunpack.c.h.bf16 %v228_v0  ;;  %v261_v6 = vld [vmem:[%s416_s0 + $0x18] sm:$0xff]   ;;  %v233_v8 = vunpack.c.l.bf16 %v259_v4  ;;  %v234_v9 = vunpack.c.h.bf16 %v259_v4  ;;  %v263_v41 = vld [vmem:[%s416_s0 + $0x28] sm:$0xff]  }
   0x3   :  { %v306_v7 = vld [vmem:[%s418_s2] ss:$0 sm:$0xff]  ;;  %v237_v10 = vunpack.c.l.bf16 %v260_v5  ;;  %v238_v11 = vunpack.c.h.bf16 %v260_v5  ;;  %v241_v14 = vunpack.c.l.bf16 %v261_v6  ;;  %v242_v15 = vunpack.c.h.bf16 %v261_v6  ;;  %v264_v42 = vld [vmem:[%s416_s0 + $0x30] sm:$0xff]   ;;  %v265_v47 = vld [vmem:[%s416_s0 + $0x38] sm:$0xff]  }
   0x4   :  { %v53_v12 = vmul.f32 %v229_v2, %v292_v1  ;;  %v54_v13 = vmul.f32 %v230_v3, %v292_v1  ;;  %v55_v16 = vmul.f32 %v233_v8, %v292_v1  ;;  %v56_v17 = vmul.f32 %v234_v9, %v292_v1  ;;  %v262_v36 = vld [vmem:[%s416_s0 + $0x20] sm:$0xff]  }
   0x5   :  { %v57_v18 = vmul.f32 %v237_v10, %v292_v1  ;;  %v58_v19 = vmul.f32 %v238_v11, %v292_v1  ;;  %v59_v22 = vmul.f32 %v241_v14, %v292_v1  ;;  %v60_v23 = vmul.f32 %v242_v15, %v292_v1 }
   0x6   :  { %v76_v20 = vadd.f32 %v306_v7, %v53_v12  ;;  %v77_v21 = vadd.f32 %v306_v7, %v54_v13  ;;  %v78_v24 = vadd.f32 %v306_v7, %v55_v16  ;;  %v79_v25 = vadd.f32 %v306_v7, %v56_v17 }
   0x7   :  { %v80_v26 = vadd.f32 %v306_v7, %v57_v18  ;;  %v81_v27 = vadd.f32 %v306_v7, %v58_v19  ;;  %v82_v30 = vadd.f32 %v306_v7, %v59_v22  ;;  %v83_v31 = vadd.f32 %v306_v7, %v60_v23 }
   0x8   :  { %v92_v28 = vmax.f32 %v76_v20, 0.0  ;;  %v93_v29 = vmax.f32 %v77_v21, 0.0  ;;  %v94_v32 = vmax.f32 %v78_v24, 0.0  ;;  %v95_v33 = vmax.f32 %v79_v25, 0.0 }
   0x9   :  { %v96_v34 = vmax.f32 %v80_v26, 0.0  ;;  %v97_v35 = vmax.f32 %v81_v27, 0.0  ;;  %v98_v39 = vmax.f32 %v82_v30, 0.0  ;;  %v99_v40 = vmax.f32 %v83_v31, 0.0 }
   0xa   :  { %v211_v37 = vpack.c.bf16 %v92_v28, %v92_v28  ;;  %v212_v38 = vpack.c.bf16 %v93_v29, %v93_v29  ;;  %v213_v43 = vpack.c.bf16 %v94_v32, %v94_v32  ;;  %v214_v44 = vpack.c.bf16 %v95_v33, %v95_v33 }
   0xb   :  { %v215_v45 = vpack.c.bf16 %v96_v34, %v96_v34  ;;  %v216_v46 = vpack.c.bf16 %v97_v35, %v97_v35  ;;  %v217_v48 = vpack.c.bf16 %v98_v39, %v98_v39  ;;  %v218_v49 = vpack.c.bf16 %v99_v40, %v99_v40 }
   0xc   :  { %173 = vst.msk [vmem:[%s419_s3] sm:$0xf] %vm172_vm0, %v211_v37  ;;  %174 = vst.msk [vmem:[%s419_s3 + $0x4] sm:$0xf] %vm172_vm0, %v212_v38  ;;  %v245_v50 = vunpack.c.l.bf16 %v262_v36  ;;  %v246_v51 = vunpack.c.h.bf16 %v262_v36  ;;  %v249_v52 = vunpack.c.l.bf16 %v263_v41  ;;  %v250_v53 = vunpack.c.h.bf16 %v263_v41 }
   0xd   :  { %175 = vst.msk [vmem:[%s419_s3 + $0x8] sm:$0xf] %vm172_vm0, %v213_v43  ;;  %176 = vst.msk [vmem:[%s419_s3 + $0xc] sm:$0xf] %vm172_vm0, %v214_v44  ;;  %v253_v54 = vunpack.c.l.bf16 %v264_v42  ;;  %v254_v55 = vunpack.c.h.bf16 %v264_v42  ;;  %v257_v58 = vunpack.c.l.bf16 %v265_v47  ;;  %v258_v59 = vunpack.c.h.bf16 %v265_v47 }
   0xe   :  { %177 = vst.msk [vmem:[%s419_s3 + $0x10] sm:$0xf] %vm172_vm0, %v215_v45  ;;  %178 = vst.msk [vmem:[%s419_s3 + $0x14] sm:$0xf] %vm172_vm0, %v216_v46  ;;  %v61_v56 = vmul.f32 %v245_v50, %v292_v1  ;;  %v62_v57 = vmul.f32 %v246_v51, %v292_v1  ;;  %v63_v60 = vmul.f32 %v249_v52, %v292_v1 }
   0xf   :  { %179 = vst.msk [vmem:[%s419_s3 + $0x18] sm:$0xf] %vm172_vm0, %v217_v48  ;;  %180 = vst.msk [vmem:[%s419_s3 + $0x1c] sm:$0xf] %vm172_vm0, %v218_v49  ;;  %v64_v61 = vmul.f32 %v250_v53, %v292_v1  ;;  %v65_v62 = vmul.f32 %v253_v54, %v292_v1  ;;  %v66_v63 = vmul.f32 %v254_v55, %v292_v1 }
  0x10   :  { %v84_v0 = vadd.f32 %v306_v7, %v61_v56  ;;  %v85_v2 = vadd.f32 %v306_v7, %v62_v57  ;;  %v67_v3 = vmul.f32 %v257_v58, %v292_v1  ;;  %v68_v4 = vmul.f32 %v258_v59, %v292_v1 }
  0x11   :  { %v86_v5 = vadd.f32 %v306_v7, %v63_v60  ;;  %v87_v6 = vadd.f32 %v306_v7, %v64_v61  ;;  %v88_v8 = vadd.f32 %v306_v7, %v65_v62  ;;  %v89_v9 = vadd.f32 %v306_v7, %v66_v63 }
  0x12   :  { %v100_v10 = vmax.f32 %v84_v0, 0.0  ;;  %v101_v11 = vmax.f32 %v85_v2, 0.0  ;;  %v90_v12 = vadd.f32 %v306_v7, %v67_v3  ;;  %v91_v13 = vadd.f32 %v306_v7, %v68_v4 }
  0x13   :  { %v102_v14 = vmax.f32 %v86_v5, 0.0  ;;  %v103_v15 = vmax.f32 %v87_v6, 0.0  ;;  %v104_v16 = vmax.f32 %v88_v8, 0.0  ;;  %v105_v17 = vmax.f32 %v89_v9, 0.0 }
  0x14   :  { %v219_v18 = vpack.c.bf16 %v100_v10, %v100_v10  ;;  %v220_v1 = vpack.c.bf16 %v101_v11, %v101_v11  ;;  %v106_v19 = vmax.f32 %v90_v12, 0.0  ;;  %v107_v20 = vmax.f32 %v91_v13, 0.0 }
  0x15   :  { %v221_v21 = vpack.c.bf16 %v102_v14, %v102_v14  ;;  %v222_v22 = vpack.c.bf16 %v103_v15, %v103_v15  ;;  %v223_v23 = vpack.c.bf16 %v104_v16, %v104_v16  ;;  %v224_v24 = vpack.c.bf16 %v105_v17, %v105_v17 }
  0x16   :  { %181 = vst.msk [vmem:[%s419_s3 + $0x20] sm:$0xf] %vm172_vm0, %v219_v18  ;;  %182 = vst.msk [vmem:[%s419_s3 + $0x24] sm:$0xf] %vm172_vm0, %v220_v1  ;;  %v225_v7 = vpack.c.bf16 %v106_v19, %v106_v19  ;;  %v226_v25 = vpack.c.bf16 %v107_v20, %v107_v20 }
  0x17   :  { %183 = vst.msk [vmem:[%s419_s3 + $0x28] sm:$0xf] %vm172_vm0, %v221_v21  ;;  %184 = vst.msk [vmem:[%s419_s3 + $0x2c] sm:$0xf] %vm172_vm0, %v222_v22 }
  0x18   :  { %185 = vst.msk [vmem:[%s419_s3 + $0x30] sm:$0xf] %vm172_vm0, %v223_v23  ;;  %186 = vst.msk [vmem:[%s419_s3 + $0x34] sm:$0xf] %vm172_vm0, %v224_v24 }
  0x19   :  { %187 = vst.msk [vmem:[%s419_s3 + $0x38] sm:$0xf] %vm172_vm0, %v225_v7  ;;  %188 = vst.msk [vmem:[%s419_s3 + $0x3c] sm:$0xf] %vm172_vm0, %v226_v25 }

// kernel: resnet18_forward.47
= control target key start
LH: loop header
LB: loop body
LE: loop exit
PB: predicated region body
PF: predicated region fallthrough
CT: control target
= control target key end

     0   :  { %v773_v0 = vmov 0   ;;  %vm20_vm0 = vcmask 523264   ;;  %v774_v3 = vmov 0.0   ;;  %vm217_vm1 = vcmask 154624   ;;  %s1090_s1 = inlined_call_operand.vmem [shape: bf16[147,64], index: 1, kind: input, shape index: {}]   ;;  %s1091_s0 = inlined_call_operand.vmem [shape: bf16[128,147], index: 0, kind: input, shape index: {}]   ;;  %s1092_s2 = inlined_call_operand.vmem [shape: bf16[128,64], index: 2, kind: output, shape index: {0}]   ;;  %s1093_s3 = inlined_call_operand.vmem [shape: f32[1,1,64], index: 3, kind: output, shape index: {1}]   ;;  %s1094_s4 = inlined_call_operand.vmem [shape: f32[1,1,64], index: 4, kind: output, shape index: {2}]  }
   0x1   :  { %249 = vmatprep.subr.bf16.mxu0 %v773_v0  ;;  %v739_v1 = vld [vmem:[%s1090_s1 + $0x38] sm:$0xff]   ;;  %716 = vmatprep.subr.bf16.mxu1 %v773_v0  ;;  %v740_v2 = vld [vmem:[%s1090_s1 + $0x30] sm:$0xff]   ;;  %21 = vst.msk [vmem:[#allocation2] sm:$0xff] %vm20_vm0, %v774_v3  ;;  %22 = vst.msk [vmem:[#allocation2 + $0x8] sm:$0xff] %vm20_vm0, %v774_v3  ;;  %vm242_vm2 = vcmask 1040384   ;;  %vm243_vm3 = vcmask 1041408  }
   0x2   :  { %250 = vmatpush1.bf16.msra.mxu0 %v739_v1  ;;  %726 = vmatpush1.bf16.msra.mxu1 %v739_v1  ;;  %23 = vst.msk [vmem:[#allocation2 + $0x10] sm:$0xff] %vm20_vm0, %v774_v3  ;;  %24 = vst.msk [vmem:[#allocation2 + $0x18] sm:$0xff] %vm20_vm0, %v774_v3  ;;  %v741_v4 = vld [vmem:[%s1090_s1 + $0x28] sm:$0xff]   ;;  %v742_v5 = vld [vmem:[%s1090_s1 + $0x20] sm:$0xff]   ;;  %v775_v11 = vmov 65535   ;;  %vm462_vm4 = vcmask 519168  }
   0x3   :  { %251 = vmatprep.subr.bf16.mxu0 %v773_v0  ;;  %717 = vmatprep.subr.bf16.mxu1 %v773_v0  ;;  %25 = vst.msk [vmem:[#allocation2 + $0x20] sm:$0xff] %vm20_vm0, %v774_v3  ;;  %26 = vst.msk [vmem:[#allocation2 + $0x28] sm:$0xff] %vm20_vm0, %v774_v3  ;;  %v751_v6 = vld [vmem:[%s1091_s0 + $0x4] ss:$8 sps:$4 sm:$0xff]   ;;  %v743_v8 = vld [vmem:[%s1090_s1 + $0x18] sm:$0xff]   ;;  %v244_v12 = vsel %vm242_vm2, 4294967295, %v775_v11 }
   0x4   :  { %27 = vst.msk [vmem:[#allocation2 + $0x30] sm:$0xff] %vm20_vm0, %v774_v3  ;;  %28 = vst.msk [vmem:[#allocation2 + $0x38] sm:$0xff] %vm20_vm0, %v774_v3  ;;  %676 = vmatprep.mubr.msk.bf16.mxu0 %vm217_vm1, %v751_v6  ;;  %v757_v7 = vld [vmem:[%s1091_s0 + $0x44] ss:$8 sps:$4 sm:$0xff]   ;;  %v744_v9 = vld [vmem:[%s1090_s1 + $0x10] sm:$0xff]   ;;  %v245_v15 = vsel %vm243_vm3, %v244_v12, 0 }
   0x5   :  { %29 = vst.msk [vmem:[#allocation2 + $0x40] sm:$0xff] %vm20_vm0, %v774_v3  ;;  %30 = vst.msk [vmem:[#allocation2 + $0x48] sm:$0xff] %vm20_vm0, %v774_v3  ;;  %680 = vmatprep.mubr.msk.bf16.mxu1 %vm217_vm1, %v757_v7  ;;  %v745_v10 = vld [vmem:[%s1090_s1 + $0x8] sm:$0xff]   ;;  %v746_v13 = vld [vmem:[%s1090_s1] sm:$0xff]   ;;  %vm582_vm5 = vcmask 516096  }
   0x6   :  { %31 = vst.msk [vmem:[#allocation2 + $0x50] sm:$0xff] %vm20_vm0, %v774_v3  ;;  %32 = vst.msk [vmem:[#allocation2 + $0x58] sm:$0xff] %vm20_vm0, %v774_v3  ;;  %252 = vmatpush1.bf16.msra.mxu0 %v740_v2  ;;  %727 = vmatpush1.bf16.msra.mxu1 %v740_v2  ;;  %v747_v14 = vld [vmem:[%s1090_s1 + $0x48] ss:$0 sps:$4 sm:$0x33]   ;;  %v748_v17 = vld [vmem:[%s1090_s1 + $0x40] sm:$0xff]  }
   0x7   :  { %33 = vst.msk [vmem:[#allocation2 + $0x60] sm:$0xff] %vm20_vm0, %v774_v3  ;;  %34 = vst.msk [vmem:[#allocation2 + $0x68] sm:$0xff] %vm20_vm0, %v774_v3  ;;  %253 = vmatprep.subr.bf16.mxu0 %v773_v0  ;;  %718 = vmatprep.subr.bf16.mxu1 %v773_v0  ;;  %v247_v16 = vand.u32 %v747_v14, %v245_v15  ;;  %v749_v18 = vld [vmem:[%s1091_s0] ss:$8 sps:$4 sm:$0xff]   ;;  %v752_v20 = vld [vmem:[%s1091_s0 + $0x14] ss:$8 sps:$4 sm:$0xff]  }
   0x8   :  { %35 = vst.msk [vmem:[#allocation2 + $0x70] sm:$0xff] %vm20_vm0, %v774_v3  ;;  %36 = vst.msk [vmem:[#allocation2 + $0x78] sm:$0xff] %vm20_vm0, %v774_v3  ;;  %v755_v19 = vld [vmem:[%s1091_s0 + $0x40] ss:$8 sps:$4 sm:$0xff]   ;;  %v761_v21 = vld [vmem:[%s1091_s0 + $0x54] ss:$8 sps:$4 sm:$0xff]  }
   0x9   :  { %v754_v22 = vld [vmem:[%s1091_s0 + $0x10] ss:$8 sps:$4 sm:$0xff]   ;;  %v758_v24 = vld [vmem:[%s1091_s0 + $0x24] ss:$8 sps:$4 sm:$0xff]   ;;  %v760_v26 = vld [vmem:[%s1091_s0 + $0x20] ss:$8 sps:$4 sm:$0xff]  }
   0xa   :  { %254 = vmatpush1.bf16.msra.mxu0 %v741_v4  ;;  %728 = vmatpush1.bf16.msra.mxu1 %v741_v4  ;;  %v763_v23 = vld [vmem:[%s1091_s0 + $0x50] ss:$8 sps:$4 sm:$0xff]   ;;  %v767_v25 = vld [vmem:[%s1091_s0 + $0x64] ss:$8 sps:$4 sm:$0xff]   ;;  %v769_v27 = vld [vmem:[%s1091_s0 + $0x60] ss:$8 sps:$4 sm:$0xff]  }
   0xb   :  { %255 = vmatprep.subr.bf16.mxu0 %v773_v0  ;;  %719 = vmatprep.subr.bf16.mxu1 %v773_v0  ;;  %v764_v28 = vld [vmem:[%s1091_s0 + $0x34] ss:$8 sps:$4 sm:$0xff]   ;;  %v766_v30 = vld [vmem:[%s1091_s0 + $0x30] ss:$8 sps:$4 sm:$0xff]   ;;  %v37_v32 = vld [vmem:[#allocation2] sm:$0xff] }
   0xc   :  { %v770_v29 = vld [vmem:[%s1091_s0 + $0x74] ss:$8 sps:$4 sm:$0xff]   ;;  %v772_v31 = vld [vmem:[%s1091_s0 + $0x70] ss:$8 sps:$4 sm:$0xff]   ;;  %v45_v33 = vld [vmem:[#allocation2 + $0x40] sm:$0xff] }
   0xd   :  { %v38_v39 = vld [vmem:[#allocation2 + $0x8] sm:$0xff]  ;;  %v39_v47 = vld [vmem:[#allocation2 + $0x10] sm:$0xff]  ;;  %v40_v53 = vld [vmem:[#allocation2 + $0x18] sm:$0xff] }
   0xe   :  { %256 = vmatpush1.bf16.msra.mxu0 %v742_v5  ;;  %729 = vmatpush1.bf16.msra.mxu1 %v742_v5  ;;  %v46_v41 = vld [vmem:[#allocation2 + $0x48] sm:$0xff]  ;;  %v47_v49 = vld [vmem:[#allocation2 + $0x50] sm:$0xff]  ;;  %v48_v59 = vld [vmem:[#allocation2 + $0x58] sm:$0xff] }
   0xf   :  { %257 = vmatprep.subr.bf16.mxu0 %v773_v0  ;;  %720 = vmatprep.subr.bf16.mxu1 %v773_v0  ;;  %v41_v1 = vld [vmem:[#allocation2 + $0x20] sm:$0xff] }
  0x10   :  { %v49_v7 = vld [vmem:[#allocation2 + $0x60] sm:$0xff] }
  0x12   :  { %258 = vmatpush1.bf16.msra.mxu0 %v743_v8  ;;  %730 = vmatpush1.bf16.msra.mxu1 %v743_v8 }
  0x13   :  { %259 = vmatprep.subr.bf16.mxu0 %v773_v0  ;;  %721 = vmatprep.subr.bf16.mxu1 %v773_v0 }
  0x16   :  { %260 = vmatpush1.bf16.msra.mxu0 %v744_v9  ;;  %731 = vmatpush1.bf16.msra.mxu1 %v744_v9 }
  0x17   :  { %261 = vmatprep.subr.bf16.mxu0 %v773_v0  ;;  %722 = vmatprep.subr.bf16.mxu1 %v773_v0 }
  0x1a   :  { %262 = vmatpush1.bf16.msra.mxu0 %v745_v10  ;;  %732 = vmatpush1.bf16.msra.mxu1 %v745_v10 }
  0x1b   :  { %263 = vmatprep.subr.bf16.mxu0 %v773_v0  ;;  %723 = vmatprep.subr.bf16.mxu1 %v773_v0 }
  0x1e   :  { %264 = vmatpush1.bf16.msra.mxu0 %v746_v13  ;;  %733 = vmatpush1.bf16.msra.mxu1 %v746_v13  ;;  %v42_v13 = vld [vmem:[#allocation2 + $0x28] sm:$0xff] }
  0x1f   :  { %277 = vmatprep.subr.bf16.mxu0 %v773_v0  ;;  %724 = vmatprep.subr.bf16.mxu1 %v773_v0 }
  0x22   :  { %278 = vmatpush2.bf16.msra.mxu0 %v247_v16  ;;  %734 = vmatpush2.bf16.msra.mxu1 %v247_v16 }
  0x23   :  { %279 = vmatprep.subr.bf16.mxu0 %v773_v0  ;;  %725 = vmatprep.subr.bf16.mxu1 %v773_v0 }
  0x26   :  { %280 = vmatpush2.bf16.msra.mxu0 %v748_v17  ;;  %735 = vmatpush2.bf16.msra.mxu1 %v748_v17 }
  0x29   :  { %282 = vmatmul.mubr.bf16.vlgmr.msra.gmra.mxu0 %v749_v18  ;;  %314 = vmatmul.mubr.bf16.vlgmr.msra.gmra.mxu1 %v755_v19  ;;  %v50_v19 = vld [vmem:[#allocation2 + $0x68] sm:$0xff] }
  0x2a   :  { %677 = vmatprep.mubr.msk.bf16.mxu0 %vm217_vm1, %v752_v20  ;;  %681 = vmatprep.mubr.msk.bf16.mxu1 %vm217_vm1, %v761_v21 }
  0x31   :  { %290 = vmatmul.mubr.bf16.gmra.mxu0 %v754_v22  ;;  %322 = vmatmul.mubr.bf16.gmra.mxu1 %v763_v23 }
  0x32   :  { %678 = vmatprep.mubr.msk.bf16.mxu0 %vm217_vm1, %v758_v24  ;;  %682 = vmatprep.mubr.msk.bf16.mxu1 %vm217_vm1, %v767_v25  ;;  %v43_v25 = vld [vmem:[#allocation2 + $0x30] sm:$0xff] }
  0x39   :  { %298 = vmatmul.mubr.bf16.gmra.mxu0 %v760_v26  ;;  %330 = vmatmul.mubr.bf16.gmra.mxu1 %v769_v27 }
  0x3a   :  { %679 = vmatprep.mubr.msk.bf16.mxu0 %vm217_vm1, %v764_v28  ;;  %683 = vmatprep.mubr.msk.bf16.mxu1 %vm217_vm1, %v770_v29 }
  0x41   :  { %306 = vmatmul.mubr.bf16.gmra.mxu0 %v766_v30  ;;  %338 = vmatmul.mubr.bf16.gmra.mxu1 %v772_v31  ;;  %v51_v31 = vld [vmem:[#allocation2 + $0x70] sm:$0xff] }
  0xe9   :  { %v283_v34 = vpop.f32.mrf.mxu0  ;;  %v315_v35 = vpop.f32.mrf.mxu1 }
  0xea   :  { %v346_v36 = vadd.f32 %v283_v34, %v37_v32  ;;  %v354_v37 = vadd.f32 %v315_v35, %v45_v33 }
  0xeb   :  { %v285_v38 = vpop.f32.mrf.mxu0  ;;  %v317_v40 = vpop.f32.mrf.mxu1 }
  0xec   :  { %363 = vst.msk [vmem:[#allocation2] sm:$0xff] %vm20_vm0, %v346_v36  ;;  %371 = vst.msk [vmem:[#allocation2 + $0x40] sm:$0xff] %vm20_vm0, %v354_v37 }
  0xed   :  { %v286_v42 = vpop.f32.mrf.mxu0  ;;  %v318_v43 = vpop.f32.mrf.mxu1 }
  0xee   :  { %v347_v44 = vadd.f32 %v286_v42, %v38_v39  ;;  %v355_v45 = vadd.f32 %v318_v43, %v46_v41  ;;  %v44_v41 = vld [vmem:[#allocation2 + $0x38] sm:$0xff] }
  0xef   :  { %v288_v46 = vpop.f32.mrf.mxu0  ;;  %v320_v48 = vpop.f32.mrf.mxu1 }
  0xf0   :  { %364 = vst.msk [vmem:[#allocation2 + $0x8] sm:$0xff] %vm20_vm0, %v347_v44  ;;  %372 = vst.msk [vmem:[#allocation2 + $0x48] sm:$0xff] %vm20_vm0, %v355_v45 }
  0xf1   :  { %v291_v50 = vpop.f32.mrf.mxu0  ;;  %v323_v51 = vpop.f32.mrf.mxu1 }
  0xf2   :  { %v348_v52 = vadd.f32 %v291_v50, %v39_v47  ;;  %v356_v54 = vadd.f32 %v323_v51, %v47_v49  ;;  %v52_v49 = vld [vmem:[#allocation2 + $0x78] sm:$0xff] }
  0xf3   :  { %v927_v55 = vld [vmem:[#allocation2] sm:$0xff]  ;;  %v293_v56 = vpop.f32.mrf.mxu0  ;;  %v325_v58 = vpop.f32.mrf.mxu1 }
  0xf4   :  { %v929_v57 = vld [vmem:[#allocation2 + $0x40] sm:$0xff]  ;;  %v700_v60 = vpack.c.bf16 %v927_v55, %v927_v55  ;;  %365 = vst.msk [vmem:[#allocation2 + $0x10] sm:$0xff] %vm20_vm0, %v348_v52  ;;  %373 = vst.msk [vmem:[#allocation2 + $0x50] sm:$0xff] %vm20_vm0, %v356_v54  ;;  %v584_v35 = vmul.f32 %v927_v55, %v927_v55  ;;  %v545_v43 = vsel %vm20_vm0, %v927_v55, 0.0 }
  0xf5   :  { %v708_v61 = vpack.c.bf16 %v929_v57, %v929_v57  ;;  %v294_v62 = vpop.f32.mrf.mxu0  ;;  %v326_v63 = vpop.f32.mrf.mxu1 }
  0xf6   :  { %463 = vst.msk [vmem:[%s1092_s2] sm:$0xf] %vm462_vm4, %v700_v60  ;;  %v349_v0 = vadd.f32 %v294_v62, %v40_v53  ;;  %v357_v2 = vadd.f32 %v326_v63, %v48_v59  ;;  %v600_v54 = vsel %vm20_vm0, %v584_v35, 0.0 }
  0xf7   :  { %471 = vst.msk [vmem:[%s1092_s2 + $0x20] sm:$0xf] %vm462_vm4, %v708_v61  ;;  %v383_v3 = vld [vmem:[#allocation2 + $0x8] sm:$0xff]  ;;  %v296_v4 = vpop.f32.mrf.mxu0  ;;  %v328_v6 = vpop.f32.mrf.mxu1 }
  0xf8   :  { %v945_v5 = vld [vmem:[#allocation2 + $0x48] sm:$0xff]  ;;  %v701_v8 = vpack.c.bf16 %v383_v3, %v383_v3  ;;  %366 = vst.msk [vmem:[#allocation2 + $0x18] sm:$0xff] %vm20_vm0, %v349_v0  ;;  %374 = vst.msk [vmem:[#allocation2 + $0x58] sm:$0xff] %vm20_vm0, %v357_v2  ;;  %v585_v32 = vmul.f32 %v383_v3, %v383_v3  ;;  %v546_v39 = vsel %vm20_vm0, %v383_v3, 0.0 }
  0xf9   :  { %v709_v9 = vpack.c.bf16 %v945_v5, %v945_v5  ;;  %v299_v10 = vpop.f32.mrf.mxu0  ;;  %v331_v11 = vpop.f32.mrf.mxu1  ;;  %v547_v55 = vadd.f32 %v546_v39, %v545_v43 }
  0xfa   :  { %464 = vst.msk [vmem:[%s1092_s2 + $0x4] sm:$0xf] %vm462_vm4, %v701_v8  ;;  %v350_v12 = vadd.f32 %v299_v10, %v41_v1  ;;  %v358_v14 = vadd.f32 %v331_v11, %v49_v7  ;;  %v601_v50 = vsel %vm20_vm0, %v585_v32, 0.0 }
  0xfb   :  { %472 = vst.msk [vmem:[%s1092_s2 + $0x24] sm:$0xf] %vm462_vm4, %v709_v9  ;;  %v384_v15 = vld [vmem:[#allocation2 + $0x10] sm:$0xff]  ;;  %v301_v16 = vpop.f32.mrf.mxu0  ;;  %v333_v18 = vpop.f32.mrf.mxu1  ;;  %v602_v0 = vadd.f32 %v601_v50, %v600_v54 }
  0xfc   :  { %v959_v17 = vld [vmem:[#allocation2 + $0x50] sm:$0xff]  ;;  %v702_v20 = vpack.c.bf16 %v384_v15, %v384_v15  ;;  %367 = vst.msk [vmem:[#allocation2 + $0x20] sm:$0xff] %vm20_vm0, %v350_v12  ;;  %375 = vst.msk [vmem:[#allocation2 + $0x60] sm:$0xff] %vm20_vm0, %v358_v14  ;;  %v586_v36 = vmul.f32 %v384_v15, %v384_v15  ;;  %v548_v51 = vsel %vm20_vm0, %v384_v15, 0.0 }
  0xfd   :  { %v710_v21 = vpack.c.bf16 %v959_v17, %v959_v17  ;;  %v302_v22 = vpop.f32.mrf.mxu0  ;;  %v334_v23 = vpop.f32.mrf.mxu1  ;;  %v549_v1 = vadd.f32 %v548_v51, %v547_v55 }
  0xfe   :  { %465 = vst.msk [vmem:[%s1092_s2 + $0x8] sm:$0xf] %vm462_vm4, %v702_v20  ;;  %v351_v24 = vadd.f32 %v302_v22, %v42_v13  ;;  %v359_v26 = vadd.f32 %v334_v23, %v50_v19  ;;  %v603_v56 = vsel %vm20_vm0, %v586_v36, 0.0 }
  0xff   :  { %473 = vst.msk [vmem:[%s1092_s2 + $0x28] sm:$0xf] %vm462_vm4, %v710_v21  ;;  %v385_v27 = vld [vmem:[#allocation2 + $0x18] sm:$0xff]  ;;  %v304_v28 = vpop.f32.mrf.mxu0  ;;  %v336_v30 = vpop.f32.mrf.mxu1  ;;  %v604_v12 = vadd.f32 %v603_v56, %v602_v0 }
 0x100   :  { %v973_v29 = vld [vmem:[#allocation2 + $0x58] sm:$0xff]  ;;  %v703_v33 = vpack.c.bf16 %v385_v27, %v385_v27  ;;  %368 = vst.msk [vmem:[#allocation2 + $0x28] sm:$0xff] %vm20_vm0, %v351_v24  ;;  %376 = vst.msk [vmem:[#allocation2 + $0x68] sm:$0xff] %vm20_vm0, %v359_v26  ;;  %v587_v44 = vmul.f32 %v385_v27, %v385_v27  ;;  %v550_v60 = vsel %vm20_vm0, %v385_v27, 0.0  ;;  %v592_v30 = vmul.f32 %v929_v57, %v929_v57 }
 0x101   :  { %v711_v34 = vpack.c.bf16 %v973_v29, %v973_v29  ;;  %v307_v37 = vpop.f32.mrf.mxu0  ;;  %v339_v38 = vpop.f32.mrf.mxu1  ;;  %v551_v13 = vadd.f32 %v550_v60, %v549_v1 }
 0x102   :  { %466 = vst.msk [vmem:[%s1092_s2 + $0xc] sm:$0xf] %vm462_vm4, %v703_v33  ;;  %v352_v40 = vadd.f32 %v307_v37, %v43_v25  ;;  %v360_v42 = vadd.f32 %v339_v38, %v51_v31  ;;  %v605_v2 = vsel %vm20_vm0, %v587_v44, 0.0 }
 0x103   :  { %474 = vst.msk [vmem:[%s1092_s2 + $0x2c] sm:$0xf] %vm462_vm4, %v711_v34  ;;  %v386_v45 = vld [vmem:[#allocation2 + $0x20] sm:$0xff]  ;;  %v309_v46 = vpop.f32.mrf.mxu0  ;;  %v341_v48 = vpop.f32.mrf.mxu1  ;;  %v606_v16 = vadd.f32 %v605_v2, %v604_v12 }
 0x104   :  { %v992_v47 = vld [vmem:[#allocation2 + $0x60] sm:$0xff]  ;;  %v704_v52 = vpack.c.bf16 %v386_v45, %v386_v45  ;;  %369 = vst.msk [vmem:[#allocation2 + $0x30] sm:$0xff] %vm20_vm0, %v352_v40  ;;  %377 = vst.msk [vmem:[#allocation2 + $0x70] sm:$0xff] %vm20_vm0, %v360_v42  ;;  %v588_v61 = vmul.f32 %v386_v45, %v386_v45  ;;  %v552_v8 = vsel %vm20_vm0, %v386_v45, 0.0  ;;  %v593_v42 = vmul.f32 %v945_v5, %v945_v5 }
 0x105   :  { %v712_v53 = vpack.c.bf16 %v992_v47, %v992_v47  ;;  %v310_v58 = vpop.f32.mrf.mxu0  ;;  %v342_v59 = vpop.f32.mrf.mxu1  ;;  %v553_v18 = vadd.f32 %v552_v8, %v551_v13  ;;  %v615_v46 = vsel %vm20_vm0, %v592_v30, 0.0  ;;  %v594_v48 = vmul.f32 %v959_v17, %v959_v17 }
 0x106   :  { %467 = vst.msk [vmem:[%s1092_s2 + $0x10] sm:$0xf] %vm462_vm4, %v704_v52  ;;  %v353_v62 = vadd.f32 %v310_v58, %v44_v41  ;;  %v361_v63 = vadd.f32 %v342_v59, %v52_v49  ;;  %v607_v14 = vsel %vm20_vm0, %v588_v61, 0.0  ;;  %v560_v41 = vsel %vm20_vm0, %v929_v57, 0.0 }
 0x107   :  { %475 = vst.msk [vmem:[%s1092_s2 + $0x30] sm:$0xf] %vm462_vm4, %v712_v53  ;;  %v387_v3 = vld [vmem:[#allocation2 + $0x28] sm:$0xff]  ;;  %v312_v4 = vpop.f32.mrf.mxu0  ;;  %v344_v7 = vpop.f32.mrf.mxu1  ;;  %v608_v26 = vadd.f32 %v607_v14, %v606_v16  ;;  %v562_v57 = vsel %vm20_vm0, %v945_v5, 0.0  ;;  %v617_v51 = vsel %vm20_vm0, %v593_v42, 0.0  ;;  %v564_v52 = vsel %vm20_vm0, %v959_v17, 0.0 }
 0x108   :  { %v1012_v6 = vld [vmem:[#allocation2 + $0x68] sm:$0xff]  ;;  %v705_v9 = vpack.c.bf16 %v387_v3, %v387_v3  ;;  %v589_v10 = vmul.f32 %v387_v3, %v387_v3  ;;  %370 = vst.msk [vmem:[#allocation2 + $0x38] sm:$0xff] %vm20_vm0, %v353_v62  ;;  %378 = vst.msk [vmem:[#allocation2 + $0x78] sm:$0xff] %vm20_vm0, %v361_v63  ;;  %v554_v15 = vsel %vm20_vm0, %v387_v3, 0.0  ;;  %v595_v53 = vmul.f32 %v973_v29, %v973_v29 }
 0x109   :  { %v713_v11 = vpack.c.bf16 %v1012_v6, %v1012_v6  ;;  %v555_v27 = vadd.f32 %v554_v15, %v553_v18  ;;  %v619_v56 = vsel %vm20_vm0, %v594_v48, 0.0  ;;  %v566_v5 = vsel %vm20_vm0, %v973_v29, 0.0 }
 0x10a   :  { %468 = vst.msk [vmem:[%s1092_s2 + $0x14] sm:$0xf] %vm462_vm4, %v705_v9  ;;  %v609_v19 = vsel %vm20_vm0, %v589_v10, 0.0  ;;  %v596_v58 = vmul.f32 %v992_v47, %v992_v47  ;;  %v621_v61 = vsel %vm20_vm0, %v595_v53, 0.0  ;;  %v568_v17 = vsel %vm20_vm0, %v992_v47, 0.0 }
 0x10b   :  { %476 = vst.msk [vmem:[%s1092_s2 + $0x34] sm:$0xf] %vm462_vm4, %v713_v11  ;;  %v388_v20 = vld [vmem:[#allocation2 + $0x30] sm:$0xff]  ;;  %v610_v31 = vadd.f32 %v609_v19, %v608_v26  ;;  %v597_v62 = vmul.f32 %v1012_v6, %v1012_v6  ;;  %v570_v29 = vsel %vm20_vm0, %v1012_v6, 0.0 }
 0x10c   :  { %v396_v21 = vld [vmem:[#allocation2 + $0x70] sm:$0xff]  ;;  %v706_v22 = vpack.c.bf16 %v388_v20, %v388_v20  ;;  %v556_v23 = vsel %vm20_vm0, %v388_v20, 0.0  ;;  %v590_v24 = vmul.f32 %v388_v20, %v388_v20  ;;  %v623_v1 = vsel %vm20_vm0, %v596_v58, 0.0 }
 0x10d   :  { %v714_v25 = vpack.c.bf16 %v396_v21, %v396_v21  ;;  %v557_v32 = vadd.f32 %v556_v23, %v555_v27  ;;  %v598_v2 = vmul.f32 %v396_v21, %v396_v21  ;;  %v625_v7 = vsel %vm20_vm0, %v597_v62, 0.0 }
 0x10e   :  { %469 = vst.msk [vmem:[%s1092_s2 + $0x18] sm:$0xf] %vm462_vm4, %v706_v22  ;;  %v611_v28 = vsel %vm20_vm0, %v590_v24, 0.0  ;;  %v572_v8 = vsel %vm20_vm0, %v396_v21, 0.0 }
 0x10f   :  { %477 = vst.msk [vmem:[%s1092_s2 + $0x38] sm:$0xf] %vm462_vm4, %v714_v25  ;;  %v389_v33 = vld [vmem:[#allocation2 + $0x38] sm:$0xff]  ;;  %v612_v39 = vadd.f32 %v611_v28, %v610_v31  ;;  %v627_v11 = vsel %vm20_vm0, %v598_v2, 0.0 }
 0x110   :  { %v397_v34 = vld [vmem:[#allocation2 + $0x78] sm:$0xff]  ;;  %v707_v35 = vpack.c.bf16 %v389_v33, %v389_v33  ;;  %v558_v36 = vsel %vm20_vm0, %v389_v33, 0.0  ;;  %v591_v37 = vmul.f32 %v389_v33, %v389_v33 }
 0x111   :  { %v715_v38 = vpack.c.bf16 %v397_v34, %v397_v34  ;;  %v559_v40 = vadd.f32 %v558_v36, %v557_v32  ;;  %v599_v9 = vmul.f32 %v397_v34, %v397_v34  ;;  %v574_v12 = vsel %vm20_vm0, %v397_v34, 0.0 }
 0x112   :  { %470 = vst.msk [vmem:[%s1092_s2 + $0x1c] sm:$0xf] %vm462_vm4, %v707_v35  ;;  %v613_v43 = vsel %vm20_vm0, %v591_v37, 0.0 }
 0x113   :  { %478 = vst.msk [vmem:[%s1092_s2 + $0x3c] sm:$0xf] %vm462_vm4, %v715_v38  ;;  %v561_v44 = vadd.f32 %v560_v41, %v559_v40  ;;  %v614_v45 = vadd.f32 %v613_v43, %v612_v39  ;;  %v629_v15 = vsel %vm20_vm0, %v599_v9, 0.0 }
 0x115   :  { %v563_v49 = vadd.f32 %v562_v57, %v561_v44  ;;  %v616_v50 = vadd.f32 %v615_v46, %v614_v45 }
 0x117   :  { %v618_v54 = vadd.f32 %v617_v51, %v616_v50  ;;  %v565_v55 = vadd.f32 %v564_v52, %v563_v49 }
 0x119   :  { %v567_v59 = vadd.f32 %v566_v5, %v565_v55  ;;  %v620_v60 = vadd.f32 %v619_v56, %v618_v54 }
 0x11b   :  { %v569_v63 = vadd.f32 %v568_v17, %v567_v59  ;;  %v622_v0 = vadd.f32 %v621_v61, %v620_v60 }
 0x11d   :  { %v571_v3 = vadd.f32 %v570_v29, %v569_v63  ;;  %v624_v4 = vadd.f32 %v623_v1, %v622_v0 }
 0x11f   :  { %v626_v10 = vadd.f32 %v625_v7, %v624_v4  ;;  %v573_v47 = vadd.f32 %v572_v8, %v571_v3 }
 0x121   :  { %v628_v13 = vadd.f32 %v627_v11, %v626_v10  ;;  %v575_v14 = vadd.f32 %v574_v12, %v573_v47 }
 0x123   :  { %v576_v16 = vrot.slane %v575_v14, 4  ;;  %v630_v6 = vadd.f32 %v629_v15, %v628_v13 }
 0x125   :  { %v577_v18 = vadd.f32 %v576_v16, %v575_v14  ;;  %v631_v19 = vrot.slane %v630_v6, 4 }
 0x127   :  { %v578_v20 = vrot.slane %v577_v18, 2  ;;  %v632_v22 = vadd.f32 %v631_v19, %v630_v6 }
 0x129   :  { %v579_v23 = vadd.f32 %v578_v20, %v577_v18  ;;  %v633_v24 = vrot.slane %v632_v22, 2 }
 0x12b   :  { %v580_v21 = vrot.slane %v579_v23, 1  ;;  %v634_v25 = vadd.f32 %v633_v24, %v632_v22 }
 0x12d   :  { %v581_v26 = vadd.f32 %v580_v21, %v579_v23  ;;  %v635_v27 = vrot.slane %v634_v25, 1 }
 0x12f   :  { %583 = vst.msk [vmem:[%s1093_s3] sm:$0x1] %vm582_vm5, %v581_v26  ;;  %v636_v28 = vadd.f32 %v635_v27, %v634_v25 }
 0x131   :  { %637 = vst.msk [vmem:[%s1094_s4] sm:$0x1] %vm582_vm5, %v636_v28 }

// kernel: resnet18_forward.49
= control target key start
LH: loop header
LB: loop body
LE: loop exit
PB: predicated region body
PF: predicated region fallthrough
CT: control target
= control target key end

     0   :  { %s329_s6 = smov 0   ;;  %s331_s7 = smov 0   ;;  %s378_s0 = inlined_call_operand.vmem [shape: bf16[9,32,64], index: 0, kind: input, shape index: {}]   ;;  %s379_s1 = inlined_call_operand.vmem [shape: bf16[32,64], index: 1, kind: output, shape index: {}]  }
   0x1   :  { %s333_s8 = smov 0  }
   0x2 LB: > { %s20_s9 = sadd.s32 1, %s313_s7  ;;  %p260_p0 = scmp.ge.s32.totalorder %s317_s8, 1  ;;  %s317_s8 = sphi %s333_s8, %s11_s8   ;;  %s313_s7 = sphi %s331_s7, %s381_s7   ;;  %s309_s6 = sphi %s329_s6, %s380_s6  }
   0x3   : > { %p21_p1 = scmp.ge.s32.totalorder %s20_s9, 9  ;;  %p106_p2 = scmp.lt.s32.totalorder %s317_s8, 10 }
   0x5   : > { %s383_s9 = smov (%p21_p1, %s20_s9), 0  ;;  %p107_p3 = pnand %p260_p0, %p106_p2 }
   0x6   : > { %p131_p4 = scmp.lt.s32.totalorder (!%p107_p3), %s309_s6, 8  ;;  %p263_p5 = scmp.ne.s32.totalorder (!%p107_p3), %s309_s6, 0 }
   0x7   : > { %110 = sbr.rel (%p107_p3) target bundleno = 44 (0x2c), region = 24 }
   0xc   : > { %s132_s10 = scalar_select %p131_p4, %s309_s6, 8 }
   0xd   : > { %153 = sbr.rel (%p263_p5) target bundleno = 21 (0x15), region = 28 }
   0xe   : > { %s270_s11 = sshll.u32 %s132_s10, 4 }
   0xf   : > { %s138_s14 = scalar_lea.vmem %s378_s0, %s270_s11 }
  0x10   : > { %v146_v0 = vld [vmem:[%s138_s14] sm:$0xf]  ;;  %v147_v1 = vld [vmem:[%s138_s14 + $0x4] sm:$0xf]  ;;  %v148_v2 = vld [vmem:[%s138_s14 + $0x8] sm:$0xf] }
  0x11   : > { %v149_v3 = vld [vmem:[%s138_s14 + $0xc] sm:$0xf] }
  0x12   : > { %vm154_vm0 = vcmask 519168  }
  0x13   : > { %155 = vst.msk [vmem:[#allocation2] sm:$0xf] %vm154_vm0, %v146_v0  ;;  %156 = vst.msk [vmem:[#allocation2 + $0x4] sm:$0xf] %vm154_vm0, %v147_v1 }
  0x14   : > { %157 = vst.msk [vmem:[#allocation2 + $0x8] sm:$0xf] %vm154_vm0, %v148_v2  ;;  %158 = vst.msk [vmem:[#allocation2 + $0xc] sm:$0xf] %vm154_vm0, %v149_v3 }
  0x15 PF: > { %p264_p6 = scmp.eq.s32.totalorder %s309_s6, 0 }
  0x17   : > { %162 = sbr.rel (%p264_p6) target bundleno = 33 (0x21), region = 32 }
  0x1c   : > { %v163_v4 = vld [vmem:[#allocation2] sm:$0xf]  ;;  %vm171_vm1 = vcmask 519168   ;;  %v164_v5 = vld [vmem:[#allocation2 + $0x4] sm:$0xf] }
  0x1d   : > { %v167_v6 = vmax.bf16 %v163_v4, %v146_v0  ;;  %v168_v7 = vmax.bf16 %v164_v5, %v147_v1  ;;  %v165_v8 = vld [vmem:[#allocation2 + $0x8] sm:$0xf]  ;;  %v166_v9 = vld [vmem:[#allocation2 + $0xc] sm:$0xf] }
  0x1e   : > { %v169_v10 = vmax.bf16 %v165_v8, %v148_v2  ;;  %v170_v11 = vmax.bf16 %v166_v9, %v149_v3 }
  0x1f   : > { %172 = vst.msk [vmem:[#allocation2] sm:$0xf] %vm171_vm1, %v167_v6  ;;  %173 = vst.msk [vmem:[#allocation2 + $0x4] sm:$0xf] %vm171_vm1, %v168_v7 }
  0x20   : > { %174 = vst.msk [vmem:[#allocation2 + $0x8] sm:$0xf] %vm171_vm1, %v169_v10  ;;  %175 = vst.msk [vmem:[#allocation2 + $0xc] sm:$0xf] %vm171_vm1, %v170_v11 }
  0x21 PF: > { %p265_p7 = scmp.ne.s32.totalorder %s309_s6, 8 }
  0x23   : > { %179 = sbr.rel (%p265_p7) target bundleno = 44 (0x2c), region = 36 }
  0x28   : > { %v180_v12 = vld [vmem:[#allocation2] sm:$0xf]  ;;  %vm184_vm2 = vcmask 519168   ;;  %v181_v13 = vld [vmem:[#allocation2 + $0x4] sm:$0xf] }
  0x29   : > { %185 = vst.msk [vmem:[%s379_s1] sm:$0xf] %vm184_vm2, %v180_v12  ;;  %186 = vst.msk [vmem:[%s379_s1 + $0x4] sm:$0xf] %vm184_vm2, %v181_v13  ;;  %v182_v14 = vld [vmem:[#allocation2 + $0x8] sm:$0xf] }
  0x2a   : > { %v183_v15 = vld [vmem:[#allocation2 + $0xc] sm:$0xf]  ;;  %187 = vst.msk [vmem:[%s379_s1 + $0x8] sm:$0xf] %vm184_vm2, %v182_v14 }
  0x2b   : > { %188 = vst.msk [vmem:[%s379_s1 + $0xc] sm:$0xf] %vm184_vm2, %v183_v15 }
  0x2c PF: > { %s11_s8 = sadd.s32 1, %s317_s8   ;;  %s380_s6 = smov %s313_s7 }
  0x2d   : > { %p8_p8 = scmp.ge.s32.totalorder %s11_s8, 11   ;;  %s381_s7 = smov %s383_s9 }
  0x2f   :  { %10 = sbr.rel (!%p8_p8) target bundleno = 2 (0x2), region = 66 }

// kernel: resnet18_forward.51
= control target key start
LH: loop header
LB: loop body
LE: loop exit
PB: predicated region body
PF: predicated region fallthrough
CT: control target
= control target key end

     0   :  { %vm64_vm0 = vcmask 519168   ;;  %s136_s0 = inlined_call_operand.vmem [shape: bf16[32,64], index: 0, kind: input, shape index: {}]   ;;  %s137_s1 = inlined_call_operand.vmem [shape: f32[1,64], index: 1, kind: input, shape index: {}]   ;;  %s138_s2 = inlined_call_operand.vmem [shape: f32[1,64], index: 2, kind: input, shape index: {}]   ;;  %s139_s3 = inlined_call_operand.vmem [shape: bf16[32,64], index: 3, kind: output, shape index: {}]  }
   0x1   :  { %v84_v0 = vld [vmem:[%s136_s0] sm:$0xff]   ;;  %v91_v4 = vld [vmem:[%s136_s0 + $0x8] sm:$0xff]  }
   0x2   :  { %v73_v1 = vld [vmem:[%s137_s1] ss:$0 sm:$0xff]  ;;  %v85_v2 = vunpack.c.l.bf16 %v84_v0  ;;  %v86_v3 = vunpack.c.h.bf16 %v84_v0  ;;  %v89_v6 = vunpack.c.l.bf16 %v91_v4  ;;  %v90_v7 = vunpack.c.h.bf16 %v91_v4 }
   0x3   :  { %v74_v5 = vld [vmem:[%s138_s2] ss:$0 sm:$0xff] }
   0x4   :  { %v29_v8 = vmul.f32 %v85_v2, %v73_v1  ;;  %v30_v9 = vmul.f32 %v86_v3, %v73_v1  ;;  %v31_v10 = vmul.f32 %v89_v6, %v73_v1  ;;  %v32_v11 = vmul.f32 %v90_v7, %v73_v1 }
   0x6   :  { %v40_v12 = vadd.f32 %v74_v5, %v29_v8  ;;  %v41_v13 = vadd.f32 %v74_v5, %v30_v9  ;;  %v42_v14 = vadd.f32 %v74_v5, %v31_v10  ;;  %v43_v15 = vadd.f32 %v74_v5, %v32_v11 }
   0x8   :  { %v44_v16 = vmax.f32 %v40_v12, 0.0  ;;  %v45_v17 = vmax.f32 %v41_v13, 0.0  ;;  %v46_v18 = vmax.f32 %v42_v14, 0.0  ;;  %v47_v19 = vmax.f32 %v43_v15, 0.0 }
   0xa   :  { %v79_v20 = vpack.c.bf16 %v44_v16, %v44_v16  ;;  %v80_v21 = vpack.c.bf16 %v45_v17, %v45_v17  ;;  %v81_v22 = vpack.c.bf16 %v46_v18, %v46_v18  ;;  %v82_v23 = vpack.c.bf16 %v47_v19, %v47_v19 }
   0xc   :  { %65 = vst.msk [vmem:[%s139_s3] sm:$0xf] %vm64_vm0, %v79_v20  ;;  %66 = vst.msk [vmem:[%s139_s3 + $0x4] sm:$0xf] %vm64_vm0, %v80_v21 }
   0xd   :  { %67 = vst.msk [vmem:[%s139_s3 + $0x8] sm:$0xf] %vm64_vm0, %v81_v22  ;;  %68 = vst.msk [vmem:[%s139_s3 + $0xc] sm:$0xf] %vm64_vm0, %v82_v23 }

// kernel: resnet18_forward.53
= control target key start
LH: loop header
LB: loop body
LE: loop exit
PB: predicated region body
PF: predicated region fallthrough
CT: control target
= control target key end

     0   :  { %vm79_vm0 = vcmask 519168   ;;  %s171_s0 = inlined_call_operand.vmem [shape: bf16[32,64], index: 0, kind: input, shape index: {}]   ;;  %s172_s1 = inlined_call_operand.vmem [shape: f32[1,64], index: 1, kind: input, shape index: {}]   ;;  %s173_s2 = inlined_call_operand.vmem [shape: f32[1,64], index: 2, kind: input, shape index: {}]   ;;  %s174_s3 = inlined_call_operand.vmem [shape: bf16[32,64], index: 3, kind: input, shape index: {}]   ;;  %s175_s4 = inlined_call_operand.vmem [shape: bf16[32,64], index: 4, kind: output, shape index: {}]  }
   0x1   :  { %v99_v0 = vld [vmem:[%s171_s0] sm:$0xff]   ;;  %v114_v5 = vld [vmem:[%s171_s0 + $0x8] sm:$0xff]  }
   0x2   :  { %v88_v1 = vld [vmem:[%s172_s1] ss:$0 sm:$0xff]  ;;  %v100_v2 = vunpack.c.l.bf16 %v99_v0  ;;  %v101_v4 = vunpack.c.h.bf16 %v99_v0  ;;  %v115_v6 = vld [vmem:[%s174_s3 + $0x8] sm:$0xff]   ;;  %v104_v9 = vunpack.c.l.bf16 %v114_v5  ;;  %v105_v13 = vunpack.c.h.bf16 %v114_v5 }
   0x3   :  { %v107_v3 = vld [vmem:[%s174_s3] sm:$0xff]   ;;  %v112_v15 = vunpack.c.l.bf16 %v115_v6  ;;  %v113_v19 = vunpack.c.h.bf16 %v115_v6 }
   0x4   :  { %v89_v7 = vld [vmem:[%s173_s2] ss:$0 sm:$0xff]  ;;  %v108_v8 = vunpack.c.l.bf16 %v107_v3  ;;  %v32_v10 = vmul.f32 %v100_v2, %v88_v1  ;;  %v33_v11 = vmul.f32 %v101_v4, %v88_v1  ;;  %v109_v12 = vunpack.c.h.bf16 %v107_v3 }
   0x5   :  { %v34_v14 = vmul.f32 %v104_v9, %v88_v1  ;;  %v35_v18 = vmul.f32 %v105_v13, %v88_v1 }
   0x6   :  { %v43_v16 = vadd.f32 %v89_v7, %v32_v10  ;;  %v44_v17 = vadd.f32 %v89_v7, %v33_v11 }
   0x7   :  { %v45_v20 = vadd.f32 %v89_v7, %v34_v14  ;;  %v46_v23 = vadd.f32 %v89_v7, %v35_v18 }
   0x8   :  { %v55_v21 = vadd.f32 %v108_v8, %v43_v16  ;;  %v56_v22 = vadd.f32 %v109_v12, %v44_v17 }
   0x9   :  { %v57_v24 = vadd.f32 %v112_v15, %v45_v20  ;;  %v58_v27 = vadd.f32 %v113_v19, %v46_v23 }
   0xa   :  { %v59_v25 = vmax.f32 %v55_v21, 0.0  ;;  %v60_v26 = vmax.f32 %v56_v22, 0.0 }
   0xb   :  { %v61_v28 = vmax.f32 %v57_v24, 0.0  ;;  %v62_v31 = vmax.f32 %v58_v27, 0.0 }
   0xc   :  { %v94_v29 = vpack.c.bf16 %v59_v25, %v59_v25  ;;  %v95_v30 = vpack.c.bf16 %v60_v26, %v60_v26 }
   0xd   :  { %v96_v32 = vpack.c.bf16 %v61_v28, %v61_v28  ;;  %v97_v33 = vpack.c.bf16 %v62_v31, %v62_v31 }
   0xe   :  { %80 = vst.msk [vmem:[%s175_s4] sm:$0xf] %vm79_vm0, %v94_v29  ;;  %81 = vst.msk [vmem:[%s175_s4 + $0x4] sm:$0xf] %vm79_vm0, %v95_v30 }
   0xf   :  { %82 = vst.msk [vmem:[%s175_s4 + $0x8] sm:$0xf] %vm79_vm0, %v96_v32  ;;  %83 = vst.msk [vmem:[%s175_s4 + $0xc] sm:$0xf] %vm79_vm0, %v97_v33 }

// kernel: resnet18_forward.50
= control target key start
LH: loop header
LB: loop body
LE: loop exit
PB: predicated region body
PF: predicated region fallthrough
CT: control target
= control target key end

     0   :  { %vm20_vm0 = vcmask 523264   ;;  %v813_v46 = vmov 0.0   ;;  %vm564_vm1 = vcmask 519168   ;;  %vm600_vm2 = vcmask 516096   ;;  %s1017_s1 = inlined_call_operand.vmem [shape: bf16[576,64], index: 1, kind: input, shape index: {}]   ;;  %s1018_s0 = inlined_call_operand.vmem [shape: bf16[32,576], index: 0, kind: input, shape index: {}]   ;;  %s1019_s2 = inlined_call_operand.vmem [shape: bf16[32,64], index: 2, kind: output, shape index: {0}]   ;;  %s1020_s3 = inlined_call_operand.vmem [shape: f32[1,1,64], index: 3, kind: output, shape index: {1}]   ;;  %s1021_s4 = inlined_call_operand.vmem [shape: f32[1,1,64], index: 4, kind: output, shape index: {2}]  }
   0x1   :  { %v763_v0 = vld [vmem:[%s1017_s1 + $0x78] sm:$0xff]   ;;  %v767_v4 = vld [vmem:[%s1017_s1 + $0x70] sm:$0xff]   ;;  %v771_v8 = vld [vmem:[%s1017_s1 + $0x68] sm:$0xff]   ;;  %23 = vst.msk [vmem:[#allocation2 + $0x10] sm:$0xff] %vm20_vm0, %v813_v46 }
   0x2   :  { %v764_v1 = vld [vmem:[%s1017_s1 + $0xf8] sm:$0xff]   ;;  %688 = vmatprep.subr.bf16.mxu0 %v763_v0  ;;  %v768_v5 = vld [vmem:[%s1017_s1 + $0xf0] sm:$0xff]   ;;  %v772_v9 = vld [vmem:[%s1017_s1 + $0xe8] sm:$0xff]   ;;  %21 = vst.msk [vmem:[#allocation2] sm:$0xff] %vm20_vm0, %v813_v46 }
   0x3   :  { %v765_v2 = vld [vmem:[%s1017_s1 + $0x38] sm:$0xff]   ;;  %716 = vmatprep.subr.bf16.mxu1 %v764_v1  ;;  %v769_v6 = vld [vmem:[%s1017_s1 + $0x30] sm:$0xff]   ;;  %v773_v10 = vld [vmem:[%s1017_s1 + $0x28] sm:$0xff]   ;;  %22 = vst.msk [vmem:[#allocation2 + $0x8] sm:$0xff] %vm20_vm0, %v813_v46 }
   0x4   :  { %v766_v3 = vld [vmem:[%s1017_s1 + $0xb8] sm:$0xff]   ;;  %689 = vmatpush3.bf16.msra.mxu0 %v765_v2  ;;  %v770_v7 = vld [vmem:[%s1017_s1 + $0xb0] sm:$0xff]   ;;  %v774_v11 = vld [vmem:[%s1017_s1 + $0xa8] sm:$0xff]   ;;  %24 = vst.msk [vmem:[#allocation2 + $0x18] sm:$0xff] %vm20_vm0, %v813_v46 }
   0x5   :  { %717 = vmatpush3.bf16.msra.mxu1 %v766_v3  ;;  %690 = vmatprep.subr.bf16.mxu0 %v767_v4  ;;  %v775_v12 = vld [vmem:[%s1017_s1 + $0x60] sm:$0xff]   ;;  %v779_v16 = vld [vmem:[%s1017_s1 + $0x58] sm:$0xff]   ;;  %v783_v20 = vld [vmem:[%s1017_s1 + $0x50] sm:$0xff]  }
   0x6   :  { %718 = vmatprep.subr.bf16.mxu1 %v768_v5  ;;  %v776_v13 = vld [vmem:[%s1017_s1 + $0xe0] sm:$0xff]   ;;  %v780_v17 = vld [vmem:[%s1017_s1 + $0xd8] sm:$0xff]   ;;  %v784_v21 = vld [vmem:[%s1017_s1 + $0xd0] sm:$0xff]  }
   0x7   :  { %v777_v14 = vld [vmem:[%s1017_s1 + $0x20] sm:$0xff]   ;;  %v781_v18 = vld [vmem:[%s1017_s1 + $0x18] sm:$0xff]   ;;  %v785_v22 = vld [vmem:[%s1017_s1 + $0x10] sm:$0xff]  }
   0x8   :  { %691 = vmatpush3.bf16.msra.mxu0 %v769_v6  ;;  %v778_v15 = vld [vmem:[%s1017_s1 + $0xa0] sm:$0xff]   ;;  %v782_v19 = vld [vmem:[%s1017_s1 + $0x98] sm:$0xff]   ;;  %v786_v23 = vld [vmem:[%s1017_s1 + $0x90] sm:$0xff]  }
   0x9   :  { %719 = vmatpush3.bf16.msra.mxu1 %v770_v7  ;;  %692 = vmatprep.subr.bf16.mxu0 %v771_v8  ;;  %v787_v24 = vld [vmem:[%s1017_s1 + $0x48] sm:$0xff]   ;;  %v791_v28 = vld [vmem:[%s1017_s1 + $0x40] sm:$0xff]   ;;  %v801_v36 = vld [vmem:[%s1017_s1 + $0x118] sm:$0xff]  }
   0xa   :  { %720 = vmatprep.subr.bf16.mxu1 %v772_v9  ;;  %v788_v25 = vld [vmem:[%s1017_s1 + $0xc8] sm:$0xff]   ;;  %v792_v29 = vld [vmem:[%s1017_s1 + $0xc0] sm:$0xff]   ;;  %v802_v37 = vld [vmem:[%s1017_s1 + $0x110] sm:$0xff]  }
   0xb   :  { %v789_v26 = vld [vmem:[%s1017_s1 + $0x8] sm:$0xff]   ;;  %v793_v30 = vld [vmem:[%s1017_s1] sm:$0xff]   ;;  %v27_v6 = vld [vmem:[#allocation2 + $0x10] sm:$0xff] }
   0xc   :  { %693 = vmatpush3.bf16.msra.mxu0 %v773_v10  ;;  %v790_v27 = vld [vmem:[%s1017_s1 + $0x88] sm:$0xff]   ;;  %v794_v31 = vld [vmem:[%s1017_s1 + $0x80] sm:$0xff]  }
   0xd   :  { %721 = vmatpush3.bf16.msra.mxu1 %v774_v11  ;;  %694 = vmatprep.subr.bf16.mxu0 %v775_v12  ;;  %v795_v32 = vld [vmem:[%s1018_s0] ss:$20 sps:$4 sm:$0xff]   ;;  %v797_v33 = vld [vmem:[%s1018_s0 + $0x4] ss:$20 sps:$4 sm:$0xff]   ;;  %v798_v34 = vld [vmem:[%s1018_s0 + $0x8] ss:$20 sps:$4 sm:$0xff]  }
   0xe   :  { %722 = vmatprep.subr.bf16.mxu1 %v776_v13  ;;  %v800_v35 = vld [vmem:[%s1018_s0 + $0xc] ss:$20 sps:$4 sm:$0xff]   ;;  %418 = vmatprep.mubr.bf16.mxu0 %v797_v33  ;;  %v805_v39 = vld [vmem:[%s1018_s0 + $0x34] ss:$20 sps:$4 sm:$0xff]   ;;  %v808_v42 = vld [vmem:[%s1018_s0 + $0x30] ss:$20 sps:$4 sm:$0xff]  }
   0xf   :  { %467 = vmatprep.mubr.bf16.mxu1 %v800_v35  ;;  %v803_v38 = vld [vmem:[%s1018_s0 + $0x2c] ss:$20 sps:$4 sm:$0xff]   ;;  %v807_v40 = vld [vmem:[%s1018_s0 + $0x28] ss:$20 sps:$4 sm:$0xff]   ;;  %v811_v43 = vld [vmem:[%s1018_s0 + $0x10] ss:$20 sps:$4 sm:$0xff]  }
  0x10   :  { %695 = vmatpush3.bf16.msra.mxu0 %v777_v14  ;;  %v809_v41 = vld [vmem:[%s1017_s1 + $0x108] sm:$0xff]   ;;  %v810_v44 = vld [vmem:[%s1017_s1 + $0x100] sm:$0xff]  }
  0x11   :  { %723 = vmatpush3.bf16.msra.mxu1 %v778_v15  ;;  %696 = vmatprep.subr.bf16.mxu0 %v779_v16  ;;  %v812_v45 = vld [vmem:[%s1018_s0 + $0x38] ss:$20 sps:$4 sm:$0xff]   ;;  %v25_v12 = vld [vmem:[#allocation2] sm:$0xff] }
  0x12   :  { %724 = vmatprep.subr.bf16.mxu1 %v780_v17  ;;  %v28_v17 = vld [vmem:[#allocation2 + $0x18] sm:$0xff] }
  0x14   :  { %697 = vmatpush3.bf16.msra.mxu0 %v781_v18 }
  0x15   :  { %725 = vmatpush3.bf16.msra.mxu1 %v782_v19  ;;  %698 = vmatprep.subr.bf16.mxu0 %v783_v20 }
  0x16   :  { %726 = vmatprep.subr.bf16.mxu1 %v784_v21 }
  0x18   :  { %699 = vmatpush3.bf16.msra.mxu0 %v785_v22  ;;  %v26_v22 = vld [vmem:[#allocation2 + $0x8] sm:$0xff] }
  0x19   :  { %727 = vmatpush3.bf16.msra.mxu1 %v786_v23  ;;  %700 = vmatprep.subr.bf16.mxu0 %v787_v24 }
  0x1a   :  { %728 = vmatprep.subr.bf16.mxu1 %v788_v25 }
  0x1c   :  { %701 = vmatpush3.bf16.msra.mxu0 %v789_v26 }
  0x1d   :  { %729 = vmatpush3.bf16.msra.mxu1 %v790_v27  ;;  %702 = vmatprep.subr.bf16.mxu0 %v791_v28 }
  0x1e   :  { %730 = vmatprep.subr.bf16.mxu1 %v792_v29 }
  0x20   :  { %703 = vmatpush3.bf16.msra.mxu0 %v793_v30 }
  0x21   :  { %731 = vmatpush3.bf16.msra.mxu1 %v794_v31  ;;  %750 = vmatprep.subr.bf16.mxu0 %v801_v36 }
  0x23   :  { %419 = vmatmul.mubr.bf16.vlgmr.msra.gmra.mxu0 %v795_v32 }
  0x24   :  { %468 = vmatmul.mubr.bf16.vlgmr.msra.gmra.mxu1 %v798_v34  ;;  %751 = vmatpush3.bf16.msra.mxu0 %v801_v36 }
  0x25   :  { %752 = vmatprep.subr.bf16.mxu0 %v802_v37  ;;  %426 = vmatprep.mubr.bf16.mxu0 %v803_v38 }
  0x26   :  { %475 = vmatprep.mubr.bf16.mxu1 %v805_v39 }
  0x28   :  { %753 = vmatpush3.bf16.msra.mxu0 %v802_v37 }
  0x29   :  { %754 = vmatprep.subr.bf16.mxu0 %v809_v41 }
  0x2b   :  { %427 = vmatmul.mubr.bf16.gmra.mxu0 %v807_v40 }
  0x2c   :  { %476 = vmatmul.mubr.bf16.gmra.mxu1 %v808_v42  ;;  %758 = vmatprep.mubr.msk.bf16.mxu0 %vm20_vm0, %v811_v43 }
  0x2d   :  { %755 = vmatpush3.bf16.msra.mxu0 %v809_v41 }
  0x2e   :  { %756 = vmatprep.subr.bf16.mxu0 %v810_v44 }
  0x31   :  { %757 = vmatpush3.bf16.msra.mxu0 %v810_v44 }
  0x34   :  { %759 = vmatmul.mubr.msk.bf16.vlgmr.msra.gmra.mxu0 %vm20_vm0, %v812_v45 }
  0xe3   :  { %v704_v47 = vpop.f32.mrf.mxu0 }
  0xe4   :  { %v732_v48 = vpop.f32.mrf.mxu1 }
  0xe5   :  { %v705_v49 = vpop.f32.mrf.mxu0 }
  0xe6   :  { %v733_v50 = vpop.f32.mrf.mxu1  ;;  %v706_v63 = vadd.f32 %v705_v49, %v704_v47 }
  0xe7   :  { %v707_v51 = vpop.f32.mrf.mxu0  ;;  %v734_v0 = vadd.f32 %v733_v50, %v732_v48 }
  0xe8   :  { %v735_v52 = vpop.f32.mrf.mxu1 }
  0xe9   :  { %v708_v53 = vpop.f32.mrf.mxu0  ;;  %v470_v11 = vadd.f32 %v734_v0, %v706_v63 }
  0xea   :  { %v736_v54 = vpop.f32.mrf.mxu1  ;;  %v709_v8 = vadd.f32 %v708_v53, %v707_v51 }
  0xeb   :  { %v710_v55 = vpop.f32.mrf.mxu0  ;;  %v737_v9 = vadd.f32 %v736_v54, %v735_v52 }
  0xec   :  { %v738_v56 = vpop.f32.mrf.mxu1 }
  0xed   :  { %v711_v57 = vpop.f32.mrf.mxu0  ;;  %v473_v21 = vadd.f32 %v737_v9, %v709_v8 }
  0xee   :  { %v739_v58 = vpop.f32.mrf.mxu1  ;;  %v712_v59 = vadd.f32 %v711_v57, %v710_v55 }
  0xef   :  { %v740_v60 = vadd.f32 %v739_v58, %v738_v56  ;;  %v713_v61 = vpop.f32.mrf.mxu0 }
  0xf0   :  { %v741_v62 = vpop.f32.mrf.mxu1 }
  0xf1   :  { %v714_v1 = vpop.f32.mrf.mxu0  ;;  %v478_v5 = vadd.f32 %v740_v60, %v712_v59 }
  0xf2   :  { %v742_v2 = vpop.f32.mrf.mxu1  ;;  %v715_v3 = vadd.f32 %v714_v1, %v713_v61 }
  0xf3   :  { %v743_v4 = vadd.f32 %v742_v2, %v741_v62 }
  0xf4   :  { %v760_v7 = vpop.f32.mrf.mxu0 }
  0xf5   :  { %v527_v10 = vadd.f32 %v760_v7, %v478_v5  ;;  %v481_v16 = vadd.f32 %v743_v4, %v715_v3 }
  0xf6   :  { %v518_v13 = vpop.f32.mrf.mxu0 }
  0xf7   :  { %v535_v14 = vadd.f32 %v527_v10, %v27_v6  ;;  %v519_v15 = vadd.f32 %v518_v13, %v470_v11 }
  0xf8   :  { %v761_v18 = vpop.f32.mrf.mxu0 }
  0xf9   :  { %539 = vst.msk [vmem:[#allocation2 + $0x10] sm:$0xff] %vm20_vm0, %v535_v14  ;;  %v533_v19 = vadd.f32 %v519_v15, %v25_v12  ;;  %v530_v20 = vadd.f32 %v761_v18, %v481_v16 }
  0xfa   :  { %v521_v23 = vpop.f32.mrf.mxu0 }
  0xfb   :  { %537 = vst.msk [vmem:[#allocation2] sm:$0xff] %vm20_vm0, %v533_v19  ;;  %v536_v24 = vadd.f32 %v530_v20, %v28_v17  ;;  %v522_v25 = vadd.f32 %v521_v23, %v473_v21 }
  0xfd   :  { %540 = vst.msk [vmem:[#allocation2 + $0x18] sm:$0xff] %vm20_vm0, %v536_v24  ;;  %v534_v26 = vadd.f32 %v522_v25, %v26_v22 }
  0xff   :  { %538 = vst.msk [vmem:[#allocation2 + $0x8] sm:$0xff] %vm20_vm0, %v534_v26 }
 0x100   :  { %v546_v27 = vld [vmem:[#allocation2 + $0x10] sm:$0xff] }
 0x101   :  { %v686_v28 = vpack.c.bf16 %v546_v27, %v546_v27  ;;  %v604_v34 = vmul.f32 %v546_v27, %v546_v27  ;;  %v590_v41 = vsel %vm20_vm0, %v546_v27, 0.0 }
 0x102   :  { %v544_v29 = vld [vmem:[#allocation2] sm:$0xff] }
 0x103   :  { %567 = vst.msk [vmem:[%s1019_s2 + $0x8] sm:$0xf] %vm564_vm1, %v686_v28  ;;  %v684_v30 = vpack.c.bf16 %v544_v29, %v544_v29  ;;  %v602_v32 = vmul.f32 %v544_v29, %v544_v29  ;;  %v587_v36 = vsel %vm20_vm0, %v544_v29, 0.0  ;;  %v609_v47 = vsel %vm20_vm0, %v604_v34, 0.0 }
 0x104   :  { %v547_v31 = vld [vmem:[#allocation2 + $0x18] sm:$0xff] }
 0x105   :  { %565 = vst.msk [vmem:[%s1019_s2] sm:$0xf] %vm564_vm1, %v684_v30  ;;  %v687_v33 = vpack.c.bf16 %v547_v31, %v547_v31  ;;  %v606_v42 = vsel %vm20_vm0, %v602_v32, 0.0  ;;  %v605_v43 = vmul.f32 %v547_v31, %v547_v31  ;;  %v592_v48 = vsel %vm20_vm0, %v547_v31, 0.0 }
 0x106   :  { %v545_v35 = vld [vmem:[#allocation2 + $0x8] sm:$0xff] }
 0x107   :  { %568 = vst.msk [vmem:[%s1019_s2 + $0xc] sm:$0xf] %vm564_vm1, %v687_v33  ;;  %v685_v37 = vpack.c.bf16 %v545_v35, %v545_v35  ;;  %v588_v38 = vsel %vm20_vm0, %v545_v35, 0.0  ;;  %v603_v39 = vmul.f32 %v545_v35, %v545_v35  ;;  %v611_v51 = vsel %vm20_vm0, %v605_v43, 0.0 }
 0x108   :  { %v589_v40 = vadd.f32 %v588_v38, %v587_v36 }
 0x109   :  { %566 = vst.msk [vmem:[%s1019_s2 + $0x4] sm:$0xf] %vm564_vm1, %v685_v37  ;;  %v607_v44 = vsel %vm20_vm0, %v603_v39, 0.0 }
 0x10a   :  { %v591_v45 = vadd.f32 %v590_v41, %v589_v40  ;;  %v608_v46 = vadd.f32 %v607_v44, %v606_v42 }
 0x10c   :  { %v593_v49 = vadd.f32 %v592_v48, %v591_v45  ;;  %v610_v50 = vadd.f32 %v609_v47, %v608_v46 }
 0x10e   :  { %v594_v52 = vrot.slane %v593_v49, 4  ;;  %v612_v53 = vadd.f32 %v611_v51, %v610_v50 }
 0x110   :  { %v595_v54 = vadd.f32 %v594_v52, %v593_v49  ;;  %v613_v55 = vrot.slane %v612_v53, 4 }
 0x112   :  { %v596_v56 = vrot.slane %v595_v54, 2  ;;  %v614_v57 = vadd.f32 %v613_v55, %v612_v53 }
 0x114   :  { %v597_v58 = vadd.f32 %v596_v56, %v595_v54  ;;  %v615_v59 = vrot.slane %v614_v57, 2 }
 0x116   :  { %v598_v60 = vrot.slane %v597_v58, 1  ;;  %v616_v61 = vadd.f32 %v615_v59, %v614_v57 }
 0x118   :  { %v599_v62 = vadd.f32 %v598_v60, %v597_v58  ;;  %v617_v63 = vrot.slane %v616_v61, 1 }
 0x11a   :  { %601 = vst.msk [vmem:[%s1020_s3] sm:$0x1] %vm600_vm2, %v599_v62  ;;  %v618_v0 = vadd.f32 %v617_v63, %v616_v61 }
 0x11c   :  { %619 = vst.msk [vmem:[%s1021_s4] sm:$0x1] %vm600_vm2, %v618_v0 }

// kernel: resnet18_forward.60
= control target key start
LH: loop header
LB: loop body
LE: loop exit
PB: predicated region body
PF: predicated region fallthrough
CT: control target
= control target key end

     0   :  { %v168_v0 = vmov 0.0   ;;  %vm169_vm0 = vmmov 0   ;;  %vm55_vm1 = vcmask 523264   ;;  %s219_s1 = inlined_call_operand.vmem [shape: bf16[64,128], index: 1, kind: input, shape index: {}]   ;;  %s220_s0 = inlined_call_operand.vmem [shape: bf16[8,64], index: 0, kind: input, shape index: {}]   ;;  %s221_s2 = inlined_call_operand.vmem [shape: bf16[8,128], index: 2, kind: output, shape index: {0}]   ;;  %s222_s3 = inlined_call_operand.vmem [shape: f32[1,1,128], index: 3, kind: output, shape index: {1}]   ;;  %s223_s4 = inlined_call_operand.vmem [shape: f32[1,1,128], index: 4, kind: output, shape index: {2}]  }
   0x1   :  { %150 = vmatprep.subr.bf16.mxu0 %v168_v0  ;;  %v164_v1 = vld [vmem:[%s219_s1 + $0x18] sm:$0xff]   ;;  %158 = vmatprep.mubr.msk.bf16.mxu0 %vm169_vm0, %v168_v0  ;;  %v165_v2 = vld [vmem:[%s219_s1 + $0x10] sm:$0xff]   ;;  %v166_v3 = vld [vmem:[%s219_s1 + $0x8] sm:$0xff]  }
   0x2   :  { %151 = vmatpush3.bf16.msra.mxu0 %v164_v1  ;;  %v167_v4 = vld [vmem:[%s219_s1] sm:$0xff]  }
   0x3   :  { %152 = vmatprep.subr.bf16.mxu0 %v168_v0  ;;  %v22_v5 = vld [vmem:[%s220_s0] sm:$0xf] }
   0x6   :  { %153 = vmatpush3.bf16.msra.mxu0 %v165_v2 }
   0x7   :  { %154 = vmatprep.subr.bf16.mxu0 %v168_v0 }
   0xa   :  { %155 = vmatpush3.bf16.msra.mxu0 %v166_v3 }
   0xb   :  { %156 = vmatprep.subr.bf16.mxu0 %v168_v0 }
   0xe   :  { %157 = vmatpush3.bf16.msra.mxu0 %v167_v4 }
  0x11   :  { %159 = vmatmul.mubr.msk.bf16.vlgmr.msra.gmra.mxu0 %vm55_vm1, %v22_v5 }
  0xd1   :  { %v93_v6 = vpop.f32.mrf.mxu0 }
  0xd2   :  { %v105_v7 = vpack.c.bf16 %v93_v6, %v93_v6  ;;  %v113_v8 = vrot.slane %v93_v6, 4  ;;  %v120_v9 = vmul.f32 %v93_v6, %v93_v6 }
  0xd3   :  { %v160_v10 = vpop.f32.mrf.mxu0 }
  0xd4   :  { %106 = vst [vmem:[%s221_s2] sm:$0xf] %v105_v7  ;;  %v114_v11 = vadd.f32 %v113_v8, %v93_v6  ;;  %v121_v12 = vrot.slane %v120_v9, 4 }
  0xd5   :  { %v96_v13 = vpop.f32.mrf.mxu0 }
  0xd6   :  { %v115_v14 = vrot.slane %v114_v11, 2  ;;  %v122_v15 = vadd.f32 %v121_v12, %v120_v9 }
  0xd7   :  { %v161_v16 = vpop.f32.mrf.mxu0 }
  0xd8   :  { %v116_v17 = vadd.f32 %v115_v14, %v114_v11  ;;  %v123_v18 = vrot.slane %v122_v15, 2 }
  0xda   :  { %v117_v19 = vrot.slane %v116_v17, 1  ;;  %v124_v20 = vadd.f32 %v123_v18, %v122_v15 }
  0xdc   :  { %v118_v21 = vadd.f32 %v117_v19, %v116_v17  ;;  %v125_v22 = vrot.slane %v124_v20, 1 }
  0xde   :  { %119 = vst [vmem:[%s222_s3] sm:$0x1] %v118_v21  ;;  %v126_v23 = vadd.f32 %v125_v22, %v124_v20 }
  0xe0   :  { %127 = vst [vmem:[%s223_s4] sm:$0x1] %v126_v23 }

// kernel: resnet18_forward.61
= control target key start
LH: loop header
LB: loop body
LE: loop exit
PB: predicated region body
PF: predicated region fallthrough
CT: control target
= control target key end

     0   :  { %s72_s0 = inlined_call_operand.vmem [shape: bf16[8,128], index: 0, kind: input, shape index: {}]   ;;  %s73_s1 = inlined_call_operand.vmem [shape: f32[1,128], index: 1, kind: input, shape index: {}]   ;;  %s74_s2 = inlined_call_operand.vmem [shape: f32[1,128], index: 2, kind: input, shape index: {}]   ;;  %s75_s3 = inlined_call_operand.vmem [shape: bf16[8,128], index: 3, kind: output, shape index: {}]  }
   0x1   :  { %v14_v0 = vld [vmem:[%s72_s0] sm:$0xf] }
   0x2   :  { %v38_v1 = vld [vmem:[%s73_s1] ss:$0 sm:$0xff]  ;;  %v15_v2 = vunpack.c.l.bf16 %v14_v0 }
   0x3   :  { %v39_v3 = vld [vmem:[%s74_s2] ss:$0 sm:$0xff] }
   0x4   :  { %v23_v4 = vmul.f32 %v38_v1, %v15_v2 }
   0x6   :  { %v31_v5 = vadd.f32 %v39_v3, %v23_v4 }
   0x8   :  { %v32_v6 = vpack.c.bf16 %v31_v5, %v31_v5 }
   0xa   :  { %33 = vst [vmem:[%s75_s3] sm:$0xf] %v32_v6 }

// kernel: resnet18_forward.59
= control target key start
LH: loop header
LB: loop body
LE: loop exit
PB: predicated region body
PF: predicated region fallthrough
CT: control target
= control target key end

     0   :  { %s73_s0 = inlined_call_operand.vmem [shape: bf16[8,128], index: 0, kind: input, shape index: {}]   ;;  %s74_s1 = inlined_call_operand.vmem [shape: f32[1,128], index: 1, kind: input, shape index: {}]   ;;  %s75_s2 = inlined_call_operand.vmem [shape: f32[1,128], index: 2, kind: input, shape index: {}]   ;;  %s76_s3 = inlined_call_operand.vmem [shape: bf16[8,128], index: 3, kind: output, shape index: {}]  }
   0x1   :  { %v14_v0 = vld [vmem:[%s73_s0] sm:$0xf] }
   0x2   :  { %v39_v1 = vld [vmem:[%s74_s1] ss:$0 sm:$0xff]  ;;  %v15_v2 = vunpack.c.l.bf16 %v14_v0 }
   0x3   :  { %v40_v3 = vld [vmem:[%s75_s2] ss:$0 sm:$0xff] }
   0x4   :  { %v23_v4 = vmul.f32 %v39_v1, %v15_v2 }
   0x6   :  { %v31_v5 = vadd.f32 %v40_v3, %v23_v4 }
   0x8   :  { %v32_v6 = vmax.f32 %v31_v5, 0.0 }
   0xa   :  { %v33_v7 = vpack.c.bf16 %v32_v6, %v32_v6 }
   0xc   :  { %34 = vst [vmem:[%s76_s3] sm:$0xf] %v33_v7 }

// kernel: resnet18_forward.58
= control target key start
LH: loop header
LB: loop body
LE: loop exit
PB: predicated region body
PF: predicated region fallthrough
CT: control target
= control target key end

     0   :  { %v641_v36 = vmov 0.0   ;;  %vm642_vm0 = vmmov 0   ;;  %vm330_vm1 = vcmask 523264   ;;  %s794_s1 = inlined_call_operand.vmem [shape: bf16[576,128], index: 1, kind: input, shape index: {}]   ;;  %s795_s0 = inlined_call_operand.vmem [shape: bf16[8,576], index: 0, kind: input, shape index: {}]   ;;  %s796_s2 = inlined_call_operand.vmem [shape: bf16[8,128], index: 2, kind: output, shape index: {0}]   ;;  %s797_s3 = inlined_call_operand.vmem [shape: f32[1,1,128], index: 3, kind: output, shape index: {1}]   ;;  %s798_s4 = inlined_call_operand.vmem [shape: f32[1,1,128], index: 4, kind: output, shape index: {2}]  }
   0x1   :  { %v600_v0 = vld [vmem:[%s794_s1 + $0x78] sm:$0xff]   ;;  %v604_v4 = vld [vmem:[%s794_s1 + $0x70] sm:$0xff]   ;;  %v608_v8 = vld [vmem:[%s794_s1 + $0x68] sm:$0xff]  }
   0x2   :  { %v601_v1 = vld [vmem:[%s794_s1 + $0xf8] sm:$0xff]   ;;  %537 = vmatprep.subr.bf16.mxu0 %v600_v0  ;;  %v605_v5 = vld [vmem:[%s794_s1 + $0xf0] sm:$0xff]   ;;  %v609_v9 = vld [vmem:[%s794_s1 + $0xe8] sm:$0xff]  }
   0x3   :  { %v602_v2 = vld [vmem:[%s794_s1 + $0x38] sm:$0xff]   ;;  %559 = vmatprep.subr.bf16.mxu1 %v601_v1  ;;  %v606_v6 = vld [vmem:[%s794_s1 + $0x30] sm:$0xff]   ;;  %v610_v10 = vld [vmem:[%s794_s1 + $0x28] sm:$0xff]  }
   0x4   :  { %v603_v3 = vld [vmem:[%s794_s1 + $0xb8] sm:$0xff]   ;;  %538 = vmatpush3.bf16.msra.mxu0 %v602_v2  ;;  %v607_v7 = vld [vmem:[%s794_s1 + $0xb0] sm:$0xff]   ;;  %v611_v11 = vld [vmem:[%s794_s1 + $0xa8] sm:$0xff]  }
   0x5   :  { %560 = vmatpush3.bf16.msra.mxu1 %v603_v3  ;;  %539 = vmatprep.subr.bf16.mxu0 %v604_v4  ;;  %v612_v12 = vld [vmem:[%s794_s1 + $0x60] sm:$0xff]   ;;  %v616_v16 = vld [vmem:[%s794_s1 + $0x58] sm:$0xff]   ;;  %v620_v20 = vld [vmem:[%s794_s1 + $0x50] sm:$0xff]  }
   0x6   :  { %561 = vmatprep.subr.bf16.mxu1 %v605_v5  ;;  %v613_v13 = vld [vmem:[%s794_s1 + $0xe0] sm:$0xff]   ;;  %v617_v17 = vld [vmem:[%s794_s1 + $0xd8] sm:$0xff]   ;;  %v621_v21 = vld [vmem:[%s794_s1 + $0xd0] sm:$0xff]  }
   0x7   :  { %v614_v14 = vld [vmem:[%s794_s1 + $0x20] sm:$0xff]   ;;  %v618_v18 = vld [vmem:[%s794_s1 + $0x18] sm:$0xff]   ;;  %v622_v22 = vld [vmem:[%s794_s1 + $0x10] sm:$0xff]  }
   0x8   :  { %540 = vmatpush3.bf16.msra.mxu0 %v606_v6  ;;  %v615_v15 = vld [vmem:[%s794_s1 + $0xa0] sm:$0xff]   ;;  %v619_v19 = vld [vmem:[%s794_s1 + $0x98] sm:$0xff]   ;;  %v623_v23 = vld [vmem:[%s794_s1 + $0x90] sm:$0xff]  }
   0x9   :  { %562 = vmatpush3.bf16.msra.mxu1 %v607_v7  ;;  %541 = vmatprep.subr.bf16.mxu0 %v608_v8  ;;  %v624_v24 = vld [vmem:[%s794_s1 + $0x48] sm:$0xff]   ;;  %v628_v28 = vld [vmem:[%s794_s1 + $0x40] sm:$0xff]   ;;  %v637_v39 = vld [vmem:[%s794_s1 + $0x118] sm:$0xff]  }
   0xa   :  { %563 = vmatprep.subr.bf16.mxu1 %v609_v9  ;;  %v625_v25 = vld [vmem:[%s794_s1 + $0xc8] sm:$0xff]   ;;  %v629_v29 = vld [vmem:[%s794_s1 + $0xc0] sm:$0xff]   ;;  %v638_v40 = vld [vmem:[%s794_s1 + $0x110] sm:$0xff]  }
   0xb   :  { %v626_v26 = vld [vmem:[%s794_s1 + $0x8] sm:$0xff]   ;;  %v630_v30 = vld [vmem:[%s794_s1] sm:$0xff]   ;;  %v634_v43 = vld [vmem:[%s795_s0 + $0x10] ss:$0 sps:$4 sm:$0xff]  }
   0xc   :  { %542 = vmatpush3.bf16.msra.mxu0 %v610_v10  ;;  %v627_v27 = vld [vmem:[%s794_s1 + $0x88] sm:$0xff]   ;;  %v631_v31 = vld [vmem:[%s794_s1 + $0x80] sm:$0xff]  }
   0xd   :  { %564 = vmatpush3.bf16.msra.mxu1 %v611_v11  ;;  %543 = vmatprep.subr.bf16.mxu0 %v612_v12  ;;  %v22_v32 = vld [vmem:[%s795_s0] sm:$0xff]  ;;  %v23_v35 = vld [vmem:[%s795_s0 + $0x8] sm:$0xff] }
   0xe   :  { %565 = vmatprep.subr.bf16.mxu1 %v613_v13  ;;  %v495_v33 = vcombine.low %v22_v32, %v22_v32  ;;  %v496_v34 = vcombine.high %v22_v32, %v22_v32  ;;  %v497_v37 = vcombine.low %v23_v35, %v23_v35  ;;  %v498_v38 = vcombine.high %v23_v35, %v23_v35  ;;  %v639_v41 = vld [vmem:[%s794_s1 + $0x108] sm:$0xff]   ;;  %v640_v42 = vld [vmem:[%s794_s1 + $0x100] sm:$0xff]  }
  0x10   :  { %544 = vmatpush3.bf16.msra.mxu0 %v614_v14  ;;  %366 = vmatprep.mubr.bf16.mxu0 %v496_v34 }
  0x11   :  { %566 = vmatpush3.bf16.msra.mxu1 %v615_v15  ;;  %545 = vmatprep.subr.bf16.mxu0 %v616_v16 }
  0x12   :  { %567 = vmatprep.subr.bf16.mxu1 %v617_v17  ;;  %406 = vmatprep.mubr.bf16.mxu1 %v498_v38 }
  0x14   :  { %546 = vmatpush3.bf16.msra.mxu0 %v618_v18 }
  0x15   :  { %568 = vmatpush3.bf16.msra.mxu1 %v619_v19  ;;  %547 = vmatprep.subr.bf16.mxu0 %v620_v20 }
  0x16   :  { %569 = vmatprep.subr.bf16.mxu1 %v621_v21 }
  0x18   :  { %548 = vmatpush3.bf16.msra.mxu0 %v622_v22 }
  0x19   :  { %570 = vmatpush3.bf16.msra.mxu1 %v623_v23  ;;  %549 = vmatprep.subr.bf16.mxu0 %v624_v24 }
  0x1a   :  { %571 = vmatprep.subr.bf16.mxu1 %v625_v25 }
  0x1c   :  { %550 = vmatpush3.bf16.msra.mxu0 %v626_v26 }
  0x1d   :  { %572 = vmatpush3.bf16.msra.mxu1 %v627_v27  ;;  %551 = vmatprep.subr.bf16.mxu0 %v628_v28 }
  0x1e   :  { %573 = vmatprep.subr.bf16.mxu1 %v629_v29 }
  0x20   :  { %552 = vmatpush3.bf16.msra.mxu0 %v630_v30 }
  0x21   :  { %574 = vmatpush3.bf16.msra.mxu1 %v631_v31  ;;  %586 = vmatprep.subr.bf16.mxu0 %v641_v36 }
  0x23   :  { %367 = vmatmul.mubr.bf16.vlgmr.msra.gmra.mxu0 %v495_v33 }
  0x24   :  { %407 = vmatmul.mubr.bf16.vlgmr.msra.gmra.mxu1 %v497_v37  ;;  %587 = vmatpush3.bf16.msra.mxu0 %v637_v39 }
  0x25   :  { %588 = vmatprep.subr.bf16.mxu0 %v641_v36  ;;  %594 = vmatprep.mubr.msk.bf16.mxu0 %vm642_vm0, %v641_v36 }
  0x28   :  { %589 = vmatpush3.bf16.msra.mxu0 %v638_v40 }
  0x29   :  { %590 = vmatprep.subr.bf16.mxu0 %v641_v36 }
  0x2c   :  { %591 = vmatpush3.bf16.msra.mxu0 %v639_v41 }
  0x2d   :  { %592 = vmatprep.subr.bf16.mxu0 %v641_v36 }
  0x30   :  { %593 = vmatpush3.bf16.msra.mxu0 %v640_v42 }
  0x33   :  { %595 = vmatmul.mubr.msk.bf16.vlgmr.msra.gmra.mxu0 %vm330_vm1, %v634_v43 }
  0xe3   :  { %v553_v44 = vpop.f32.mrf.mxu0 }
  0xe4   :  { %v575_v45 = vpop.f32.mrf.mxu1 }
  0xe5   :  { %v554_v46 = vpop.f32.mrf.mxu0 }
  0xe6   :  { %v576_v47 = vpop.f32.mrf.mxu1  ;;  %v555_v52 = vadd.f32 %v554_v46, %v553_v44 }
  0xe7   :  { %v556_v48 = vpop.f32.mrf.mxu0  ;;  %v577_v53 = vadd.f32 %v576_v47, %v575_v45 }
  0xe8   :  { %v578_v49 = vpop.f32.mrf.mxu1 }
  0xe9   :  { %v557_v50 = vpop.f32.mrf.mxu0  ;;  %v409_v54 = vadd.f32 %v577_v53, %v555_v52 }
  0xea   :  { %v579_v51 = vpop.f32.mrf.mxu1 }
  0xf3   :  { %v448_v55 = vpop.f32.mrf.mxu0 }
  0xf4   :  { %v449_v56 = vadd.f32 %v448_v55, %v409_v54 }
  0xf5   :  { %v596_v57 = vpop.f32.mrf.mxu0 }
  0xf6   :  { %v460_v58 = vpack.c.bf16 %v449_v56, %v449_v56  ;;  %v468_v59 = vrot.slane %v449_v56, 4  ;;  %v475_v60 = vmul.f32 %v449_v56, %v449_v56 }
  0xf7   :  { %v451_v61 = vpop.f32.mrf.mxu0 }
  0xf8   :  { %461 = vst [vmem:[%s796_s2] sm:$0xf] %v460_v58  ;;  %v469_v62 = vadd.f32 %v468_v59, %v449_v56  ;;  %v476_v63 = vrot.slane %v475_v60, 4 }
  0xf9   :  { %v597_v0 = vpop.f32.mrf.mxu0 }
  0xfa   :  { %v470_v1 = vrot.slane %v469_v62, 2  ;;  %v477_v2 = vadd.f32 %v476_v63, %v475_v60 }
  0xfc   :  { %v471_v3 = vadd.f32 %v470_v1, %v469_v62  ;;  %v478_v4 = vrot.slane %v477_v2, 2 }
  0xfe   :  { %v472_v5 = vrot.slane %v471_v3, 1  ;;  %v479_v6 = vadd.f32 %v478_v4, %v477_v2 }
 0x100   :  { %v473_v7 = vadd.f32 %v472_v5, %v471_v3  ;;  %v480_v8 = vrot.slane %v479_v6, 1 }
 0x102   :  { %474 = vst [vmem:[%s797_s3] sm:$0x1] %v473_v7  ;;  %v481_v9 = vadd.f32 %v480_v8, %v479_v6 }
 0x104   :  { %482 = vst [vmem:[%s798_s4] sm:$0x1] %v481_v9 }

// kernel: resnet18_forward.63
= control target key start
LH: loop header
LB: loop body
LE: loop exit
PB: predicated region body
PF: predicated region fallthrough
CT: control target
= control target key end

     0   :  { %s87_s0 = inlined_call_operand.vmem [shape: bf16[8,128], index: 0, kind: input, shape index: {}]   ;;  %s88_s1 = inlined_call_operand.vmem [shape: f32[1,128], index: 1, kind: input, shape index: {}]   ;;  %s89_s2 = inlined_call_operand.vmem [shape: f32[1,128], index: 2, kind: input, shape index: {}]   ;;  %s90_s3 = inlined_call_operand.vmem [shape: bf16[8,128], index: 3, kind: input, shape index: {}]   ;;  %s91_s4 = inlined_call_operand.vmem [shape: bf16[8,128], index: 4, kind: output, shape index: {}]  }
   0x1   :  { %v17_v0 = vld [vmem:[%s87_s0] sm:$0xf] }
   0x2   :  { %v45_v1 = vld [vmem:[%s88_s1] ss:$0 sm:$0xff]  ;;  %v18_v2 = vunpack.c.l.bf16 %v17_v0 }
   0x3   :  { %v35_v3 = vld [vmem:[%s90_s3] sm:$0xf] }
   0x4   :  { %v46_v4 = vld [vmem:[%s89_s2] ss:$0 sm:$0xff]  ;;  %v26_v5 = vmul.f32 %v45_v1, %v18_v2  ;;  %v36_v6 = vunpack.c.l.bf16 %v35_v3 }
   0x6   :  { %v34_v7 = vadd.f32 %v46_v4, %v26_v5 }
   0x8   :  { %v37_v8 = vadd.f32 %v36_v6, %v34_v7 }
   0xa   :  { %v38_v9 = vmax.f32 %v37_v8, 0.0 }
   0xc   :  { %v39_v10 = vpack.c.bf16 %v38_v9, %v38_v9 }
   0xe   :  { %40 = vst [vmem:[%s91_s4] sm:$0xf] %v39_v10 }

// kernel: resnet18_forward.62
= control target key start
LH: loop header
LB: loop body
LE: loop exit
PB: predicated region body
PF: predicated region fallthrough
CT: control target
= control target key end

     0   :  { %s982_s15 = smov 0   ;;  %s984_s16 = smov 0   ;;  %s1060_s0 = inlined_call_operand.vmem [shape: bf16[8,1152], index: 0, kind: input, shape index: {}]   ;;  %s1061_s1 = inlined_call_operand.vmem [shape: bf16[1152,128], index: 1, kind: input, shape index: {}]   ;;  %s1062_s2 = inlined_call_operand.vmem [shape: bf16[8,128], index: 2, kind: output, shape index: {0}]   ;;  %s1063_s3 = inlined_call_operand.vmem [shape: f32[1,1,128], index: 3, kind: output, shape index: {1}]   ;;  %s1064_s4 = inlined_call_operand.vmem [shape: f32[1,1,128], index: 4, kind: output, shape index: {2}]  }
   0x1   :  { %s986_s17 = smov 0  }
   0x2 LB: > { %s27_s18 = sadd.s32 1, %s948_s16  ;;  %p788_p0 = scmp.ge.s32.totalorder %s952_s17, 1  ;;  %s952_s17 = sphi %s986_s17, %s15_s17   ;;  %s948_s16 = sphi %s984_s16, %s1066_s16   ;;  %s944_s15 = sphi %s982_s15, %s1065_s15  }
   0x3   : > { %p28_p1 = scmp.ge.s32.totalorder %s27_s18, 3  ;;  %p215_p2 = scmp.lt.s32.totalorder %s952_s17, 4 }
   0x5   : > { %s1068_s18 = smov (%p28_p1, %s27_s18), 0  ;;  %p216_p3 = pnand %p788_p0, %p215_p2 }
   0x6   : > { %s267_s19 = smul.u32 (!%p216_p3), 3, %s944_s15  ;;  %p791_p6 = scmp.ne.s32.totalorder (!%p216_p3), %s944_s15, 0 }
   0x7   : > { %219 = sbr.rel (%p216_p3) target bundleno = 280 (0x118), region = 28 }
   0x8   : > { %s277_s20 = smul.u32 (!%p216_p3), 48, %s944_s15  ;;  %p270_p4 = scmp.lt.s32.totalorder (!%p216_p3), %s267_s19, 8 }
   0xa   : > { %p278_p5 = scmp.lt.s32.totalorder (!%p216_p3), %s277_s20, 143 }
   0xc   : > { %s1070_s19 = smov (!%p270_p4, %s267_s19), 8  ;;  %s1072_s20 = smov (!%p278_p5, %s277_s20), 143 }
   0xd   : > { %s789_s21 = sshll.u32 %s1070_s19, 2  ;;  %s790_s25 = sshll.u32 %s1072_s20, 2 }
   0xe   : > { %s1007_s24 = scalar_lea.vmem %s1060_s0, %s789_s21  ;;  %s1012_s28 = scalar_lea.vmem %s1061_s1, %s790_s25 }
   0xf   : > { %310 = sbr.rel (%p791_p6) target bundleno = 22 (0x16), region = 32 }
  0x14   : > { %v954_v0 = vmov 0.0  }
  0x15   : > { %311 = vst [vmem:[#allocation2] sm:$0xff] %v954_v0 }
  0x16 PF: > { %v903_v1 = vld [vmem:[%s1012_s28 + $0x78] sm:$0xff]   ;;  %v955_v2 = vmov 0.0   ;;  %vm956_vm0 = vmmov 0   ;;  %v906_v5 = vld [vmem:[%s1012_s28 + $0x70] sm:$0xff]   ;;  %v909_v8 = vld [vmem:[%s1012_s28 + $0x68] sm:$0xff]   ;;  %p819_p7 = scmp.ne.s32.totalorder %s944_s15, 2 }
  0x17   : > { %856 = vmatprep.subr.bf16.mxu1 %v955_v2  ;;  %v904_v3 = vld [vmem:[%s1012_s28 + $0xb8] sm:$0xff]   ;;  %825 = vmatprep.subr.bf16.mxu0 %v903_v1  ;;  %v907_v6 = vld [vmem:[%s1012_s28 + $0xb0] sm:$0xff]   ;;  %v910_v9 = vld [vmem:[%s1012_s28 + $0xa8] sm:$0xff]  }
  0x18   : > { %v905_v4 = vld [vmem:[%s1012_s28 + $0x38] sm:$0xff]   ;;  %872 = vmatprep.mubr.msk.bf16.mxu1 %vm956_vm0, %v955_v2  ;;  %857 = vmatpush3.bf16.msra.mxu1 %v904_v3  ;;  %v908_v7 = vld [vmem:[%s1012_s28 + $0x30] sm:$0xff]   ;;  %v911_v10 = vld [vmem:[%s1012_s28 + $0x28] sm:$0xff]  }
  0x19   : > { %826 = vmatpush3.bf16.msra.mxu0 %v905_v4  ;;  %858 = vmatprep.subr.bf16.mxu1 %v955_v2  ;;  %v912_v11 = vld [vmem:[%s1012_s28 + $0x60] sm:$0xff]   ;;  %v915_v14 = vld [vmem:[%s1012_s28 + $0x58] sm:$0xff]   ;;  %v918_v17 = vld [vmem:[%s1012_s28 + $0x50] sm:$0xff]  }
  0x1a   : > { %827 = vmatprep.subr.bf16.mxu0 %v906_v5  ;;  %v913_v12 = vld [vmem:[%s1012_s28 + $0xa0] sm:$0xff]   ;;  %v916_v15 = vld [vmem:[%s1012_s28 + $0x98] sm:$0xff]   ;;  %v919_v18 = vld [vmem:[%s1012_s28 + $0x90] sm:$0xff]  }
  0x1b   : > { %v914_v13 = vld [vmem:[%s1012_s28 + $0x20] sm:$0xff]   ;;  %v917_v16 = vld [vmem:[%s1012_s28 + $0x18] sm:$0xff]   ;;  %v920_v19 = vld [vmem:[%s1012_s28 + $0x10] sm:$0xff]  }
  0x1c   : > { %859 = vmatpush3.bf16.msra.mxu1 %v907_v6  ;;  %v921_v20 = vld [vmem:[%s1012_s28 + $0x48] sm:$0xff]   ;;  %v313_v23 = vld [vmem:[%s1007_s24] sm:$0xff] }
  0x1d   : > { %828 = vmatpush3.bf16.msra.mxu0 %v908_v7  ;;  %860 = vmatprep.subr.bf16.mxu1 %v955_v2  ;;  %v922_v21 = vld [vmem:[%s1012_s28 + $0x88] sm:$0xff]   ;;  %v924_v24 = vld [vmem:[%s1012_s28 + $0x40] sm:$0xff]   ;;  %v793_v25 = vcombine.high %v313_v23, %v313_v23  ;;  %v792_v29 = vcombine.low %v313_v23, %v313_v23 }
  0x1e   : > { %829 = vmatprep.subr.bf16.mxu0 %v909_v8  ;;  %v923_v22 = vld [vmem:[%s1012_s28 + $0x8] sm:$0xff]   ;;  %v925_v26 = vld [vmem:[%s1012_s28 + $0x80] sm:$0xff]  }
  0x1f   : > { %550 = vmatprep.mubr.bf16.mxu0 %v793_v25  ;;  %v926_v27 = vld [vmem:[%s1012_s28] sm:$0xff]   ;;  %v929_v28 = vld [vmem:[%s1007_s24 + $0x8] ss:$0 sps:$4 sm:$0xff]  }
  0x20   : > { %861 = vmatpush3.bf16.msra.mxu1 %v910_v9  ;;  %v312_v36 = vld [vmem:[#allocation2] sm:$0xff] }
  0x21   : > { %830 = vmatpush3.bf16.msra.mxu0 %v911_v10  ;;  %862 = vmatprep.subr.bf16.mxu1 %v955_v2 }
  0x22   : > { %831 = vmatprep.subr.bf16.mxu0 %v912_v11 }
  0x24   : > { %863 = vmatpush3.bf16.msra.mxu1 %v913_v12 }
  0x25   : > { %832 = vmatpush3.bf16.msra.mxu0 %v914_v13  ;;  %864 = vmatprep.subr.bf16.mxu1 %v955_v2 }
  0x26   : > { %833 = vmatprep.subr.bf16.mxu0 %v915_v14 }
  0x28   : > { %865 = vmatpush3.bf16.msra.mxu1 %v916_v15 }
  0x29   : > { %834 = vmatpush3.bf16.msra.mxu0 %v917_v16  ;;  %866 = vmatprep.subr.bf16.mxu1 %v955_v2 }
  0x2a   : > { %835 = vmatprep.subr.bf16.mxu0 %v918_v17 }
  0x2c   : > { %867 = vmatpush3.bf16.msra.mxu1 %v919_v18 }
  0x2d   : > { %836 = vmatpush3.bf16.msra.mxu0 %v920_v19  ;;  %868 = vmatprep.subr.bf16.mxu1 %v955_v2 }
  0x2e   : > { %837 = vmatprep.subr.bf16.mxu0 %v921_v20 }
  0x30   : > { %869 = vmatpush3.bf16.msra.mxu1 %v922_v21 }
  0x31   : > { %838 = vmatpush3.bf16.msra.mxu0 %v923_v22  ;;  %870 = vmatprep.subr.bf16.mxu1 %v955_v2 }
  0x32   : > { %839 = vmatprep.subr.bf16.mxu0 %v924_v24 }
  0x34   : > { %871 = vmatpush3.bf16.msra.mxu1 %v925_v26 }
  0x35   : > { %840 = vmatpush3.bf16.msra.mxu0 %v926_v27 }
  0x37   : > { %873 = vmatmul.mubr.bf16.vlgmr.msra.gmra.mxu1 %v929_v28 }
  0x38   : > { %551 = vmatmul.mubr.bf16.vlgmr.msra.gmra.mxu0 %v792_v29 }
  0xf7   : > { %v592_v30 = vpop.f32.mrf.mxu1 }
  0xf8   : > { %v841_v31 = vpop.f32.mrf.mxu0 }
  0xf9   : > { %v874_v32 = vpop.f32.mrf.mxu1 }
  0xfa   : > { %v842_v33 = vpop.f32.mrf.mxu0 }
  0xfb   : > { %v843_v34 = vadd.f32 %v842_v33, %v841_v31  ;;  %v595_v35 = vpop.f32.mrf.mxu1 }
  0xfc   : > { %v844_v37 = vpop.f32.mrf.mxu0 }
  0xfd   : > { %v593_v38 = vadd.f32 %v843_v34, %v592_v30  ;;  %v875_v39 = vpop.f32.mrf.mxu1  ;;  %603 = sbr.rel (%p819_p7) target bundleno = 280 (0x118), region = 36 }
  0xfe   : > { %v845_v40 = vpop.f32.mrf.mxu0 }
  0xff   : > { %v598_v41 = vadd.f32 %v593_v38, %v312_v36 }
 0x101   : > { %599 = vst [vmem:[#allocation2] sm:$0xff] %v598_v41 }
 0x108   : > { %v604_v42 = vld [vmem:[#allocation2] sm:$0xff] }
 0x109   : > { %v605_v43 = vpack.c.bf16 %v604_v42, %v604_v42  ;;  %v613_v44 = vrot.slane %v604_v42, 4  ;;  %v620_v45 = vmul.f32 %v604_v42, %v604_v42 }
 0x10b   : > { %606 = vst [vmem:[%s1062_s2] sm:$0xf] %v605_v43  ;;  %v614_v46 = vadd.f32 %v613_v44, %v604_v42  ;;  %v621_v47 = vrot.slane %v620_v45, 4 }
 0x10d   : > { %v615_v48 = vrot.slane %v614_v46, 2  ;;  %v622_v49 = vadd.f32 %v621_v47, %v620_v45 }
 0x10f   : > { %v616_v50 = vadd.f32 %v615_v48, %v614_v46  ;;  %v623_v51 = vrot.slane %v622_v49, 2 }
 0x111   : > { %v617_v52 = vrot.slane %v616_v50, 1  ;;  %v624_v53 = vadd.f32 %v623_v51, %v622_v49 }
 0x113   : > { %v618_v54 = vadd.f32 %v617_v52, %v616_v50  ;;  %v625_v55 = vrot.slane %v624_v53, 1 }
 0x115   : > { %619 = vst [vmem:[%s1063_s3] sm:$0x1] %v618_v54  ;;  %v626_v56 = vadd.f32 %v625_v55, %v624_v53 }
 0x117   : > { %627 = vst [vmem:[%s1064_s4] sm:$0x1] %v626_v56 }
 0x118 PF: > { %s15_s17 = sadd.s32 1, %s952_s17   ;;  %s1065_s15 = smov %s948_s16 }
 0x119   : > { %p12_p8 = scmp.ge.s32.totalorder %s15_s17, 5   ;;  %s1066_s16 = smov %s1068_s18 }
 0x11b   :  { %14 = sbr.rel (!%p12_p8) target bundleno = 2 (0x2), region = 93 }

// kernel: resnet18_forward.70
= control target key start
LH: loop header
LB: loop body
LE: loop exit
PB: predicated region body
PF: predicated region fallthrough
CT: control target
= control target key end

     0   :  { %v18_v0 = vlaneseq  ;;  %v96_v1 = vmov 1983009808   ;;  %v97_v20 = vmov 1966171168   ;;  %s130_s1 = inlined_call_operand.vmem [shape: f32[1,256], index: 1, kind: input, shape index: {}]   ;;  %s131_s2 = inlined_call_operand.vmem [shape: f32[1,256], index: 2, kind: input, shape index: {}]   ;;  %s132_s0 = inlined_call_operand.vmem [shape: bf16[2,256], index: 0, kind: input, shape index: {}]   ;;  %s133_s3 = inlined_call_operand.vmem [shape: bf16[2,256], index: 3, kind: output, shape index: {}]  }
   0x1   :  { %v28_v2 = vunpack.c.l.s4 %v96_v1  ;;  %v16_v4 = vld [vmem:[%s130_s1] sm:$0x3]  ;;  %v73_v21 = vunpack.c.l.s4 %v97_v20 }
   0x2   :  { %v19_v3 = vshrl.u32 %v18_v0, 7  ;;  %v36_v6 = vld [vmem:[%s131_s2] sm:$0x3] }
   0x3   :  { %v29_v5 = vunpack.c.0.s8 %v28_v2  ;;  %v14_v9 = vld [vmem:[%s132_s0] sm:$0x3]  ;;  %v74_v24 = vunpack.c.0.s8 %v73_v21 }
   0x4   :  { %v20_v7 = vsub.s32 0, %v19_v3  ;;  %v24_v8 = vsub.s32 1, %v19_v3  ;;  %v15_v15 = vunpack.c.l.bf16 %v14_v9 }
   0x5   :  { %v32_v10 = vsub.s32 %v29_v5, %v19_v3  ;;  %v77_v27 = vsub.s32 %v74_v24, %v19_v3 }
   0x6   :  { %v21_v11 = vrot.slane %v16_v4, %v20_v7  ;;  %v25_v12 = vrot.slane %v16_v4, %v24_v8  ;;  %v41_v13 = vrot.slane %v36_v6, %v20_v7  ;;  %v45_v14 = vrot.slane %v36_v6, %v24_v8 }
   0x8   :  { %v26_v16 = vcombine.low %v21_v11, %v25_v12  ;;  %v46_v17 = vcombine.low %v41_v13, %v45_v14 }
   0xa   :  { %v33_v18 = vrot.slane %v26_v16, %v32_v10  ;;  %v53_v19 = vrot.slane %v46_v17, %v32_v10 }
   0xc   :  { %v35_v22 = vmul.f32 %v33_v18, %v15_v15 }
   0xe   :  { %v55_v23 = vadd.f32 %v53_v19, %v35_v22 }
  0x10   :  { %v63_v25 = vrot.slane %v55_v23, %v32_v10 }
  0x12   :  { %v64_v26 = vcombine.high %v63_v25, %v63_v25 }
  0x14   :  { %v92_v28 = vpack.c.bf16 %v64_v26, %v63_v25 }
  0x16   :  { %v78_v29 = vrot.slane %v92_v28, %v77_v27 }
  0x18   :  { %93 = vst.sshfl [vmem:[%s133_s3] sm:$0x5 pattern:$0x73625140] %v78_v29 }

// kernel: resnet18_forward.69
= control target key start
LH: loop header
LB: loop body
LE: loop exit
PB: predicated region body
PF: predicated region fallthrough
CT: control target
= control target key end

     0   :  { %v348_v1 = vmov 0   ;;  %v349_v18 = vmov 0.0   ;;  %v350_v19 = vmov 1983009808   ;;  %v166_v21 = vlaneseq  ;;  %s441_s1 = inlined_call_operand.vmem [shape: bf16[128,256], index: 1, kind: input, shape index: {}]   ;;  %s442_s0 = inlined_call_operand.vmem [shape: bf16[2,128], index: 0, kind: input, shape index: {}]   ;;  %s443_s2 = inlined_call_operand.vmem [shape: bf16[2,256], index: 2, kind: output, shape index: {0}]   ;;  %s444_s3 = inlined_call_operand.vmem [shape: f32[1,1,256], index: 3, kind: output, shape index: {1}]   ;;  %s445_s4 = inlined_call_operand.vmem [shape: f32[1,1,256], index: 4, kind: output, shape index: {2}]  }
   0x1   :  { %v324_v0 = vld [vmem:[%s441_s1 + $0x74] ss:$8 sps:$4 sm:$0xff]   ;;  %151 = vmatprep.mubr.bf16.mxu0 %v348_v1  ;;  %v326_v2 = vld [vmem:[%s441_s1 + $0x70] ss:$8 sps:$4 sm:$0xff]   ;;  %v327_v3 = vld [vmem:[%s441_s1 + $0x64] ss:$8 sps:$4 sm:$0xff]   ;;  %v164_v20 = vunpack.c.l.s4 %v350_v19 }
   0x2   :  { %119 = vmatprep.subr.bf16.mxu0 %v324_v0  ;;  %v329_v4 = vld [vmem:[%s441_s1 + $0x60] ss:$8 sps:$4 sm:$0xff]   ;;  %v330_v5 = vld [vmem:[%s441_s1 + $0x54] ss:$8 sps:$4 sm:$0xff]   ;;  %v332_v6 = vld [vmem:[%s441_s1 + $0x50] ss:$8 sps:$4 sm:$0xff]  }
   0x3   :  { %120 = vmatpush1.bf16.msra.mxu0 %v326_v2  ;;  %v333_v7 = vld [vmem:[%s441_s1 + $0x44] ss:$8 sps:$4 sm:$0xff]   ;;  %v335_v8 = vld [vmem:[%s441_s1 + $0x40] ss:$8 sps:$4 sm:$0xff]   ;;  %v336_v9 = vld [vmem:[%s441_s1 + $0x34] ss:$8 sps:$4 sm:$0xff]   ;;  %v165_v22 = vunpack.c.0.s8 %v164_v20 }
   0x4   :  { %121 = vmatprep.subr.bf16.mxu0 %v327_v3  ;;  %v338_v10 = vld [vmem:[%s441_s1 + $0x30] ss:$8 sps:$4 sm:$0xff]   ;;  %v339_v11 = vld [vmem:[%s441_s1 + $0x24] ss:$8 sps:$4 sm:$0xff]   ;;  %v341_v12 = vld [vmem:[%s441_s1 + $0x20] ss:$8 sps:$4 sm:$0xff]  }
   0x5   :  { %v342_v13 = vld [vmem:[%s441_s1 + $0x14] ss:$8 sps:$4 sm:$0xff]   ;;  %v344_v14 = vld [vmem:[%s441_s1 + $0x10] ss:$8 sps:$4 sm:$0xff]   ;;  %v345_v15 = vld [vmem:[%s441_s1 + $0x4] ss:$8 sps:$4 sm:$0xff]  }
   0x6   :  { %v347_v16 = vld [vmem:[%s441_s1] ss:$8 sps:$4 sm:$0xff]   ;;  %20 = vst [vmem:[#allocation2] sm:$0xf] %v349_v18  ;;  %v167_v23 = vshrl.u32 %v166_v21, 7  ;;  %vm216_vm1 = vcmask 1041408  }
   0x7   :  { %122 = vmatpush1.bf16.msra.mxu0 %v329_v4  ;;  %v22_v17 = vld [vmem:[%s442_s0] sm:$0x1]  ;;  %v351_v33 = vmov 1966171168   ;;  %vm251_vm2 = vcmp.lt.s32.totalorder %v166_v21, 256 }
   0x8   :  { %123 = vmatprep.subr.bf16.mxu0 %v330_v5  ;;  %v168_v25 = vsub.s32 %v165_v22, %v167_v23  ;;  %v194_v34 = vunpack.c.l.s4 %v351_v33  ;;  %vm213_vm0 = vcmp.lt.s32.totalorder %v167_v23, 2 }
   0xa   :  { %v195_v35 = vunpack.c.0.s8 %v194_v34 }
   0xb   :  { %124 = vmatpush1.bf16.msra.mxu0 %v332_v6 }
   0xc   :  { %125 = vmatprep.subr.bf16.mxu0 %v333_v7  ;;  %v198_v38 = vsub.s32 %v195_v35, %v167_v23 }
   0xd   :  { %v21_v28 = vld [vmem:[#allocation2] sm:$0xf] }
   0xf   :  { %126 = vmatpush1.bf16.msra.mxu0 %v335_v8 }
  0x10   :  { %127 = vmatprep.subr.bf16.mxu0 %v336_v9 }
  0x13   :  { %128 = vmatpush1.bf16.msra.mxu0 %v338_v10 }
  0x14   :  { %129 = vmatprep.subr.bf16.mxu0 %v339_v11 }
  0x17   :  { %130 = vmatpush1.bf16.msra.mxu0 %v341_v12 }
  0x18   :  { %131 = vmatprep.subr.bf16.mxu0 %v342_v13 }
  0x1b   :  { %132 = vmatpush1.bf16.msra.mxu0 %v344_v14 }
  0x1c   :  { %133 = vmatprep.subr.bf16.mxu0 %v345_v15 }
  0x1f   :  { %134 = vmatpush1.bf16.msra.mxu0 %v347_v16 }
  0x22   :  { %152 = vmatmul.mubr.bf16.vlgmr.msra.gmra.mxu0 %v22_v17 }
  0xe2   :  { %v153_v24 = vpop.f32.mrf.mxu0 }
  0xe4   :  { %v155_v26 = vpop.f32.mrf.mxu0 }
  0xe5   :  { %v162_v27 = vcombine.low %v153_v24, %v155_v26 }
  0xe6   :  { %v157_v29 = vpop.f32.mrf.mxu0 }
  0xe7   :  { %v169_v30 = vrot.slane %v162_v27, %v168_v25 }
  0xe8   :  { %v158_v31 = vpop.f32.mrf.mxu0 }
  0xe9   :  { %v171_v32 = vadd.f32 %v169_v30, %v21_v28 }
  0xeb   :  { %172 = vst [vmem:[#allocation2] sm:$0xf] %v171_v32 }
  0xf2   :  { %v317_v36 = vld.sshfl [vmem:[#allocation2] sm:$0x33 pattern:$0x76325410] }
  0xf3   :  { %v185_v37 = vcombine.high %v317_v36, %v317_v36  ;;  %v214_v39 = vsel %vm213_vm0, %v317_v36, 0.0 }
  0xf4   :  { %v217_v40 = vsel %vm216_vm1, %v214_v39, 0.0  ;;  %v254_v41 = vmul.f32 %v214_v39, %v214_v39 }
  0xf5   :  { %v318_v42 = vpack.c.bf16 %v185_v37, %v317_v36  ;;  %v215_v43 = vsel %vm213_vm0, %v185_v37, 0.0  ;;  %v218_v44 = vrot.slane %v217_v40, 4 }
  0xf6   :  { %v224_v45 = vsel %vm216_vm1, %v215_v43, 0.0  ;;  %v255_v46 = vmul.f32 %v215_v43, %v215_v43  ;;  %v256_v47 = vsel %vm216_vm1, %v254_v41, 0.0 }
  0xf7   :  { %v199_v48 = vrot.slane %v318_v42, %v198_v38  ;;  %v219_v49 = vadd.f32 %v218_v44, %v217_v40  ;;  %v225_v50 = vrot.slane %v224_v45, 4  ;;  %v257_v51 = vrot.slane %v256_v47, 4 }
  0xf8   :  { %v263_v52 = vsel %vm216_vm1, %v255_v46, 0.0 }
  0xf9   :  { %319 = vst.sshfl [vmem:[%s443_s2] sm:$0x5 pattern:$0x73625140] %v199_v48  ;;  %v220_v53 = vrot.slane %v219_v49, 2  ;;  %v226_v54 = vadd.f32 %v225_v50, %v224_v45  ;;  %v258_v55 = vadd.f32 %v257_v51, %v256_v47  ;;  %v264_v56 = vrot.slane %v263_v52, 4 }
  0xfb   :  { %v221_v57 = vadd.f32 %v220_v53, %v219_v49  ;;  %v227_v58 = vrot.slane %v226_v54, 2  ;;  %v259_v59 = vrot.slane %v258_v55, 2  ;;  %v265_v60 = vadd.f32 %v264_v56, %v263_v52 }
  0xfd   :  { %v222_v61 = vrot.slane %v221_v57, 1  ;;  %v228_v62 = vadd.f32 %v227_v58, %v226_v54  ;;  %v260_v63 = vadd.f32 %v259_v59, %v258_v55  ;;  %v266_v0 = vrot.slane %v265_v60, 2 }
  0xff   :  { %v229_v1 = vrot.slane %v228_v62, 1  ;;  %v261_v2 = vrot.slane %v260_v63, 1  ;;  %v267_v3 = vadd.f32 %v266_v0, %v265_v60  ;;  %v223_v4 = vadd.f32 %v222_v61, %v221_v57 }
 0x101   :  { %v230_v5 = vadd.f32 %v229_v1, %v228_v62  ;;  %v268_v6 = vrot.slane %v267_v3, 1  ;;  %v262_v8 = vadd.f32 %v261_v2, %v260_v63 }
 0x103   :  { %v233_v7 = vcombine.low %v223_v4, %v230_v5  ;;  %v269_v9 = vadd.f32 %v268_v6, %v267_v3 }
 0x105   :  { %v240_v10 = vrot.slane %v233_v7, %v198_v38  ;;  %v272_v11 = vcombine.low %v262_v8, %v269_v9 }
 0x107   :  { %v247_v12 = vrot.slane %v240_v10, %v198_v38  ;;  %v279_v13 = vrot.slane %v272_v11, %v198_v38 }
 0x109   :  { %253 = vst.msk [vmem:[%s444_s3] sm:$0x3] %vm251_vm2, %v247_v12  ;;  %v286_v14 = vrot.slane %v279_v13, %v198_v38 }
 0x10b   :  { %288 = vst.msk [vmem:[%s445_s4] sm:$0x3] %vm251_vm2, %v286_v14 }

// kernel: resnet18_forward.86
= control target key start
LH: loop header
LB: loop body
LE: loop exit
PB: predicated region body
PF: predicated region fallthrough
CT: control target
= control target key end

     0   :  { %v20_v0 = vlaneseq  ;;  %v137_v1 = vmov 1983009808   ;;  %v138_v21 = vmov 1966171168   ;;  %s176_s0 = inlined_call_operand.vmem [shape: bf16[2,1,1,9,256], index: 0, kind: input, shape index: {}, may-alias: {0,4}]   ;;  %s177_s1 = inlined_call_operand.vmem [shape: bf16[2,256], index: 1, kind: input, shape index: {}]   ;;  %s178_s2 = inlined_call_operand.vmem [shape: f32[1,256], index: 2, kind: input, shape index: {}]   ;;  %s179_s3 = inlined_call_operand.vmem [shape: f32[1,256], index: 3, kind: input, shape index: {}]   ;;  %s180_s4 = inlined_call_operand.vmem [shape: bf16[2,1,1,9,256], index: 4, kind: output, shape index: {}, may-alias: {0,4}]  }
   0x1   :  { %v30_v2 = vunpack.c.l.s4 %v137_v1  ;;  %v18_v4 = vld [vmem:[%s178_s2] sm:$0x3]  ;;  %v76_v22 = vunpack.c.l.s4 %v138_v21 }
   0x2   :  { %v21_v3 = vshrl.u32 %v20_v0, 7  ;;  %v38_v6 = vld [vmem:[%s179_s3] sm:$0x3] }
   0x3   :  { %v31_v5 = vunpack.c.0.s8 %v30_v2  ;;  %v16_v9 = vld [vmem:[%s177_s1] sm:$0x3]  ;;  %v77_v25 = vunpack.c.0.s8 %v76_v22 }
   0x4   :  { %v22_v7 = vsub.s32 0, %v21_v3  ;;  %v26_v8 = vsub.s32 1, %v21_v3  ;;  %v17_v15 = vunpack.c.l.bf16 %v16_v9 }
   0x5   :  { %v34_v10 = vsub.s32 %v31_v5, %v21_v3  ;;  %v80_v28 = vsub.s32 %v77_v25, %v21_v3 }
   0x6   :  { %v23_v11 = vrot.slane %v18_v4, %v22_v7  ;;  %v27_v12 = vrot.slane %v18_v4, %v26_v8  ;;  %v43_v13 = vrot.slane %v38_v6, %v22_v7  ;;  %v47_v14 = vrot.slane %v38_v6, %v26_v8 }
   0x8   :  { %v28_v16 = vcombine.low %v23_v11, %v27_v12  ;;  %v48_v17 = vcombine.low %v43_v13, %v47_v14 }
   0xa   :  { %v35_v18 = vrot.slane %v28_v16, %v34_v10  ;;  %v55_v19 = vrot.slane %v48_v17, %v34_v10 }
   0xc   :  { %v37_v20 = vmul.f32 %v35_v18, %v17_v15 }
   0xe   :  { %v57_v23 = vadd.f32 %v55_v19, %v37_v20 }
  0x10   :  { %v58_v24 = vmax.f32 %v57_v23, 0.0 }
  0x12   :  { %v66_v26 = vrot.slane %v58_v24, %v34_v10 }
  0x14   :  { %v67_v27 = vcombine.high %v66_v26, %v66_v26 }
  0x16   :  { %v132_v29 = vpack.c.bf16 %v67_v27, %v66_v26 }
  0x18   :  { %v81_v30 = vrot.slane %v132_v29, %v80_v28 }
  0x1a   :  { %133 = vst.sshfl [vmem:[#allocation2] sm:$0x5 pattern:$0x73625140] %v81_v30 }
  0x21   :  { %v109_v31 = vld [vmem:[#allocation2] sm:$0x3] }
  0x22   :  { %134 = vst [vmem:[%s180_s4 + $0x8] sm:$0x3] %v109_v31 }

// kernel: resnet18_forward.68
= control target key start
LH: loop header
LB: loop body
LE: loop exit
PB: predicated region body
PF: predicated region fallthrough
CT: control target
= control target key end

     0   :  { %s1259_s15 = smov 0   ;;  %s1261_s16 = smov 0   ;;  %s1381_s0 = inlined_call_operand.vmem [shape: bf16[2,1152], index: 0, kind: input, shape index: {}]   ;;  %s1382_s1 = inlined_call_operand.vmem [shape: bf16[1152,256], index: 1, kind: input, shape index: {}]   ;;  %s1383_s2 = inlined_call_operand.vmem [shape: bf16[2,256], index: 2, kind: output, shape index: {0}]   ;;  %s1384_s3 = inlined_call_operand.vmem [shape: f32[1,1,256], index: 3, kind: output, shape index: {1}]   ;;  %s1385_s4 = inlined_call_operand.vmem [shape: f32[1,1,256], index: 4, kind: output, shape index: {2}]  }
   0x1   :  { %s1263_s17 = smov 0  }
   0x2 LB: > { %s27_s18 = sadd.s32 1, %s1224_s16  ;;  %p1040_p0 = scmp.ge.s32.totalorder %s1228_s17, 1  ;;  %s1228_s17 = sphi %s1263_s17, %s15_s17   ;;  %s1224_s16 = sphi %s1261_s16, %s1387_s16   ;;  %s1220_s15 = sphi %s1259_s15, %s1386_s15  }
   0x3   : > { %p28_p1 = scmp.ge.s32.totalorder %s27_s18, 3  ;;  %p217_p2 = scmp.lt.s32.totalorder %s1228_s17, 4 }
   0x5   : > { %s1389_s18 = smov (%p28_p1, %s27_s18), 0  ;;  %p218_p3 = pnand %p1040_p0, %p217_p2 }
   0x6   : > { %s275_s19 = smul.u32 (!%p218_p3), 3, %s1220_s15  ;;  %p1043_p6 = scmp.ne.s32.totalorder (!%p218_p3), %s1220_s15, 0 }
   0x7   : > { %221 = sbr.rel (%p218_p3) target bundleno = 322 (0x142), region = 28 }
   0x8   : > { %s284_s20 = smul.u32 (!%p218_p3), 48, %s1220_s15  ;;  %p278_p4 = scmp.lt.s32.totalorder (!%p218_p3), %s275_s19, 8 }
   0xa   : > { %p286_p5 = scmp.lt.s32.totalorder (!%p218_p3), %s284_s20, 143 }
   0xc   : > { %s1391_s19 = smov (!%p278_p4, %s275_s19), 8  ;;  %s1393_s20 = smov (!%p286_p5, %s284_s20), 143 }
   0xd   : > { %s282_s23 = scalar_lea.vmem %s1381_s0, %s1391_s19  ;;  %s1105_s24 = sshll.u32 %s1393_s20, 3 }
   0xe   : > { %s1290_s27 = scalar_lea.vmem %s1382_s1, %s1105_s24  ;;  %328 = sbr.rel (%p1043_p6) target bundleno = 21 (0x15), region = 32 }
  0x13   : > { %v1230_v0 = vmov 0.0  }
  0x14   : > { %329 = vst [vmem:[#allocation2] sm:$0xf] %v1230_v0 }
  0x15 PF: > { %v1134_v1 = vld [vmem:[%s1290_s27 + $0x74] ss:$8 sps:$4 sm:$0xff]   ;;  %v1136_v2 = vld [vmem:[%s1290_s27 + $0x70] ss:$8 sps:$4 sm:$0xff]   ;;  %v1231_v3 = vmov 0   ;;  %v392_v28 = vlaneseq  ;;  %p1093_p7 = scmp.ne.s32.totalorder %s1220_s15, 2 }
  0x16   : > { %720 = vmatprep.mubr.bf16.mxu1 %v1231_v3  ;;  %647 = vmatprep.subr.bf16.mxu0 %v1134_v1  ;;  %v1137_v4 = vld [vmem:[%s1290_s27 + $0x64] ss:$8 sps:$4 sm:$0xff]   ;;  %v1139_v5 = vld [vmem:[%s1290_s27 + $0x60] ss:$8 sps:$4 sm:$0xff]   ;;  %v1140_v6 = vld [vmem:[%s1290_s27 + $0x54] ss:$8 sps:$4 sm:$0xff]  }
  0x17   : > { %648 = vmatpush1.bf16.msra.mxu0 %v1136_v2  ;;  %v1142_v7 = vld [vmem:[%s1290_s27 + $0x50] ss:$8 sps:$4 sm:$0xff]   ;;  %v1143_v8 = vld [vmem:[%s1290_s27 + $0x44] ss:$8 sps:$4 sm:$0xff]   ;;  %v1155_v9 = vld [vmem:[%s1290_s27 + $0x174] ss:$8 sps:$4 sm:$0xff]  }
  0x18   : > { %649 = vmatprep.subr.bf16.mxu0 %v1137_v4  ;;  %v1157_v10 = vld [vmem:[%s1290_s27 + $0x170] ss:$8 sps:$4 sm:$0xff]   ;;  %v1145_v11 = vld [vmem:[%s1290_s27 + $0x40] ss:$8 sps:$4 sm:$0xff]   ;;  %v1146_v12 = vld [vmem:[%s1290_s27 + $0x34] ss:$8 sps:$4 sm:$0xff]   ;;  %688 = vmatprep.subr.bf16.mxu1 %v1155_v9 }
  0x19   : > { %v1161_v13 = vld [vmem:[%s1290_s27 + $0x164] ss:$8 sps:$4 sm:$0xff]   ;;  %689 = vmatpush1.bf16.msra.mxu1 %v1157_v10  ;;  %v1163_v14 = vld [vmem:[%s1290_s27 + $0x160] ss:$8 sps:$4 sm:$0xff]   ;;  %v1148_v15 = vld [vmem:[%s1290_s27 + $0x30] ss:$8 sps:$4 sm:$0xff]  }
  0x1a   : > { %690 = vmatprep.subr.bf16.mxu1 %v1161_v13  ;;  %v1167_v16 = vld [vmem:[%s1290_s27 + $0x154] ss:$8 sps:$4 sm:$0xff]   ;;  %v1149_v17 = vld [vmem:[%s1290_s27 + $0x24] ss:$8 sps:$4 sm:$0xff]   ;;  %v1169_v18 = vld [vmem:[%s1290_s27 + $0x150] ss:$8 sps:$4 sm:$0xff]  }
  0x1b   : > { %650 = vmatpush1.bf16.msra.mxu0 %v1139_v5  ;;  %v1173_v19 = vld [vmem:[%s1290_s27 + $0x144] ss:$8 sps:$4 sm:$0xff]   ;;  %v1151_v20 = vld [vmem:[%s1290_s27 + $0x20] ss:$8 sps:$4 sm:$0xff]   ;;  %v1152_v21 = vld [vmem:[%s1290_s27 + $0x14] ss:$8 sps:$4 sm:$0xff]  }
  0x1c   : > { %651 = vmatprep.subr.bf16.mxu0 %v1140_v6  ;;  %v1175_v22 = vld [vmem:[%s1290_s27 + $0x140] ss:$8 sps:$4 sm:$0xff]   ;;  %v1179_v23 = vld [vmem:[%s1290_s27 + $0x134] ss:$8 sps:$4 sm:$0xff]   ;;  %v1154_v24 = vld [vmem:[%s1290_s27 + $0x10] ss:$8 sps:$4 sm:$0xff]  }
  0x1d   : > { %691 = vmatpush1.bf16.msra.mxu1 %v1163_v14  ;;  %v1158_v25 = vld [vmem:[%s1290_s27 + $0x4] ss:$8 sps:$4 sm:$0xff]   ;;  %v1232_v26 = vmov 1966171168   ;;  %v1181_v29 = vld [vmem:[%s1290_s27 + $0x130] ss:$8 sps:$4 sm:$0xff]  }
  0x1e   : > { %692 = vmatprep.subr.bf16.mxu1 %v1167_v16  ;;  %v390_v27 = vunpack.c.l.s4 %v1232_v26  ;;  %v1185_v30 = vld [vmem:[%s1290_s27 + $0x124] ss:$8 sps:$4 sm:$0xff]   ;;  %v1160_v31 = vld [vmem:[%s1290_s27] ss:$8 sps:$4 sm:$0xff]   ;;  %v1164_v32 = vld [vmem:[%s1290_s27 + $0xf4] ss:$8 sps:$4 sm:$0xff]  }
  0x1f   : > { %652 = vmatpush1.bf16.msra.mxu0 %v1142_v7  ;;  %v1322_v34 = vshrl.u32 %v392_v28, 7  ;;  %v1187_v35 = vld [vmem:[%s1290_s27 + $0x120] ss:$8 sps:$4 sm:$0xff]   ;;  %v1166_v36 = vld [vmem:[%s1290_s27 + $0xf0] ss:$8 sps:$4 sm:$0xff]  }
  0x20   : > { %653 = vmatprep.subr.bf16.mxu0 %v1143_v8  ;;  %v391_v33 = vunpack.c.0.s8 %v390_v27  ;;  %v1191_v37 = vld [vmem:[%s1290_s27 + $0x114] ss:$8 sps:$4 sm:$0xff]   ;;  %v1044_v38 = vld.sshfl [vmem:[%s282_s23] sm:$0x13 pattern:$0x75316420] }
  0x21   : > { %693 = vmatpush1.bf16.msra.mxu1 %v1169_v18  ;;  %v1170_v39 = vld [vmem:[%s1290_s27 + $0xe4] ss:$8 sps:$4 sm:$0xff]   ;;  %v388_v41 = vcombine.high %v1044_v38, %v1044_v38  ;;  %v1193_v42 = vld [vmem:[%s1290_s27 + $0x110] ss:$8 sps:$4 sm:$0xff]   ;;  %v1172_v45 = vld [vmem:[%s1290_s27 + $0xe0] ss:$8 sps:$4 sm:$0xff]  }
  0x22   : > { %694 = vmatprep.subr.bf16.mxu1 %v1173_v19  ;;  %v1334_v40 = vsub.s32 %v391_v33, %v1322_v34  ;;  %v1197_v43 = vld [vmem:[%s1290_s27 + $0x104] ss:$8 sps:$4 sm:$0xff]   ;;  %v1176_v46 = vld [vmem:[%s1290_s27 + $0xd4] ss:$8 sps:$4 sm:$0xff]   ;;  %v1199_v48 = vld [vmem:[%s1290_s27 + $0x100] ss:$8 sps:$4 sm:$0xff]  }
  0x23   : > { %654 = vmatpush1.bf16.msra.mxu0 %v1145_v11  ;;  %v1178_v49 = vld [vmem:[%s1290_s27 + $0xd0] ss:$8 sps:$4 sm:$0xff]   ;;  %v1182_v50 = vld [vmem:[%s1290_s27 + $0xc4] ss:$8 sps:$4 sm:$0xff]   ;;  %v1184_v52 = vld [vmem:[%s1290_s27 + $0xc0] ss:$8 sps:$4 sm:$0xff]  }
  0x24   : > { %655 = vmatprep.subr.bf16.mxu0 %v1146_v12  ;;  %v402_v44 = vrot.slane %v388_v41, %v1334_v40  ;;  %v395_v47 = vrot.slane %v1044_v38, %v1334_v40  ;;  %v1188_v53 = vld [vmem:[%s1290_s27 + $0xb4] ss:$8 sps:$4 sm:$0xff]   ;;  %v1190_v54 = vld [vmem:[%s1290_s27 + $0xb0] ss:$8 sps:$4 sm:$0xff]   ;;  %v1194_v55 = vld [vmem:[%s1290_s27 + $0xa4] ss:$8 sps:$4 sm:$0xff]  }
  0x25   : > { %695 = vmatpush1.bf16.msra.mxu1 %v1175_v22  ;;  %v1196_v56 = vld [vmem:[%s1290_s27 + $0xa0] ss:$8 sps:$4 sm:$0xff]   ;;  %v1200_v57 = vld [vmem:[%s1290_s27 + $0x94] ss:$8 sps:$4 sm:$0xff]   ;;  %v1202_v58 = vld [vmem:[%s1290_s27 + $0x90] ss:$8 sps:$4 sm:$0xff]  }
  0x26   : > { %696 = vmatprep.subr.bf16.mxu1 %v1179_v23  ;;  %679 = vmatprep.mubr.bf16.mxu0 %v402_v44  ;;  %v403_v51 = vcombine.high %v395_v47, %v395_v47  ;;  %v1203_v59 = vld [vmem:[%s1290_s27 + $0x84] ss:$8 sps:$4 sm:$0xff]   ;;  %v1205_v60 = vld [vmem:[%s1290_s27 + $0x80] ss:$8 sps:$4 sm:$0xff]   ;;  %v1233_v1 = vmov 1983009808  }
  0x27   : > { %656 = vmatpush1.bf16.msra.mxu0 %v1148_v15  ;;  %v733_v2 = vunpack.c.l.s4 %v1233_v1  ;;  %v330_v11 = vld [vmem:[#allocation2] sm:$0xf] }
  0x28   : > { %657 = vmatprep.subr.bf16.mxu0 %v1149_v17 }
  0x29   : > { %697 = vmatpush1.bf16.msra.mxu1 %v1181_v29  ;;  %v734_v3 = vunpack.c.0.s8 %v733_v2 }
  0x2a   : > { %698 = vmatprep.subr.bf16.mxu1 %v1185_v30 }
  0x2b   : > { %658 = vmatpush1.bf16.msra.mxu0 %v1151_v20  ;;  %v737_v8 = vsub.s32 %v734_v3, %v1322_v34 }
  0x2c   : > { %659 = vmatprep.subr.bf16.mxu0 %v1152_v21 }
  0x2d   : > { %699 = vmatpush1.bf16.msra.mxu1 %v1187_v35 }
  0x2e   : > { %700 = vmatprep.subr.bf16.mxu1 %v1191_v37 }
  0x2f   : > { %660 = vmatpush1.bf16.msra.mxu0 %v1154_v24 }
  0x30   : > { %661 = vmatprep.subr.bf16.mxu0 %v1158_v25 }
  0x31   : > { %701 = vmatpush1.bf16.msra.mxu1 %v1193_v42 }
  0x32   : > { %702 = vmatprep.subr.bf16.mxu1 %v1197_v43 }
  0x33   : > { %662 = vmatpush1.bf16.msra.mxu0 %v1160_v31 }
  0x34   : > { %663 = vmatprep.subr.bf16.mxu0 %v1164_v32 }
  0x35   : > { %703 = vmatpush1.bf16.msra.mxu1 %v1199_v48 }
  0x37   : > { %664 = vmatpush2.bf16.msra.mxu0 %v1166_v36 }
  0x38   : > { %665 = vmatprep.subr.bf16.mxu0 %v1170_v39  ;;  %721 = vmatmul.mubr.bf16.vlgmr.msra.gmra.mxu1 %v403_v51 }
  0x3b   : > { %666 = vmatpush2.bf16.msra.mxu0 %v1172_v45 }
  0x3c   : > { %667 = vmatprep.subr.bf16.mxu0 %v1176_v46 }
  0x3f   : > { %668 = vmatpush2.bf16.msra.mxu0 %v1178_v49 }
  0x40   : > { %669 = vmatprep.subr.bf16.mxu0 %v1182_v50 }
  0x43   : > { %670 = vmatpush2.bf16.msra.mxu0 %v1184_v52 }
  0x44   : > { %671 = vmatprep.subr.bf16.mxu0 %v1188_v53 }
  0x47   : > { %672 = vmatpush2.bf16.msra.mxu0 %v1190_v54 }
  0x48   : > { %673 = vmatprep.subr.bf16.mxu0 %v1194_v55 }
  0x4b   : > { %674 = vmatpush2.bf16.msra.mxu0 %v1196_v56 }
  0x4c   : > { %675 = vmatprep.subr.bf16.mxu0 %v1200_v57 }
  0x4f   : > { %676 = vmatpush2.bf16.msra.mxu0 %v1202_v58 }
  0x50   : > { %677 = vmatprep.subr.bf16.mxu0 %v1203_v59 }
  0x53   : > { %678 = vmatpush2.bf16.msra.mxu0 %v1205_v60 }
  0x56   : > { %680 = vmatmul.mubr.bf16.vlgmr.msra.gmra.mxu0 %v395_v47 }
  0xf8   : > { %v722_v61 = vpop.f32.mrf.mxu1 }
  0xfa   : > { %v724_v62 = vpop.f32.mrf.mxu1 }
  0xfc   : > { %v726_v63 = vpop.f32.mrf.mxu1 }
  0xfe   : > { %v727_v0 = vpop.f32.mrf.mxu1 }
 0x116   : > { %v681_v4 = vpop.f32.mrf.mxu0 }
 0x117   : > { %v723_v6 = vadd.f32 %v722_v61, %v681_v4 }
 0x118   : > { %v683_v5 = vpop.f32.mrf.mxu0 }
 0x119   : > { %v725_v7 = vadd.f32 %v724_v62, %v683_v5 }
 0x11a   : > { %v685_v9 = vpop.f32.mrf.mxu0 }
 0x11b   : > { %v731_v10 = vcombine.low %v723_v6, %v725_v7 }
 0x11c   : > { %v686_v12 = vpop.f32.mrf.mxu0 }
 0x11d   : > { %v738_v13 = vrot.slane %v731_v10, %v737_v8  ;;  %745 = sbr.rel (%p1093_p7) target bundleno = 322 (0x142), region = 36 }
 0x11f   : > { %v740_v14 = vadd.f32 %v738_v13, %v330_v11 }
 0x121   : > { %741 = vst [vmem:[#allocation2] sm:$0xf] %v740_v14 }
 0x122   : > { %vm783_vm0 = vcmp.lt.s32.totalorder %v1322_v34, 2  ;;  %vm786_vm1 = vcmask 1041408   ;;  %vm821_vm2 = vcmp.lt.s32.totalorder %v392_v28, 256 }
 0x128   : > { %v1094_v15 = vld.sshfl [vmem:[#allocation2] sm:$0x33 pattern:$0x76325410] }
 0x129   : > { %v755_v16 = vcombine.high %v1094_v15, %v1094_v15  ;;  %v784_v17 = vsel %vm783_vm0, %v1094_v15, 0.0 }
 0x12a   : > { %v787_v18 = vsel %vm786_vm1, %v784_v17, 0.0  ;;  %v824_v19 = vmul.f32 %v784_v17, %v784_v17 }
 0x12b   : > { %v1095_v20 = vpack.c.bf16 %v755_v16, %v1094_v15  ;;  %v785_v21 = vsel %vm783_vm0, %v755_v16, 0.0  ;;  %v788_v22 = vrot.slane %v787_v18, 4 }
 0x12c   : > { %v794_v23 = vsel %vm786_vm1, %v785_v21, 0.0  ;;  %v825_v24 = vmul.f32 %v785_v21, %v785_v21  ;;  %v826_v25 = vsel %vm786_vm1, %v824_v19, 0.0 }
 0x12d   : > { %v769_v26 = vrot.slane %v1095_v20, %v1334_v40  ;;  %v789_v27 = vadd.f32 %v788_v22, %v787_v18  ;;  %v795_v29 = vrot.slane %v794_v23, 4  ;;  %v827_v30 = vrot.slane %v826_v25, 4 }
 0x12e   : > { %v833_v31 = vsel %vm786_vm1, %v825_v24, 0.0 }
 0x12f   : > { %1096 = vst.sshfl [vmem:[%s1383_s2] sm:$0x5 pattern:$0x73625140] %v769_v26  ;;  %v796_v32 = vadd.f32 %v795_v29, %v794_v23  ;;  %v834_v33 = vrot.slane %v833_v31, 4  ;;  %v790_v34 = vrot.slane %v789_v27, 2  ;;  %v828_v35 = vadd.f32 %v827_v30, %v826_v25 }
 0x131   : > { %v791_v36 = vadd.f32 %v790_v34, %v789_v27  ;;  %v797_v37 = vrot.slane %v796_v32, 2  ;;  %v829_v38 = vrot.slane %v828_v35, 2  ;;  %v835_v39 = vadd.f32 %v834_v33, %v833_v31 }
 0x133   : > { %v792_v41 = vrot.slane %v791_v36, 1  ;;  %v798_v42 = vadd.f32 %v797_v37, %v796_v32  ;;  %v830_v43 = vadd.f32 %v829_v38, %v828_v35  ;;  %v836_v44 = vrot.slane %v835_v39, 2 }
 0x135   : > { %v793_v45 = vadd.f32 %v792_v41, %v791_v36  ;;  %v799_v46 = vrot.slane %v798_v42, 1  ;;  %v831_v47 = vrot.slane %v830_v43, 1  ;;  %v837_v48 = vadd.f32 %v836_v44, %v835_v39 }
 0x137   : > { %v800_v49 = vadd.f32 %v799_v46, %v798_v42  ;;  %v832_v50 = vadd.f32 %v831_v47, %v830_v43  ;;  %v838_v51 = vrot.slane %v837_v48, 1 }
 0x139   : > { %v803_v52 = vcombine.low %v793_v45, %v800_v49  ;;  %v839_v53 = vadd.f32 %v838_v51, %v837_v48 }
 0x13b   : > { %v810_v54 = vrot.slane %v803_v52, %v1334_v40  ;;  %v842_v55 = vcombine.low %v832_v50, %v839_v53 }
 0x13d   : > { %v817_v56 = vrot.slane %v810_v54, %v1334_v40  ;;  %v849_v57 = vrot.slane %v842_v55, %v1334_v40 }
 0x13f   : > { %823 = vst.msk [vmem:[%s1384_s3] sm:$0x3] %vm821_vm2, %v817_v56  ;;  %v856_v58 = vrot.slane %v849_v57, %v1334_v40 }
 0x141   : > { %858 = vst.msk [vmem:[%s1385_s4] sm:$0x3] %vm821_vm2, %v856_v58 }
 0x142 PF: > { %s15_s17 = sadd.s32 1, %s1228_s17   ;;  %s1386_s15 = smov %s1224_s16 }
 0x143   : > { %p12_p8 = scmp.ge.s32.totalorder %s15_s17, 5   ;;  %s1387_s16 = smov %s1389_s18 }
 0x145   :  { %14 = sbr.rel (!%p12_p8) target bundleno = 2 (0x2), region = 93 }

// kernel: resnet18_forward.72
= control target key start
LH: loop header
LB: loop body
LE: loop exit
PB: predicated region body
PF: predicated region fallthrough
CT: control target
= control target key end

     0   :  { %v21_v0 = vlaneseq  ;;  %v103_v1 = vmov 1983009808   ;;  %v104_v24 = vmov 1966171168   ;;  %s145_s1 = inlined_call_operand.vmem [shape: f32[1,256], index: 1, kind: input, shape index: {}]   ;;  %s146_s2 = inlined_call_operand.vmem [shape: f32[1,256], index: 2, kind: input, shape index: {}]   ;;  %s147_s0 = inlined_call_operand.vmem [shape: bf16[2,256], index: 0, kind: input, shape index: {}]   ;;  %s148_s3 = inlined_call_operand.vmem [shape: bf16[2,256], index: 3, kind: input, shape index: {}]   ;;  %s149_s4 = inlined_call_operand.vmem [shape: bf16[2,256], index: 4, kind: output, shape index: {}]  }
   0x1   :  { %v31_v2 = vunpack.c.l.s4 %v103_v1  ;;  %v19_v4 = vld [vmem:[%s145_s1] sm:$0x3]  ;;  %v80_v25 = vunpack.c.l.s4 %v104_v24 }
   0x2   :  { %v22_v3 = vshrl.u32 %v21_v0, 7  ;;  %v39_v6 = vld [vmem:[%s146_s2] sm:$0x3] }
   0x3   :  { %v32_v5 = vunpack.c.0.s8 %v31_v2  ;;  %v17_v9 = vld [vmem:[%s147_s0] sm:$0x3]  ;;  %v81_v28 = vunpack.c.0.s8 %v80_v25 }
   0x4   :  { %v23_v7 = vsub.s32 0, %v22_v3  ;;  %v27_v8 = vsub.s32 1, %v22_v3  ;;  %v18_v15 = vunpack.c.l.bf16 %v17_v9  ;;  %v59_v18 = vld [vmem:[%s148_s3] sm:$0x3] }
   0x5   :  { %v35_v10 = vsub.s32 %v32_v5, %v22_v3  ;;  %v60_v22 = vunpack.c.l.bf16 %v59_v18  ;;  %v84_v31 = vsub.s32 %v81_v28, %v22_v3 }
   0x6   :  { %v24_v11 = vrot.slane %v19_v4, %v23_v7  ;;  %v28_v12 = vrot.slane %v19_v4, %v27_v8  ;;  %v44_v13 = vrot.slane %v39_v6, %v23_v7  ;;  %v48_v14 = vrot.slane %v39_v6, %v27_v8 }
   0x8   :  { %v29_v16 = vcombine.low %v24_v11, %v28_v12  ;;  %v49_v17 = vcombine.low %v44_v13, %v48_v14 }
   0xa   :  { %v36_v19 = vrot.slane %v29_v16, %v35_v10  ;;  %v56_v20 = vrot.slane %v49_v17, %v35_v10 }
   0xc   :  { %v38_v21 = vmul.f32 %v36_v19, %v18_v15 }
   0xe   :  { %v58_v23 = vadd.f32 %v56_v20, %v38_v21 }
  0x10   :  { %v61_v26 = vadd.f32 %v60_v22, %v58_v23 }
  0x12   :  { %v62_v27 = vmax.f32 %v61_v26, 0.0 }
  0x14   :  { %v70_v29 = vrot.slane %v62_v27, %v35_v10 }
  0x16   :  { %v71_v30 = vcombine.high %v70_v29, %v70_v29 }
  0x18   :  { %v99_v32 = vpack.c.bf16 %v71_v30, %v70_v29 }
  0x1a   :  { %v85_v33 = vrot.slane %v99_v32, %v84_v31 }
  0x1c   :  { %100 = vst.sshfl [vmem:[%s149_s4] sm:$0x5 pattern:$0x73625140] %v85_v33 }

// kernel: resnet18_forward.71
= control target key start
LH: loop header
LB: loop body
LE: loop exit
PB: predicated region body
PF: predicated region fallthrough
CT: control target
= control target key end

     0   :  { %s1259_s15 = smov 0   ;;  %s1261_s16 = smov 0   ;;  %s1381_s0 = inlined_call_operand.vmem [shape: bf16[2,2304], index: 0, kind: input, shape index: {}]   ;;  %s1382_s1 = inlined_call_operand.vmem [shape: bf16[2304,256], index: 1, kind: input, shape index: {}]   ;;  %s1383_s2 = inlined_call_operand.vmem [shape: bf16[2,256], index: 2, kind: output, shape index: {0}]   ;;  %s1384_s3 = inlined_call_operand.vmem [shape: f32[1,1,256], index: 3, kind: output, shape index: {1}]   ;;  %s1385_s4 = inlined_call_operand.vmem [shape: f32[1,1,256], index: 4, kind: output, shape index: {2}]  }
   0x1   :  { %s1263_s17 = smov 0  }
   0x2 LB: > { %s27_s18 = sadd.s32 1, %s1224_s16  ;;  %p1040_p0 = scmp.ge.s32.totalorder %s1228_s17, 1  ;;  %s1228_s17 = sphi %s1263_s17, %s15_s17   ;;  %s1224_s16 = sphi %s1261_s16, %s1387_s16   ;;  %s1220_s15 = sphi %s1259_s15, %s1386_s15  }
   0x3   : > { %p28_p1 = scmp.ge.s32.totalorder %s27_s18, 6  ;;  %p217_p2 = scmp.lt.s32.totalorder %s1228_s17, 7 }
   0x5   : > { %s1389_s18 = smov (%p28_p1, %s27_s18), 0  ;;  %p218_p3 = pnand %p1040_p0, %p217_p2 }
   0x6   : > { %s275_s19 = smul.u32 (!%p218_p3), 3, %s1220_s15  ;;  %p1043_p6 = scmp.ne.s32.totalorder (!%p218_p3), %s1220_s15, 0 }
   0x7   : > { %221 = sbr.rel (%p218_p3) target bundleno = 322 (0x142), region = 28 }
   0x8   : > { %s284_s20 = smul.u32 (!%p218_p3), 48, %s1220_s15  ;;  %p278_p4 = scmp.lt.s32.totalorder (!%p218_p3), %s275_s19, 17 }
   0xa   : > { %p286_p5 = scmp.lt.s32.totalorder (!%p218_p3), %s284_s20, 287 }
   0xc   : > { %s1391_s19 = smov (!%p278_p4, %s275_s19), 17  ;;  %s1393_s20 = smov (!%p286_p5, %s284_s20), 287 }
   0xd   : > { %s282_s23 = scalar_lea.vmem %s1381_s0, %s1391_s19  ;;  %s1105_s24 = sshll.u32 %s1393_s20, 3 }
   0xe   : > { %s1290_s27 = scalar_lea.vmem %s1382_s1, %s1105_s24  ;;  %328 = sbr.rel (%p1043_p6) target bundleno = 21 (0x15), region = 32 }
  0x13   : > { %v1230_v0 = vmov 0.0  }
  0x14   : > { %329 = vst [vmem:[#allocation2] sm:$0xf] %v1230_v0 }
  0x15 PF: > { %v1134_v1 = vld [vmem:[%s1290_s27 + $0x74] ss:$8 sps:$4 sm:$0xff]   ;;  %v1136_v2 = vld [vmem:[%s1290_s27 + $0x70] ss:$8 sps:$4 sm:$0xff]   ;;  %v1231_v3 = vmov 0   ;;  %v392_v28 = vlaneseq  ;;  %p1093_p7 = scmp.ne.s32.totalorder %s1220_s15, 5 }
  0x16   : > { %720 = vmatprep.mubr.bf16.mxu1 %v1231_v3  ;;  %647 = vmatprep.subr.bf16.mxu0 %v1134_v1  ;;  %v1137_v4 = vld [vmem:[%s1290_s27 + $0x64] ss:$8 sps:$4 sm:$0xff]   ;;  %v1139_v5 = vld [vmem:[%s1290_s27 + $0x60] ss:$8 sps:$4 sm:$0xff]   ;;  %v1140_v6 = vld [vmem:[%s1290_s27 + $0x54] ss:$8 sps:$4 sm:$0xff]  }
  0x17   : > { %648 = vmatpush1.bf16.msra.mxu0 %v1136_v2  ;;  %v1142_v7 = vld [vmem:[%s1290_s27 + $0x50] ss:$8 sps:$4 sm:$0xff]   ;;  %v1143_v8 = vld [vmem:[%s1290_s27 + $0x44] ss:$8 sps:$4 sm:$0xff]   ;;  %v1155_v9 = vld [vmem:[%s1290_s27 + $0x174] ss:$8 sps:$4 sm:$0xff]  }
  0x18   : > { %649 = vmatprep.subr.bf16.mxu0 %v1137_v4  ;;  %v1157_v10 = vld [vmem:[%s1290_s27 + $0x170] ss:$8 sps:$4 sm:$0xff]   ;;  %v1145_v11 = vld [vmem:[%s1290_s27 + $0x40] ss:$8 sps:$4 sm:$0xff]   ;;  %v1146_v12 = vld [vmem:[%s1290_s27 + $0x34] ss:$8 sps:$4 sm:$0xff]   ;;  %688 = vmatprep.subr.bf16.mxu1 %v1155_v9 }
  0x19   : > { %v1161_v13 = vld [vmem:[%s1290_s27 + $0x164] ss:$8 sps:$4 sm:$0xff]   ;;  %689 = vmatpush1.bf16.msra.mxu1 %v1157_v10  ;;  %v1163_v14 = vld [vmem:[%s1290_s27 + $0x160] ss:$8 sps:$4 sm:$0xff]   ;;  %v1148_v15 = vld [vmem:[%s1290_s27 + $0x30] ss:$8 sps:$4 sm:$0xff]  }
  0x1a   : > { %690 = vmatprep.subr.bf16.mxu1 %v1161_v13  ;;  %v1167_v16 = vld [vmem:[%s1290_s27 + $0x154] ss:$8 sps:$4 sm:$0xff]   ;;  %v1149_v17 = vld [vmem:[%s1290_s27 + $0x24] ss:$8 sps:$4 sm:$0xff]   ;;  %v1169_v18 = vld [vmem:[%s1290_s27 + $0x150] ss:$8 sps:$4 sm:$0xff]  }
  0x1b   : > { %650 = vmatpush1.bf16.msra.mxu0 %v1139_v5  ;;  %v1173_v19 = vld [vmem:[%s1290_s27 + $0x144] ss:$8 sps:$4 sm:$0xff]   ;;  %v1151_v20 = vld [vmem:[%s1290_s27 + $0x20] ss:$8 sps:$4 sm:$0xff]   ;;  %v1152_v21 = vld [vmem:[%s1290_s27 + $0x14] ss:$8 sps:$4 sm:$0xff]  }
  0x1c   : > { %651 = vmatprep.subr.bf16.mxu0 %v1140_v6  ;;  %v1175_v22 = vld [vmem:[%s1290_s27 + $0x140] ss:$8 sps:$4 sm:$0xff]   ;;  %v1179_v23 = vld [vmem:[%s1290_s27 + $0x134] ss:$8 sps:$4 sm:$0xff]   ;;  %v1154_v24 = vld [vmem:[%s1290_s27 + $0x10] ss:$8 sps:$4 sm:$0xff]  }
  0x1d   : > { %691 = vmatpush1.bf16.msra.mxu1 %v1163_v14  ;;  %v1158_v25 = vld [vmem:[%s1290_s27 + $0x4] ss:$8 sps:$4 sm:$0xff]   ;;  %v1232_v26 = vmov 1966171168   ;;  %v1181_v29 = vld [vmem:[%s1290_s27 + $0x130] ss:$8 sps:$4 sm:$0xff]  }
  0x1e   : > { %692 = vmatprep.subr.bf16.mxu1 %v1167_v16  ;;  %v390_v27 = vunpack.c.l.s4 %v1232_v26  ;;  %v1185_v30 = vld [vmem:[%s1290_s27 + $0x124] ss:$8 sps:$4 sm:$0xff]   ;;  %v1160_v31 = vld [vmem:[%s1290_s27] ss:$8 sps:$4 sm:$0xff]   ;;  %v1164_v32 = vld [vmem:[%s1290_s27 + $0xf4] ss:$8 sps:$4 sm:$0xff]  }
  0x1f   : > { %652 = vmatpush1.bf16.msra.mxu0 %v1142_v7  ;;  %v1322_v34 = vshrl.u32 %v392_v28, 7  ;;  %v1187_v35 = vld [vmem:[%s1290_s27 + $0x120] ss:$8 sps:$4 sm:$0xff]   ;;  %v1166_v36 = vld [vmem:[%s1290_s27 + $0xf0] ss:$8 sps:$4 sm:$0xff]  }
  0x20   : > { %653 = vmatprep.subr.bf16.mxu0 %v1143_v8  ;;  %v391_v33 = vunpack.c.0.s8 %v390_v27  ;;  %v1191_v37 = vld [vmem:[%s1290_s27 + $0x114] ss:$8 sps:$4 sm:$0xff]   ;;  %v1044_v38 = vld.sshfl [vmem:[%s282_s23] sm:$0x13 pattern:$0x75316420] }
  0x21   : > { %693 = vmatpush1.bf16.msra.mxu1 %v1169_v18  ;;  %v1170_v39 = vld [vmem:[%s1290_s27 + $0xe4] ss:$8 sps:$4 sm:$0xff]   ;;  %v388_v41 = vcombine.high %v1044_v38, %v1044_v38  ;;  %v1193_v42 = vld [vmem:[%s1290_s27 + $0x110] ss:$8 sps:$4 sm:$0xff]   ;;  %v1172_v45 = vld [vmem:[%s1290_s27 + $0xe0] ss:$8 sps:$4 sm:$0xff]  }
  0x22   : > { %694 = vmatprep.subr.bf16.mxu1 %v1173_v19  ;;  %v1334_v40 = vsub.s32 %v391_v33, %v1322_v34  ;;  %v1197_v43 = vld [vmem:[%s1290_s27 + $0x104] ss:$8 sps:$4 sm:$0xff]   ;;  %v1176_v46 = vld [vmem:[%s1290_s27 + $0xd4] ss:$8 sps:$4 sm:$0xff]   ;;  %v1199_v48 = vld [vmem:[%s1290_s27 + $0x100] ss:$8 sps:$4 sm:$0xff]  }
  0x23   : > { %654 = vmatpush1.bf16.msra.mxu0 %v1145_v11  ;;  %v1178_v49 = vld [vmem:[%s1290_s27 + $0xd0] ss:$8 sps:$4 sm:$0xff]   ;;  %v1182_v50 = vld [vmem:[%s1290_s27 + $0xc4] ss:$8 sps:$4 sm:$0xff]   ;;  %v1184_v52 = vld [vmem:[%s1290_s27 + $0xc0] ss:$8 sps:$4 sm:$0xff]  }
  0x24   : > { %655 = vmatprep.subr.bf16.mxu0 %v1146_v12  ;;  %v402_v44 = vrot.slane %v388_v41, %v1334_v40  ;;  %v395_v47 = vrot.slane %v1044_v38, %v1334_v40  ;;  %v1188_v53 = vld [vmem:[%s1290_s27 + $0xb4] ss:$8 sps:$4 sm:$0xff]   ;;  %v1190_v54 = vld [vmem:[%s1290_s27 + $0xb0] ss:$8 sps:$4 sm:$0xff]   ;;  %v1194_v55 = vld [vmem:[%s1290_s27 + $0xa4] ss:$8 sps:$4 sm:$0xff]  }
  0x25   : > { %695 = vmatpush1.bf16.msra.mxu1 %v1175_v22  ;;  %v1196_v56 = vld [vmem:[%s1290_s27 + $0xa0] ss:$8 sps:$4 sm:$0xff]   ;;  %v1200_v57 = vld [vmem:[%s1290_s27 + $0x94] ss:$8 sps:$4 sm:$0xff]   ;;  %v1202_v58 = vld [vmem:[%s1290_s27 + $0x90] ss:$8 sps:$4 sm:$0xff]  }
  0x26   : > { %696 = vmatprep.subr.bf16.mxu1 %v1179_v23  ;;  %679 = vmatprep.mubr.bf16.mxu0 %v402_v44  ;;  %v403_v51 = vcombine.high %v395_v47, %v395_v47  ;;  %v1203_v59 = vld [vmem:[%s1290_s27 + $0x84] ss:$8 sps:$4 sm:$0xff]   ;;  %v1205_v60 = vld [vmem:[%s1290_s27 + $0x80] ss:$8 sps:$4 sm:$0xff]   ;;  %v1233_v1 = vmov 1983009808  }
  0x27   : > { %656 = vmatpush1.bf16.msra.mxu0 %v1148_v15  ;;  %v733_v2 = vunpack.c.l.s4 %v1233_v1  ;;  %v330_v11 = vld [vmem:[#allocation2] sm:$0xf] }
  0x28   : > { %657 = vmatprep.subr.bf16.mxu0 %v1149_v17 }
  0x29   : > { %697 = vmatpush1.bf16.msra.mxu1 %v1181_v29  ;;  %v734_v3 = vunpack.c.0.s8 %v733_v2 }
  0x2a   : > { %698 = vmatprep.subr.bf16.mxu1 %v1185_v30 }
  0x2b   : > { %658 = vmatpush1.bf16.msra.mxu0 %v1151_v20  ;;  %v737_v8 = vsub.s32 %v734_v3, %v1322_v34 }
  0x2c   : > { %659 = vmatprep.subr.bf16.mxu0 %v1152_v21 }
  0x2d   : > { %699 = vmatpush1.bf16.msra.mxu1 %v1187_v35 }
  0x2e   : > { %700 = vmatprep.subr.bf16.mxu1 %v1191_v37 }
  0x2f   : > { %660 = vmatpush1.bf16.msra.mxu0 %v1154_v24 }
  0x30   : > { %661 = vmatprep.subr.bf16.mxu0 %v1158_v25 }
  0x31   : > { %701 = vmatpush1.bf16.msra.mxu1 %v1193_v42 }
  0x32   : > { %702 = vmatprep.subr.bf16.mxu1 %v1197_v43 }
  0x33   : > { %662 = vmatpush1.bf16.msra.mxu0 %v1160_v31 }
  0x34   : > { %663 = vmatprep.subr.bf16.mxu0 %v1164_v32 }
  0x35   : > { %703 = vmatpush1.bf16.msra.mxu1 %v1199_v48 }
  0x37   : > { %664 = vmatpush2.bf16.msra.mxu0 %v1166_v36 }
  0x38   : > { %665 = vmatprep.subr.bf16.mxu0 %v1170_v39  ;;  %721 = vmatmul.mubr.bf16.vlgmr.msra.gmra.mxu1 %v403_v51 }
  0x3b   : > { %666 = vmatpush2.bf16.msra.mxu0 %v1172_v45 }
  0x3c   : > { %667 = vmatprep.subr.bf16.mxu0 %v1176_v46 }
  0x3f   : > { %668 = vmatpush2.bf16.msra.mxu0 %v1178_v49 }
  0x40   : > { %669 = vmatprep.subr.bf16.mxu0 %v1182_v50 }
  0x43   : > { %670 = vmatpush2.bf16.msra.mxu0 %v1184_v52 }
  0x44   : > { %671 = vmatprep.subr.bf16.mxu0 %v1188_v53 }
  0x47   : > { %672 = vmatpush2.bf16.msra.mxu0 %v1190_v54 }
  0x48   : > { %673 = vmatprep.subr.bf16.mxu0 %v1194_v55 }
  0x4b   : > { %674 = vmatpush2.bf16.msra.mxu0 %v1196_v56 }
  0x4c   : > { %675 = vmatprep.subr.bf16.mxu0 %v1200_v57 }
  0x4f   : > { %676 = vmatpush2.bf16.msra.mxu0 %v1202_v58 }
  0x50   : > { %677 = vmatprep.subr.bf16.mxu0 %v1203_v59 }
  0x53   : > { %678 = vmatpush2.bf16.msra.mxu0 %v1205_v60 }
  0x56   : > { %680 = vmatmul.mubr.bf16.vlgmr.msra.gmra.mxu0 %v395_v47 }
  0xf8   : > { %v722_v61 = vpop.f32.mrf.mxu1 }
  0xfa   : > { %v724_v62 = vpop.f32.mrf.mxu1 }
  0xfc   : > { %v726_v63 = vpop.f32.mrf.mxu1 }
  0xfe   : > { %v727_v0 = vpop.f32.mrf.mxu1 }
 0x116   : > { %v681_v4 = vpop.f32.mrf.mxu0 }
 0x117   : > { %v723_v6 = vadd.f32 %v722_v61, %v681_v4 }
 0x118   : > { %v683_v5 = vpop.f32.mrf.mxu0 }
 0x119   : > { %v725_v7 = vadd.f32 %v724_v62, %v683_v5 }
 0x11a   : > { %v685_v9 = vpop.f32.mrf.mxu0 }
 0x11b   : > { %v731_v10 = vcombine.low %v723_v6, %v725_v7 }
 0x11c   : > { %v686_v12 = vpop.f32.mrf.mxu0 }
 0x11d   : > { %v738_v13 = vrot.slane %v731_v10, %v737_v8  ;;  %745 = sbr.rel (%p1093_p7) target bundleno = 322 (0x142), region = 36 }
 0x11f   : > { %v740_v14 = vadd.f32 %v738_v13, %v330_v11 }
 0x121   : > { %741 = vst [vmem:[#allocation2] sm:$0xf] %v740_v14 }
 0x122   : > { %vm783_vm0 = vcmp.lt.s32.totalorder %v1322_v34, 2  ;;  %vm786_vm1 = vcmask 1041408   ;;  %vm821_vm2 = vcmp.lt.s32.totalorder %v392_v28, 256 }
 0x128   : > { %v1094_v15 = vld.sshfl [vmem:[#allocation2] sm:$0x33 pattern:$0x76325410] }
 0x129   : > { %v755_v16 = vcombine.high %v1094_v15, %v1094_v15  ;;  %v784_v17 = vsel %vm783_vm0, %v1094_v15, 0.0 }
 0x12a   : > { %v787_v18 = vsel %vm786_vm1, %v784_v17, 0.0  ;;  %v824_v19 = vmul.f32 %v784_v17, %v784_v17 }
 0x12b   : > { %v1095_v20 = vpack.c.bf16 %v755_v16, %v1094_v15  ;;  %v785_v21 = vsel %vm783_vm0, %v755_v16, 0.0  ;;  %v788_v22 = vrot.slane %v787_v18, 4 }
 0x12c   : > { %v794_v23 = vsel %vm786_vm1, %v785_v21, 0.0  ;;  %v825_v24 = vmul.f32 %v785_v21, %v785_v21  ;;  %v826_v25 = vsel %vm786_vm1, %v824_v19, 0.0 }
 0x12d   : > { %v769_v26 = vrot.slane %v1095_v20, %v1334_v40  ;;  %v789_v27 = vadd.f32 %v788_v22, %v787_v18  ;;  %v795_v29 = vrot.slane %v794_v23, 4  ;;  %v827_v30 = vrot.slane %v826_v25, 4 }
 0x12e   : > { %v833_v31 = vsel %vm786_vm1, %v825_v24, 0.0 }
 0x12f   : > { %1096 = vst.sshfl [vmem:[%s1383_s2] sm:$0x5 pattern:$0x73625140] %v769_v26  ;;  %v796_v32 = vadd.f32 %v795_v29, %v794_v23  ;;  %v834_v33 = vrot.slane %v833_v31, 4  ;;  %v790_v34 = vrot.slane %v789_v27, 2  ;;  %v828_v35 = vadd.f32 %v827_v30, %v826_v25 }
 0x131   : > { %v791_v36 = vadd.f32 %v790_v34, %v789_v27  ;;  %v797_v37 = vrot.slane %v796_v32, 2  ;;  %v829_v38 = vrot.slane %v828_v35, 2  ;;  %v835_v39 = vadd.f32 %v834_v33, %v833_v31 }
 0x133   : > { %v792_v41 = vrot.slane %v791_v36, 1  ;;  %v798_v42 = vadd.f32 %v797_v37, %v796_v32  ;;  %v830_v43 = vadd.f32 %v829_v38, %v828_v35  ;;  %v836_v44 = vrot.slane %v835_v39, 2 }
 0x135   : > { %v793_v45 = vadd.f32 %v792_v41, %v791_v36  ;;  %v799_v46 = vrot.slane %v798_v42, 1  ;;  %v831_v47 = vrot.slane %v830_v43, 1  ;;  %v837_v48 = vadd.f32 %v836_v44, %v835_v39 }
 0x137   : > { %v800_v49 = vadd.f32 %v799_v46, %v798_v42  ;;  %v832_v50 = vadd.f32 %v831_v47, %v830_v43  ;;  %v838_v51 = vrot.slane %v837_v48, 1 }
 0x139   : > { %v803_v52 = vcombine.low %v793_v45, %v800_v49  ;;  %v839_v53 = vadd.f32 %v838_v51, %v837_v48 }
 0x13b   : > { %v810_v54 = vrot.slane %v803_v52, %v1334_v40  ;;  %v842_v55 = vcombine.low %v832_v50, %v839_v53 }
 0x13d   : > { %v817_v56 = vrot.slane %v810_v54, %v1334_v40  ;;  %v849_v57 = vrot.slane %v842_v55, %v1334_v40 }
 0x13f   : > { %823 = vst.msk [vmem:[%s1384_s3] sm:$0x3] %vm821_vm2, %v817_v56  ;;  %v856_v58 = vrot.slane %v849_v57, %v1334_v40 }
 0x141   : > { %858 = vst.msk [vmem:[%s1385_s4] sm:$0x3] %vm821_vm2, %v856_v58 }
 0x142 PF: > { %s15_s17 = sadd.s32 1, %s1228_s17   ;;  %s1386_s15 = smov %s1224_s16 }
 0x143   : > { %p12_p8 = scmp.ge.s32.totalorder %s15_s17, 8   ;;  %s1387_s16 = smov %s1389_s18 }
 0x145   :  { %14 = sbr.rel (!%p12_p8) target bundleno = 2 (0x2), region = 93 }

// kernel: resnet18_forward.77
= control target key start
LH: loop header
LB: loop body
LE: loop exit
PB: predicated region body
PF: predicated region fallthrough
CT: control target
= control target key end

     0   :  { %s1268_s15 = smov 0   ;;  %s1270_s16 = smov 0   ;;  %s1474_s0 = inlined_call_operand.vmem [shape: bf16[2,256], index: 0, kind: input, shape index: {}]   ;;  %s1475_s1 = inlined_call_operand.vmem [shape: bf16[256,512], index: 1, kind: input, shape index: {}]   ;;  %s1476_s2 = inlined_call_operand.vmem [shape: bf16[2,512], index: 2, kind: output, shape index: {0}]   ;;  %s1477_s3 = inlined_call_operand.vmem [shape: f32[1,1,512], index: 3, kind: output, shape index: {1}]   ;;  %s1478_s4 = inlined_call_operand.vmem [shape: f32[1,1,512], index: 4, kind: output, shape index: {2}]  }
   0x1   :  { %s1272_s17 = smov 0   ;;  %s1274_s18 = smov 0  }
   0x2   :  { %s1276_s19 = smov 0  }
   0x3 LB: > { %s30_s20 = sadd.s32 1, %s1234_s18  ;;  %p78_p1 = scmp.ne.s32.totalorder %s1226_s16, %s1222_s15  ;;  %s1238_s19 = sphi %s1276_s19, %s15_s19   ;;  %s1234_s18 = sphi %s1274_s18, %s1482_s18   ;;  %s1230_s17 = sphi %s1272_s17, %s1481_s17   ;;  %s1226_s16 = sphi %s1270_s16, %s1480_s16   ;;  %s1222_s15 = sphi %s1268_s15, %s1479_s15  }
   0x4   : > { %p32_p0 = scmp.ge.s32.totalorder %s30_s20, 2  ;;  %p79_p2 = scmp.eq.s32.totalorder %s1238_s19, 0 }
   0x5   : > { %s71_s22 = sadd.s32 1, %s1226_s16  ;;  %p1061_p5 = scmp.ge.s32.totalorder %s1238_s19, 2 }
   0x6   : > { %s1484_s20 = smov (%p32_p0, %s30_s20), 0  ;;  %p80_p3 = por %p79_p2, %p78_p1 }
   0x7   : > { %s67_s21 = ssub.s32 %s1234_s18, %s1484_s20  ;;  %200 = sbr.rel (%p1061_p5) target bundleno = 32 (0x20), region = 20 }
   0x8   : > { %p69_p4 = scmp.eq.s32.totalorder %s67_s21, 0 }
   0xa   : > { %s1303_s23 = scalar_select %p69_p4, %s1226_s16, %s71_s22  }
   0xc   : > { %203 = sbr.rel (!%p80_p3) target bundleno = 32 (0x20), region = 24  ;;  %s205_s24 = sand.u32 (%p80_p3), 1, %s1226_s16  }
   0xd   : > { %s1108_s25 = sshll.u32 (%p80_p3), %s1234_s18, 3  ;;  %s1062_s26 = sshll.u32 (%p80_p3), %s205_s24, 8 }
   0xe   : > { %s1311_s29 = scalar_lea.vmem (%p80_p3), %s1475_s1, %s1108_s25  ;;  %s1316_s30 = scalar_lea.vmem (%p80_p3), [#allocation3], %s1062_s26 }
   0xf   : > { %v304_v0 = vld [vmem:[%s1311_s29] sm:$0xff] (%p80_p3)  ;;  %v306_v1 = vld [vmem:[%s1311_s29 + $0x10] sm:$0xff] (%p80_p3) }
  0x10   : > { %v308_v2 = vld [vmem:[%s1311_s29 + $0x20] sm:$0xff] (%p80_p3)  ;;  %305 = vst [vmem:[%s1316_s30] sm:$0xff] (%p80_p3), %v304_v0  ;;  %307 = vst [vmem:[%s1316_s30 + $0x8] sm:$0xff] (%p80_p3), %v306_v1  ;;  %v310_v3 = vld [vmem:[%s1311_s29 + $0x30] sm:$0xff] (%p80_p3) }
  0x11   : > { %309 = vst [vmem:[%s1316_s30 + $0x10] sm:$0xff] %v308_v2  ;;  %v312_v4 = vld [vmem:[%s1311_s29 + $0x40] sm:$0xff]  ;;  %v314_v5 = vld [vmem:[%s1311_s29 + $0x50] sm:$0xff]  ;;  %311 = vst [vmem:[%s1316_s30 + $0x18] sm:$0xff] %v310_v3 }
  0x12   : > { %313 = vst [vmem:[%s1316_s30 + $0x20] sm:$0xff] %v312_v4  ;;  %315 = vst [vmem:[%s1316_s30 + $0x28] sm:$0xff] %v314_v5  ;;  %v316_v6 = vld [vmem:[%s1311_s29 + $0x60] sm:$0xff]  ;;  %v318_v7 = vld [vmem:[%s1311_s29 + $0x70] sm:$0xff] }
  0x13   : > { %v320_v8 = vld [vmem:[%s1311_s29 + $0x80] sm:$0xff]  ;;  %317 = vst [vmem:[%s1316_s30 + $0x30] sm:$0xff] %v316_v6  ;;  %319 = vst [vmem:[%s1316_s30 + $0x38] sm:$0xff] %v318_v7  ;;  %v322_v9 = vld [vmem:[%s1311_s29 + $0x90] sm:$0xff] }
  0x14   : > { %321 = vst [vmem:[%s1316_s30 + $0x40] sm:$0xff] %v320_v8  ;;  %v324_v10 = vld [vmem:[%s1311_s29 + $0xa0] sm:$0xff]  ;;  %v326_v11 = vld [vmem:[%s1311_s29 + $0xb0] sm:$0xff]  ;;  %323 = vst [vmem:[%s1316_s30 + $0x48] sm:$0xff] %v322_v9 }
  0x15   : > { %325 = vst [vmem:[%s1316_s30 + $0x50] sm:$0xff] %v324_v10  ;;  %327 = vst [vmem:[%s1316_s30 + $0x58] sm:$0xff] %v326_v11  ;;  %v328_v12 = vld [vmem:[%s1311_s29 + $0xc0] sm:$0xff]  ;;  %v330_v13 = vld [vmem:[%s1311_s29 + $0xd0] sm:$0xff] }
  0x16   : > { %v332_v14 = vld [vmem:[%s1311_s29 + $0xe0] sm:$0xff]  ;;  %329 = vst [vmem:[%s1316_s30 + $0x60] sm:$0xff] %v328_v12  ;;  %331 = vst [vmem:[%s1316_s30 + $0x68] sm:$0xff] %v330_v13  ;;  %v334_v15 = vld [vmem:[%s1311_s29 + $0xf0] sm:$0xff] }
  0x17   : > { %333 = vst [vmem:[%s1316_s30 + $0x70] sm:$0xff] %v332_v14  ;;  %v336_v16 = vld [vmem:[%s1311_s29 + $0x100] sm:$0xff]  ;;  %v338_v17 = vld [vmem:[%s1311_s29 + $0x110] sm:$0xff]  ;;  %335 = vst [vmem:[%s1316_s30 + $0x78] sm:$0xff] %v334_v15 }
  0x18   : > { %337 = vst [vmem:[%s1316_s30 + $0x80] sm:$0xff] %v336_v16  ;;  %339 = vst [vmem:[%s1316_s30 + $0x88] sm:$0xff] %v338_v17  ;;  %v340_v18 = vld [vmem:[%s1311_s29 + $0x120] sm:$0xff]  ;;  %v342_v19 = vld [vmem:[%s1311_s29 + $0x130] sm:$0xff] }
  0x19   : > { %v344_v20 = vld [vmem:[%s1311_s29 + $0x140] sm:$0xff]  ;;  %341 = vst [vmem:[%s1316_s30 + $0x90] sm:$0xff] %v340_v18  ;;  %343 = vst [vmem:[%s1316_s30 + $0x98] sm:$0xff] %v342_v19  ;;  %v346_v21 = vld [vmem:[%s1311_s29 + $0x150] sm:$0xff] }
  0x1a   : > { %345 = vst [vmem:[%s1316_s30 + $0xa0] sm:$0xff] %v344_v20  ;;  %v348_v22 = vld [vmem:[%s1311_s29 + $0x160] sm:$0xff]  ;;  %v350_v23 = vld [vmem:[%s1311_s29 + $0x170] sm:$0xff]  ;;  %347 = vst [vmem:[%s1316_s30 + $0xa8] sm:$0xff] %v346_v21 }
  0x1b   : > { %349 = vst [vmem:[%s1316_s30 + $0xb0] sm:$0xff] %v348_v22  ;;  %351 = vst [vmem:[%s1316_s30 + $0xb8] sm:$0xff] %v350_v23  ;;  %v352_v24 = vld [vmem:[%s1311_s29 + $0x180] sm:$0xff]  ;;  %v354_v25 = vld [vmem:[%s1311_s29 + $0x190] sm:$0xff] }
  0x1c   : > { %v356_v26 = vld [vmem:[%s1311_s29 + $0x1a0] sm:$0xff]  ;;  %353 = vst [vmem:[%s1316_s30 + $0xc0] sm:$0xff] %v352_v24  ;;  %355 = vst [vmem:[%s1316_s30 + $0xc8] sm:$0xff] %v354_v25  ;;  %v358_v27 = vld [vmem:[%s1311_s29 + $0x1b0] sm:$0xff] }
  0x1d   : > { %357 = vst [vmem:[%s1316_s30 + $0xd0] sm:$0xff] %v356_v26  ;;  %v360_v28 = vld [vmem:[%s1311_s29 + $0x1c0] sm:$0xff]  ;;  %v362_v29 = vld [vmem:[%s1311_s29 + $0x1d0] sm:$0xff]  ;;  %359 = vst [vmem:[%s1316_s30 + $0xd8] sm:$0xff] %v358_v27 }
  0x1e   : > { %361 = vst [vmem:[%s1316_s30 + $0xe0] sm:$0xff] %v360_v28  ;;  %363 = vst [vmem:[%s1316_s30 + $0xe8] sm:$0xff] %v362_v29  ;;  %v364_v30 = vld [vmem:[%s1311_s29 + $0x1e0] sm:$0xff]  ;;  %v366_v31 = vld [vmem:[%s1311_s29 + $0x1f0] sm:$0xff] }
  0x1f   : > { %365 = vst [vmem:[%s1316_s30 + $0xf0] sm:$0xff] %v364_v30  ;;  %367 = vst [vmem:[%s1316_s30 + $0xf8] sm:$0xff] %v366_v31 }
  0x20 PF: > { %p1065_p6 = scmp.ge.s32.totalorder %s1238_s19, 1  ;;  %p372_p7 = scmp.lt.s32.totalorder %s1238_s19, 3 }
  0x22   : > { %p373_p8 = pnand %p1065_p6, %p372_p7 }
  0x23   : > { %s379_s5 = sand.u32 (!%p373_p8), 1, %s1222_s15   ;;  %s1067_s10 = sshll.u32 (!%p373_p8), %s1230_s17, 1 }
  0x24   : > { %376 = sbr.rel (%p373_p8) target bundleno = 341 (0x155), region = 62  ;;  %s1066_s8 = sshll.u32 (!%p373_p8), %s379_s5, 8 }
  0x25   : > { %s1390_s9 = scalar_lea.vmem (!%p373_p8), [#allocation3], %s1066_s8  ;;  %p445_p9 = scmp.lt.s32.totalorder (!%p373_p8), %s1067_s10, 3 }
  0x29   : > { %v1385_v32 = vld.sshfl [vmem:[%s1474_s0] sm:$0x11 pattern:$0x75316420]  ;;  %v521_v33 = vlaneseq  ;;  %v1240_v34 = vmov 1966171168  }
  0x2a   : > { %v519_v35 = vunpack.c.l.s4 %v1240_v34  ;;  %v1152_v37 = vld [vmem:[%s1390_s9 + $0x74] ss:$8 sps:$4 sm:$0xff]   ;;  %v1154_v38 = vld [vmem:[%s1390_s9 + $0x70] ss:$8 sps:$4 sm:$0xff]   ;;  %v517_v39 = vcombine.high %v1385_v32, %v1385_v32  ;;  %v1155_v41 = vld [vmem:[%s1390_s9 + $0x64] ss:$8 sps:$4 sm:$0xff]  }
  0x2b   : > { %v1388_v36 = vshrl.u32 %v521_v33, 7  ;;  %694 = vmatprep.subr.bf16.mxu0 %v1152_v37  ;;  %v1157_v42 = vld [vmem:[%s1390_s9 + $0x60] ss:$8 sps:$4 sm:$0xff]   ;;  %v1158_v44 = vld [vmem:[%s1390_s9 + $0x54] ss:$8 sps:$4 sm:$0xff]   ;;  %v1241_v10 = vmov 0.0  }
  0x2c   : > { %v520_v40 = vunpack.c.0.s8 %v519_v35  ;;  %695 = vmatpush1.bf16.msra.mxu0 %v1154_v38  ;;  %v1160_v46 = vld [vmem:[%s1390_s9 + $0x50] ss:$8 sps:$4 sm:$0xff]   ;;  %v1161_v47 = vld [vmem:[%s1390_s9 + $0x44] ss:$8 sps:$4 sm:$0xff]   ;;  %v1163_v48 = vld [vmem:[%s1390_s9 + $0x40] ss:$8 sps:$4 sm:$0xff]  }
  0x2d   : > { %696 = vmatprep.subr.bf16.mxu0 %v1155_v41  ;;  %v1164_v49 = vld [vmem:[%s1390_s9 + $0x34] ss:$8 sps:$4 sm:$0xff]   ;;  %v1166_v50 = vld [vmem:[%s1390_s9 + $0x30] ss:$8 sps:$4 sm:$0xff]   ;;  %v1167_v51 = vld [vmem:[%s1390_s9 + $0x24] ss:$8 sps:$4 sm:$0xff]  }
  0x2e   : > { %v1399_v43 = vsub.s32 %v520_v40, %v1388_v36  ;;  %v1169_v52 = vld [vmem:[%s1390_s9 + $0x20] ss:$8 sps:$4 sm:$0xff]   ;;  %v1170_v53 = vld [vmem:[%s1390_s9 + $0x14] ss:$8 sps:$4 sm:$0xff]   ;;  %v1172_v54 = vld [vmem:[%s1390_s9 + $0x10] ss:$8 sps:$4 sm:$0xff]  }
  0x2f   : > { %v1173_v55 = vld [vmem:[%s1390_s9 + $0x4] ss:$8 sps:$4 sm:$0xff]   ;;  %v1175_v56 = vld [vmem:[%s1390_s9] ss:$8 sps:$4 sm:$0xff]   ;;  %v1176_v57 = vld [vmem:[%s1390_s9 + $0xf4] ss:$8 sps:$4 sm:$0xff]  }
  0x30   : > { %v531_v45 = vrot.slane %v517_v39, %v1399_v43  ;;  %697 = vmatpush1.bf16.msra.mxu0 %v1157_v42  ;;  %v1178_v58 = vld [vmem:[%s1390_s9 + $0xf0] ss:$8 sps:$4 sm:$0xff]   ;;  %v1179_v59 = vld [vmem:[%s1390_s9 + $0xe4] ss:$8 sps:$4 sm:$0xff]   ;;  %v1181_v60 = vld [vmem:[%s1390_s9 + $0xe0] ss:$8 sps:$4 sm:$0xff]   ;;  %v524_v9 = vrot.slane %v1385_v32, %v1399_v43 }
  0x31   : > { %698 = vmatprep.subr.bf16.mxu0 %v1158_v44  ;;  %v1182_v61 = vld [vmem:[%s1390_s9 + $0xd4] ss:$8 sps:$4 sm:$0xff]   ;;  %v1184_v62 = vld [vmem:[%s1390_s9 + $0xd0] ss:$8 sps:$4 sm:$0xff]   ;;  %v1185_v63 = vld [vmem:[%s1390_s9 + $0xc4] ss:$8 sps:$4 sm:$0xff]  }
  0x32   : > { %726 = vmatprep.mubr.bf16.mxu0 %v531_v45  ;;  %v1187_v0 = vld [vmem:[%s1390_s9 + $0xc0] ss:$8 sps:$4 sm:$0xff]   ;;  %v1188_v1 = vld [vmem:[%s1390_s9 + $0xb4] ss:$8 sps:$4 sm:$0xff]   ;;  %v1190_v2 = vld [vmem:[%s1390_s9 + $0xb0] ss:$8 sps:$4 sm:$0xff]  }
  0x33   : > { %v1191_v3 = vld [vmem:[%s1390_s9 + $0xa4] ss:$8 sps:$4 sm:$0xff]   ;;  %v1193_v4 = vld [vmem:[%s1390_s9 + $0xa0] ss:$8 sps:$4 sm:$0xff]   ;;  %v1194_v5 = vld [vmem:[%s1390_s9 + $0x94] ss:$8 sps:$4 sm:$0xff]  }
  0x34   : > { %699 = vmatpush1.bf16.msra.mxu0 %v1160_v46  ;;  %v1196_v6 = vld [vmem:[%s1390_s9 + $0x90] ss:$8 sps:$4 sm:$0xff]   ;;  %v1197_v7 = vld [vmem:[%s1390_s9 + $0x84] ss:$8 sps:$4 sm:$0xff]   ;;  %v1199_v8 = vld [vmem:[%s1390_s9 + $0x80] ss:$8 sps:$4 sm:$0xff]  }
  0x35   : > { %700 = vmatprep.subr.bf16.mxu0 %v1161_v47  ;;  %474 = vst [vmem:[#allocation2] sm:$0xf] %v1241_v10  ;;  %v1242_v11 = vmov 1983009808   ;;  %vm788_vm0 = vcmp.lt.s32.totalorder %v1388_v36, 2  ;;  %vm791_vm1 = vcmask 1041408  }
  0x36   : > { %v739_v12 = vunpack.c.l.s4 %v1242_v11  ;;  %s1486_s10 = smov (!%p445_p9, %s1067_s10), 3  ;;  %vm826_vm2 = vcmp.lt.s32.totalorder %v521_v33, 256 }
  0x37   : > { %s449_s13 = scalar_lea.vmem %s1476_s2, %s1486_s10  ;;  %s458_s17 = scalar_lea.vmem %s1477_s3, %s1486_s10 }
  0x38   : > { %701 = vmatpush1.bf16.msra.mxu0 %v1163_v48  ;;  %v740_v13 = vunpack.c.0.s8 %v739_v12  ;;  %s467_s24 = scalar_lea.vmem %s1478_s4, %s1486_s10 }
  0x39   : > { %702 = vmatprep.subr.bf16.mxu0 %v1164_v49 }
  0x3a   : > { %v743_v15 = vsub.s32 %v740_v13, %v1388_v36 }
  0x3c   : > { %703 = vmatpush1.bf16.msra.mxu0 %v1166_v50  ;;  %v475_v18 = vld [vmem:[#allocation2] sm:$0xf] }
  0x3d   : > { %704 = vmatprep.subr.bf16.mxu0 %v1167_v51 }
  0x40   : > { %705 = vmatpush1.bf16.msra.mxu0 %v1169_v52 }
  0x41   : > { %706 = vmatprep.subr.bf16.mxu0 %v1170_v53 }
  0x44   : > { %707 = vmatpush1.bf16.msra.mxu0 %v1172_v54 }
  0x45   : > { %708 = vmatprep.subr.bf16.mxu0 %v1173_v55 }
  0x48   : > { %709 = vmatpush1.bf16.msra.mxu0 %v1175_v56 }
  0x49   : > { %710 = vmatprep.subr.bf16.mxu0 %v1176_v57 }
  0x4c   : > { %711 = vmatpush2.bf16.msra.mxu0 %v1178_v58 }
  0x4d   : > { %712 = vmatprep.subr.bf16.mxu0 %v1179_v59 }
  0x50   : > { %713 = vmatpush2.bf16.msra.mxu0 %v1181_v60 }
  0x51   : > { %714 = vmatprep.subr.bf16.mxu0 %v1182_v61 }
  0x54   : > { %715 = vmatpush2.bf16.msra.mxu0 %v1184_v62 }
  0x55   : > { %716 = vmatprep.subr.bf16.mxu0 %v1185_v63 }
  0x58   : > { %717 = vmatpush2.bf16.msra.mxu0 %v1187_v0 }
  0x59   : > { %718 = vmatprep.subr.bf16.mxu0 %v1188_v1 }
  0x5c   : > { %719 = vmatpush2.bf16.msra.mxu0 %v1190_v2 }
  0x5d   : > { %720 = vmatprep.subr.bf16.mxu0 %v1191_v3 }
  0x60   : > { %721 = vmatpush2.bf16.msra.mxu0 %v1193_v4 }
  0x61   : > { %722 = vmatprep.subr.bf16.mxu0 %v1194_v5 }
  0x64   : > { %723 = vmatpush2.bf16.msra.mxu0 %v1196_v6 }
  0x65   : > { %724 = vmatprep.subr.bf16.mxu0 %v1197_v7 }
  0x68   : > { %725 = vmatpush2.bf16.msra.mxu0 %v1199_v8 }
  0x6b   : > { %727 = vmatmul.mubr.bf16.vlgmr.msra.gmra.mxu0 %v524_v9 }
 0x12b   : > { %v728_v14 = vpop.f32.mrf.mxu0 }
 0x12d   : > { %v730_v16 = vpop.f32.mrf.mxu0 }
 0x12e   : > { %v737_v17 = vcombine.low %v728_v14, %v730_v16 }
 0x12f   : > { %v732_v19 = vpop.f32.mrf.mxu0 }
 0x130   : > { %v744_v20 = vrot.slane %v737_v17, %v743_v15 }
 0x131   : > { %v733_v21 = vpop.f32.mrf.mxu0 }
 0x132   : > { %v746_v22 = vadd.f32 %v744_v20, %v475_v18 }
 0x134   : > { %747 = vst [vmem:[#allocation2] sm:$0xf] %v746_v22 }
 0x13b   : > { %v1103_v23 = vld.sshfl [vmem:[#allocation2] sm:$0x33 pattern:$0x76325410] }
 0x13c   : > { %v760_v24 = vcombine.high %v1103_v23, %v1103_v23  ;;  %v789_v25 = vsel %vm788_vm0, %v1103_v23, 0.0 }
 0x13d   : > { %v792_v26 = vsel %vm791_vm1, %v789_v25, 0.0  ;;  %v829_v27 = vmul.f32 %v789_v25, %v789_v25 }
 0x13e   : > { %v1104_v28 = vpack.c.bf16 %v760_v24, %v1103_v23  ;;  %v790_v29 = vsel %vm788_vm0, %v760_v24, 0.0  ;;  %v793_v30 = vrot.slane %v792_v26, 4 }
 0x13f   : > { %v799_v31 = vsel %vm791_vm1, %v790_v29, 0.0  ;;  %v830_v32 = vmul.f32 %v790_v29, %v790_v29  ;;  %v831_v34 = vsel %vm791_vm1, %v829_v27, 0.0 }
 0x140   : > { %v774_v35 = vrot.slane %v1104_v28, %v1399_v43  ;;  %v794_v36 = vadd.f32 %v793_v30, %v792_v26  ;;  %v800_v37 = vrot.slane %v799_v31, 4  ;;  %v832_v38 = vrot.slane %v831_v34, 4 }
 0x141   : > { %v838_v39 = vsel %vm791_vm1, %v830_v32, 0.0 }
 0x142   : > { %1105 = vst.sshfl [vmem:[%s449_s13] sm:$0x5 pattern:$0x73625140] %v774_v35  ;;  %v795_v40 = vrot.slane %v794_v36, 2  ;;  %v801_v41 = vadd.f32 %v800_v37, %v799_v31  ;;  %v833_v42 = vadd.f32 %v832_v38, %v831_v34  ;;  %v839_v44 = vrot.slane %v838_v39, 4 }
 0x144   : > { %v796_v45 = vadd.f32 %v795_v40, %v794_v36  ;;  %v802_v46 = vrot.slane %v801_v41, 2  ;;  %v834_v47 = vrot.slane %v833_v42, 2  ;;  %v840_v48 = vadd.f32 %v839_v44, %v838_v39 }
 0x146   : > { %v797_v49 = vrot.slane %v796_v45, 1  ;;  %v803_v50 = vadd.f32 %v802_v46, %v801_v41  ;;  %v835_v51 = vadd.f32 %v834_v47, %v833_v42  ;;  %v841_v52 = vrot.slane %v840_v48, 2 }
 0x148   : > { %v804_v53 = vrot.slane %v803_v50, 1  ;;  %v836_v54 = vrot.slane %v835_v51, 1  ;;  %v842_v55 = vadd.f32 %v841_v52, %v840_v48  ;;  %v798_v56 = vadd.f32 %v797_v49, %v796_v45 }
 0x14a   : > { %v805_v57 = vadd.f32 %v804_v53, %v803_v50  ;;  %v843_v58 = vrot.slane %v842_v55, 1  ;;  %v837_v60 = vadd.f32 %v836_v54, %v835_v51 }
 0x14c   : > { %v808_v59 = vcombine.low %v798_v56, %v805_v57  ;;  %v844_v61 = vadd.f32 %v843_v58, %v842_v55 }
 0x14e   : > { %v815_v62 = vrot.slane %v808_v59, %v1399_v43  ;;  %v847_v63 = vcombine.low %v837_v60, %v844_v61 }
 0x150   : > { %v822_v0 = vrot.slane %v815_v62, %v1399_v43  ;;  %v854_v1 = vrot.slane %v847_v63, %v1399_v43 }
 0x152   : > { %828 = vst.msk [vmem:[%s458_s17] sm:$0x3] %vm826_vm2, %v822_v0  ;;  %v861_v2 = vrot.slane %v854_v1, %v1399_v43 }
 0x154   : > { %863 = vst.msk [vmem:[%s467_s24] sm:$0x3] %vm826_vm2, %v861_v2 }
 0x155 PF: > { %s15_s19 = sadd.s32 1, %s1238_s19   ;;  %s1479_s15 = smov %s1226_s16 }
 0x156   : > { %p12_p10 = scmp.ge.s32.totalorder %s15_s19, 4   ;;  %s1480_s16 = smov %s1303_s23 }
 0x157   : > { %s1481_s17 = smov %s1234_s18  ;;  %s1482_s18 = smov %s1484_s20 }
 0x158   :  { %14 = sbr.rel (!%p12_p10) target bundleno = 3 (0x3), region = 136 }

// kernel: resnet18_forward.78
= control target key start
LH: loop header
LB: loop body
LE: loop exit
PB: predicated region body
PF: predicated region fallthrough
CT: control target
= control target key end

     0   :  { %v18_v0 = vlaneseq  ;;  %v155_v1 = vmov 1983009808   ;;  %v156_v31 = vmov 1966171168   ;;  %s189_s1 = inlined_call_operand.vmem [shape: f32[1,512], index: 1, kind: input, shape index: {}]   ;;  %s190_s2 = inlined_call_operand.vmem [shape: f32[1,512], index: 2, kind: input, shape index: {}]   ;;  %s191_s0 = inlined_call_operand.vmem [shape: bf16[2,512], index: 0, kind: input, shape index: {}]   ;;  %s192_s3 = inlined_call_operand.vmem [shape: bf16[2,512], index: 3, kind: output, shape index: {}]  }
   0x1   :  { %v37_v2 = vunpack.c.l.s4 %v155_v1  ;;  %v16_v4 = vld [vmem:[%s189_s1] sm:$0xf]  ;;  %v123_v32 = vunpack.c.l.s4 %v156_v31 }
   0x2   :  { %v19_v3 = vshrl.u32 %v18_v0, 7  ;;  %v53_v10 = vld [vmem:[%s190_s2] sm:$0xf] }
   0x3   :  { %v38_v5 = vunpack.c.0.s8 %v37_v2  ;;  %v14_v16 = vld [vmem:[%s191_s0] sm:$0xf]  ;;  %v124_v36 = vunpack.c.0.s8 %v123_v32 }
   0x4   :  { %v20_v6 = vsub.s32 0, %v19_v3  ;;  %v24_v7 = vsub.s32 1, %v19_v3  ;;  %v28_v8 = vsub.s32 2, %v19_v3  ;;  %v32_v9 = vsub.s32 3, %v19_v3 }
   0x5   :  { %v41_v11 = vsub.s32 %v38_v5, %v19_v3  ;;  %v15_v25 = vunpack.c.l.bf16 %v14_v16  ;;  %v127_v41 = vsub.s32 %v124_v36, %v19_v3 }
   0x6   :  { %v21_v12 = vrot.slane %v16_v4, %v20_v6  ;;  %v25_v13 = vrot.slane %v16_v4, %v24_v7  ;;  %v29_v14 = vrot.slane %v16_v4, %v28_v8  ;;  %v33_v15 = vrot.slane %v16_v4, %v32_v9 }
   0x7   :  { %v58_v17 = vrot.slane %v53_v10, %v20_v6  ;;  %v62_v18 = vrot.slane %v53_v10, %v24_v7  ;;  %v66_v19 = vrot.slane %v53_v10, %v28_v8  ;;  %v70_v20 = vrot.slane %v53_v10, %v32_v9 }
   0x8   :  { %v34_v21 = vcombine.low %v21_v12, %v25_v13  ;;  %v35_v22 = vcombine.low %v29_v14, %v33_v15 }
   0x9   :  { %v71_v23 = vcombine.low %v58_v17, %v62_v18  ;;  %v72_v24 = vcombine.low %v66_v19, %v70_v20 }
   0xa   :  { %v42_v26 = vrot.slane %v34_v21, %v41_v11  ;;  %v49_v27 = vrot.slane %v35_v22, %v41_v11 }
   0xb   :  { %v79_v28 = vrot.slane %v71_v23, %v41_v11  ;;  %v86_v29 = vrot.slane %v72_v24, %v41_v11 }
   0xc   :  { %v50_v30 = vcombine.low %v42_v26, %v49_v27 }
   0xd   :  { %v87_v33 = vcombine.low %v79_v28, %v86_v29 }
   0xe   :  { %v52_v34 = vmul.f32 %v50_v30, %v15_v25 }
  0x10   :  { %v89_v35 = vadd.f32 %v87_v33, %v52_v34 }
  0x12   :  { %v91_v37 = vcombine.high %v89_v35, %v89_v35  ;;  %v98_v38 = vrot.slane %v89_v35, %v41_v11 }
  0x14   :  { %v105_v39 = vrot.slane %v91_v37, %v41_v11  ;;  %v106_v40 = vcombine.high %v98_v38, %v98_v38 }
  0x16   :  { %v107_v42 = vcombine.high %v105_v39, %v105_v39  ;;  %v150_v43 = vpack.c.bf16 %v106_v40, %v98_v38 }
  0x18   :  { %v151_v44 = vpack.c.bf16 %v107_v42, %v105_v39  ;;  %v128_v45 = vrot.slane %v150_v43, %v127_v41 }
  0x1a   :  { %v135_v46 = vrot.slane %v151_v44, %v127_v41 }
  0x1c   :  { %v136_v47 = vcombine.low %v128_v45, %v135_v46 }
  0x1e   :  { %152 = vst.sshfl [vmem:[%s192_s3] sm:$0x55 pattern:$0x73625140] %v136_v47 }

// kernel: resnet18_forward.88
= control target key start
LH: loop header
LB: loop body
LE: loop exit
PB: predicated region body
PF: predicated region fallthrough
CT: control target
= control target key end

     0   :  { %v20_v0 = vlaneseq  ;;  %v196_v1 = vmov 1983009808   ;;  %v197_v33 = vmov 1966171168   ;;  %s235_s0 = inlined_call_operand.vmem [shape: bf16[2,1,1,9,512], index: 0, kind: input, shape index: {}, may-alias: {0,4}]   ;;  %s236_s1 = inlined_call_operand.vmem [shape: bf16[2,512], index: 1, kind: input, shape index: {}]   ;;  %s237_s2 = inlined_call_operand.vmem [shape: f32[1,512], index: 2, kind: input, shape index: {}]   ;;  %s238_s3 = inlined_call_operand.vmem [shape: f32[1,512], index: 3, kind: input, shape index: {}]   ;;  %s239_s4 = inlined_call_operand.vmem [shape: bf16[2,1,1,9,512], index: 4, kind: output, shape index: {}, may-alias: {0,4}]  }
   0x1   :  { %v39_v2 = vunpack.c.l.s4 %v196_v1  ;;  %v18_v4 = vld [vmem:[%s237_s2] sm:$0xf]  ;;  %v126_v34 = vunpack.c.l.s4 %v197_v33 }
   0x2   :  { %v21_v3 = vshrl.u32 %v20_v0, 7  ;;  %v55_v10 = vld [vmem:[%s238_s3] sm:$0xf] }
   0x3   :  { %v40_v5 = vunpack.c.0.s8 %v39_v2  ;;  %v16_v16 = vld [vmem:[%s236_s1] sm:$0xf]  ;;  %v127_v37 = vunpack.c.0.s8 %v126_v34 }
   0x4   :  { %v22_v6 = vsub.s32 0, %v21_v3  ;;  %v26_v7 = vsub.s32 1, %v21_v3  ;;  %v30_v8 = vsub.s32 2, %v21_v3  ;;  %v34_v9 = vsub.s32 3, %v21_v3 }
   0x5   :  { %v43_v11 = vsub.s32 %v40_v5, %v21_v3  ;;  %v17_v25 = vunpack.c.l.bf16 %v16_v16  ;;  %v130_v42 = vsub.s32 %v127_v37, %v21_v3 }
   0x6   :  { %v23_v12 = vrot.slane %v18_v4, %v22_v6  ;;  %v27_v13 = vrot.slane %v18_v4, %v26_v7  ;;  %v31_v14 = vrot.slane %v18_v4, %v30_v8  ;;  %v35_v15 = vrot.slane %v18_v4, %v34_v9 }
   0x7   :  { %v60_v17 = vrot.slane %v55_v10, %v22_v6  ;;  %v64_v18 = vrot.slane %v55_v10, %v26_v7  ;;  %v68_v19 = vrot.slane %v55_v10, %v30_v8  ;;  %v72_v20 = vrot.slane %v55_v10, %v34_v9 }
   0x8   :  { %v36_v21 = vcombine.low %v23_v12, %v27_v13  ;;  %v37_v22 = vcombine.low %v31_v14, %v35_v15 }
   0x9   :  { %v73_v23 = vcombine.low %v60_v17, %v64_v18  ;;  %v74_v24 = vcombine.low %v68_v19, %v72_v20 }
   0xa   :  { %v44_v26 = vrot.slane %v36_v21, %v43_v11  ;;  %v51_v27 = vrot.slane %v37_v22, %v43_v11 }
   0xb   :  { %v81_v28 = vrot.slane %v73_v23, %v43_v11  ;;  %v88_v29 = vrot.slane %v74_v24, %v43_v11 }
   0xc   :  { %v52_v30 = vcombine.low %v44_v26, %v51_v27 }
   0xd   :  { %v89_v31 = vcombine.low %v81_v28, %v88_v29 }
   0xe   :  { %v54_v32 = vmul.f32 %v52_v30, %v17_v25 }
  0x10   :  { %v91_v35 = vadd.f32 %v89_v31, %v54_v32 }
  0x12   :  { %v92_v36 = vmax.f32 %v91_v35, 0.0 }
  0x14   :  { %v94_v38 = vcombine.high %v92_v36, %v92_v36  ;;  %v101_v39 = vrot.slane %v92_v36, %v43_v11 }
  0x16   :  { %v108_v40 = vrot.slane %v94_v38, %v43_v11  ;;  %v109_v41 = vcombine.high %v101_v39, %v101_v39 }
  0x18   :  { %v110_v43 = vcombine.high %v108_v40, %v108_v40  ;;  %v190_v44 = vpack.c.bf16 %v109_v41, %v101_v39 }
  0x1a   :  { %v191_v45 = vpack.c.bf16 %v110_v43, %v108_v40  ;;  %v131_v46 = vrot.slane %v190_v44, %v130_v42 }
  0x1c   :  { %v138_v47 = vrot.slane %v191_v45, %v130_v42 }
  0x1e   :  { %v139_v48 = vcombine.low %v131_v46, %v138_v47 }
  0x20   :  { %192 = vst.sshfl [vmem:[#allocation2] sm:$0x55 pattern:$0x73625140] %v139_v48 }
  0x27   :  { %v167_v49 = vld [vmem:[#allocation2] sm:$0xf] }
  0x28   :  { %193 = vst [vmem:[%s239_s4 + $0x10] sm:$0xf] %v167_v49 }

// kernel: resnet18_forward.76
= control target key start
LH: loop header
LB: loop body
LE: loop exit
PB: predicated region body
PF: predicated region fallthrough
CT: control target
= control target key end

     0   :  { %s1549_s15 = smov 0   ;;  %s1551_s16 = smov 0   ;;  %s1843_s0 = inlined_call_operand.vmem [shape: bf16[2,2304], index: 0, kind: input, shape index: {}]   ;;  %s1844_s1 = inlined_call_operand.vmem [shape: bf16[2304,512], index: 1, kind: input, shape index: {}]   ;;  %s1845_s2 = inlined_call_operand.vmem [shape: bf16[2,512], index: 2, kind: output, shape index: {0}]   ;;  %s1846_s3 = inlined_call_operand.vmem [shape: f32[1,1,512], index: 3, kind: output, shape index: {1}]   ;;  %s1847_s4 = inlined_call_operand.vmem [shape: f32[1,1,512], index: 4, kind: output, shape index: {2}]  }
   0x1   :  { %s1553_s17 = smov 0   ;;  %s1555_s18 = smov 0  }
   0x2   :  { %s1557_s19 = smov 0   ;;  %s1559_s20 = smov 0  }
   0x3   :  { %s1561_s21 = smov 0  }
   0x4 LB: > { %s27_s22 = sadd.s32 1, %s1510_s19  ;;  %s30_s23 = sadd.s32 1, %s1514_s20  ;;  %s1518_s21 = sphi %s1561_s21, %s15_s21   ;;  %s1514_s20 = sphi %s1559_s20, %s1853_s20   ;;  %s1510_s19 = sphi %s1557_s19, %s1852_s19   ;;  %s1506_s18 = sphi %s1555_s18, %s1851_s18   ;;  %s1502_s17 = sphi %s1553_s17, %s1850_s17   ;;  %s1498_s16 = sphi %s1551_s16, %s1849_s16   ;;  %s1494_s15 = sphi %s1549_s15, %s1848_s15  }
   0x5   : > { %p28_p0 = scmp.ge.s32.totalorder %s27_s22, 6  ;;  %p78_p1 = scmp.ne.s32.totalorder %s1498_s16, %s1494_s15 }
   0x6   : > { %p79_p2 = scmp.eq.s32.totalorder %s1518_s21, 0  ;;  %s71_s27 = sadd.s32 1, %s1498_s16 }
   0x7   : > { %s1855_s22 = smov (%p28_p0, %s27_s22), 0  ;;  %s1857_s23 = smov (!%p28_p0, %s30_s23), %s1514_s20 }
   0x8   : > { %p80_p3 = por %p79_p2, %p78_p1  ;;  %p32_p4 = scmp.ge.s32.totalorder %s1857_s23, 2 }
   0x9   : > { %s66_s24 = ssub.s32 %s1510_s19, %s1855_s22  ;;  %p1265_p6 = scmp.ge.s32.totalorder %s1518_s21, 12 }
   0xa   : > { %s1859_s23 = smov (%p32_p4, %s1857_s23), 0 }
   0xb   : > { %s67_s25 = ssub.s32 %s1514_s20, %s1859_s23  ;;  %188 = sbr.rel (%p1265_p6) target bundleno = 48 (0x30), region = 16 }
   0xc   : > { %s68_s26 = sor.u32 %s67_s25, %s66_s24 }
   0xd   : > { %p69_p5 = scmp.eq.s32.totalorder %s68_s26, 0 }
   0xf   : > { %s1600_s28 = scalar_select %p69_p5, %s1498_s16, %s71_s27  }
  0x10   : > { %203 = sbr.rel (!%p80_p3) target bundleno = 48 (0x30), region = 24  ;;  %s205_s29 = sand.u32 (%p80_p3), 1, %s1498_s16  }
  0x11   : > { %s1330_s30 = smul.u32 (%p80_p3), 384, %s205_s29  ;;  %s1266_s5 = sshll.u32 (%p80_p3), %s1514_s20, 1 }
  0x12   : > { %s1329_s6 = smul.u32 (%p80_p3), 192, %s1510_s19 }
  0x13   : > { %s1614_s12 = scalar_lea.vmem (%p80_p3), [#allocation3], %s1330_s30 }
  0x14   : > { %s211_s7 = sadd.s32 (%p80_p3), %s1329_s6, %s1266_s5 }
  0x15   : > { %s1268_s8 = sshll.u32 %s211_s7, 2 }
  0x16   : > { %s1609_s11 = scalar_lea.vmem %s1844_s1, %s1268_s8 }
  0x17   : > { %v336_v0 = vld [vmem:[%s1609_s11] sm:$0xff]  ;;  %v338_v1 = vld [vmem:[%s1609_s11 + $0x10] sm:$0xff] }
  0x18   : > { %v340_v2 = vld [vmem:[%s1609_s11 + $0x20] sm:$0xff]  ;;  %337 = vst [vmem:[%s1614_s12] sm:$0xff] %v336_v0  ;;  %339 = vst [vmem:[%s1614_s12 + $0x8] sm:$0xff] %v338_v1  ;;  %v342_v3 = vld [vmem:[%s1609_s11 + $0x30] sm:$0xff] }
  0x19   : > { %341 = vst [vmem:[%s1614_s12 + $0x10] sm:$0xff] %v340_v2  ;;  %v344_v4 = vld [vmem:[%s1609_s11 + $0x40] sm:$0xff]  ;;  %v346_v5 = vld [vmem:[%s1609_s11 + $0x50] sm:$0xff]  ;;  %343 = vst [vmem:[%s1614_s12 + $0x18] sm:$0xff] %v342_v3 }
  0x1a   : > { %345 = vst [vmem:[%s1614_s12 + $0x20] sm:$0xff] %v344_v4  ;;  %347 = vst [vmem:[%s1614_s12 + $0x28] sm:$0xff] %v346_v5  ;;  %v348_v6 = vld [vmem:[%s1609_s11 + $0x60] sm:$0xff]  ;;  %v350_v7 = vld [vmem:[%s1609_s11 + $0x70] sm:$0xff] }
  0x1b   : > { %v352_v8 = vld [vmem:[%s1609_s11 + $0x80] sm:$0xff]  ;;  %349 = vst [vmem:[%s1614_s12 + $0x30] sm:$0xff] %v348_v6  ;;  %351 = vst [vmem:[%s1614_s12 + $0x38] sm:$0xff] %v350_v7  ;;  %v354_v9 = vld [vmem:[%s1609_s11 + $0x90] sm:$0xff] }
  0x1c   : > { %353 = vst [vmem:[%s1614_s12 + $0x40] sm:$0xff] %v352_v8  ;;  %v356_v10 = vld [vmem:[%s1609_s11 + $0xa0] sm:$0xff]  ;;  %v358_v11 = vld [vmem:[%s1609_s11 + $0xb0] sm:$0xff]  ;;  %355 = vst [vmem:[%s1614_s12 + $0x48] sm:$0xff] %v354_v9 }
  0x1d   : > { %357 = vst [vmem:[%s1614_s12 + $0x50] sm:$0xff] %v356_v10  ;;  %359 = vst [vmem:[%s1614_s12 + $0x58] sm:$0xff] %v358_v11  ;;  %v360_v12 = vld [vmem:[%s1609_s11 + $0xc0] sm:$0xff]  ;;  %v362_v13 = vld [vmem:[%s1609_s11 + $0xd0] sm:$0xff] }
  0x1e   : > { %v364_v14 = vld [vmem:[%s1609_s11 + $0xe0] sm:$0xff]  ;;  %361 = vst [vmem:[%s1614_s12 + $0x60] sm:$0xff] %v360_v12  ;;  %363 = vst [vmem:[%s1614_s12 + $0x68] sm:$0xff] %v362_v13  ;;  %v366_v15 = vld [vmem:[%s1609_s11 + $0xf0] sm:$0xff] }
  0x1f   : > { %365 = vst [vmem:[%s1614_s12 + $0x70] sm:$0xff] %v364_v14  ;;  %v368_v16 = vld [vmem:[%s1609_s11 + $0x100] sm:$0xff]  ;;  %v370_v17 = vld [vmem:[%s1609_s11 + $0x110] sm:$0xff]  ;;  %367 = vst [vmem:[%s1614_s12 + $0x78] sm:$0xff] %v366_v15 }
  0x20   : > { %369 = vst [vmem:[%s1614_s12 + $0x80] sm:$0xff] %v368_v16  ;;  %371 = vst [vmem:[%s1614_s12 + $0x88] sm:$0xff] %v370_v17  ;;  %v372_v18 = vld [vmem:[%s1609_s11 + $0x120] sm:$0xff]  ;;  %v374_v19 = vld [vmem:[%s1609_s11 + $0x130] sm:$0xff] }
  0x21   : > { %v376_v20 = vld [vmem:[%s1609_s11 + $0x140] sm:$0xff]  ;;  %373 = vst [vmem:[%s1614_s12 + $0x90] sm:$0xff] %v372_v18  ;;  %375 = vst [vmem:[%s1614_s12 + $0x98] sm:$0xff] %v374_v19  ;;  %v378_v21 = vld [vmem:[%s1609_s11 + $0x150] sm:$0xff] }
  0x22   : > { %377 = vst [vmem:[%s1614_s12 + $0xa0] sm:$0xff] %v376_v20  ;;  %v380_v22 = vld [vmem:[%s1609_s11 + $0x160] sm:$0xff]  ;;  %v382_v23 = vld [vmem:[%s1609_s11 + $0x170] sm:$0xff]  ;;  %379 = vst [vmem:[%s1614_s12 + $0xa8] sm:$0xff] %v378_v21 }
  0x23   : > { %381 = vst [vmem:[%s1614_s12 + $0xb0] sm:$0xff] %v380_v22  ;;  %383 = vst [vmem:[%s1614_s12 + $0xb8] sm:$0xff] %v382_v23  ;;  %v384_v24 = vld [vmem:[%s1609_s11 + $0x180] sm:$0xff]  ;;  %v386_v25 = vld [vmem:[%s1609_s11 + $0x190] sm:$0xff] }
  0x24   : > { %v388_v26 = vld [vmem:[%s1609_s11 + $0x1a0] sm:$0xff]  ;;  %385 = vst [vmem:[%s1614_s12 + $0xc0] sm:$0xff] %v384_v24  ;;  %387 = vst [vmem:[%s1614_s12 + $0xc8] sm:$0xff] %v386_v25  ;;  %v390_v27 = vld [vmem:[%s1609_s11 + $0x1b0] sm:$0xff] }
  0x25   : > { %389 = vst [vmem:[%s1614_s12 + $0xd0] sm:$0xff] %v388_v26  ;;  %v392_v28 = vld [vmem:[%s1609_s11 + $0x1c0] sm:$0xff]  ;;  %v394_v29 = vld [vmem:[%s1609_s11 + $0x1d0] sm:$0xff]  ;;  %391 = vst [vmem:[%s1614_s12 + $0xd8] sm:$0xff] %v390_v27 }
  0x26   : > { %393 = vst [vmem:[%s1614_s12 + $0xe0] sm:$0xff] %v392_v28  ;;  %395 = vst [vmem:[%s1614_s12 + $0xe8] sm:$0xff] %v394_v29  ;;  %v396_v30 = vld [vmem:[%s1609_s11 + $0x1e0] sm:$0xff]  ;;  %v398_v31 = vld [vmem:[%s1609_s11 + $0x1f0] sm:$0xff] }
  0x27   : > { %v400_v32 = vld [vmem:[%s1609_s11 + $0x200] sm:$0xff]  ;;  %397 = vst [vmem:[%s1614_s12 + $0xf0] sm:$0xff] %v396_v30  ;;  %399 = vst [vmem:[%s1614_s12 + $0xf8] sm:$0xff] %v398_v31  ;;  %v402_v33 = vld [vmem:[%s1609_s11 + $0x210] sm:$0xff] }
  0x28   : > { %401 = vst [vmem:[%s1614_s12 + $0x100] sm:$0xff] %v400_v32  ;;  %v404_v34 = vld [vmem:[%s1609_s11 + $0x220] sm:$0xff]  ;;  %v406_v35 = vld [vmem:[%s1609_s11 + $0x230] sm:$0xff]  ;;  %403 = vst [vmem:[%s1614_s12 + $0x108] sm:$0xff] %v402_v33 }
  0x29   : > { %405 = vst [vmem:[%s1614_s12 + $0x110] sm:$0xff] %v404_v34  ;;  %407 = vst [vmem:[%s1614_s12 + $0x118] sm:$0xff] %v406_v35  ;;  %v408_v36 = vld [vmem:[%s1609_s11 + $0x240] sm:$0xff]  ;;  %v410_v37 = vld [vmem:[%s1609_s11 + $0x250] sm:$0xff] }
  0x2a   : > { %v412_v38 = vld [vmem:[%s1609_s11 + $0x260] sm:$0xff]  ;;  %409 = vst [vmem:[%s1614_s12 + $0x120] sm:$0xff] %v408_v36  ;;  %411 = vst [vmem:[%s1614_s12 + $0x128] sm:$0xff] %v410_v37  ;;  %v414_v39 = vld [vmem:[%s1609_s11 + $0x270] sm:$0xff] }
  0x2b   : > { %413 = vst [vmem:[%s1614_s12 + $0x130] sm:$0xff] %v412_v38  ;;  %v416_v40 = vld [vmem:[%s1609_s11 + $0x280] sm:$0xff]  ;;  %v418_v41 = vld [vmem:[%s1609_s11 + $0x290] sm:$0xff]  ;;  %415 = vst [vmem:[%s1614_s12 + $0x138] sm:$0xff] %v414_v39 }
  0x2c   : > { %417 = vst [vmem:[%s1614_s12 + $0x140] sm:$0xff] %v416_v40  ;;  %419 = vst [vmem:[%s1614_s12 + $0x148] sm:$0xff] %v418_v41  ;;  %v420_v42 = vld [vmem:[%s1609_s11 + $0x2a0] sm:$0xff]  ;;  %v422_v43 = vld [vmem:[%s1609_s11 + $0x2b0] sm:$0xff] }
  0x2d   : > { %v424_v44 = vld [vmem:[%s1609_s11 + $0x2c0] sm:$0xff]  ;;  %421 = vst [vmem:[%s1614_s12 + $0x150] sm:$0xff] %v420_v42  ;;  %423 = vst [vmem:[%s1614_s12 + $0x158] sm:$0xff] %v422_v43  ;;  %v426_v45 = vld [vmem:[%s1609_s11 + $0x2d0] sm:$0xff] }
  0x2e   : > { %425 = vst [vmem:[%s1614_s12 + $0x160] sm:$0xff] %v424_v44  ;;  %v428_v46 = vld [vmem:[%s1609_s11 + $0x2e0] sm:$0xff]  ;;  %v430_v47 = vld [vmem:[%s1609_s11 + $0x2f0] sm:$0xff]  ;;  %427 = vst [vmem:[%s1614_s12 + $0x168] sm:$0xff] %v426_v45 }
  0x2f   : > { %429 = vst [vmem:[%s1614_s12 + $0x170] sm:$0xff] %v428_v46  ;;  %431 = vst [vmem:[%s1614_s12 + $0x178] sm:$0xff] %v430_v47 }
  0x30 PF: > { %p1269_p7 = scmp.ge.s32.totalorder %s1518_s21, 1  ;;  %p436_p8 = scmp.lt.s32.totalorder %s1518_s21, 13 }
  0x32   : > { %p437_p9 = pnand %p1269_p7, %p436_p8 }
  0x33   : > { %s443_s13 = sand.u32 (!%p437_p9), 1, %s1494_s15   ;;  %s495_s14 = smul.u32 (!%p437_p9), 3, %s1502_s17 }
  0x34   : > { %440 = sbr.rel (%p437_p9) target bundleno = 368 (0x170), region = 62  ;;  %s1270_s25 = sshll.u32 (!%p437_p9), %s1506_s18, 1 }
  0x35   : > { %s1331_s24 = smul.u32 (!%p437_p9), 384, %s443_s13  ;;  %p498_p10 = scmp.lt.s32.totalorder (!%p437_p9), %s495_s14, 17 }
  0x36   : > { %p509_p11 = scmp.lt.s32.totalorder (!%p437_p9), %s1270_s25, 3  ;;  %p1273_p12 = scmp.ne.s32.totalorder (!%p437_p9), %s1502_s17, 0 }
  0x37   : > { %s1734_s11 = scalar_lea.vmem (!%p437_p9), [#allocation3], %s1331_s24 }
  0x39   : > { %s1861_s14 = smov (!%p498_p10, %s495_s14), 17  ;;  %s1863_s25 = smov (!%p509_p11, %s1270_s25), 3 }
  0x3a   : > { %s502_s29 = scalar_lea.vmem %s1843_s0, %s1861_s14  ;;  %s513_s15 = scalar_lea.vmem %s1845_s2, %s1863_s25 }
  0x3b   : > { %s522_s7 = scalar_lea.vmem %s1846_s3, %s1863_s25  ;;  %s531_s10 = scalar_lea.vmem %s1847_s4, %s1863_s25 }
  0x3c   : > { %538 = sbr.rel (%p1273_p12) target bundleno = 67 (0x43), region = 70 }
  0x41   : > { %v1520_v48 = vmov 0.0  }
  0x42   : > { %539 = vst [vmem:[#allocation2] sm:$0xf] %v1520_v48 }
  0x43 PF: > { %v1392_v49 = vld [vmem:[%s1734_s11 + $0x74] ss:$8 sps:$4 sm:$0xff]   ;;  %v1394_v50 = vld [vmem:[%s1734_s11 + $0x70] ss:$8 sps:$4 sm:$0xff]   ;;  %v1521_v51 = vmov 0   ;;  %v602_v12 = vlaneseq  ;;  %p1323_p13 = scmp.ne.s32.totalorder %s1502_s17, 5 }
  0x44   : > { %930 = vmatprep.mubr.bf16.mxu1 %v1521_v51  ;;  %857 = vmatprep.subr.bf16.mxu0 %v1392_v49  ;;  %v1395_v52 = vld [vmem:[%s1734_s11 + $0x64] ss:$8 sps:$4 sm:$0xff]   ;;  %v1397_v53 = vld [vmem:[%s1734_s11 + $0x60] ss:$8 sps:$4 sm:$0xff]   ;;  %v1398_v54 = vld [vmem:[%s1734_s11 + $0x54] ss:$8 sps:$4 sm:$0xff]  }
  0x45   : > { %858 = vmatpush1.bf16.msra.mxu0 %v1394_v50  ;;  %v1400_v55 = vld [vmem:[%s1734_s11 + $0x50] ss:$8 sps:$4 sm:$0xff]   ;;  %v1401_v56 = vld [vmem:[%s1734_s11 + $0x44] ss:$8 sps:$4 sm:$0xff]   ;;  %v1413_v57 = vld [vmem:[%s1734_s11 + $0x174] ss:$8 sps:$4 sm:$0xff]  }
  0x46   : > { %859 = vmatprep.subr.bf16.mxu0 %v1395_v52  ;;  %v1415_v58 = vld [vmem:[%s1734_s11 + $0x170] ss:$8 sps:$4 sm:$0xff]   ;;  %v1403_v59 = vld [vmem:[%s1734_s11 + $0x40] ss:$8 sps:$4 sm:$0xff]   ;;  %v1404_v60 = vld [vmem:[%s1734_s11 + $0x34] ss:$8 sps:$4 sm:$0xff]   ;;  %898 = vmatprep.subr.bf16.mxu1 %v1413_v57 }
  0x47   : > { %v1419_v61 = vld [vmem:[%s1734_s11 + $0x164] ss:$8 sps:$4 sm:$0xff]   ;;  %899 = vmatpush1.bf16.msra.mxu1 %v1415_v58  ;;  %v1421_v62 = vld [vmem:[%s1734_s11 + $0x160] ss:$8 sps:$4 sm:$0xff]   ;;  %v1406_v63 = vld [vmem:[%s1734_s11 + $0x30] ss:$8 sps:$4 sm:$0xff]  }
  0x48   : > { %900 = vmatprep.subr.bf16.mxu1 %v1419_v61  ;;  %v1425_v0 = vld [vmem:[%s1734_s11 + $0x154] ss:$8 sps:$4 sm:$0xff]   ;;  %v1407_v1 = vld [vmem:[%s1734_s11 + $0x24] ss:$8 sps:$4 sm:$0xff]   ;;  %v1427_v2 = vld [vmem:[%s1734_s11 + $0x150] ss:$8 sps:$4 sm:$0xff]  }
  0x49   : > { %860 = vmatpush1.bf16.msra.mxu0 %v1397_v53  ;;  %v1431_v3 = vld [vmem:[%s1734_s11 + $0x144] ss:$8 sps:$4 sm:$0xff]   ;;  %v1409_v4 = vld [vmem:[%s1734_s11 + $0x20] ss:$8 sps:$4 sm:$0xff]   ;;  %v1410_v5 = vld [vmem:[%s1734_s11 + $0x14] ss:$8 sps:$4 sm:$0xff]  }
  0x4a   : > { %861 = vmatprep.subr.bf16.mxu0 %v1398_v54  ;;  %v1433_v6 = vld [vmem:[%s1734_s11 + $0x140] ss:$8 sps:$4 sm:$0xff]   ;;  %v1437_v7 = vld [vmem:[%s1734_s11 + $0x134] ss:$8 sps:$4 sm:$0xff]   ;;  %v1412_v8 = vld [vmem:[%s1734_s11 + $0x10] ss:$8 sps:$4 sm:$0xff]  }
  0x4b   : > { %901 = vmatpush1.bf16.msra.mxu1 %v1421_v62  ;;  %v1416_v9 = vld [vmem:[%s1734_s11 + $0x4] ss:$8 sps:$4 sm:$0xff]   ;;  %v1522_v10 = vmov 1966171168   ;;  %v1439_v13 = vld [vmem:[%s1734_s11 + $0x130] ss:$8 sps:$4 sm:$0xff]  }
  0x4c   : > { %902 = vmatprep.subr.bf16.mxu1 %v1425_v0  ;;  %v600_v11 = vunpack.c.l.s4 %v1522_v10  ;;  %v1443_v14 = vld [vmem:[%s1734_s11 + $0x124] ss:$8 sps:$4 sm:$0xff]   ;;  %v1418_v15 = vld [vmem:[%s1734_s11] ss:$8 sps:$4 sm:$0xff]   ;;  %v1422_v16 = vld [vmem:[%s1734_s11 + $0xf4] ss:$8 sps:$4 sm:$0xff]  }
  0x4d   : > { %862 = vmatpush1.bf16.msra.mxu0 %v1400_v55  ;;  %v1766_v18 = vshrl.u32 %v602_v12, 7  ;;  %v1445_v19 = vld [vmem:[%s1734_s11 + $0x120] ss:$8 sps:$4 sm:$0xff]   ;;  %v1424_v20 = vld [vmem:[%s1734_s11 + $0xf0] ss:$8 sps:$4 sm:$0xff]  }
  0x4e   : > { %863 = vmatprep.subr.bf16.mxu0 %v1401_v56  ;;  %v601_v17 = vunpack.c.0.s8 %v600_v11  ;;  %v1449_v21 = vld [vmem:[%s1734_s11 + $0x114] ss:$8 sps:$4 sm:$0xff]   ;;  %v1428_v23 = vld [vmem:[%s1734_s11 + $0xe4] ss:$8 sps:$4 sm:$0xff]   ;;  %v1451_v26 = vld [vmem:[%s1734_s11 + $0x110] ss:$8 sps:$4 sm:$0xff]  }
  0x4f   : > { %903 = vmatpush1.bf16.msra.mxu1 %v1427_v2  ;;  %v1274_v22 = vld.sshfl [vmem:[%s502_s29] sm:$0x13 pattern:$0x75316420]  ;;  %v1455_v27 = vld [vmem:[%s1734_s11 + $0x104] ss:$8 sps:$4 sm:$0xff]  }
  0x50   : > { %904 = vmatprep.subr.bf16.mxu1 %v1431_v3  ;;  %v1778_v24 = vsub.s32 %v601_v17, %v1766_v18  ;;  %v598_v25 = vcombine.high %v1274_v22, %v1274_v22  ;;  %v1430_v29 = vld [vmem:[%s1734_s11 + $0xe0] ss:$8 sps:$4 sm:$0xff]   ;;  %v1434_v30 = vld [vmem:[%s1734_s11 + $0xd4] ss:$8 sps:$4 sm:$0xff]   ;;  %v1436_v33 = vld [vmem:[%s1734_s11 + $0xd0] ss:$8 sps:$4 sm:$0xff]  }
  0x51   : > { %864 = vmatpush1.bf16.msra.mxu0 %v1403_v59  ;;  %v1457_v32 = vld [vmem:[%s1734_s11 + $0x100] ss:$8 sps:$4 sm:$0xff]   ;;  %v1440_v34 = vld [vmem:[%s1734_s11 + $0xc4] ss:$8 sps:$4 sm:$0xff]   ;;  %v1446_v37 = vld [vmem:[%s1734_s11 + $0xb4] ss:$8 sps:$4 sm:$0xff]  }
  0x52   : > { %865 = vmatprep.subr.bf16.mxu0 %v1404_v60  ;;  %v612_v28 = vrot.slane %v598_v25, %v1778_v24  ;;  %v605_v31 = vrot.slane %v1274_v22, %v1778_v24  ;;  %v1442_v36 = vld [vmem:[%s1734_s11 + $0xc0] ss:$8 sps:$4 sm:$0xff]   ;;  %v1448_v38 = vld [vmem:[%s1734_s11 + $0xb0] ss:$8 sps:$4 sm:$0xff]   ;;  %v1452_v39 = vld [vmem:[%s1734_s11 + $0xa4] ss:$8 sps:$4 sm:$0xff]  }
  0x53   : > { %905 = vmatpush1.bf16.msra.mxu1 %v1433_v6  ;;  %v1454_v40 = vld [vmem:[%s1734_s11 + $0xa0] ss:$8 sps:$4 sm:$0xff]   ;;  %v1458_v41 = vld [vmem:[%s1734_s11 + $0x94] ss:$8 sps:$4 sm:$0xff]   ;;  %v1460_v42 = vld [vmem:[%s1734_s11 + $0x90] ss:$8 sps:$4 sm:$0xff]  }
  0x54   : > { %906 = vmatprep.subr.bf16.mxu1 %v1437_v7  ;;  %889 = vmatprep.mubr.bf16.mxu0 %v612_v28  ;;  %v613_v35 = vcombine.high %v605_v31, %v605_v31  ;;  %v1461_v43 = vld [vmem:[%s1734_s11 + $0x84] ss:$8 sps:$4 sm:$0xff]   ;;  %v1463_v44 = vld [vmem:[%s1734_s11 + $0x80] ss:$8 sps:$4 sm:$0xff]   ;;  %v1523_v49 = vmov 1983009808  }
  0x55   : > { %866 = vmatpush1.bf16.msra.mxu0 %v1406_v63  ;;  %v943_v50 = vunpack.c.l.s4 %v1523_v49  ;;  %v540_v59 = vld [vmem:[#allocation2] sm:$0xf] }
  0x56   : > { %867 = vmatprep.subr.bf16.mxu0 %v1407_v1 }
  0x57   : > { %907 = vmatpush1.bf16.msra.mxu1 %v1439_v13  ;;  %v944_v51 = vunpack.c.0.s8 %v943_v50 }
  0x58   : > { %908 = vmatprep.subr.bf16.mxu1 %v1443_v14 }
  0x59   : > { %868 = vmatpush1.bf16.msra.mxu0 %v1409_v4  ;;  %v947_v56 = vsub.s32 %v944_v51, %v1766_v18 }
  0x5a   : > { %869 = vmatprep.subr.bf16.mxu0 %v1410_v5 }
  0x5b   : > { %909 = vmatpush1.bf16.msra.mxu1 %v1445_v19 }
  0x5c   : > { %910 = vmatprep.subr.bf16.mxu1 %v1449_v21 }
  0x5d   : > { %870 = vmatpush1.bf16.msra.mxu0 %v1412_v8 }
  0x5e   : > { %871 = vmatprep.subr.bf16.mxu0 %v1416_v9 }
  0x5f   : > { %911 = vmatpush1.bf16.msra.mxu1 %v1451_v26 }
  0x60   : > { %912 = vmatprep.subr.bf16.mxu1 %v1455_v27 }
  0x61   : > { %872 = vmatpush1.bf16.msra.mxu0 %v1418_v15 }
  0x62   : > { %873 = vmatprep.subr.bf16.mxu0 %v1422_v16 }
  0x63   : > { %913 = vmatpush1.bf16.msra.mxu1 %v1457_v32 }
  0x65   : > { %874 = vmatpush2.bf16.msra.mxu0 %v1424_v20 }
  0x66   : > { %875 = vmatprep.subr.bf16.mxu0 %v1428_v23  ;;  %931 = vmatmul.mubr.bf16.vlgmr.msra.gmra.mxu1 %v613_v35 }
  0x69   : > { %876 = vmatpush2.bf16.msra.mxu0 %v1430_v29 }
  0x6a   : > { %877 = vmatprep.subr.bf16.mxu0 %v1434_v30 }
  0x6d   : > { %878 = vmatpush2.bf16.msra.mxu0 %v1436_v33 }
  0x6e   : > { %879 = vmatprep.subr.bf16.mxu0 %v1440_v34 }
  0x71   : > { %880 = vmatpush2.bf16.msra.mxu0 %v1442_v36 }
  0x72   : > { %881 = vmatprep.subr.bf16.mxu0 %v1446_v37 }
  0x75   : > { %882 = vmatpush2.bf16.msra.mxu0 %v1448_v38 }
  0x76   : > { %883 = vmatprep.subr.bf16.mxu0 %v1452_v39 }
  0x79   : > { %884 = vmatpush2.bf16.msra.mxu0 %v1454_v40 }
  0x7a   : > { %885 = vmatprep.subr.bf16.mxu0 %v1458_v41 }
  0x7d   : > { %886 = vmatpush2.bf16.msra.mxu0 %v1460_v42 }
  0x7e   : > { %887 = vmatprep.subr.bf16.mxu0 %v1461_v43 }
  0x81   : > { %888 = vmatpush2.bf16.msra.mxu0 %v1463_v44 }
  0x84   : > { %890 = vmatmul.mubr.bf16.vlgmr.msra.gmra.mxu0 %v605_v31 }
 0x126   : > { %v932_v45 = vpop.f32.mrf.mxu1 }
 0x128   : > { %v934_v46 = vpop.f32.mrf.mxu1 }
 0x12a   : > { %v936_v47 = vpop.f32.mrf.mxu1 }
 0x12c   : > { %v937_v48 = vpop.f32.mrf.mxu1 }
 0x144   : > { %v891_v52 = vpop.f32.mrf.mxu0 }
 0x145   : > { %v933_v54 = vadd.f32 %v932_v45, %v891_v52 }
 0x146   : > { %v893_v53 = vpop.f32.mrf.mxu0 }
 0x147   : > { %v935_v55 = vadd.f32 %v934_v46, %v893_v53 }
 0x148   : > { %v895_v57 = vpop.f32.mrf.mxu0 }
 0x149   : > { %v941_v58 = vcombine.low %v933_v54, %v935_v55 }
 0x14a   : > { %v896_v60 = vpop.f32.mrf.mxu0 }
 0x14b   : > { %v948_v61 = vrot.slane %v941_v58, %v947_v56  ;;  %955 = sbr.rel (%p1323_p13) target bundleno = 368 (0x170), region = 74 }
 0x14d   : > { %v950_v62 = vadd.f32 %v948_v61, %v540_v59 }
 0x14f   : > { %951 = vst [vmem:[#allocation2] sm:$0xf] %v950_v62 }
 0x150   : > { %vm993_vm0 = vcmp.lt.s32.totalorder %v1766_v18, 2  ;;  %vm996_vm1 = vcmask 1041408   ;;  %vm1031_vm2 = vcmp.lt.s32.totalorder %v602_v12, 256 }
 0x156   : > { %v1324_v63 = vld.sshfl [vmem:[#allocation2] sm:$0x33 pattern:$0x76325410] }
 0x157   : > { %v965_v0 = vcombine.high %v1324_v63, %v1324_v63  ;;  %v994_v1 = vsel %vm993_vm0, %v1324_v63, 0.0 }
 0x158   : > { %v997_v2 = vsel %vm996_vm1, %v994_v1, 0.0  ;;  %v1034_v3 = vmul.f32 %v994_v1, %v994_v1 }
 0x159   : > { %v1325_v4 = vpack.c.bf16 %v965_v0, %v1324_v63  ;;  %v995_v5 = vsel %vm993_vm0, %v965_v0, 0.0  ;;  %v998_v6 = vrot.slane %v997_v2, 4 }
 0x15a   : > { %v1004_v7 = vsel %vm996_vm1, %v995_v5, 0.0  ;;  %v1035_v8 = vmul.f32 %v995_v5, %v995_v5  ;;  %v1036_v9 = vsel %vm996_vm1, %v1034_v3, 0.0 }
 0x15b   : > { %v979_v10 = vrot.slane %v1325_v4, %v1778_v24  ;;  %v999_v11 = vadd.f32 %v998_v6, %v997_v2  ;;  %v1005_v13 = vrot.slane %v1004_v7, 4  ;;  %v1037_v14 = vrot.slane %v1036_v9, 4 }
 0x15c   : > { %v1043_v15 = vsel %vm996_vm1, %v1035_v8, 0.0 }
 0x15d   : > { %1326 = vst.sshfl [vmem:[%s513_s15] sm:$0x5 pattern:$0x73625140] %v979_v10  ;;  %v1006_v16 = vadd.f32 %v1005_v13, %v1004_v7  ;;  %v1044_v17 = vrot.slane %v1043_v15, 4  ;;  %v1000_v18 = vrot.slane %v999_v11, 2  ;;  %v1038_v19 = vadd.f32 %v1037_v14, %v1036_v9 }
 0x15f   : > { %v1001_v20 = vadd.f32 %v1000_v18, %v999_v11  ;;  %v1007_v21 = vrot.slane %v1006_v16, 2  ;;  %v1039_v22 = vrot.slane %v1038_v19, 2  ;;  %v1045_v23 = vadd.f32 %v1044_v17, %v1043_v15 }
 0x161   : > { %v1002_v25 = vrot.slane %v1001_v20, 1  ;;  %v1008_v26 = vadd.f32 %v1007_v21, %v1006_v16  ;;  %v1040_v27 = vadd.f32 %v1039_v22, %v1038_v19  ;;  %v1046_v28 = vrot.slane %v1045_v23, 2 }
 0x163   : > { %v1003_v29 = vadd.f32 %v1002_v25, %v1001_v20  ;;  %v1009_v30 = vrot.slane %v1008_v26, 1  ;;  %v1041_v31 = vrot.slane %v1040_v27, 1  ;;  %v1047_v32 = vadd.f32 %v1046_v28, %v1045_v23 }
 0x165   : > { %v1010_v33 = vadd.f32 %v1009_v30, %v1008_v26  ;;  %v1042_v34 = vadd.f32 %v1041_v31, %v1040_v27  ;;  %v1048_v35 = vrot.slane %v1047_v32, 1 }
 0x167   : > { %v1013_v36 = vcombine.low %v1003_v29, %v1010_v33  ;;  %v1049_v37 = vadd.f32 %v1048_v35, %v1047_v32 }
 0x169   : > { %v1020_v38 = vrot.slane %v1013_v36, %v1778_v24  ;;  %v1052_v39 = vcombine.low %v1042_v34, %v1049_v37 }
 0x16b   : > { %v1027_v40 = vrot.slane %v1020_v38, %v1778_v24  ;;  %v1059_v41 = vrot.slane %v1052_v39, %v1778_v24 }
 0x16d   : > { %1033 = vst.msk [vmem:[%s522_s7] sm:$0x3] %vm1031_vm2, %v1027_v40  ;;  %v1066_v42 = vrot.slane %v1059_v41, %v1778_v24 }
 0x16f   : > { %1068 = vst.msk [vmem:[%s531_s10] sm:$0x3] %vm1031_vm2, %v1066_v42 }
 0x170 PF: > { %s15_s21 = sadd.s32 1, %s1518_s21   ;;  %s1848_s15 = smov %s1498_s16 }
 0x171   : > { %p12_p0 = scmp.ge.s32.totalorder %s15_s21, 14   ;;  %s1849_s16 = smov %s1600_s28 }
 0x172   : > { %s1850_s17 = smov %s1510_s19  ;;  %s1851_s18 = smov %s1514_s20 }
 0x173   : > { %s1852_s19 = smov %s1855_s22  ;;  %s1853_s20 = smov %s1859_s23 }
 0x174   :  { %14 = sbr.rel (!%p12_p0) target bundleno = 4 (0x4), region = 136 }

// kernel: resnet18_forward.79
= control target key start
LH: loop header
LB: loop body
LE: loop exit
PB: predicated region body
PF: predicated region fallthrough
CT: control target
= control target key end

     0   :  { %s1750_s15 = smov 0   ;;  %s1752_s16 = smov 0   ;;  %s2092_s0 = inlined_call_operand.vmem [shape: bf16[2,4608], index: 0, kind: input, shape index: {}]   ;;  %s2093_s1 = inlined_call_operand.vmem [shape: bf16[4608,512], index: 1, kind: input, shape index: {}]   ;;  %s2094_s2 = inlined_call_operand.vmem [shape: bf16[2,512], index: 2, kind: output, shape index: {0}]   ;;  %s2095_s3 = inlined_call_operand.vmem [shape: f32[1,1,512], index: 3, kind: output, shape index: {1}]   ;;  %s2096_s4 = inlined_call_operand.vmem [shape: f32[1,1,512], index: 4, kind: output, shape index: {2}]  }
   0x1   :  { %s1754_s17 = smov 0   ;;  %s1756_s18 = smov 0  }
   0x2   :  { %s1758_s19 = smov 0   ;;  %s1760_s20 = smov 0  }
   0x3   :  { %s1762_s21 = smov 0  }
   0x4 LB: > { %s27_s22 = sadd.s32 1, %s1712_s19  ;;  %s30_s23 = sadd.s32 1, %s1716_s20  ;;  %s1720_s21 = sphi %s1762_s21, %s15_s21   ;;  %s1716_s20 = sphi %s1760_s20, %s2102_s20   ;;  %s1712_s19 = sphi %s1758_s19, %s2101_s19   ;;  %s1708_s18 = sphi %s1756_s18, %s2100_s18   ;;  %s1704_s17 = sphi %s1754_s17, %s2099_s17   ;;  %s1700_s16 = sphi %s1752_s16, %s2098_s16   ;;  %s1696_s15 = sphi %s1750_s15, %s2097_s15  }
   0x5   : > { %p28_p0 = scmp.ge.s32.totalorder %s27_s22, 9  ;;  %p78_p1 = scmp.ne.s32.totalorder %s1700_s16, %s1696_s15 }
   0x6   : > { %p79_p2 = scmp.eq.s32.totalorder %s1720_s21, 0  ;;  %s71_s27 = sadd.s32 1, %s1700_s16 }
   0x7   : > { %s2104_s22 = smov (%p28_p0, %s27_s22), 0  ;;  %s2106_s23 = smov (!%p28_p0, %s30_s23), %s1716_s20 }
   0x8   : > { %p80_p3 = por %p79_p2, %p78_p1  ;;  %p32_p4 = scmp.ge.s32.totalorder %s2106_s23, 2 }
   0x9   : > { %s66_s24 = ssub.s32 %s1712_s19, %s2104_s22  ;;  %p1426_p6 = scmp.ge.s32.totalorder %s1720_s21, 18 }
   0xa   : > { %s2108_s23 = smov (%p32_p4, %s2106_s23), 0 }
   0xb   : > { %s67_s25 = ssub.s32 %s1716_s20, %s2108_s23  ;;  %188 = sbr.rel (%p1426_p6) target bundleno = 55 (0x37), region = 16 }
   0xc   : > { %s68_s26 = sor.u32 %s67_s25, %s66_s24 }
   0xd   : > { %p69_p5 = scmp.eq.s32.totalorder %s68_s26, 0 }
   0xf   : > { %s1801_s28 = scalar_select %p69_p5, %s1700_s16, %s71_s27  }
  0x10   : > { %203 = sbr.rel (!%p80_p3) target bundleno = 55 (0x37), region = 24  ;;  %s205_s29 = sand.u32 (%p80_p3), 1, %s1700_s16  }
  0x11   : > { %s1429_s30 = sshll.u32 (%p80_p3), %s1716_s20, 1  ;;  %s1427_s5 = sshll.u32 (%p80_p3), %s205_s29, 9 }
  0x12   : > { %s1510_s6 = sshll.u32 (%p80_p3), %s1712_s19, 8  ;;  %s1815_s12 = scalar_lea.vmem (%p80_p3), [#allocation3], %s1427_s5 }
  0x13   : > { %s211_s7 = sadd.s32 (%p80_p3), %s1510_s6, %s1429_s30 }
  0x14   : > { %s1431_s8 = sshll.u32 (%p80_p3), %s211_s7, 2 }
  0x15   : > { %s1810_s11 = scalar_lea.vmem %s2093_s1, %s1431_s8 }
  0x16   : > { %v368_v0 = vld [vmem:[%s1810_s11] sm:$0xff]  ;;  %v370_v1 = vld [vmem:[%s1810_s11 + $0x10] sm:$0xff] }
  0x17   : > { %v372_v2 = vld [vmem:[%s1810_s11 + $0x20] sm:$0xff]  ;;  %369 = vst [vmem:[%s1815_s12] sm:$0xff] %v368_v0  ;;  %371 = vst [vmem:[%s1815_s12 + $0x8] sm:$0xff] %v370_v1  ;;  %v374_v3 = vld [vmem:[%s1810_s11 + $0x30] sm:$0xff] }
  0x18   : > { %373 = vst [vmem:[%s1815_s12 + $0x10] sm:$0xff] %v372_v2  ;;  %v376_v4 = vld [vmem:[%s1810_s11 + $0x40] sm:$0xff]  ;;  %v378_v5 = vld [vmem:[%s1810_s11 + $0x50] sm:$0xff]  ;;  %375 = vst [vmem:[%s1815_s12 + $0x18] sm:$0xff] %v374_v3 }
  0x19   : > { %377 = vst [vmem:[%s1815_s12 + $0x20] sm:$0xff] %v376_v4  ;;  %379 = vst [vmem:[%s1815_s12 + $0x28] sm:$0xff] %v378_v5  ;;  %v380_v6 = vld [vmem:[%s1810_s11 + $0x60] sm:$0xff]  ;;  %v382_v7 = vld [vmem:[%s1810_s11 + $0x70] sm:$0xff] }
  0x1a   : > { %v384_v8 = vld [vmem:[%s1810_s11 + $0x80] sm:$0xff]  ;;  %381 = vst [vmem:[%s1815_s12 + $0x30] sm:$0xff] %v380_v6  ;;  %383 = vst [vmem:[%s1815_s12 + $0x38] sm:$0xff] %v382_v7  ;;  %v386_v9 = vld [vmem:[%s1810_s11 + $0x90] sm:$0xff] }
  0x1b   : > { %385 = vst [vmem:[%s1815_s12 + $0x40] sm:$0xff] %v384_v8  ;;  %v388_v10 = vld [vmem:[%s1810_s11 + $0xa0] sm:$0xff]  ;;  %v390_v11 = vld [vmem:[%s1810_s11 + $0xb0] sm:$0xff]  ;;  %387 = vst [vmem:[%s1815_s12 + $0x48] sm:$0xff] %v386_v9 }
  0x1c   : > { %389 = vst [vmem:[%s1815_s12 + $0x50] sm:$0xff] %v388_v10  ;;  %391 = vst [vmem:[%s1815_s12 + $0x58] sm:$0xff] %v390_v11  ;;  %v392_v12 = vld [vmem:[%s1810_s11 + $0xc0] sm:$0xff]  ;;  %v394_v13 = vld [vmem:[%s1810_s11 + $0xd0] sm:$0xff] }
  0x1d   : > { %v396_v14 = vld [vmem:[%s1810_s11 + $0xe0] sm:$0xff]  ;;  %393 = vst [vmem:[%s1815_s12 + $0x60] sm:$0xff] %v392_v12  ;;  %395 = vst [vmem:[%s1815_s12 + $0x68] sm:$0xff] %v394_v13  ;;  %v398_v15 = vld [vmem:[%s1810_s11 + $0xf0] sm:$0xff] }
  0x1e   : > { %397 = vst [vmem:[%s1815_s12 + $0x70] sm:$0xff] %v396_v14  ;;  %v400_v16 = vld [vmem:[%s1810_s11 + $0x100] sm:$0xff]  ;;  %v402_v17 = vld [vmem:[%s1810_s11 + $0x110] sm:$0xff]  ;;  %399 = vst [vmem:[%s1815_s12 + $0x78] sm:$0xff] %v398_v15 }
  0x1f   : > { %401 = vst [vmem:[%s1815_s12 + $0x80] sm:$0xff] %v400_v16  ;;  %403 = vst [vmem:[%s1815_s12 + $0x88] sm:$0xff] %v402_v17  ;;  %v404_v18 = vld [vmem:[%s1810_s11 + $0x120] sm:$0xff]  ;;  %v406_v19 = vld [vmem:[%s1810_s11 + $0x130] sm:$0xff] }
  0x20   : > { %v408_v20 = vld [vmem:[%s1810_s11 + $0x140] sm:$0xff]  ;;  %405 = vst [vmem:[%s1815_s12 + $0x90] sm:$0xff] %v404_v18  ;;  %407 = vst [vmem:[%s1815_s12 + $0x98] sm:$0xff] %v406_v19  ;;  %v410_v21 = vld [vmem:[%s1810_s11 + $0x150] sm:$0xff] }
  0x21   : > { %409 = vst [vmem:[%s1815_s12 + $0xa0] sm:$0xff] %v408_v20  ;;  %v412_v22 = vld [vmem:[%s1810_s11 + $0x160] sm:$0xff]  ;;  %v414_v23 = vld [vmem:[%s1810_s11 + $0x170] sm:$0xff]  ;;  %411 = vst [vmem:[%s1815_s12 + $0xa8] sm:$0xff] %v410_v21 }
  0x22   : > { %413 = vst [vmem:[%s1815_s12 + $0xb0] sm:$0xff] %v412_v22  ;;  %415 = vst [vmem:[%s1815_s12 + $0xb8] sm:$0xff] %v414_v23  ;;  %v416_v24 = vld [vmem:[%s1810_s11 + $0x180] sm:$0xff]  ;;  %v418_v25 = vld [vmem:[%s1810_s11 + $0x190] sm:$0xff] }
  0x23   : > { %v420_v26 = vld [vmem:[%s1810_s11 + $0x1a0] sm:$0xff]  ;;  %417 = vst [vmem:[%s1815_s12 + $0xc0] sm:$0xff] %v416_v24  ;;  %419 = vst [vmem:[%s1815_s12 + $0xc8] sm:$0xff] %v418_v25  ;;  %v422_v27 = vld [vmem:[%s1810_s11 + $0x1b0] sm:$0xff] }
  0x24   : > { %421 = vst [vmem:[%s1815_s12 + $0xd0] sm:$0xff] %v420_v26  ;;  %v424_v28 = vld [vmem:[%s1810_s11 + $0x1c0] sm:$0xff]  ;;  %v426_v29 = vld [vmem:[%s1810_s11 + $0x1d0] sm:$0xff]  ;;  %423 = vst [vmem:[%s1815_s12 + $0xd8] sm:$0xff] %v422_v27 }
  0x25   : > { %425 = vst [vmem:[%s1815_s12 + $0xe0] sm:$0xff] %v424_v28  ;;  %427 = vst [vmem:[%s1815_s12 + $0xe8] sm:$0xff] %v426_v29  ;;  %v428_v30 = vld [vmem:[%s1810_s11 + $0x1e0] sm:$0xff]  ;;  %v430_v31 = vld [vmem:[%s1810_s11 + $0x1f0] sm:$0xff] }
  0x26   : > { %v432_v32 = vld [vmem:[%s1810_s11 + $0x200] sm:$0xff]  ;;  %429 = vst [vmem:[%s1815_s12 + $0xf0] sm:$0xff] %v428_v30  ;;  %431 = vst [vmem:[%s1815_s12 + $0xf8] sm:$0xff] %v430_v31  ;;  %v434_v33 = vld [vmem:[%s1810_s11 + $0x210] sm:$0xff] }
  0x27   : > { %433 = vst [vmem:[%s1815_s12 + $0x100] sm:$0xff] %v432_v32  ;;  %v436_v34 = vld [vmem:[%s1810_s11 + $0x220] sm:$0xff]  ;;  %v438_v35 = vld [vmem:[%s1810_s11 + $0x230] sm:$0xff]  ;;  %435 = vst [vmem:[%s1815_s12 + $0x108] sm:$0xff] %v434_v33 }
  0x28   : > { %437 = vst [vmem:[%s1815_s12 + $0x110] sm:$0xff] %v436_v34  ;;  %439 = vst [vmem:[%s1815_s12 + $0x118] sm:$0xff] %v438_v35  ;;  %v440_v36 = vld [vmem:[%s1810_s11 + $0x240] sm:$0xff]  ;;  %v442_v37 = vld [vmem:[%s1810_s11 + $0x250] sm:$0xff] }
  0x29   : > { %v444_v38 = vld [vmem:[%s1810_s11 + $0x260] sm:$0xff]  ;;  %441 = vst [vmem:[%s1815_s12 + $0x120] sm:$0xff] %v440_v36  ;;  %443 = vst [vmem:[%s1815_s12 + $0x128] sm:$0xff] %v442_v37  ;;  %v446_v39 = vld [vmem:[%s1810_s11 + $0x270] sm:$0xff] }
  0x2a   : > { %445 = vst [vmem:[%s1815_s12 + $0x130] sm:$0xff] %v444_v38  ;;  %v448_v40 = vld [vmem:[%s1810_s11 + $0x280] sm:$0xff]  ;;  %v450_v41 = vld [vmem:[%s1810_s11 + $0x290] sm:$0xff]  ;;  %447 = vst [vmem:[%s1815_s12 + $0x138] sm:$0xff] %v446_v39 }
  0x2b   : > { %449 = vst [vmem:[%s1815_s12 + $0x140] sm:$0xff] %v448_v40  ;;  %451 = vst [vmem:[%s1815_s12 + $0x148] sm:$0xff] %v450_v41  ;;  %v452_v42 = vld [vmem:[%s1810_s11 + $0x2a0] sm:$0xff]  ;;  %v454_v43 = vld [vmem:[%s1810_s11 + $0x2b0] sm:$0xff] }
  0x2c   : > { %v456_v44 = vld [vmem:[%s1810_s11 + $0x2c0] sm:$0xff]  ;;  %453 = vst [vmem:[%s1815_s12 + $0x150] sm:$0xff] %v452_v42  ;;  %455 = vst [vmem:[%s1815_s12 + $0x158] sm:$0xff] %v454_v43  ;;  %v458_v45 = vld [vmem:[%s1810_s11 + $0x2d0] sm:$0xff] }
  0x2d   : > { %457 = vst [vmem:[%s1815_s12 + $0x160] sm:$0xff] %v456_v44  ;;  %v460_v46 = vld [vmem:[%s1810_s11 + $0x2e0] sm:$0xff]  ;;  %v462_v47 = vld [vmem:[%s1810_s11 + $0x2f0] sm:$0xff]  ;;  %459 = vst [vmem:[%s1815_s12 + $0x168] sm:$0xff] %v458_v45 }
  0x2e   : > { %461 = vst [vmem:[%s1815_s12 + $0x170] sm:$0xff] %v460_v46  ;;  %463 = vst [vmem:[%s1815_s12 + $0x178] sm:$0xff] %v462_v47  ;;  %v464_v48 = vld [vmem:[%s1810_s11 + $0x300] sm:$0xff]  ;;  %v466_v49 = vld [vmem:[%s1810_s11 + $0x310] sm:$0xff] }
  0x2f   : > { %v468_v50 = vld [vmem:[%s1810_s11 + $0x320] sm:$0xff]  ;;  %465 = vst [vmem:[%s1815_s12 + $0x180] sm:$0xff] %v464_v48  ;;  %467 = vst [vmem:[%s1815_s12 + $0x188] sm:$0xff] %v466_v49  ;;  %v470_v51 = vld [vmem:[%s1810_s11 + $0x330] sm:$0xff] }
  0x30   : > { %469 = vst [vmem:[%s1815_s12 + $0x190] sm:$0xff] %v468_v50  ;;  %v472_v52 = vld [vmem:[%s1810_s11 + $0x340] sm:$0xff]  ;;  %v474_v53 = vld [vmem:[%s1810_s11 + $0x350] sm:$0xff]  ;;  %471 = vst [vmem:[%s1815_s12 + $0x198] sm:$0xff] %v470_v51 }
  0x31   : > { %473 = vst [vmem:[%s1815_s12 + $0x1a0] sm:$0xff] %v472_v52  ;;  %475 = vst [vmem:[%s1815_s12 + $0x1a8] sm:$0xff] %v474_v53  ;;  %v476_v54 = vld [vmem:[%s1810_s11 + $0x360] sm:$0xff]  ;;  %v478_v55 = vld [vmem:[%s1810_s11 + $0x370] sm:$0xff] }
  0x32   : > { %v480_v56 = vld [vmem:[%s1810_s11 + $0x380] sm:$0xff]  ;;  %477 = vst [vmem:[%s1815_s12 + $0x1b0] sm:$0xff] %v476_v54  ;;  %479 = vst [vmem:[%s1815_s12 + $0x1b8] sm:$0xff] %v478_v55  ;;  %v482_v57 = vld [vmem:[%s1810_s11 + $0x390] sm:$0xff] }
  0x33   : > { %481 = vst [vmem:[%s1815_s12 + $0x1c0] sm:$0xff] %v480_v56  ;;  %v484_v58 = vld [vmem:[%s1810_s11 + $0x3a0] sm:$0xff]  ;;  %v486_v59 = vld [vmem:[%s1810_s11 + $0x3b0] sm:$0xff]  ;;  %483 = vst [vmem:[%s1815_s12 + $0x1c8] sm:$0xff] %v482_v57 }
  0x34   : > { %485 = vst [vmem:[%s1815_s12 + $0x1d0] sm:$0xff] %v484_v58  ;;  %487 = vst [vmem:[%s1815_s12 + $0x1d8] sm:$0xff] %v486_v59  ;;  %v488_v60 = vld [vmem:[%s1810_s11 + $0x3c0] sm:$0xff]  ;;  %v490_v61 = vld [vmem:[%s1810_s11 + $0x3d0] sm:$0xff] }
  0x35   : > { %v492_v62 = vld [vmem:[%s1810_s11 + $0x3e0] sm:$0xff]  ;;  %489 = vst [vmem:[%s1815_s12 + $0x1e0] sm:$0xff] %v488_v60  ;;  %491 = vst [vmem:[%s1815_s12 + $0x1e8] sm:$0xff] %v490_v61  ;;  %v494_v63 = vld [vmem:[%s1810_s11 + $0x3f0] sm:$0xff] }
  0x36   : > { %493 = vst [vmem:[%s1815_s12 + $0x1f0] sm:$0xff] %v492_v62  ;;  %495 = vst [vmem:[%s1815_s12 + $0x1f8] sm:$0xff] %v494_v63 }
  0x37 PF: > { %p1432_p7 = scmp.ge.s32.totalorder %s1720_s21, 1  ;;  %p500_p8 = scmp.lt.s32.totalorder %s1720_s21, 19 }
  0x39   : > { %p501_p9 = pnand %p1432_p7, %p500_p8 }
  0x3a   : > { %s507_s13 = sand.u32 (!%p501_p9), 1, %s1696_s15   ;;  %s1434_s14 = sshll.u32 (!%p501_p9), %s1704_s17, 2 }
  0x3b   : > { %504 = sbr.rel (%p501_p9) target bundleno = 376 (0x178), region = 62  ;;  %s1433_s24 = sshll.u32 (!%p501_p9), %s507_s13, 9 }
  0x3c   : > { %p562_p10 = scmp.lt.s32.totalorder (!%p501_p9), %s1434_s14, 35  ;;  %s1435_s25 = sshll.u32 (!%p501_p9), %s1708_s18, 1 }
  0x3d   : > { %p573_p11 = scmp.lt.s32.totalorder (!%p501_p9), %s1435_s25, 3  ;;  %s1967_s11 = scalar_lea.vmem (!%p501_p9), [#allocation3], %s1433_s24 }
  0x3e   : > { %p1438_p12 = scmp.ne.s32.totalorder (!%p501_p9), %s1704_s17, 0 }
  0x40   : > { %s2110_s14 = smov (!%p562_p10, %s1434_s14), 35  ;;  %s2112_s25 = smov (!%p573_p11, %s1435_s25), 3 }
  0x41   : > { %s566_s29 = scalar_lea.vmem %s2092_s0, %s2110_s14  ;;  %s577_s15 = scalar_lea.vmem %s2094_s2, %s2112_s25 }
  0x42   : > { %s586_s18 = scalar_lea.vmem %s2095_s3, %s2112_s25  ;;  %s595_s10 = scalar_lea.vmem %s2096_s4, %s2112_s25 }
  0x43   : > { %601 = sbr.rel (%p1438_p12) target bundleno = 74 (0x4a), region = 70 }
  0x48   : > { %v1722_v0 = vmov 0.0  }
  0x49   : > { %602 = vst [vmem:[#allocation2] sm:$0xf] %v1722_v0 }
  0x4a PF: > { %v1570_v1 = vld [vmem:[%s1967_s11 + $0x74] ss:$8 sps:$4 sm:$0xff]   ;;  %v1574_v3 = vld [vmem:[%s1967_s11 + $0x70] ss:$8 sps:$4 sm:$0xff]   ;;  %v1576_v5 = vld [vmem:[%s1967_s11 + $0x64] ss:$8 sps:$4 sm:$0xff]   ;;  %v681_v41 = vlaneseq }
  0x4b   : > { %v1572_v2 = vld [vmem:[%s1967_s11 + $0x174] ss:$8 sps:$4 sm:$0xff]   ;;  %1018 = vmatprep.subr.bf16.mxu0 %v1570_v1  ;;  %v1575_v4 = vld [vmem:[%s1967_s11 + $0x170] ss:$8 sps:$4 sm:$0xff]   ;;  %v1578_v6 = vld [vmem:[%s1967_s11 + $0x164] ss:$8 sps:$4 sm:$0xff]  }
  0x4c   : > { %1059 = vmatprep.subr.bf16.mxu1 %v1572_v2  ;;  %1019 = vmatpush1.bf16.msra.mxu0 %v1574_v3  ;;  %v1580_v7 = vld [vmem:[%s1967_s11 + $0x60] ss:$8 sps:$4 sm:$0xff]   ;;  %v1582_v9 = vld [vmem:[%s1967_s11 + $0x54] ss:$8 sps:$4 sm:$0xff]   ;;  %v1586_v11 = vld [vmem:[%s1967_s11 + $0x50] ss:$8 sps:$4 sm:$0xff]  }
  0x4d   : > { %1060 = vmatpush1.bf16.msra.mxu1 %v1575_v4  ;;  %1020 = vmatprep.subr.bf16.mxu0 %v1576_v5  ;;  %v1581_v8 = vld [vmem:[%s1967_s11 + $0x160] ss:$8 sps:$4 sm:$0xff]   ;;  %v1584_v10 = vld [vmem:[%s1967_s11 + $0x154] ss:$8 sps:$4 sm:$0xff]   ;;  %v1587_v12 = vld [vmem:[%s1967_s11 + $0x150] ss:$8 sps:$4 sm:$0xff]  }
  0x4e   : > { %1061 = vmatprep.subr.bf16.mxu1 %v1578_v6  ;;  %v1588_v13 = vld [vmem:[%s1967_s11 + $0x44] ss:$8 sps:$4 sm:$0xff]   ;;  %v1592_v15 = vld [vmem:[%s1967_s11 + $0x40] ss:$8 sps:$4 sm:$0xff]   ;;  %v1594_v17 = vld [vmem:[%s1967_s11 + $0x34] ss:$8 sps:$4 sm:$0xff]  }
  0x4f   : > { %v1590_v14 = vld [vmem:[%s1967_s11 + $0x144] ss:$8 sps:$4 sm:$0xff]   ;;  %v1593_v16 = vld [vmem:[%s1967_s11 + $0x140] ss:$8 sps:$4 sm:$0xff]   ;;  %v1596_v18 = vld [vmem:[%s1967_s11 + $0x134] ss:$8 sps:$4 sm:$0xff]  }
  0x50   : > { %1021 = vmatpush1.bf16.msra.mxu0 %v1580_v7  ;;  %v1598_v19 = vld [vmem:[%s1967_s11 + $0x30] ss:$8 sps:$4 sm:$0xff]   ;;  %v1600_v21 = vld [vmem:[%s1967_s11 + $0x24] ss:$8 sps:$4 sm:$0xff]   ;;  %v1604_v23 = vld [vmem:[%s1967_s11 + $0x20] ss:$8 sps:$4 sm:$0xff]  }
  0x51   : > { %1062 = vmatpush1.bf16.msra.mxu1 %v1581_v8  ;;  %1022 = vmatprep.subr.bf16.mxu0 %v1582_v9  ;;  %v1599_v20 = vld [vmem:[%s1967_s11 + $0x130] ss:$8 sps:$4 sm:$0xff]   ;;  %v1602_v22 = vld [vmem:[%s1967_s11 + $0x124] ss:$8 sps:$4 sm:$0xff]   ;;  %v1605_v24 = vld [vmem:[%s1967_s11 + $0x120] ss:$8 sps:$4 sm:$0xff]  }
  0x52   : > { %1063 = vmatprep.subr.bf16.mxu1 %v1584_v10  ;;  %v1606_v25 = vld [vmem:[%s1967_s11 + $0x14] ss:$8 sps:$4 sm:$0xff]   ;;  %v1610_v27 = vld [vmem:[%s1967_s11 + $0x10] ss:$8 sps:$4 sm:$0xff]   ;;  %v1612_v29 = vld [vmem:[%s1967_s11 + $0x4] ss:$8 sps:$4 sm:$0xff]  }
  0x53   : > { %v1608_v26 = vld [vmem:[%s1967_s11 + $0x114] ss:$8 sps:$4 sm:$0xff]   ;;  %v1611_v28 = vld [vmem:[%s1967_s11 + $0x110] ss:$8 sps:$4 sm:$0xff]   ;;  %v1614_v30 = vld [vmem:[%s1967_s11 + $0x104] ss:$8 sps:$4 sm:$0xff]  }
  0x54   : > { %1023 = vmatpush1.bf16.msra.mxu0 %v1586_v11  ;;  %v1616_v31 = vld [vmem:[%s1967_s11] ss:$8 sps:$4 sm:$0xff]   ;;  %v1618_v33 = vld [vmem:[%s1967_s11 + $0xf4] ss:$8 sps:$4 sm:$0xff]   ;;  %v1622_v35 = vld [vmem:[%s1967_s11 + $0xf0] ss:$8 sps:$4 sm:$0xff]  }
  0x55   : > { %1064 = vmatpush1.bf16.msra.mxu1 %v1587_v12  ;;  %1024 = vmatprep.subr.bf16.mxu0 %v1588_v13  ;;  %v1617_v32 = vld [vmem:[%s1967_s11 + $0x100] ss:$8 sps:$4 sm:$0xff]   ;;  %v1620_v34 = vld [vmem:[%s1967_s11 + $0x1f4] ss:$8 sps:$4 sm:$0xff]   ;;  %v1623_v36 = vld [vmem:[%s1967_s11 + $0x1f0] ss:$8 sps:$4 sm:$0xff]  }
  0x56   : > { %1065 = vmatprep.subr.bf16.mxu1 %v1590_v14  ;;  %v1624_v37 = vld [vmem:[%s1967_s11 + $0xe4] ss:$8 sps:$4 sm:$0xff]   ;;  %v1723_v39 = vmov 1966171168   ;;  %v1628_v42 = vld [vmem:[%s1967_s11 + $0xe0] ss:$8 sps:$4 sm:$0xff]  }
  0x57   : > { %v1626_v38 = vld [vmem:[%s1967_s11 + $0x1e4] ss:$8 sps:$4 sm:$0xff]   ;;  %v679_v40 = vunpack.c.l.s4 %v1723_v39  ;;  %v1629_v43 = vld [vmem:[%s1967_s11 + $0x1e0] ss:$8 sps:$4 sm:$0xff]   ;;  %v1630_v44 = vld [vmem:[%s1967_s11 + $0xd4] ss:$8 sps:$4 sm:$0xff]  }
  0x58   : > { %1025 = vmatpush1.bf16.msra.mxu0 %v1592_v15  ;;  %v1632_v45 = vld [vmem:[%s1967_s11 + $0x1d4] ss:$8 sps:$4 sm:$0xff]   ;;  %v2013_v47 = vshrl.u32 %v681_v41, 7  ;;  %v1634_v48 = vld [vmem:[%s1967_s11 + $0xd0] ss:$8 sps:$4 sm:$0xff]   ;;  %p1504_p13 = scmp.ne.s32.totalorder %s1704_s17, 8 }
  0x59   : > { %1066 = vmatpush1.bf16.msra.mxu1 %v1593_v16  ;;  %1026 = vmatprep.subr.bf16.mxu0 %v1594_v17  ;;  %v680_v46 = vunpack.c.0.s8 %v679_v40  ;;  %v1635_v49 = vld [vmem:[%s1967_s11 + $0x1d0] ss:$8 sps:$4 sm:$0xff]   ;;  %v1636_v50 = vld [vmem:[%s1967_s11 + $0xc4] ss:$8 sps:$4 sm:$0xff]   ;;  %v1640_v54 = vld [vmem:[%s1967_s11 + $0xc0] ss:$8 sps:$4 sm:$0xff]  }
  0x5a   : > { %1067 = vmatprep.subr.bf16.mxu1 %v1596_v18  ;;  %v1638_v51 = vld [vmem:[%s1967_s11 + $0x1c4] ss:$8 sps:$4 sm:$0xff]   ;;  %v1439_v53 = vld.sshfl [vmem:[%s566_s29] sm:$0x33 pattern:$0x75316420] }
  0x5b   : > { %v2020_v52 = vsub.s32 %v680_v46, %v2013_v47  ;;  %v1641_v55 = vld [vmem:[%s1967_s11 + $0x1c0] ss:$8 sps:$4 sm:$0xff]   ;;  %v677_v56 = vcombine.high %v1439_v53, %v1439_v53  ;;  %v1642_v57 = vld [vmem:[%s1967_s11 + $0xb4] ss:$8 sps:$4 sm:$0xff]   ;;  %v1646_v60 = vld [vmem:[%s1967_s11 + $0xb0] ss:$8 sps:$4 sm:$0xff]  }
  0x5c   : > { %1027 = vmatpush1.bf16.msra.mxu0 %v1598_v19  ;;  %v1644_v58 = vld [vmem:[%s1967_s11 + $0x1b4] ss:$8 sps:$4 sm:$0xff]   ;;  %v1647_v61 = vld [vmem:[%s1967_s11 + $0x1b0] ss:$8 sps:$4 sm:$0xff]   ;;  %v1648_v63 = vld [vmem:[%s1967_s11 + $0xa4] ss:$8 sps:$4 sm:$0xff]  }
  0x5d   : > { %1068 = vmatpush1.bf16.msra.mxu1 %v1599_v20  ;;  %1028 = vmatprep.subr.bf16.mxu0 %v1600_v21  ;;  %v691_v59 = vrot.slane %v677_v56, %v2020_v52  ;;  %v1650_v0 = vld [vmem:[%s1967_s11 + $0x1a4] ss:$8 sps:$4 sm:$0xff]   ;;  %v1652_v1 = vld [vmem:[%s1967_s11 + $0xa0] ss:$8 sps:$4 sm:$0xff]   ;;  %v1654_v3 = vld [vmem:[%s1967_s11 + $0x94] ss:$8 sps:$4 sm:$0xff]   ;;  %v684_v9 = vrot.slane %v1439_v53, %v2020_v52 }
  0x5e   : > { %1069 = vmatprep.subr.bf16.mxu1 %v1602_v22  ;;  %v1653_v2 = vld [vmem:[%s1967_s11 + $0x1a0] ss:$8 sps:$4 sm:$0xff]   ;;  %v1656_v4 = vld [vmem:[%s1967_s11 + $0x194] ss:$8 sps:$4 sm:$0xff]   ;;  %v1658_v5 = vld [vmem:[%s1967_s11 + $0x90] ss:$8 sps:$4 sm:$0xff]  }
  0x5f   : > { %v693_v62 = vcombine.high %v691_v59, %v691_v59  ;;  %1050 = vmatprep.mubr.bf16.mxu0 %v691_v59  ;;  %v1659_v6 = vld [vmem:[%s1967_s11 + $0x190] ss:$8 sps:$4 sm:$0xff]   ;;  %v1660_v7 = vld [vmem:[%s1967_s11 + $0x84] ss:$8 sps:$4 sm:$0xff]   ;;  %v1664_v10 = vld [vmem:[%s1967_s11 + $0x80] ss:$8 sps:$4 sm:$0xff]   ;;  %v692_v12 = vcombine.high %v684_v9, %v684_v9 }
  0x60   : > { %1029 = vmatpush1.bf16.msra.mxu0 %v1604_v23  ;;  %v1662_v8 = vld [vmem:[%s1967_s11 + $0x184] ss:$8 sps:$4 sm:$0xff]   ;;  %v1665_v11 = vld [vmem:[%s1967_s11 + $0x180] ss:$8 sps:$4 sm:$0xff]   ;;  %v1724_v13 = vmov 1983009808  }
  0x61   : > { %1070 = vmatpush1.bf16.msra.mxu1 %v1605_v24  ;;  %1030 = vmatprep.subr.bf16.mxu0 %v1606_v25  ;;  %v1104_v14 = vunpack.c.l.s4 %v1724_v13 }
  0x62   : > { %1071 = vmatprep.subr.bf16.mxu1 %v1608_v26  ;;  %1091 = vmatprep.mubr.bf16.mxu1 %v693_v62  ;;  %v603_v26 = vld [vmem:[#allocation2] sm:$0xf] }
  0x63   : > { %v1105_v15 = vunpack.c.0.s8 %v1104_v14 }
  0x64   : > { %1031 = vmatpush1.bf16.msra.mxu0 %v1610_v27 }
  0x65   : > { %1072 = vmatpush1.bf16.msra.mxu1 %v1611_v28  ;;  %1032 = vmatprep.subr.bf16.mxu0 %v1612_v29  ;;  %v1108_v22 = vsub.s32 %v1105_v15, %v2013_v47 }
  0x66   : > { %1073 = vmatprep.subr.bf16.mxu1 %v1614_v30 }
  0x68   : > { %1033 = vmatpush1.bf16.msra.mxu0 %v1616_v31 }
  0x69   : > { %1074 = vmatpush1.bf16.msra.mxu1 %v1617_v32  ;;  %1034 = vmatprep.subr.bf16.mxu0 %v1618_v33 }
  0x6a   : > { %1075 = vmatprep.subr.bf16.mxu1 %v1620_v34 }
  0x6c   : > { %1035 = vmatpush2.bf16.msra.mxu0 %v1622_v35 }
  0x6d   : > { %1076 = vmatpush2.bf16.msra.mxu1 %v1623_v36  ;;  %1036 = vmatprep.subr.bf16.mxu0 %v1624_v37 }
  0x6e   : > { %1077 = vmatprep.subr.bf16.mxu1 %v1626_v38 }
  0x70   : > { %1037 = vmatpush2.bf16.msra.mxu0 %v1628_v42 }
  0x71   : > { %1078 = vmatpush2.bf16.msra.mxu1 %v1629_v43  ;;  %1038 = vmatprep.subr.bf16.mxu0 %v1630_v44 }
  0x72   : > { %1079 = vmatprep.subr.bf16.mxu1 %v1632_v45 }
  0x74   : > { %1039 = vmatpush2.bf16.msra.mxu0 %v1634_v48 }
  0x75   : > { %1080 = vmatpush2.bf16.msra.mxu1 %v1635_v49  ;;  %1040 = vmatprep.subr.bf16.mxu0 %v1636_v50 }
  0x76   : > { %1081 = vmatprep.subr.bf16.mxu1 %v1638_v51 }
  0x78   : > { %1041 = vmatpush2.bf16.msra.mxu0 %v1640_v54 }
  0x79   : > { %1082 = vmatpush2.bf16.msra.mxu1 %v1641_v55  ;;  %1042 = vmatprep.subr.bf16.mxu0 %v1642_v57 }
  0x7a   : > { %1083 = vmatprep.subr.bf16.mxu1 %v1644_v58 }
  0x7c   : > { %1043 = vmatpush2.bf16.msra.mxu0 %v1646_v60 }
  0x7d   : > { %1084 = vmatpush2.bf16.msra.mxu1 %v1647_v61  ;;  %1044 = vmatprep.subr.bf16.mxu0 %v1648_v63 }
  0x7e   : > { %1085 = vmatprep.subr.bf16.mxu1 %v1650_v0 }
  0x80   : > { %1045 = vmatpush2.bf16.msra.mxu0 %v1652_v1 }
  0x81   : > { %1086 = vmatpush2.bf16.msra.mxu1 %v1653_v2  ;;  %1046 = vmatprep.subr.bf16.mxu0 %v1654_v3 }
  0x82   : > { %1087 = vmatprep.subr.bf16.mxu1 %v1656_v4 }
  0x84   : > { %1047 = vmatpush2.bf16.msra.mxu0 %v1658_v5 }
  0x85   : > { %1088 = vmatpush2.bf16.msra.mxu1 %v1659_v6  ;;  %1048 = vmatprep.subr.bf16.mxu0 %v1660_v7 }
  0x86   : > { %1089 = vmatprep.subr.bf16.mxu1 %v1662_v8 }
  0x88   : > { %1049 = vmatpush2.bf16.msra.mxu0 %v1664_v10 }
  0x89   : > { %1090 = vmatpush2.bf16.msra.mxu1 %v1665_v11 }
  0x8b   : > { %1051 = vmatmul.mubr.bf16.vlgmr.msra.gmra.mxu0 %v684_v9 }
  0x8c   : > { %1092 = vmatmul.mubr.bf16.vlgmr.msra.gmra.mxu1 %v692_v12 }
 0x14b   : > { %v1052_v16 = vpop.f32.mrf.mxu0 }
 0x14c   : > { %v1093_v17 = vpop.f32.mrf.mxu1 }
 0x14d   : > { %v1054_v18 = vpop.f32.mrf.mxu0  ;;  %v1094_v20 = vadd.f32 %v1093_v17, %v1052_v16 }
 0x14e   : > { %v1095_v19 = vpop.f32.mrf.mxu1 }
 0x14f   : > { %v1096_v21 = vadd.f32 %v1095_v19, %v1054_v18  ;;  %v1056_v23 = vpop.f32.mrf.mxu0 }
 0x150   : > { %v1097_v24 = vpop.f32.mrf.mxu1 }
 0x151   : > { %v1102_v25 = vcombine.low %v1094_v20, %v1096_v21  ;;  %v1057_v27 = vpop.f32.mrf.mxu0 }
 0x152   : > { %v1098_v28 = vpop.f32.mrf.mxu1 }
 0x153   : > { %v1109_v29 = vrot.slane %v1102_v25, %v1108_v22  ;;  %1116 = sbr.rel (%p1504_p13) target bundleno = 376 (0x178), region = 74 }
 0x155   : > { %v1111_v30 = vadd.f32 %v1109_v29, %v603_v26 }
 0x157   : > { %1112 = vst [vmem:[#allocation2] sm:$0xf] %v1111_v30 }
 0x158   : > { %vm1154_vm0 = vcmp.lt.s32.totalorder %v2013_v47, 2  ;;  %vm1157_vm1 = vcmask 1041408   ;;  %vm1192_vm2 = vcmp.lt.s32.totalorder %v681_v41, 256 }
 0x15e   : > { %v1505_v31 = vld.sshfl [vmem:[#allocation2] sm:$0x33 pattern:$0x76325410] }
 0x15f   : > { %v1126_v32 = vcombine.high %v1505_v31, %v1505_v31  ;;  %v1155_v33 = vsel %vm1154_vm0, %v1505_v31, 0.0 }
 0x160   : > { %v1158_v34 = vsel %vm1157_vm1, %v1155_v33, 0.0  ;;  %v1195_v35 = vmul.f32 %v1155_v33, %v1155_v33 }
 0x161   : > { %v1506_v36 = vpack.c.bf16 %v1126_v32, %v1505_v31  ;;  %v1156_v37 = vsel %vm1154_vm0, %v1126_v32, 0.0  ;;  %v1159_v38 = vrot.slane %v1158_v34, 4 }
 0x162   : > { %v1165_v39 = vsel %vm1157_vm1, %v1156_v37, 0.0  ;;  %v1196_v40 = vmul.f32 %v1156_v37, %v1156_v37  ;;  %v1197_v42 = vsel %vm1157_vm1, %v1195_v35, 0.0 }
 0x163   : > { %v1140_v43 = vrot.slane %v1506_v36, %v2020_v52  ;;  %v1160_v44 = vadd.f32 %v1159_v38, %v1158_v34  ;;  %v1166_v45 = vrot.slane %v1165_v39, 4  ;;  %v1198_v46 = vrot.slane %v1197_v42, 4 }
 0x164   : > { %v1204_v48 = vsel %vm1157_vm1, %v1196_v40, 0.0 }
 0x165   : > { %1507 = vst.sshfl [vmem:[%s577_s15] sm:$0x5 pattern:$0x73625140] %v1140_v43  ;;  %v1167_v47 = vadd.f32 %v1166_v45, %v1165_v39  ;;  %v1205_v49 = vrot.slane %v1204_v48, 4  ;;  %v1161_v50 = vrot.slane %v1160_v44, 2  ;;  %v1199_v51 = vadd.f32 %v1198_v46, %v1197_v42 }
 0x167   : > { %v1162_v53 = vadd.f32 %v1161_v50, %v1160_v44  ;;  %v1168_v54 = vrot.slane %v1167_v47, 2  ;;  %v1200_v55 = vrot.slane %v1199_v51, 2  ;;  %v1206_v56 = vadd.f32 %v1205_v49, %v1204_v48 }
 0x169   : > { %v1163_v57 = vrot.slane %v1162_v53, 1  ;;  %v1169_v58 = vadd.f32 %v1168_v54, %v1167_v47  ;;  %v1201_v59 = vadd.f32 %v1200_v55, %v1199_v51  ;;  %v1207_v60 = vrot.slane %v1206_v56, 2 }
 0x16b   : > { %v1164_v61 = vadd.f32 %v1163_v57, %v1162_v53  ;;  %v1170_v62 = vrot.slane %v1169_v58, 1  ;;  %v1202_v63 = vrot.slane %v1201_v59, 1  ;;  %v1208_v0 = vadd.f32 %v1207_v60, %v1206_v56 }
 0x16d   : > { %v1171_v1 = vadd.f32 %v1170_v62, %v1169_v58  ;;  %v1203_v2 = vadd.f32 %v1202_v63, %v1201_v59  ;;  %v1209_v3 = vrot.slane %v1208_v0, 1 }
 0x16f   : > { %v1174_v4 = vcombine.low %v1164_v61, %v1171_v1  ;;  %v1210_v5 = vadd.f32 %v1209_v3, %v1208_v0 }
 0x171   : > { %v1181_v6 = vrot.slane %v1174_v4, %v2020_v52  ;;  %v1213_v7 = vcombine.low %v1203_v2, %v1210_v5 }
 0x173   : > { %v1188_v8 = vrot.slane %v1181_v6, %v2020_v52  ;;  %v1220_v9 = vrot.slane %v1213_v7, %v2020_v52 }
 0x175   : > { %1194 = vst.msk [vmem:[%s586_s18] sm:$0x3] %vm1192_vm2, %v1188_v8  ;;  %v1227_v10 = vrot.slane %v1220_v9, %v2020_v52 }
 0x177   : > { %1229 = vst.msk [vmem:[%s595_s10] sm:$0x3] %vm1192_vm2, %v1227_v10 }
 0x178 PF: > { %s15_s21 = sadd.s32 1, %s1720_s21   ;;  %s2097_s15 = smov %s1700_s16 }
 0x179   : > { %p12_p0 = scmp.ge.s32.totalorder %s15_s21, 20   ;;  %s2098_s16 = smov %s1801_s28 }
 0x17a   : > { %s2099_s17 = smov %s1712_s19  ;;  %s2100_s18 = smov %s1716_s20 }
 0x17b   : > { %s2101_s19 = smov %s2104_s22  ;;  %s2102_s20 = smov %s2108_s23 }
 0x17c   :  { %14 = sbr.rel (!%p12_p0) target bundleno = 4 (0x4), region = 136 }

// kernel: resnet18_forward.80
= control target key start
LH: loop header
LB: loop body
LE: loop exit
PB: predicated region body
PF: predicated region fallthrough
CT: control target
= control target key end

     0   :  { %v21_v0 = vlaneseq  ;;  %v162_v1 = vmov 1983009808   ;;  %v163_v36 = vmov 1966171168   ;;  %s204_s1 = inlined_call_operand.vmem [shape: f32[1,512], index: 1, kind: input, shape index: {}]   ;;  %s205_s2 = inlined_call_operand.vmem [shape: f32[1,512], index: 2, kind: input, shape index: {}]   ;;  %s206_s0 = inlined_call_operand.vmem [shape: bf16[2,512], index: 0, kind: input, shape index: {}]   ;;  %s207_s3 = inlined_call_operand.vmem [shape: bf16[2,512], index: 3, kind: input, shape index: {}]   ;;  %s208_s4 = inlined_call_operand.vmem [shape: bf16[2,512], index: 4, kind: output, shape index: {}]  }
   0x1   :  { %v40_v2 = vunpack.c.l.s4 %v162_v1  ;;  %v19_v4 = vld [vmem:[%s204_s1] sm:$0xf]  ;;  %v130_v37 = vunpack.c.l.s4 %v163_v36 }
   0x2   :  { %v22_v3 = vshrl.u32 %v21_v0, 7  ;;  %v56_v10 = vld [vmem:[%s205_s2] sm:$0xf] }
   0x3   :  { %v41_v5 = vunpack.c.0.s8 %v40_v2  ;;  %v17_v16 = vld [vmem:[%s206_s0] sm:$0xf]  ;;  %v131_v40 = vunpack.c.0.s8 %v130_v37 }
   0x4   :  { %v23_v6 = vsub.s32 0, %v22_v3  ;;  %v27_v7 = vsub.s32 1, %v22_v3  ;;  %v31_v8 = vsub.s32 2, %v22_v3  ;;  %v35_v9 = vsub.s32 3, %v22_v3  ;;  %v93_v30 = vld [vmem:[%s207_s3] sm:$0xf] }
   0x5   :  { %v44_v11 = vsub.s32 %v41_v5, %v22_v3  ;;  %v18_v25 = vunpack.c.l.bf16 %v17_v16  ;;  %v94_v34 = vunpack.c.l.bf16 %v93_v30  ;;  %v134_v45 = vsub.s32 %v131_v40, %v22_v3 }
   0x6   :  { %v24_v12 = vrot.slane %v19_v4, %v23_v6  ;;  %v28_v13 = vrot.slane %v19_v4, %v27_v7  ;;  %v32_v14 = vrot.slane %v19_v4, %v31_v8  ;;  %v36_v15 = vrot.slane %v19_v4, %v35_v9 }
   0x7   :  { %v61_v17 = vrot.slane %v56_v10, %v23_v6  ;;  %v65_v18 = vrot.slane %v56_v10, %v27_v7  ;;  %v69_v19 = vrot.slane %v56_v10, %v31_v8  ;;  %v73_v20 = vrot.slane %v56_v10, %v35_v9 }
   0x8   :  { %v37_v21 = vcombine.low %v24_v12, %v28_v13  ;;  %v38_v22 = vcombine.low %v32_v14, %v36_v15 }
   0x9   :  { %v74_v23 = vcombine.low %v61_v17, %v65_v18  ;;  %v75_v24 = vcombine.low %v69_v19, %v73_v20 }
   0xa   :  { %v45_v26 = vrot.slane %v37_v21, %v44_v11  ;;  %v52_v27 = vrot.slane %v38_v22, %v44_v11 }
   0xb   :  { %v82_v28 = vrot.slane %v74_v23, %v44_v11  ;;  %v89_v29 = vrot.slane %v75_v24, %v44_v11 }
   0xc   :  { %v53_v31 = vcombine.low %v45_v26, %v52_v27 }
   0xd   :  { %v90_v32 = vcombine.low %v82_v28, %v89_v29 }
   0xe   :  { %v55_v33 = vmul.f32 %v53_v31, %v18_v25 }
  0x10   :  { %v92_v35 = vadd.f32 %v90_v32, %v55_v33 }
  0x12   :  { %v95_v38 = vadd.f32 %v94_v34, %v92_v35 }
  0x14   :  { %v96_v39 = vmax.f32 %v95_v38, 0.0 }
  0x16   :  { %v98_v41 = vcombine.high %v96_v39, %v96_v39  ;;  %v105_v42 = vrot.slane %v96_v39, %v44_v11 }
  0x18   :  { %v112_v43 = vrot.slane %v98_v41, %v44_v11  ;;  %v113_v44 = vcombine.high %v105_v42, %v105_v42 }
  0x1a   :  { %v114_v46 = vcombine.high %v112_v43, %v112_v43  ;;  %v157_v47 = vpack.c.bf16 %v113_v44, %v105_v42 }
  0x1c   :  { %v158_v48 = vpack.c.bf16 %v114_v46, %v112_v43  ;;  %v135_v49 = vrot.slane %v157_v47, %v134_v45 }
  0x1e   :  { %v142_v50 = vrot.slane %v158_v48, %v134_v45 }
  0x20   :  { %v143_v51 = vcombine.low %v135_v49, %v142_v50 }
  0x22   :  { %159 = vst.sshfl [vmem:[%s208_s4] sm:$0x55 pattern:$0x73625140] %v143_v51 }

// kernel: resnet18_forward.84
= control target key start
LH: loop header
LB: loop body
LE: loop exit
PB: predicated region body
PF: predicated region fallthrough
CT: control target
= control target key end

     0   :  { %vm21_vm0 = vcmask 1041409   ;;  %vm23_vm1 = vcmask 1043459   ;;  %vm25_vm2 = vcmask 1045509   ;;  %vm27_vm3 = vcmask 1047559   ;;  %s55_s0 = inlined_call_operand.vmem [shape: bf16[2,1,512], index: 0, kind: input, shape index: {}]   ;;  %s56_s1 = inlined_call_operand.vmem [shape: f32[2,512], index: 1, kind: output, shape index: {}]  }
   0x1   :  { %v36_v0 = vld [vmem:[%s55_s0] sm:$0xff]  }
   0x2   :  { %v37_v1 = vunpack.c.l.bf16 %v36_v0  ;;  %v38_v2 = vunpack.c.h.bf16 %v36_v0 }
   0x4   :  { %v20_v3 = vrot.slane %v38_v2, 7 }
   0x6   :  { %v22_v4 = vsel %vm21_vm0, %v20_v3, %v37_v1 }
   0x7   :  { %v24_v5 = vsel %vm23_vm1, %v20_v3, %v22_v4 }
   0x8   :  { %v26_v6 = vsel %vm25_vm2, %v20_v3, %v24_v5 }
   0x9   :  { %v28_v7 = vsel %vm27_vm3, %v20_v3, %v26_v6 }
   0xa   :  { %30 = vst [vmem:[%s56_s1] sm:$0xff] %v28_v7 }

// kernel: resnet18_forward.85
= control target key start
LH: loop header
LB: loop body
LE: loop exit
PB: predicated region body
PF: predicated region fallthrough
CT: control target
= control target key end

     0   :  { %v361_v30 = vmov 1983009808   ;;  %v92_v32 = vlaneseq  ;;  %s584_s0 = inlined_call_operand.vmem [shape: f32[2,512], index: 0, kind: input, shape index: {}]   ;;  %s585_s1 = inlined_call_operand.vmem [shape: f32[512,10], index: 1, kind: input, shape index: {}]   ;;  %s586_s2 = inlined_call_operand.vmem [shape: f32[1,10], index: 2, kind: input, shape index: {}]   ;;  %s587_s3 = inlined_call_operand.hbm [shape: f32[2,10], index: 3, kind: output, shape index: {}]  }
   0x1   :  { %v47_v0 = vld [vmem:[%s585_s1 + $0xf8] sm:$0xff]  ;;  %v46_v4 = vld [vmem:[%s585_s1 + $0xf0] sm:$0xff]  ;;  %v45_v8 = vld [vmem:[%s585_s1 + $0xe8] sm:$0xff]  ;;  %v90_v31 = vunpack.c.l.s4 %v361_v30 }
   0x2   :  { %v79_v1 = vld [vmem:[%s585_s1 + $0x1f8] sm:$0xff]  ;;  %266 = vmatprep.subr.mxu0 %v47_v0  ;;  %v78_v5 = vld [vmem:[%s585_s1 + $0x1f0] sm:$0xff]  ;;  %v77_v9 = vld [vmem:[%s585_s1 + $0x1e8] sm:$0xff]  ;;  %v93_v42 = vshrl.u32 %v92_v32, 7 }
   0x3   :  { %v31_v2 = vld [vmem:[%s585_s1 + $0x78] sm:$0xff]  ;;  %301 = vmatprep.subr.mxu1 %v79_v1  ;;  %v30_v6 = vld [vmem:[%s585_s1 + $0x70] sm:$0xff]  ;;  %v29_v10 = vld [vmem:[%s585_s1 + $0x68] sm:$0xff]  ;;  %v91_v41 = vunpack.c.0.s8 %v90_v31 }
   0x4   :  { %v63_v3 = vld [vmem:[%s585_s1 + $0x178] sm:$0xff]  ;;  %267 = vmatpush3.msra.mxu0 %v31_v2  ;;  %v62_v7 = vld [vmem:[%s585_s1 + $0x170] sm:$0xff]  ;;  %v61_v11 = vld [vmem:[%s585_s1 + $0x168] sm:$0xff] }
   0x5   :  { %302 = vmatpush3.msra.mxu1 %v63_v3  ;;  %268 = vmatprep.subr.mxu0 %v46_v4  ;;  %v44_v12 = vld [vmem:[%s585_s1 + $0xe0] sm:$0xff]  ;;  %v43_v16 = vld [vmem:[%s585_s1 + $0xd8] sm:$0xff]  ;;  %v42_v20 = vld [vmem:[%s585_s1 + $0xd0] sm:$0xff]  ;;  %v94_v52 = vsub.s32 %v91_v41, %v93_v42 }
   0x6   :  { %303 = vmatprep.subr.mxu1 %v78_v5  ;;  %269 = vmatpush3.msra.mxu0 %v30_v6  ;;  %v76_v13 = vld [vmem:[%s585_s1 + $0x1e0] sm:$0xff]  ;;  %v75_v17 = vld [vmem:[%s585_s1 + $0x1d8] sm:$0xff]  ;;  %v74_v21 = vld [vmem:[%s585_s1 + $0x1d0] sm:$0xff] }
   0x7   :  { %304 = vmatpush3.msra.mxu1 %v62_v7  ;;  %270 = vmatprep.subr.mxu0 %v45_v8  ;;  %v28_v14 = vld [vmem:[%s585_s1 + $0x60] sm:$0xff]  ;;  %v27_v18 = vld [vmem:[%s585_s1 + $0x58] sm:$0xff]  ;;  %v26_v22 = vld [vmem:[%s585_s1 + $0x50] sm:$0xff] }
   0x8   :  { %305 = vmatprep.subr.mxu1 %v77_v9  ;;  %v60_v15 = vld [vmem:[%s585_s1 + $0x160] sm:$0xff]  ;;  %271 = vmatpush3.msra.mxu0 %v29_v10  ;;  %v59_v19 = vld [vmem:[%s585_s1 + $0x158] sm:$0xff]  ;;  %v58_v23 = vld [vmem:[%s585_s1 + $0x150] sm:$0xff] }
   0x9   :  { %306 = vmatpush3.msra.mxu1 %v61_v11  ;;  %272 = vmatprep.subr.mxu0 %v44_v12  ;;  %v41_v24 = vld [vmem:[%s585_s1 + $0xc8] sm:$0xff]  ;;  %v40_v28 = vld [vmem:[%s585_s1 + $0xc0] sm:$0xff]  ;;  %v39_v35 = vld [vmem:[%s585_s1 + $0xb8] sm:$0xff] }
   0xa   :  { %307 = vmatprep.subr.mxu1 %v76_v13  ;;  %273 = vmatpush3.msra.mxu0 %v28_v14  ;;  %v73_v25 = vld [vmem:[%s585_s1 + $0x1c8] sm:$0xff]  ;;  %v72_v29 = vld [vmem:[%s585_s1 + $0x1c0] sm:$0xff]  ;;  %v71_v36 = vld [vmem:[%s585_s1 + $0x1b8] sm:$0xff] }
   0xb   :  { %308 = vmatpush3.msra.mxu1 %v60_v15  ;;  %274 = vmatprep.subr.mxu0 %v43_v16  ;;  %v25_v26 = vld [vmem:[%s585_s1 + $0x48] sm:$0xff]  ;;  %v24_v33 = vld [vmem:[%s585_s1 + $0x40] sm:$0xff]  ;;  %v23_v37 = vld [vmem:[%s585_s1 + $0x38] sm:$0xff] }
   0xc   :  { %309 = vmatprep.subr.mxu1 %v75_v17  ;;  %275 = vmatpush3.msra.mxu0 %v27_v18  ;;  %v57_v27 = vld [vmem:[%s585_s1 + $0x148] sm:$0xff]  ;;  %v56_v34 = vld [vmem:[%s585_s1 + $0x140] sm:$0xff]  ;;  %v55_v38 = vld [vmem:[%s585_s1 + $0x138] sm:$0xff] }
   0xd   :  { %310 = vmatpush3.msra.mxu1 %v59_v19  ;;  %276 = vmatprep.subr.mxu0 %v42_v20  ;;  %v38_v39 = vld [vmem:[%s585_s1 + $0xb0] sm:$0xff]  ;;  %v37_v45 = vld [vmem:[%s585_s1 + $0xa8] sm:$0xff]  ;;  %v36_v49 = vld [vmem:[%s585_s1 + $0xa0] sm:$0xff] }
   0xe   :  { %311 = vmatprep.subr.mxu1 %v74_v21  ;;  %277 = vmatpush3.msra.mxu0 %v26_v22  ;;  %v70_v40 = vld [vmem:[%s585_s1 + $0x1b0] sm:$0xff]  ;;  %v69_v46 = vld [vmem:[%s585_s1 + $0x1a8] sm:$0xff]  ;;  %v68_v50 = vld [vmem:[%s585_s1 + $0x1a0] sm:$0xff] }
   0xf   :  { %312 = vmatpush3.msra.mxu1 %v58_v23  ;;  %278 = vmatprep.subr.mxu0 %v41_v24  ;;  %v22_v43 = vld [vmem:[%s585_s1 + $0x30] sm:$0xff]  ;;  %v21_v47 = vld [vmem:[%s585_s1 + $0x28] sm:$0xff]  ;;  %v20_v51 = vld [vmem:[%s585_s1 + $0x20] sm:$0xff] }
  0x10   :  { %313 = vmatprep.subr.mxu1 %v73_v25  ;;  %279 = vmatpush3.msra.mxu0 %v25_v26  ;;  %v54_v44 = vld [vmem:[%s585_s1 + $0x130] sm:$0xff]  ;;  %v53_v48 = vld [vmem:[%s585_s1 + $0x128] sm:$0xff]  ;;  %v52_v53 = vld [vmem:[%s585_s1 + $0x120] sm:$0xff] }
  0x11   :  { %314 = vmatpush3.msra.mxu1 %v57_v27  ;;  %280 = vmatprep.subr.mxu0 %v40_v28  ;;  %v15_v54 = vld [vmem:[%s584_s0] sm:$0xff] }
  0x12   :  { %315 = vmatprep.subr.mxu1 %v72_v29  ;;  %281 = vmatpush3.msra.mxu0 %v24_v33 }
  0x13   :  { %316 = vmatpush3.msra.mxu1 %v56_v34  ;;  %282 = vmatprep.subr.mxu0 %v39_v35 }
  0x14   :  { %317 = vmatprep.subr.mxu1 %v71_v36  ;;  %283 = vmatpush3.msra.mxu0 %v23_v37 }
  0x15   :  { %318 = vmatpush3.msra.mxu1 %v55_v38  ;;  %284 = vmatprep.subr.mxu0 %v38_v39 }
  0x16   :  { %319 = vmatprep.subr.mxu1 %v70_v40  ;;  %285 = vmatpush3.msra.mxu0 %v22_v43 }
  0x17   :  { %320 = vmatpush3.msra.mxu1 %v54_v44  ;;  %286 = vmatprep.subr.mxu0 %v37_v45 }
  0x18   :  { %321 = vmatprep.subr.mxu1 %v69_v46 }
  0x19   :  { %8 = vsyncpa [#allocation3], 0  ;;  %287 = vmatpush3.msra.mxu0 %v21_v47  ;;  %322 = vmatpush3.msra.mxu1 %v53_v48  ;;  %v35_v55 = vld [vmem:[%s585_s1 + $0x98] sm:$0xff]  ;;  %v88_v57 = vcombine.high %v15_v54, %v15_v54  ;;  %v34_v60 = vld [vmem:[%s585_s1 + $0x90] sm:$0xff]  ;;  %v95_v62 = vrot.slane %v15_v54, %v94_v52  ;;  %s362_s8 = smov [#allocation2]   ;;  %vm249_vm0 = vcmask 74752  }
  0x1a   :  { %v67_v56 = vld [vmem:[%s585_s1 + $0x198] sm:$0xff]  ;;  %288 = vmatprep.subr.mxu0 %v36_v49  ;;  %323 = vmatprep.subr.mxu1 %v68_v50  ;;  %v66_v61 = vld [vmem:[%s585_s1 + $0x190] sm:$0xff]  ;;  %v33_v2 = vld [vmem:[%s585_s1 + $0x88] sm:$0xff]  ;;  %s257_s0 = sshll.u32 %s362_s8, 4  ;;  %s258_s0 = int_to_ptr.vmem [resolvable:$true] %s257_s0 }
  0x1b   :  { %v19_v58 = vld [vmem:[%s585_s1 + $0x18] sm:$0xff]  ;;  %289 = vmatpush3.msra.mxu0 %v20_v51  ;;  %324 = vmatpush3.msra.mxu1 %v52_v53  ;;  %v18_v63 = vld [vmem:[%s585_s1 + $0x10] sm:$0xff]  ;;  %v102_v1 = vrot.slane %v88_v57, %v94_v52  ;;  %v65_v3 = vld [vmem:[%s585_s1 + $0x188] sm:$0xff]  ;;  %v103_v8 = vcombine.high %v95_v62, %v95_v62  ;;  %p344_p1 = scmp.lt.s32.totalorder %s258_s0, %s258_s0 }
  0x1c   :  { %v51_v59 = vld [vmem:[%s585_s1 + $0x118] sm:$0xff]  ;;  %290 = vmatprep.subr.mxu0 %v35_v55  ;;  %325 = vmatprep.subr.mxu1 %v67_v56  ;;  %v50_v0 = vld [vmem:[%s585_s1 + $0x110] sm:$0xff]  ;;  %v17_v4 = vld [vmem:[%s585_s1 + $0x8] sm:$0xff] }
  0x1d   :  { %291 = vmatpush3.msra.mxu0 %v19_v58  ;;  %326 = vmatpush3.msra.mxu1 %v51_v59  ;;  %v49_v5 = vld [vmem:[%s585_s1 + $0x108] sm:$0xff]  ;;  %v32_v6 = vld [vmem:[%s585_s1 + $0x80] sm:$0xff]  ;;  %v104_v10 = vcombine.high %v102_v1, %v102_v1 }
  0x1e   :  { %292 = vmatprep.subr.mxu0 %v34_v60  ;;  %327 = vmatprep.subr.mxu1 %v66_v61  ;;  %v64_v7 = vld [vmem:[%s585_s1 + $0x180] sm:$0xff] }
  0x1f   :  { %293 = vmatpush3.msra.mxu0 %v18_v63  ;;  %328 = vmatpush3.msra.mxu1 %v50_v0  ;;  %v16_v9 = vld [vmem:[%s585_s1] sm:$0xff] }
  0x20   :  { %294 = vmatprep.subr.mxu0 %v33_v2  ;;  %329 = vmatprep.subr.mxu1 %v65_v3  ;;  %v48_v11 = vld [vmem:[%s585_s1 + $0x100] sm:$0xff]  ;;  %s339_s1 = scalar_lea.vmem %s258_s0, 32 }
  0x21   :  { %295 = vmatpush3.msra.mxu0 %v17_v4  ;;  %330 = vmatpush3.msra.mxu1 %v49_v5  ;;  %v265_v14 = vld [vmem:[%s586_s2] ss:$0 sm:$0xff]  ;;  %p340_p0 = scmp.ne.s32.totalorder %s258_s0, %s339_s1  ;;  %p345_p2 = scmp.lt.s32.totalorder %s339_s1, %s339_s1 }
  0x22   :  { %296 = vmatprep.subr.mxu0 %v32_v6  ;;  %331 = vmatprep.subr.mxu1 %v64_v7 }
  0x23   :  { %297 = vmatpush3.msra.mxu0 %v16_v9  ;;  %173 = vmatprep.mubr.f32.mxu0 %v103_v8  ;;  %p346_p3 = por %p345_p2, %p344_p1 }
  0x24   :  { %332 = vmatpush3.msra.mxu1 %v48_v11  ;;  %243 = vmatprep.mubr.f32.mxu1 %v104_v10 }
  0x25   :  { %174 = vmatmul.mubr.f32.vlgmr.msra.gmra.mxu0 %v95_v62  ;;  %244 = vmatmul.mubr.f32.vlgmr.msra.gmra.mxu1 %v102_v1  ;;  %p347_p4 = pnand %p346_p3, %p340_p0 }
  0xe5   :  { %v298_v12 = vpop.f32.mrf.mxu0  ;;  %v333_v13 = vpop.f32.mrf.mxu1 }
  0xe7   :  { %v299_v15 = vpop.f32.mrf.mxu0  ;;  %v334_v16 = vpop.f32.mrf.mxu1 }
  0xe8   :  { %v300_v17 = vadd.f32 %v299_v15, %v298_v12  ;;  %v335_v19 = vadd.f32 %v334_v16, %v333_v13 }
  0xea   :  { %v176_v18 = vadd.f32 %v300_v17, %v265_v14 }
  0xec   :  { %v246_v20 = vadd.f32 %v335_v19, %v176_v18 }
  0xee   :  { %250 = vst.msk [vmem:[#allocation2] sm:$0x3] %vm249_vm0, %v246_v20 }
  0xef   :  { %350 = shalt.err (!%p347_p4)
}
  0xf0   :  { %260 = dma.vmem_to_hbm [thread:$0]  %s258_s0, 32, %s587_s3, [#allocation3]  }
  0xf1   :  { %359 = dma.done.wait [#allocation3], 32  }
  0xf2   :  { %360 = vsyncadd [#allocation3], 4294967264 }
  0xf3   :  { %264 = vsyncpa [#allocation3], 1 }

</bundles_post_ra>
